<compile_context>
chip_gen: v6e
topology: v6e:2x2x1
jax: 0.10.0
libtpu: 0.0.40
codegen_flags: <defaults>
</compile_context>

<pallas_src>
import functools

import jax
import jax.numpy as jnp
from jax import lax
from jax.experimental import pallas as pl
from jax.experimental.pallas import tpu as pltpu


# ------------------------------ shared math helpers ------------------------------

def _gelu(x):
    # tanh approximation of F.gelu (erf variant); deviation < ~1e-3.
    c = 0.7978845608028654  # sqrt(2/pi)
    return 0.5 * x * (1.0 + jnp.tanh(c * (x + 0.044715 * x * x * x)))


def _layer_norm_rows(x, gamma, beta, eps=1e-5):
    """LayerNorm over the last axis (token-major layout, used by the reference)."""
    mean = jnp.mean(x, axis=-1, keepdims=True)
    var = jnp.mean(jnp.square(x - mean), axis=-1, keepdims=True)
    return (x - mean) * lax.rsqrt(var + eps) * gamma + beta


def _layer_norm_cols(x, gamma, beta, eps=1e-5):
    """LayerNorm over axis 0 (feature-major / transposed layout). gamma,beta: (D,1)."""
    mean = jnp.mean(x, axis=0, keepdims=True)
    var = jnp.mean(jnp.square(x - mean), axis=0, keepdims=True)
    return (x - mean) * lax.rsqrt(var + eps) * gamma + beta


# ------------------------------ Pallas kernel ------------------------------

def _make_kernel(num_layers, num_heads, head_dim):
    H, Dh = num_heads, head_dim
    scale = 1.0 / float(Dh) ** 0.5
    bf = jnp.bfloat16

    def kernel(x_ref, pos_ref, ln0_g_ref, ln0_b_ref,
               wq_ref, wk_ref, wv_ref, bq_ref, bk_ref, bv_ref,
               wo_ref, bo_ref, ln1_g_ref, ln1_b_ref,
               w1_ref, b1_ref, w2_ref, b2_ref,
               lnf_g_ref, lnf_b_ref, wpool_ref, bpool_ref,
               wfc_ref, bfc_ref, o_ref):
        D, N = x_ref.shape[1], x_ref.shape[2]

        # Transposed residual stream: features on sublanes, tokens on lanes.
        # x_t already has pos layout; dropout is identity at inference.
        z = x_ref[0] + pos_ref[...]                               # (D, N) f32

        for l in range(num_layers):                               # static unroll (L=2)
            # ---- pre-norm + multi-head self-attention + residual ----
            y = _layer_norm_cols(z, ln0_g_ref[l], ln0_b_ref[l]).astype(bf)
            q = jnp.dot(wq_ref[l], y, preferred_element_type=jnp.float32) + bq_ref[l]
            k = jnp.dot(wk_ref[l], y, preferred_element_type=jnp.float32) + bk_ref[l]
            v = jnp.dot(wv_ref[l], y, preferred_element_type=jnp.float32) + bv_ref[l]

            # Head split is a FREE sublane-group reinterpretation: (D,N) -> (H,Dh,N).
            q3 = q.astype(bf).reshape(H, Dh, N)
            v3 = v.astype(bf).reshape(H, Dh, N)
            k3 = k.reshape(H, Dh, N)
            # Token-major keys (H,N,Dh): H tiny (Dh,N) 2-D transposes (XLU) + leading concat.
            k_tok = jnp.stack([k3[h].T for h in range(H)], axis=0).astype(bf)

            # Scores for ALL heads in ONE batched matmul; sT[h, key, query].
            sT = lax.dot_general(k_tok, q3, (((2,), (1,)), ((0,), (0,))),
                                 preferred_element_type=jnp.float32) * scale  # (H,N,N)
            # Single softmax over the key axis for all heads.
            sT = sT - jnp.max(sT, axis=1, keepdims=True)
            p = jnp.exp(sT)
            p = p * pl.reciprocal(jnp.sum(p, axis=1, keepdims=True), approx=True)

            # P@V for all heads in ONE batched matmul: (H,Dh,Nk)@(H,Nk,Nq) -> (H,Dh,Nq).
            o3 = lax.dot_general(v3, p.astype(bf), (((2,), (1,)), ((0,), (0,))),
                                 preferred_element_type=jnp.float32)
            # Merge heads (free) and fuse the whole output projection into ONE matmul.
            o_t = o3.reshape(D, N).astype(bf)
            attn = jnp.dot(wo_ref[l], o_t,
                           preferred_element_type=jnp.float32) + bo_ref[l]

            # ---- residual, norm1, GELU-MLP, residual (dropout / drop_path = id) ----
            z = _layer_norm_cols(z + attn, ln1_g_ref[l], ln1_b_ref[l])
            zb = z.astype(bf)
            m = jnp.dot(w1_ref[l], zb, preferred_element_type=jnp.float32) + b1_ref[l]
            m = _gelu(m).astype(bf)
            z = z + jnp.dot(w2_ref[l], m, preferred_element_type=jnp.float32) + b2_ref[l]

        # ---- final LayerNorm, then back to token-major once (single 64x64 transpose) ----
        z = _layer_norm_cols(z, lnf_g_ref[...], lnf_b_ref[...])   # (D, N)
        zt = z.T                                                  # (N, D)

        # ---- sequence pooling: softmax(x @ w_pool) weighted sum over tokens ----
        a = jnp.sum(zt * wpool_ref[...], axis=-1, keepdims=True) + bpool_ref[...]  # (N,1)
        a = jnp.exp(a - jnp.max(a, axis=0, keepdims=True))
        a = a * pl.reciprocal(jnp.sum(a, axis=0, keepdims=True), approx=True)
        pooled = jnp.sum(a * zt, axis=0, keepdims=True)           # (1, D)

        # ---- classifier head (lane-dense: padded to 128 output lanes) ----
        o_ref[0] = jnp.dot(pooled.astype(bf), wfc_ref[...],
                           preferred_element_type=jnp.float32) + bfc_ref[...]

    return kernel


# ------------------------------ wrapper ------------------------------

def _resident(shape):
    """Full-shape block, constant index map -> weight stays resident in VMEM."""
    n = len(shape)
    return pl.BlockSpec(shape, lambda b, _n=n: (0,) * _n)


@functools.partial(jax.jit, static_argnames=("num_heads",))
def transformer_classifier_forward(x, pos, ln0_g, ln0_b, wq, wk, wv, bq, bk, bv,
                                   wo, bo, ln1_g, ln1_b, w1, b1, w2, b2,
                                   lnf_g, lnf_b, wpool, bpool, wfc, bfc,
                                   *, num_heads):
    """x: (B, N, D). Returns logits (B, num_out). Inference-mode forward."""
    B, N, D = x.shape
    L = wq.shape[0]
    num_out = wfc.shape[1]
    P = pl.cdiv(num_out, 128) * 128          # lane-dense padded classifier width
    bf = jnp.bfloat16
    col = lambda a: a[..., None]              # (..., D) -> (..., D, 1)
    t = lambda w: jnp.swapaxes(w, -1, -2)     # (in, out) -> (out, in)

    # Layout plumbing (tiny, once per call under jit): transposed activations,
    # transposed bf16 matmul weights, column biases, padded classifier head.
    x_t = jnp.swapaxes(x, 1, 2)                                            # (B, D, N)
    weights = (
        pos.T,                                                             # (D, N)
        col(ln0_g), col(ln0_b),
        t(wq).astype(bf), t(wk).astype(bf), t(wv).astype(bf),
        col(bq), col(bk), col(bv),
        t(wo).astype(bf), col(bo),
        col(ln1_g), col(ln1_b),
        t(w1).astype(bf), col(b1), t(w2).astype(bf), col(b2),
        col(lnf_g), col(lnf_b),
        wpool.reshape(1, D), bpool.reshape(1, 1),
        jnp.pad(wfc.astype(bf), ((0, 0), (0, P - num_out))),               # (D, P)
        jnp.pad(bfc, (0, P - num_out)).reshape(1, P),
    )

    kernel = _make_kernel(L, num_heads, D // num_heads)
    # NOTE: grid=(B,) parallel keeps both TensorCores busy on v7x.  On single-TC
    # v5e/v6e folding B into one step would save ~0.35us of per-step overhead;
    # left un-folded to stay generation-agnostic.
    out = pl.pallas_call(
        kernel,
        out_shape=jax.ShapeDtypeStruct((B, 1, P), jnp.float32),
        grid=(B,),
        in_specs=[pl.BlockSpec((1, D, N), lambda b: (b, 0, 0))]
                 + [_resident(w.shape) for w in weights],
        out_specs=pl.BlockSpec((1, 1, P), lambda b: (b, 0, 0)),
        compiler_params=pltpu.CompilerParams(
            dimension_semantics=("parallel",)),
    )(x_t, *weights)

    return out.reshape(B, P)[:, :num_out]


# ------------------------------ pure-JAX reference ------------------------------
# Mirrors the kernel's numerics (bf16 matmul operands, f32 accumulation, f32
# LayerNorm/softmax/GELU) so the comparison tolerance can stay tight.

def reference_forward(x, pos, ln0_g, ln0_b, wq, wk, wv, bq, bk, bv,
                      wo, bo, ln1_g, ln1_b, w1, b1, w2, b2,
                      lnf_g, lnf_b, wpool, bpool, wfc, bfc, *, num_heads):
    bf, f32 = jnp.bfloat16, jnp.float32
    B, N, D = x.shape
    L = wq.shape[0]
    Dh = D // num_heads
    dot = lambda a, w: jnp.einsum('bnd,de->bne', a.astype(bf), w.astype(bf),
                                  preferred_element_type=f32)
    z = x + pos[None]
    for l in range(L):
        y = _layer_norm_rows(z, ln0_g[l], ln0_b[l])
        q = dot(y, wq[l]) + bq[l]
        k = dot(y, wk[l]) + bk[l]
        v = dot(y, wv[l]) + bv[l]
        qh = q.reshape(B, N, num_heads, Dh).astype(bf)
        kh = k.reshape(B, N, num_heads, Dh).astype(bf)
        vh = v.reshape(B, N, num_heads, Dh).astype(bf)
        s = jnp.einsum('bnhd,bmhd->bhnm', qh, kh,
                       preferred_element_type=f32) / (Dh ** 0.5)
        p = jax.nn.softmax(s, axis=-1)
        o = jnp.einsum('bhnm,bmhd->bnhd', p.astype(bf), vh,
                       preferred_element_type=f32).reshape(B, N, D)
        z = z + dot(o, wo[l]) + bo[l]
        z = _layer_norm_rows(z, ln1_g[l], ln1_b[l])
        m = _gelu(dot(z, w1[l]) + b1[l])
        z = z + dot(m, w2[l]) + b2[l]
    z = _layer_norm_rows(z, lnf_g, lnf_b)
    a = jnp.einsum('bnd,d->bn', z, wpool) + bpool
    w_ = jax.nn.softmax(a, axis=1)
    pooled = jnp.einsum('bn,bnd->bd', w_, z)
    return jnp.einsum('bd,dp->bp', pooled.astype(bf), wfc.astype(bf),
                      preferred_element_type=f32) + bfc


# ------------------------------ main ------------------------------

if __name__ == "__main__":
    # TransformerClassifier(seq_pool=True, embedding_dim=64, num_layers=2, num_heads=4,
    #                       mlp_ratio=4.0, num_out=100, positional_embedding='learnable',
    #                       sequence_length=64), inference mode.
    B, N, D = 2, 64, 64
    H, L = 4, 2
    Dff = int(D * 4.0)
    num_out = 100

    key = jax.random.PRNGKey(0)
    ks = jax.random.split(key, 24)
    rnd = lambda i, shape, s=0.02: s * jax.random.normal(ks[i], shape, dtype=jnp.float32)

    x = jax.random.normal(ks[0], (B, N, D), dtype=jnp.float32)

    # Parameters (deterministic).  Linear weights are stored in (in, out) math form.
    pos = rnd(1, (N, D), 0.2)                                   # learnable pos-emb
    wq, wk, wv = rnd(2, (L, D, D)), rnd(3, (L, D, D)), rnd(4, (L, D, D))
    bq, bk, bv = rnd(5, (L, D)), rnd(6, (L, D)), rnd(7, (L, D))
    wo, bo = rnd(8, (L, D, D)), rnd(9, (L, D))
    ln0_g = 1.0 + rnd(10, (L, D), 0.05)
    ln0_b = rnd(11, (L, D), 0.05)
    ln1_g = 1.0 + rnd(12, (L, D), 0.05)
    ln1_b = rnd(13, (L, D), 0.05)
    w1, b1 = rnd(14, (L, D, Dff)), rnd(15, (L, Dff))
    w2, b2 = rnd(16, (L, Dff, D)), rnd(17, (L, D))
    lnf_g = 1.0 + rnd(18, (D,), 0.05)
    lnf_b = rnd(19, (D,), 0.05)
    wpool, bpool = rnd(20, (D,)), rnd(21, ())                   # attention_pool
    wfc, bfc = rnd(22, (D, num_out)), rnd(23, (num_out,))       # fc

    params = (pos, ln0_g, ln0_b, wq, wk, wv, bq, bk, bv, wo, bo,
              ln1_g, ln1_b, w1, b1, w2, b2, lnf_g, lnf_b,
              wpool, bpool, wfc, bfc)

    out = transformer_classifier_forward(x, *params, num_heads=H)
    out = jax.block_until_ready(out)

    ref = reference_forward(x, *params, num_heads=H)

    assert out.shape == (B, num_out), out.shape
    err = float(jnp.max(jnp.abs(out - ref)))
    assert err < 5e-3, f"max abs err {err}"
    print("KERNEL_OK")
</pallas_src>

<mosaic_0001>
module attributes {stable_mosaic.version = 11 : i64} {
  func.func @kernel(%arg0: i32, %arg1: memref<1x64x64xf32, #tpu.memory_space<vmem>>, %arg2: memref<64x64xf32, #tpu.memory_space<vmem>>, %arg3: memref<2x64x1xf32, #tpu.memory_space<vmem>>, %arg4: memref<2x64x1xf32, #tpu.memory_space<vmem>>, %arg5: memref<2x64x64xbf16, #tpu.memory_space<vmem>>, %arg6: memref<2x64x64xbf16, #tpu.memory_space<vmem>>, %arg7: memref<2x64x64xbf16, #tpu.memory_space<vmem>>, %arg8: memref<2x64x1xf32, #tpu.memory_space<vmem>>, %arg9: memref<2x64x1xf32, #tpu.memory_space<vmem>>, %arg10: memref<2x64x1xf32, #tpu.memory_space<vmem>>, %arg11: memref<2x64x64xbf16, #tpu.memory_space<vmem>>, %arg12: memref<2x64x1xf32, #tpu.memory_space<vmem>>, %arg13: memref<2x64x1xf32, #tpu.memory_space<vmem>>, %arg14: memref<2x64x1xf32, #tpu.memory_space<vmem>>, %arg15: memref<2x256x64xbf16, #tpu.memory_space<vmem>>, %arg16: memref<2x256x1xf32, #tpu.memory_space<vmem>>, %arg17: memref<2x64x256xbf16, #tpu.memory_space<vmem>>, %arg18: memref<2x64x1xf32, #tpu.memory_space<vmem>>, %arg19: memref<64x1xf32, #tpu.memory_space<vmem>>, %arg20: memref<64x1xf32, #tpu.memory_space<vmem>>, %arg21: memref<1x64xf32, #tpu.memory_space<vmem>>, %arg22: memref<1x1xf32, #tpu.memory_space<vmem>>, %arg23: memref<64x128xbf16, #tpu.memory_space<vmem>>, %arg24: memref<1x128xf32, #tpu.memory_space<vmem>>, %arg25: memref<1x1x128xf32, #tpu.memory_space<vmem>>) attributes {dimension_semantics = [#tpu.dimension_semantics<parallel>], iteration_bounds = array<i64: 2>, scalar_prefetch = 0 : i64, scratch_operands = 0 : i64, tpu.core_type = #tpu.core_type<tc>, window_params = [{transform_indices = @transform_0, window_bounds = array<i64: 1, 64, 64>}, {pipeline_mode = #tpu.pipeline_mode<synchronous>, transform_indices = @transform_1, window_bounds = array<i64: 64, 64>}, {pipeline_mode = #tpu.pipeline_mode<synchronous>, transform_indices = @transform_2, window_bounds = array<i64: 2, 64, 1>}, {pipeline_mode = #tpu.pipeline_mode<synchronous>, transform_indices = @transform_3, window_bounds = array<i64: 2, 64, 1>}, {pipeline_mode = #tpu.pipeline_mode<synchronous>, transform_indices = @transform_4, window_bounds = array<i64: 2, 64, 64>}, {pipeline_mode = #tpu.pipeline_mode<synchronous>, transform_indices = @transform_5, window_bounds = array<i64: 2, 64, 64>}, {pipeline_mode = #tpu.pipeline_mode<synchronous>, transform_indices = @transform_6, window_bounds = array<i64: 2, 64, 64>}, {pipeline_mode = #tpu.pipeline_mode<synchronous>, transform_indices = @transform_7, window_bounds = array<i64: 2, 64, 1>}, {pipeline_mode = #tpu.pipeline_mode<synchronous>, transform_indices = @transform_8, window_bounds = array<i64: 2, 64, 1>}, {pipeline_mode = #tpu.pipeline_mode<synchronous>, transform_indices = @transform_9, window_bounds = array<i64: 2, 64, 1>}, {pipeline_mode = #tpu.pipeline_mode<synchronous>, transform_indices = @transform_10, window_bounds = array<i64: 2, 64, 64>}, {pipeline_mode = #tpu.pipeline_mode<synchronous>, transform_indices = @transform_11, window_bounds = array<i64: 2, 64, 1>}, {pipeline_mode = #tpu.pipeline_mode<synchronous>, transform_indices = @transform_12, window_bounds = array<i64: 2, 64, 1>}, {pipeline_mode = #tpu.pipeline_mode<synchronous>, transform_indices = @transform_13, window_bounds = array<i64: 2, 64, 1>}, {pipeline_mode = #tpu.pipeline_mode<synchronous>, transform_indices = @transform_14, window_bounds = array<i64: 2, 256, 64>}, {pipeline_mode = #tpu.pipeline_mode<synchronous>, transform_indices = @transform_15, window_bounds = array<i64: 2, 256, 1>}, {pipeline_mode = #tpu.pipeline_mode<synchronous>, transform_indices = @transform_16, window_bounds = array<i64: 2, 64, 256>}, {pipeline_mode = #tpu.pipeline_mode<synchronous>, transform_indices = @transform_17, window_bounds = array<i64: 2, 64, 1>}, {pipeline_mode = #tpu.pipeline_mode<synchronous>, transform_indices = @transform_18, window_bounds = array<i64: 64, 1>}, {pipeline_mode = #tpu.pipeline_mode<synchronous>, transform_indices = @transform_19, window_bounds = array<i64: 64, 1>}, {pipeline_mode = #tpu.pipeline_mode<synchronous>, transform_indices = @transform_20, window_bounds = array<i64: 1, 64>}, {pipeline_mode = #tpu.pipeline_mode<synchronous>, transform_indices = @transform_21, window_bounds = array<i64: 1, 1>}, {pipeline_mode = #tpu.pipeline_mode<synchronous>, transform_indices = @transform_22, window_bounds = array<i64: 64, 128>}, {pipeline_mode = #tpu.pipeline_mode<synchronous>, transform_indices = @transform_23, window_bounds = array<i64: 1, 128>}, {transform_indices = @transform_24, window_bounds = array<i64: 1, 1, 128>}]} {
    %c0 = arith.constant 0 : index
    %c0_0 = arith.constant 0 : index
    %c0_1 = arith.constant 0 : index
    %0 = vector.load %arg1[%c0, %c0_0, %c0_1] : memref<1x64x64xf32, #tpu.memory_space<vmem>>, vector<1x64x64xf32>
    %1 = vector.shape_cast %0 : vector<1x64x64xf32> to vector<64x64xf32>
    %c0_2 = arith.constant 0 : index
    %c0_3 = arith.constant 0 : index
    %2 = vector.load %arg2[%c0_2, %c0_3] : memref<64x64xf32, #tpu.memory_space<vmem>>, vector<64x64xf32>
    %3 = arith.addf %1, %2 : vector<64x64xf32>
    %c0_4 = arith.constant 0 : index
    %c0_5 = arith.constant 0 : index
    %c0_6 = arith.constant 0 : index
    %4 = vector.load %arg3[%c0_4, %c0_5, %c0_6] : memref<2x64x1xf32, #tpu.memory_space<vmem>>, vector<1x64x1xf32>
    %5 = vector.shape_cast %4 : vector<1x64x1xf32> to vector<64x1xf32>
    %c0_7 = arith.constant 0 : index
    %c0_8 = arith.constant 0 : index
    %c0_9 = arith.constant 0 : index
    %6 = vector.load %arg4[%c0_7, %c0_8, %c0_9] : memref<2x64x1xf32, #tpu.memory_space<vmem>>, vector<1x64x1xf32>
    %7 = vector.shape_cast %6 : vector<1x64x1xf32> to vector<64x1xf32>
    %cst = arith.constant dense<0.000000e+00> : vector<64xf32>
    %8 = vector.multi_reduction <add>, %3, %cst [0] : vector<64x64xf32> to vector<64xf32>
    %9 = vector.shape_cast %8 : vector<64xf32> to vector<1x64xf32>
    %cst_10 = arith.constant 6.400000e+01 : f32
    %10 = vector.broadcast %cst_10 : f32 to vector<1x64xf32>
    %11 = arith.divf %9, %10 : vector<1x64xf32>
    %12 = vector.broadcast %11 : vector<1x64xf32> to vector<64x64xf32>
    %13 = arith.subf %3, %12 : vector<64x64xf32>
    %14 = arith.mulf %13, %13 : vector<64x64xf32>
    %cst_11 = arith.constant dense<0.000000e+00> : vector<64xf32>
    %15 = vector.multi_reduction <add>, %14, %cst_11 [0] : vector<64x64xf32> to vector<64xf32>
    %16 = vector.shape_cast %15 : vector<64xf32> to vector<1x64xf32>
    %cst_12 = arith.constant 6.400000e+01 : f32
    %17 = vector.broadcast %cst_12 : f32 to vector<1x64xf32>
    %18 = arith.divf %16, %17 : vector<1x64xf32>
    %19 = vector.broadcast %11 : vector<1x64xf32> to vector<64x64xf32>
    %20 = arith.subf %3, %19 : vector<64x64xf32>
    %cst_13 = arith.constant 9.99999974E-6 : f32
    %21 = vector.broadcast %cst_13 : f32 to vector<1x64xf32>
    %22 = arith.addf %18, %21 : vector<1x64xf32>
    %23 = math.rsqrt %22 : vector<1x64xf32>
    %24 = vector.broadcast %23 : vector<1x64xf32> to vector<64x64xf32>
    %25 = arith.mulf %20, %24 : vector<64x64xf32>
    %26 = vector.broadcast %5 : vector<64x1xf32> to vector<64x64xf32>
    %27 = arith.mulf %25, %26 : vector<64x64xf32>
    %28 = vector.broadcast %7 : vector<64x1xf32> to vector<64x64xf32>
    %29 = arith.addf %27, %28 : vector<64x64xf32>
    %30 = arith.truncf %29 : vector<64x64xf32> to vector<64x64xbf16>
    %c0_14 = arith.constant 0 : index
    %c0_15 = arith.constant 0 : index
    %c0_16 = arith.constant 0 : index
    %31 = vector.load %arg5[%c0_14, %c0_15, %c0_16] : memref<2x64x64xbf16, #tpu.memory_space<vmem>>, vector<1x64x64xbf16>
    %32 = vector.shape_cast %31 : vector<1x64x64xbf16> to vector<64x64xbf16>
    %cst_17 = arith.constant dense<0.000000e+00> : vector<64x64xf32>
    %33 = tpu.matmul %32, %30, %cst_17 {dimension_numbers = #tpu.dot_dimension_numbers<[1], [0], [0], [1], [0, 0, 1, 1], [], []>} : vector<64x64xbf16>, vector<64x64xbf16>, vector<64x64xf32> -> vector<64x64xf32>
    %c0_18 = arith.constant 0 : index
    %c0_19 = arith.constant 0 : index
    %c0_20 = arith.constant 0 : index
    %34 = vector.load %arg8[%c0_18, %c0_19, %c0_20] : memref<2x64x1xf32, #tpu.memory_space<vmem>>, vector<1x64x1xf32>
    %35 = vector.shape_cast %34 : vector<1x64x1xf32> to vector<64x1xf32>
    %36 = vector.broadcast %35 : vector<64x1xf32> to vector<64x64xf32>
    %37 = arith.addf %33, %36 : vector<64x64xf32>
    %c0_21 = arith.constant 0 : index
    %c0_22 = arith.constant 0 : index
    %c0_23 = arith.constant 0 : index
    %38 = vector.load %arg6[%c0_21, %c0_22, %c0_23] : memref<2x64x64xbf16, #tpu.memory_space<vmem>>, vector<1x64x64xbf16>
    %39 = vector.shape_cast %38 : vector<1x64x64xbf16> to vector<64x64xbf16>
    %cst_24 = arith.constant dense<0.000000e+00> : vector<64x64xf32>
    %40 = tpu.matmul %39, %30, %cst_24 {dimension_numbers = #tpu.dot_dimension_numbers<[1], [0], [0], [1], [0, 0, 1, 1], [], []>} : vector<64x64xbf16>, vector<64x64xbf16>, vector<64x64xf32> -> vector<64x64xf32>
    %c0_25 = arith.constant 0 : index
    %c0_26 = arith.constant 0 : index
    %c0_27 = arith.constant 0 : index
    %41 = vector.load %arg9[%c0_25, %c0_26, %c0_27] : memref<2x64x1xf32, #tpu.memory_space<vmem>>, vector<1x64x1xf32>
    %42 = vector.shape_cast %41 : vector<1x64x1xf32> to vector<64x1xf32>
    %43 = vector.broadcast %42 : vector<64x1xf32> to vector<64x64xf32>
    %44 = arith.addf %40, %43 : vector<64x64xf32>
    %c0_28 = arith.constant 0 : index
    %c0_29 = arith.constant 0 : index
    %c0_30 = arith.constant 0 : index
    %45 = vector.load %arg7[%c0_28, %c0_29, %c0_30] : memref<2x64x64xbf16, #tpu.memory_space<vmem>>, vector<1x64x64xbf16>
    %46 = vector.shape_cast %45 : vector<1x64x64xbf16> to vector<64x64xbf16>
    %cst_31 = arith.constant dense<0.000000e+00> : vector<64x64xf32>
    %47 = tpu.matmul %46, %30, %cst_31 {dimension_numbers = #tpu.dot_dimension_numbers<[1], [0], [0], [1], [0, 0, 1, 1], [], []>} : vector<64x64xbf16>, vector<64x64xbf16>, vector<64x64xf32> -> vector<64x64xf32>
    %c0_32 = arith.constant 0 : index
    %c0_33 = arith.constant 0 : index
    %c0_34 = arith.constant 0 : index
    %48 = vector.load %arg10[%c0_32, %c0_33, %c0_34] : memref<2x64x1xf32, #tpu.memory_space<vmem>>, vector<1x64x1xf32>
    %49 = vector.shape_cast %48 : vector<1x64x1xf32> to vector<64x1xf32>
    %50 = vector.broadcast %49 : vector<64x1xf32> to vector<64x64xf32>
    %51 = arith.addf %47, %50 : vector<64x64xf32>
    %52 = arith.truncf %37 : vector<64x64xf32> to vector<64x64xbf16>
    %53 = vector.shape_cast %52 : vector<64x64xbf16> to vector<4x16x64xbf16>
    %54 = arith.truncf %51 : vector<64x64xf32> to vector<64x64xbf16>
    %55 = vector.shape_cast %54 : vector<64x64xbf16> to vector<4x16x64xbf16>
    %56 = vector.shape_cast %44 : vector<64x64xf32> to vector<4x16x64xf32>
    %57 = vector.extract_strided_slice %56 {offsets = [0, 0, 0], sizes = [1, 16, 64], strides = [1, 1, 1]} : vector<4x16x64xf32> to vector<1x16x64xf32>
    %58 = vector.shape_cast %57 : vector<1x16x64xf32> to vector<16x64xf32>
    %59 = tpu.transpose %58, [1, 0] : vector<16x64xf32> -> vector<64x16xf32>
    %60 = vector.extract_strided_slice %56 {offsets = [1, 0, 0], sizes = [1, 16, 64], strides = [1, 1, 1]} : vector<4x16x64xf32> to vector<1x16x64xf32>
    %61 = vector.shape_cast %60 : vector<1x16x64xf32> to vector<16x64xf32>
    %62 = tpu.transpose %61, [1, 0] : vector<16x64xf32> -> vector<64x16xf32>
    %63 = vector.extract_strided_slice %56 {offsets = [2, 0, 0], sizes = [1, 16, 64], strides = [1, 1, 1]} : vector<4x16x64xf32> to vector<1x16x64xf32>
    %64 = vector.shape_cast %63 : vector<1x16x64xf32> to vector<16x64xf32>
    %65 = tpu.transpose %64, [1, 0] : vector<16x64xf32> -> vector<64x16xf32>
    %66 = vector.extract_strided_slice %56 {offsets = [3, 0, 0], sizes = [1, 16, 64], strides = [1, 1, 1]} : vector<4x16x64xf32> to vector<1x16x64xf32>
    %67 = vector.shape_cast %66 : vector<1x16x64xf32> to vector<16x64xf32>
    %68 = tpu.transpose %67, [1, 0] : vector<16x64xf32> -> vector<64x16xf32>
    %69 = vector.shape_cast %59 : vector<64x16xf32> to vector<1x64x16xf32>
    %70 = vector.shape_cast %62 : vector<64x16xf32> to vector<1x64x16xf32>
    %71 = vector.shape_cast %65 : vector<64x16xf32> to vector<1x64x16xf32>
    %72 = vector.shape_cast %68 : vector<64x16xf32> to vector<1x64x16xf32>
    %73 = tpu.concatenate %69, %70, %71, %72 in 0 : vector<1x64x16xf32>, vector<1x64x16xf32>, vector<1x64x16xf32>, vector<1x64x16xf32> -> vector<4x64x16xf32>
    %74 = arith.truncf %73 : vector<4x64x16xf32> to vector<4x64x16xbf16>
    %cst_35 = arith.constant dense<0.000000e+00> : vector<4x64x64xf32>
    %75 = tpu.matmul %74, %53, %cst_35 {dimension_numbers = #tpu.dot_dimension_numbers<[2], [1], [1], [2], [0, 0, 0, 1, 1, 2], [0], [0]>} : vector<4x64x16xbf16>, vector<4x16x64xbf16>, vector<4x64x64xf32> -> vector<4x64x64xf32>
    %cst_36 = arith.constant 2.500000e-01 : f32
    %76 = vector.broadcast %cst_36 : f32 to vector<4x64x64xf32>
    %77 = arith.mulf %75, %76 : vector<4x64x64xf32>
    %cst_37 = arith.constant dense<0xFF800000> : vector<4x64xf32>
    %78 = vector.multi_reduction <maximumf>, %77, %cst_37 [1] : vector<4x64x64xf32> to vector<4x64xf32>
    %79 = vector.shape_cast %78 : vector<4x64xf32> to vector<4x1x64xf32>
    %80 = vector.broadcast %79 : vector<4x1x64xf32> to vector<4x64x64xf32>
    %81 = arith.subf %77, %80 : vector<4x64x64xf32>
    %82 = math.exp %81 : vector<4x64x64xf32>
    %cst_38 = arith.constant dense<0.000000e+00> : vector<4x64xf32>
    %83 = vector.multi_reduction <add>, %82, %cst_38 [1] : vector<4x64x64xf32> to vector<4x64xf32>
    %84 = vector.shape_cast %83 : vector<4x64xf32> to vector<4x1x64xf32>
    %85 = tpu.reciprocal %84 {approx = true} : vector<4x1x64xf32> -> vector<4x1x64xf32>
    %86 = vector.broadcast %85 : vector<4x1x64xf32> to vector<4x64x64xf32>
    %87 = arith.mulf %82, %86 : vector<4x64x64xf32>
    %88 = arith.truncf %87 : vector<4x64x64xf32> to vector<4x64x64xbf16>
    %cst_39 = arith.constant dense<0.000000e+00> : vector<4x16x64xf32>
    %89 = tpu.matmul %55, %88, %cst_39 {dimension_numbers = #tpu.dot_dimension_numbers<[2], [1], [1], [2], [0, 0, 0, 1, 1, 2], [0], [0]>} : vector<4x16x64xbf16>, vector<4x64x64xbf16>, vector<4x16x64xf32> -> vector<4x16x64xf32>
    %90 = vector.shape_cast %89 : vector<4x16x64xf32> to vector<64x64xf32>
    %91 = arith.truncf %90 : vector<64x64xf32> to vector<64x64xbf16>
    %c0_40 = arith.constant 0 : index
    %c0_41 = arith.constant 0 : index
    %c0_42 = arith.constant 0 : index
    %92 = vector.load %arg11[%c0_40, %c0_41, %c0_42] : memref<2x64x64xbf16, #tpu.memory_space<vmem>>, vector<1x64x64xbf16>
    %93 = vector.shape_cast %92 : vector<1x64x64xbf16> to vector<64x64xbf16>
    %cst_43 = arith.constant dense<0.000000e+00> : vector<64x64xf32>
    %94 = tpu.matmul %93, %91, %cst_43 {dimension_numbers = #tpu.dot_dimension_numbers<[1], [0], [0], [1], [0, 0, 1, 1], [], []>} : vector<64x64xbf16>, vector<64x64xbf16>, vector<64x64xf32> -> vector<64x64xf32>
    %c0_44 = arith.constant 0 : index
    %c0_45 = arith.constant 0 : index
    %c0_46 = arith.constant 0 : index
    %95 = vector.load %arg12[%c0_44, %c0_45, %c0_46] : memref<2x64x1xf32, #tpu.memory_space<vmem>>, vector<1x64x1xf32>
    %96 = vector.shape_cast %95 : vector<1x64x1xf32> to vector<64x1xf32>
    %97 = vector.broadcast %96 : vector<64x1xf32> to vector<64x64xf32>
    %98 = arith.addf %94, %97 : vector<64x64xf32>
    %99 = arith.addf %3, %98 : vector<64x64xf32>
    %c0_47 = arith.constant 0 : index
    %c0_48 = arith.constant 0 : index
    %c0_49 = arith.constant 0 : index
    %100 = vector.load %arg13[%c0_47, %c0_48, %c0_49] : memref<2x64x1xf32, #tpu.memory_space<vmem>>, vector<1x64x1xf32>
    %101 = vector.shape_cast %100 : vector<1x64x1xf32> to vector<64x1xf32>
    %c0_50 = arith.constant 0 : index
    %c0_51 = arith.constant 0 : index
    %c0_52 = arith.constant 0 : index
    %102 = vector.load %arg14[%c0_50, %c0_51, %c0_52] : memref<2x64x1xf32, #tpu.memory_space<vmem>>, vector<1x64x1xf32>
    %103 = vector.shape_cast %102 : vector<1x64x1xf32> to vector<64x1xf32>
    %cst_53 = arith.constant dense<0.000000e+00> : vector<64xf32>
    %104 = vector.multi_reduction <add>, %99, %cst_53 [0] : vector<64x64xf32> to vector<64xf32>
    %105 = vector.shape_cast %104 : vector<64xf32> to vector<1x64xf32>
    %cst_54 = arith.constant 6.400000e+01 : f32
    %106 = vector.broadcast %cst_54 : f32 to vector<1x64xf32>
    %107 = arith.divf %105, %106 : vector<1x64xf32>
    %108 = vector.broadcast %107 : vector<1x64xf32> to vector<64x64xf32>
    %109 = arith.subf %99, %108 : vector<64x64xf32>
    %110 = arith.mulf %109, %109 : vector<64x64xf32>
    %cst_55 = arith.constant dense<0.000000e+00> : vector<64xf32>
    %111 = vector.multi_reduction <add>, %110, %cst_55 [0] : vector<64x64xf32> to vector<64xf32>
    %112 = vector.shape_cast %111 : vector<64xf32> to vector<1x64xf32>
    %cst_56 = arith.constant 6.400000e+01 : f32
    %113 = vector.broadcast %cst_56 : f32 to vector<1x64xf32>
    %114 = arith.divf %112, %113 : vector<1x64xf32>
    %115 = vector.broadcast %107 : vector<1x64xf32> to vector<64x64xf32>
    %116 = arith.subf %99, %115 : vector<64x64xf32>
    %cst_57 = arith.constant 9.99999974E-6 : f32
    %117 = vector.broadcast %cst_57 : f32 to vector<1x64xf32>
    %118 = arith.addf %114, %117 : vector<1x64xf32>
    %119 = math.rsqrt %118 : vector<1x64xf32>
    %120 = vector.broadcast %119 : vector<1x64xf32> to vector<64x64xf32>
    %121 = arith.mulf %116, %120 : vector<64x64xf32>
    %122 = vector.broadcast %101 : vector<64x1xf32> to vector<64x64xf32>
    %123 = arith.mulf %121, %122 : vector<64x64xf32>
    %124 = vector.broadcast %103 : vector<64x1xf32> to vector<64x64xf32>
    %125 = arith.addf %123, %124 : vector<64x64xf32>
    %126 = arith.truncf %125 : vector<64x64xf32> to vector<64x64xbf16>
    %c0_58 = arith.constant 0 : index
    %c0_59 = arith.constant 0 : index
    %c0_60 = arith.constant 0 : index
    %127 = vector.load %arg15[%c0_58, %c0_59, %c0_60] : memref<2x256x64xbf16, #tpu.memory_space<vmem>>, vector<1x256x64xbf16>
    %128 = vector.shape_cast %127 : vector<1x256x64xbf16> to vector<256x64xbf16>
    %cst_61 = arith.constant dense<0.000000e+00> : vector<256x64xf32>
    %129 = tpu.matmul %128, %126, %cst_61 {dimension_numbers = #tpu.dot_dimension_numbers<[1], [0], [0], [1], [0, 0, 1, 1], [], []>} : vector<256x64xbf16>, vector<64x64xbf16>, vector<256x64xf32> -> vector<256x64xf32>
    %c0_62 = arith.constant 0 : index
    %c0_63 = arith.constant 0 : index
    %c0_64 = arith.constant 0 : index
    %130 = vector.load %arg16[%c0_62, %c0_63, %c0_64] : memref<2x256x1xf32, #tpu.memory_space<vmem>>, vector<1x256x1xf32>
    %131 = vector.shape_cast %130 : vector<1x256x1xf32> to vector<256x1xf32>
    %132 = vector.broadcast %131 : vector<256x1xf32> to vector<256x64xf32>
    %133 = arith.addf %129, %132 : vector<256x64xf32>
    %cst_65 = arith.constant 5.000000e-01 : f32
    %134 = vector.broadcast %cst_65 : f32 to vector<256x64xf32>
    %135 = arith.mulf %134, %133 : vector<256x64xf32>
    %cst_66 = arith.constant 4.471500e-02 : f32
    %136 = vector.broadcast %cst_66 : f32 to vector<256x64xf32>
    %137 = arith.mulf %136, %133 : vector<256x64xf32>
    %138 = arith.mulf %137, %133 : vector<256x64xf32>
    %139 = arith.mulf %138, %133 : vector<256x64xf32>
    %140 = arith.addf %133, %139 : vector<256x64xf32>
    %cst_67 = arith.constant 0.797884583 : f32
    %141 = vector.broadcast %cst_67 : f32 to vector<256x64xf32>
    %142 = arith.mulf %141, %140 : vector<256x64xf32>
    %143 = math.tanh %142 : vector<256x64xf32>
    %cst_68 = arith.constant 1.000000e+00 : f32
    %144 = vector.broadcast %cst_68 : f32 to vector<256x64xf32>
    %145 = arith.addf %144, %143 : vector<256x64xf32>
    %146 = arith.mulf %135, %145 : vector<256x64xf32>
    %147 = arith.truncf %146 : vector<256x64xf32> to vector<256x64xbf16>
    %c0_69 = arith.constant 0 : index
    %c0_70 = arith.constant 0 : index
    %c0_71 = arith.constant 0 : index
    %148 = vector.load %arg17[%c0_69, %c0_70, %c0_71] : memref<2x64x256xbf16, #tpu.memory_space<vmem>>, vector<1x64x256xbf16>
    %149 = vector.shape_cast %148 : vector<1x64x256xbf16> to vector<64x256xbf16>
    %cst_72 = arith.constant dense<0.000000e+00> : vector<64x64xf32>
    %150 = tpu.matmul %149, %147, %cst_72 {dimension_numbers = #tpu.dot_dimension_numbers<[1], [0], [0], [1], [0, 0, 1, 1], [], []>} : vector<64x256xbf16>, vector<256x64xbf16>, vector<64x64xf32> -> vector<64x64xf32>
    %151 = arith.addf %125, %150 : vector<64x64xf32>
    %c0_73 = arith.constant 0 : index
    %c0_74 = arith.constant 0 : index
    %c0_75 = arith.constant 0 : index
    %152 = vector.load %arg18[%c0_73, %c0_74, %c0_75] : memref<2x64x1xf32, #tpu.memory_space<vmem>>, vector<1x64x1xf32>
    %153 = vector.shape_cast %152 : vector<1x64x1xf32> to vector<64x1xf32>
    %154 = vector.broadcast %153 : vector<64x1xf32> to vector<64x64xf32>
    %155 = arith.addf %151, %154 : vector<64x64xf32>
    %c1 = arith.constant 1 : index
    %c0_76 = arith.constant 0 : index
    %c0_77 = arith.constant 0 : index
    %156 = vector.load %arg3[%c1, %c0_76, %c0_77] : memref<2x64x1xf32, #tpu.memory_space<vmem>>, vector<1x64x1xf32>
    %157 = vector.shape_cast %156 : vector<1x64x1xf32> to vector<64x1xf32>
    %c1_78 = arith.constant 1 : index
    %c0_79 = arith.constant 0 : index
    %c0_80 = arith.constant 0 : index
    %158 = vector.load %arg4[%c1_78, %c0_79, %c0_80] : memref<2x64x1xf32, #tpu.memory_space<vmem>>, vector<1x64x1xf32>
    %159 = vector.shape_cast %158 : vector<1x64x1xf32> to vector<64x1xf32>
    %cst_81 = arith.constant dense<0.000000e+00> : vector<64xf32>
    %160 = vector.multi_reduction <add>, %155, %cst_81 [0] : vector<64x64xf32> to vector<64xf32>
    %161 = vector.shape_cast %160 : vector<64xf32> to vector<1x64xf32>
    %cst_82 = arith.constant 6.400000e+01 : f32
    %162 = vector.broadcast %cst_82 : f32 to vector<1x64xf32>
    %163 = arith.divf %161, %162 : vector<1x64xf32>
    %164 = vector.broadcast %163 : vector<1x64xf32> to vector<64x64xf32>
    %165 = arith.subf %155, %164 : vector<64x64xf32>
    %166 = arith.mulf %165, %165 : vector<64x64xf32>
    %cst_83 = arith.constant dense<0.000000e+00> : vector<64xf32>
    %167 = vector.multi_reduction <add>, %166, %cst_83 [0] : vector<64x64xf32> to vector<64xf32>
    %168 = vector.shape_cast %167 : vector<64xf32> to vector<1x64xf32>
    %cst_84 = arith.constant 6.400000e+01 : f32
    %169 = vector.broadcast %cst_84 : f32 to vector<1x64xf32>
    %170 = arith.divf %168, %169 : vector<1x64xf32>
    %171 = vector.broadcast %163 : vector<1x64xf32> to vector<64x64xf32>
    %172 = arith.subf %155, %171 : vector<64x64xf32>
    %cst_85 = arith.constant 9.99999974E-6 : f32
    %173 = vector.broadcast %cst_85 : f32 to vector<1x64xf32>
    %174 = arith.addf %170, %173 : vector<1x64xf32>
    %175 = math.rsqrt %174 : vector<1x64xf32>
    %176 = vector.broadcast %175 : vector<1x64xf32> to vector<64x64xf32>
    %177 = arith.mulf %172, %176 : vector<64x64xf32>
    %178 = vector.broadcast %157 : vector<64x1xf32> to vector<64x64xf32>
    %179 = arith.mulf %177, %178 : vector<64x64xf32>
    %180 = vector.broadcast %159 : vector<64x1xf32> to vector<64x64xf32>
    %181 = arith.addf %179, %180 : vector<64x64xf32>
    %182 = arith.truncf %181 : vector<64x64xf32> to vector<64x64xbf16>
    %c1_86 = arith.constant 1 : index
    %c0_87 = arith.constant 0 : index
    %c0_88 = arith.constant 0 : index
    %183 = vector.load %arg5[%c1_86, %c0_87, %c0_88] : memref<2x64x64xbf16, #tpu.memory_space<vmem>>, vector<1x64x64xbf16>
    %184 = vector.shape_cast %183 : vector<1x64x64xbf16> to vector<64x64xbf16>
    %cst_89 = arith.constant dense<0.000000e+00> : vector<64x64xf32>
    %185 = tpu.matmul %184, %182, %cst_89 {dimension_numbers = #tpu.dot_dimension_numbers<[1], [0], [0], [1], [0, 0, 1, 1], [], []>} : vector<64x64xbf16>, vector<64x64xbf16>, vector<64x64xf32> -> vector<64x64xf32>
    %c1_90 = arith.constant 1 : index
    %c0_91 = arith.constant 0 : index
    %c0_92 = arith.constant 0 : index
    %186 = vector.load %arg8[%c1_90, %c0_91, %c0_92] : memref<2x64x1xf32, #tpu.memory_space<vmem>>, vector<1x64x1xf32>
    %187 = vector.shape_cast %186 : vector<1x64x1xf32> to vector<64x1xf32>
    %188 = vector.broadcast %187 : vector<64x1xf32> to vector<64x64xf32>
    %189 = arith.addf %185, %188 : vector<64x64xf32>
    %c1_93 = arith.constant 1 : index
    %c0_94 = arith.constant 0 : index
    %c0_95 = arith.constant 0 : index
    %190 = vector.load %arg6[%c1_93, %c0_94, %c0_95] : memref<2x64x64xbf16, #tpu.memory_space<vmem>>, vector<1x64x64xbf16>
    %191 = vector.shape_cast %190 : vector<1x64x64xbf16> to vector<64x64xbf16>
    %cst_96 = arith.constant dense<0.000000e+00> : vector<64x64xf32>
    %192 = tpu.matmul %191, %182, %cst_96 {dimension_numbers = #tpu.dot_dimension_numbers<[1], [0], [0], [1], [0, 0, 1, 1], [], []>} : vector<64x64xbf16>, vector<64x64xbf16>, vector<64x64xf32> -> vector<64x64xf32>
    %c1_97 = arith.constant 1 : index
    %c0_98 = arith.constant 0 : index
    %c0_99 = arith.constant 0 : index
    %193 = vector.load %arg9[%c1_97, %c0_98, %c0_99] : memref<2x64x1xf32, #tpu.memory_space<vmem>>, vector<1x64x1xf32>
    %194 = vector.shape_cast %193 : vector<1x64x1xf32> to vector<64x1xf32>
    %195 = vector.broadcast %194 : vector<64x1xf32> to vector<64x64xf32>
    %196 = arith.addf %192, %195 : vector<64x64xf32>
    %c1_100 = arith.constant 1 : index
    %c0_101 = arith.constant 0 : index
    %c0_102 = arith.constant 0 : index
    %197 = vector.load %arg7[%c1_100, %c0_101, %c0_102] : memref<2x64x64xbf16, #tpu.memory_space<vmem>>, vector<1x64x64xbf16>
    %198 = vector.shape_cast %197 : vector<1x64x64xbf16> to vector<64x64xbf16>
    %cst_103 = arith.constant dense<0.000000e+00> : vector<64x64xf32>
    %199 = tpu.matmul %198, %182, %cst_103 {dimension_numbers = #tpu.dot_dimension_numbers<[1], [0], [0], [1], [0, 0, 1, 1], [], []>} : vector<64x64xbf16>, vector<64x64xbf16>, vector<64x64xf32> -> vector<64x64xf32>
    %c1_104 = arith.constant 1 : index
    %c0_105 = arith.constant 0 : index
    %c0_106 = arith.constant 0 : index
    %200 = vector.load %arg10[%c1_104, %c0_105, %c0_106] : memref<2x64x1xf32, #tpu.memory_space<vmem>>, vector<1x64x1xf32>
    %201 = vector.shape_cast %200 : vector<1x64x1xf32> to vector<64x1xf32>
    %202 = vector.broadcast %201 : vector<64x1xf32> to vector<64x64xf32>
    %203 = arith.addf %199, %202 : vector<64x64xf32>
    %204 = arith.truncf %189 : vector<64x64xf32> to vector<64x64xbf16>
    %205 = vector.shape_cast %204 : vector<64x64xbf16> to vector<4x16x64xbf16>
    %206 = arith.truncf %203 : vector<64x64xf32> to vector<64x64xbf16>
    %207 = vector.shape_cast %206 : vector<64x64xbf16> to vector<4x16x64xbf16>
    %208 = vector.shape_cast %196 : vector<64x64xf32> to vector<4x16x64xf32>
    %209 = vector.extract_strided_slice %208 {offsets = [0, 0, 0], sizes = [1, 16, 64], strides = [1, 1, 1]} : vector<4x16x64xf32> to vector<1x16x64xf32>
    %210 = vector.shape_cast %209 : vector<1x16x64xf32> to vector<16x64xf32>
    %211 = tpu.transpose %210, [1, 0] : vector<16x64xf32> -> vector<64x16xf32>
    %212 = vector.extract_strided_slice %208 {offsets = [1, 0, 0], sizes = [1, 16, 64], strides = [1, 1, 1]} : vector<4x16x64xf32> to vector<1x16x64xf32>
    %213 = vector.shape_cast %212 : vector<1x16x64xf32> to vector<16x64xf32>
    %214 = tpu.transpose %213, [1, 0] : vector<16x64xf32> -> vector<64x16xf32>
    %215 = vector.extract_strided_slice %208 {offsets = [2, 0, 0], sizes = [1, 16, 64], strides = [1, 1, 1]} : vector<4x16x64xf32> to vector<1x16x64xf32>
    %216 = vector.shape_cast %215 : vector<1x16x64xf32> to vector<16x64xf32>
    %217 = tpu.transpose %216, [1, 0] : vector<16x64xf32> -> vector<64x16xf32>
    %218 = vector.extract_strided_slice %208 {offsets = [3, 0, 0], sizes = [1, 16, 64], strides = [1, 1, 1]} : vector<4x16x64xf32> to vector<1x16x64xf32>
    %219 = vector.shape_cast %218 : vector<1x16x64xf32> to vector<16x64xf32>
    %220 = tpu.transpose %219, [1, 0] : vector<16x64xf32> -> vector<64x16xf32>
    %221 = vector.shape_cast %211 : vector<64x16xf32> to vector<1x64x16xf32>
    %222 = vector.shape_cast %214 : vector<64x16xf32> to vector<1x64x16xf32>
    %223 = vector.shape_cast %217 : vector<64x16xf32> to vector<1x64x16xf32>
    %224 = vector.shape_cast %220 : vector<64x16xf32> to vector<1x64x16xf32>
    %225 = tpu.concatenate %221, %222, %223, %224 in 0 : vector<1x64x16xf32>, vector<1x64x16xf32>, vector<1x64x16xf32>, vector<1x64x16xf32> -> vector<4x64x16xf32>
    %226 = arith.truncf %225 : vector<4x64x16xf32> to vector<4x64x16xbf16>
    %cst_107 = arith.constant dense<0.000000e+00> : vector<4x64x64xf32>
    %227 = tpu.matmul %226, %205, %cst_107 {dimension_numbers = #tpu.dot_dimension_numbers<[2], [1], [1], [2], [0, 0, 0, 1, 1, 2], [0], [0]>} : vector<4x64x16xbf16>, vector<4x16x64xbf16>, vector<4x64x64xf32> -> vector<4x64x64xf32>
    %cst_108 = arith.constant 2.500000e-01 : f32
    %228 = vector.broadcast %cst_108 : f32 to vector<4x64x64xf32>
    %229 = arith.mulf %227, %228 : vector<4x64x64xf32>
    %cst_109 = arith.constant dense<0xFF800000> : vector<4x64xf32>
    %230 = vector.multi_reduction <maximumf>, %229, %cst_109 [1] : vector<4x64x64xf32> to vector<4x64xf32>
    %231 = vector.shape_cast %230 : vector<4x64xf32> to vector<4x1x64xf32>
    %232 = vector.broadcast %231 : vector<4x1x64xf32> to vector<4x64x64xf32>
    %233 = arith.subf %229, %232 : vector<4x64x64xf32>
    %234 = math.exp %233 : vector<4x64x64xf32>
    %cst_110 = arith.constant dense<0.000000e+00> : vector<4x64xf32>
    %235 = vector.multi_reduction <add>, %234, %cst_110 [1] : vector<4x64x64xf32> to vector<4x64xf32>
    %236 = vector.shape_cast %235 : vector<4x64xf32> to vector<4x1x64xf32>
    %237 = tpu.reciprocal %236 {approx = true} : vector<4x1x64xf32> -> vector<4x1x64xf32>
    %238 = vector.broadcast %237 : vector<4x1x64xf32> to vector<4x64x64xf32>
    %239 = arith.mulf %234, %238 : vector<4x64x64xf32>
    %240 = arith.truncf %239 : vector<4x64x64xf32> to vector<4x64x64xbf16>
    %cst_111 = arith.constant dense<0.000000e+00> : vector<4x16x64xf32>
    %241 = tpu.matmul %207, %240, %cst_111 {dimension_numbers = #tpu.dot_dimension_numbers<[2], [1], [1], [2], [0, 0, 0, 1, 1, 2], [0], [0]>} : vector<4x16x64xbf16>, vector<4x64x64xbf16>, vector<4x16x64xf32> -> vector<4x16x64xf32>
    %242 = vector.shape_cast %241 : vector<4x16x64xf32> to vector<64x64xf32>
    %243 = arith.truncf %242 : vector<64x64xf32> to vector<64x64xbf16>
    %c1_112 = arith.constant 1 : index
    %c0_113 = arith.constant 0 : index
    %c0_114 = arith.constant 0 : index
    %244 = vector.load %arg11[%c1_112, %c0_113, %c0_114] : memref<2x64x64xbf16, #tpu.memory_space<vmem>>, vector<1x64x64xbf16>
    %245 = vector.shape_cast %244 : vector<1x64x64xbf16> to vector<64x64xbf16>
    %cst_115 = arith.constant dense<0.000000e+00> : vector<64x64xf32>
    %246 = tpu.matmul %245, %243, %cst_115 {dimension_numbers = #tpu.dot_dimension_numbers<[1], [0], [0], [1], [0, 0, 1, 1], [], []>} : vector<64x64xbf16>, vector<64x64xbf16>, vector<64x64xf32> -> vector<64x64xf32>
    %c1_116 = arith.constant 1 : index
    %c0_117 = arith.constant 0 : index
    %c0_118 = arith.constant 0 : index
    %247 = vector.load %arg12[%c1_116, %c0_117, %c0_118] : memref<2x64x1xf32, #tpu.memory_space<vmem>>, vector<1x64x1xf32>
    %248 = vector.shape_cast %247 : vector<1x64x1xf32> to vector<64x1xf32>
    %249 = vector.broadcast %248 : vector<64x1xf32> to vector<64x64xf32>
    %250 = arith.addf %246, %249 : vector<64x64xf32>
    %251 = arith.addf %155, %250 : vector<64x64xf32>
    %c1_119 = arith.constant 1 : index
    %c0_120 = arith.constant 0 : index
    %c0_121 = arith.constant 0 : index
    %252 = vector.load %arg13[%c1_119, %c0_120, %c0_121] : memref<2x64x1xf32, #tpu.memory_space<vmem>>, vector<1x64x1xf32>
    %253 = vector.shape_cast %252 : vector<1x64x1xf32> to vector<64x1xf32>
    %c1_122 = arith.constant 1 : index
    %c0_123 = arith.constant 0 : index
    %c0_124 = arith.constant 0 : index
    %254 = vector.load %arg14[%c1_122, %c0_123, %c0_124] : memref<2x64x1xf32, #tpu.memory_space<vmem>>, vector<1x64x1xf32>
    %255 = vector.shape_cast %254 : vector<1x64x1xf32> to vector<64x1xf32>
    %cst_125 = arith.constant dense<0.000000e+00> : vector<64xf32>
    %256 = vector.multi_reduction <add>, %251, %cst_125 [0] : vector<64x64xf32> to vector<64xf32>
    %257 = vector.shape_cast %256 : vector<64xf32> to vector<1x64xf32>
    %cst_126 = arith.constant 6.400000e+01 : f32
    %258 = vector.broadcast %cst_126 : f32 to vector<1x64xf32>
    %259 = arith.divf %257, %258 : vector<1x64xf32>
    %260 = vector.broadcast %259 : vector<1x64xf32> to vector<64x64xf32>
    %261 = arith.subf %251, %260 : vector<64x64xf32>
    %262 = arith.mulf %261, %261 : vector<64x64xf32>
    %cst_127 = arith.constant dense<0.000000e+00> : vector<64xf32>
    %263 = vector.multi_reduction <add>, %262, %cst_127 [0] : vector<64x64xf32> to vector<64xf32>
    %264 = vector.shape_cast %263 : vector<64xf32> to vector<1x64xf32>
    %cst_128 = arith.constant 6.400000e+01 : f32
    %265 = vector.broadcast %cst_128 : f32 to vector<1x64xf32>
    %266 = arith.divf %264, %265 : vector<1x64xf32>
    %267 = vector.broadcast %259 : vector<1x64xf32> to vector<64x64xf32>
    %268 = arith.subf %251, %267 : vector<64x64xf32>
    %cst_129 = arith.constant 9.99999974E-6 : f32
    %269 = vector.broadcast %cst_129 : f32 to vector<1x64xf32>
    %270 = arith.addf %266, %269 : vector<1x64xf32>
    %271 = math.rsqrt %270 : vector<1x64xf32>
    %272 = vector.broadcast %271 : vector<1x64xf32> to vector<64x64xf32>
    %273 = arith.mulf %268, %272 : vector<64x64xf32>
    %274 = vector.broadcast %253 : vector<64x1xf32> to vector<64x64xf32>
    %275 = arith.mulf %273, %274 : vector<64x64xf32>
    %276 = vector.broadcast %255 : vector<64x1xf32> to vector<64x64xf32>
    %277 = arith.addf %275, %276 : vector<64x64xf32>
    %278 = arith.truncf %277 : vector<64x64xf32> to vector<64x64xbf16>
    %c1_130 = arith.constant 1 : index
    %c0_131 = arith.constant 0 : index
    %c0_132 = arith.constant 0 : index
    %279 = vector.load %arg15[%c1_130, %c0_131, %c0_132] : memref<2x256x64xbf16, #tpu.memory_space<vmem>>, vector<1x256x64xbf16>
    %280 = vector.shape_cast %279 : vector<1x256x64xbf16> to vector<256x64xbf16>
    %cst_133 = arith.constant dense<0.000000e+00> : vector<256x64xf32>
    %281 = tpu.matmul %280, %278, %cst_133 {dimension_numbers = #tpu.dot_dimension_numbers<[1], [0], [0], [1], [0, 0, 1, 1], [], []>} : vector<256x64xbf16>, vector<64x64xbf16>, vector<256x64xf32> -> vector<256x64xf32>
    %c1_134 = arith.constant 1 : index
    %c0_135 = arith.constant 0 : index
    %c0_136 = arith.constant 0 : index
    %282 = vector.load %arg16[%c1_134, %c0_135, %c0_136] : memref<2x256x1xf32, #tpu.memory_space<vmem>>, vector<1x256x1xf32>
    %283 = vector.shape_cast %282 : vector<1x256x1xf32> to vector<256x1xf32>
    %284 = vector.broadcast %283 : vector<256x1xf32> to vector<256x64xf32>
    %285 = arith.addf %281, %284 : vector<256x64xf32>
    %cst_137 = arith.constant 5.000000e-01 : f32
    %286 = vector.broadcast %cst_137 : f32 to vector<256x64xf32>
    %287 = arith.mulf %286, %285 : vector<256x64xf32>
    %cst_138 = arith.constant 4.471500e-02 : f32
    %288 = vector.broadcast %cst_138 : f32 to vector<256x64xf32>
    %289 = arith.mulf %288, %285 : vector<256x64xf32>
    %290 = arith.mulf %289, %285 : vector<256x64xf32>
    %291 = arith.mulf %290, %285 : vector<256x64xf32>
    %292 = arith.addf %285, %291 : vector<256x64xf32>
    %cst_139 = arith.constant 0.797884583 : f32
    %293 = vector.broadcast %cst_139 : f32 to vector<256x64xf32>
    %294 = arith.mulf %293, %292 : vector<256x64xf32>
    %295 = math.tanh %294 : vector<256x64xf32>
    %cst_140 = arith.constant 1.000000e+00 : f32
    %296 = vector.broadcast %cst_140 : f32 to vector<256x64xf32>
    %297 = arith.addf %296, %295 : vector<256x64xf32>
    %298 = arith.mulf %287, %297 : vector<256x64xf32>
    %299 = arith.truncf %298 : vector<256x64xf32> to vector<256x64xbf16>
    %c1_141 = arith.constant 1 : index
    %c0_142 = arith.constant 0 : index
    %c0_143 = arith.constant 0 : index
    %300 = vector.load %arg17[%c1_141, %c0_142, %c0_143] : memref<2x64x256xbf16, #tpu.memory_space<vmem>>, vector<1x64x256xbf16>
    %301 = vector.shape_cast %300 : vector<1x64x256xbf16> to vector<64x256xbf16>
    %cst_144 = arith.constant dense<0.000000e+00> : vector<64x64xf32>
    %302 = tpu.matmul %301, %299, %cst_144 {dimension_numbers = #tpu.dot_dimension_numbers<[1], [0], [0], [1], [0, 0, 1, 1], [], []>} : vector<64x256xbf16>, vector<256x64xbf16>, vector<64x64xf32> -> vector<64x64xf32>
    %303 = arith.addf %277, %302 : vector<64x64xf32>
    %c1_145 = arith.constant 1 : index
    %c0_146 = arith.constant 0 : index
    %c0_147 = arith.constant 0 : index
    %304 = vector.load %arg18[%c1_145, %c0_146, %c0_147] : memref<2x64x1xf32, #tpu.memory_space<vmem>>, vector<1x64x1xf32>
    %305 = vector.shape_cast %304 : vector<1x64x1xf32> to vector<64x1xf32>
    %306 = vector.broadcast %305 : vector<64x1xf32> to vector<64x64xf32>
    %307 = arith.addf %303, %306 : vector<64x64xf32>
    %c0_148 = arith.constant 0 : index
    %c0_149 = arith.constant 0 : index
    %308 = vector.load %arg19[%c0_148, %c0_149] : memref<64x1xf32, #tpu.memory_space<vmem>>, vector<64x1xf32>
    %c0_150 = arith.constant 0 : index
    %c0_151 = arith.constant 0 : index
    %309 = vector.load %arg20[%c0_150, %c0_151] : memref<64x1xf32, #tpu.memory_space<vmem>>, vector<64x1xf32>
    %cst_152 = arith.constant dense<0.000000e+00> : vector<64xf32>
    %310 = vector.multi_reduction <add>, %307, %cst_152 [0] : vector<64x64xf32> to vector<64xf32>
    %311 = vector.shape_cast %310 : vector<64xf32> to vector<1x64xf32>
    %cst_153 = arith.constant 6.400000e+01 : f32
    %312 = vector.broadcast %cst_153 : f32 to vector<1x64xf32>
    %313 = arith.divf %311, %312 : vector<1x64xf32>
    %314 = vector.broadcast %313 : vector<1x64xf32> to vector<64x64xf32>
    %315 = arith.subf %307, %314 : vector<64x64xf32>
    %316 = arith.mulf %315, %315 : vector<64x64xf32>
    %cst_154 = arith.constant dense<0.000000e+00> : vector<64xf32>
    %317 = vector.multi_reduction <add>, %316, %cst_154 [0] : vector<64x64xf32> to vector<64xf32>
    %318 = vector.shape_cast %317 : vector<64xf32> to vector<1x64xf32>
    %cst_155 = arith.constant 6.400000e+01 : f32
    %319 = vector.broadcast %cst_155 : f32 to vector<1x64xf32>
    %320 = arith.divf %318, %319 : vector<1x64xf32>
    %321 = vector.broadcast %313 : vector<1x64xf32> to vector<64x64xf32>
    %322 = arith.subf %307, %321 : vector<64x64xf32>
    %cst_156 = arith.constant 9.99999974E-6 : f32
    %323 = vector.broadcast %cst_156 : f32 to vector<1x64xf32>
    %324 = arith.addf %320, %323 : vector<1x64xf32>
    %325 = math.rsqrt %324 : vector<1x64xf32>
    %326 = vector.broadcast %325 : vector<1x64xf32> to vector<64x64xf32>
    %327 = arith.mulf %322, %326 : vector<64x64xf32>
    %328 = vector.broadcast %308 : vector<64x1xf32> to vector<64x64xf32>
    %329 = arith.mulf %327, %328 : vector<64x64xf32>
    %330 = vector.broadcast %309 : vector<64x1xf32> to vector<64x64xf32>
    %331 = arith.addf %329, %330 : vector<64x64xf32>
    %332 = tpu.transpose %331, [1, 0] : vector<64x64xf32> -> vector<64x64xf32>
    %c0_157 = arith.constant 0 : index
    %c0_158 = arith.constant 0 : index
    %333 = vector.load %arg21[%c0_157, %c0_158] : memref<1x64xf32, #tpu.memory_space<vmem>>, vector<1x64xf32>
    %334 = vector.broadcast %333 : vector<1x64xf32> to vector<64x64xf32>
    %335 = arith.mulf %332, %334 : vector<64x64xf32>
    %cst_159 = arith.constant dense<0.000000e+00> : vector<64xf32>
    %336 = vector.multi_reduction <add>, %335, %cst_159 [1] : vector<64x64xf32> to vector<64xf32>
    %337 = vector.shape_cast %336 : vector<64xf32> to vector<64x1xf32>
    %c0_160 = arith.constant 0 : index
    %c0_161 = arith.constant 0 : index
    %338 = vector.load %arg22[%c0_160, %c0_161] : memref<1x1xf32, #tpu.memory_space<vmem>>, vector<1x1xf32>
    %339 = vector.broadcast %338 : vector<1x1xf32> to vector<64x1xf32>
    %340 = arith.addf %337, %339 : vector<64x1xf32>
    %cst_162 = arith.constant dense<0xFF800000> : vector<1xf32>
    %341 = vector.multi_reduction <maximumf>, %340, %cst_162 [0] : vector<64x1xf32> to vector<1xf32>
    %342 = vector.shape_cast %341 : vector<1xf32> to vector<1x1xf32>
    %343 = vector.broadcast %342 : vector<1x1xf32> to vector<64x1xf32>
    %344 = arith.subf %340, %343 : vector<64x1xf32>
    %345 = math.exp %344 : vector<64x1xf32>
    %cst_163 = arith.constant dense<0.000000e+00> : vector<1xf32>
    %346 = vector.multi_reduction <add>, %345, %cst_163 [0] : vector<64x1xf32> to vector<1xf32>
    %347 = vector.shape_cast %346 : vector<1xf32> to vector<1x1xf32>
    %348 = tpu.reciprocal %347 {approx = true} : vector<1x1xf32> -> vector<1x1xf32>
    %349 = vector.broadcast %348 : vector<1x1xf32> to vector<64x1xf32>
    %350 = arith.mulf %345, %349 : vector<64x1xf32>
    %351 = vector.broadcast %350 : vector<64x1xf32> to vector<64x64xf32>
    %352 = arith.mulf %351, %332 : vector<64x64xf32>
    %cst_164 = arith.constant dense<0.000000e+00> : vector<64xf32>
    %353 = vector.multi_reduction <add>, %352, %cst_164 [0] : vector<64x64xf32> to vector<64xf32>
    %354 = vector.shape_cast %353 : vector<64xf32> to vector<1x64xf32>
    %355 = arith.truncf %354 : vector<1x64xf32> to vector<1x64xbf16>
    %c0_165 = arith.constant 0 : index
    %c0_166 = arith.constant 0 : index
    %356 = vector.load %arg23[%c0_165, %c0_166] : memref<64x128xbf16, #tpu.memory_space<vmem>>, vector<64x128xbf16>
    %cst_167 = arith.constant dense<0.000000e+00> : vector<1x128xf32>
    %357 = tpu.matmul %355, %356, %cst_167 {dimension_numbers = #tpu.dot_dimension_numbers<[1], [0], [0], [1], [0, 0, 1, 1], [], []>} : vector<1x64xbf16>, vector<64x128xbf16>, vector<1x128xf32> -> vector<1x128xf32>
    %c0_168 = arith.constant 0 : index
    %c0_169 = arith.constant 0 : index
    %358 = vector.load %arg24[%c0_168, %c0_169] : memref<1x128xf32, #tpu.memory_space<vmem>>, vector<1x128xf32>
    %359 = arith.addf %357, %358 : vector<1x128xf32>
    %c0_170 = arith.constant 0 : index
    %c0_171 = arith.constant 0 : index
    %c0_172 = arith.constant 0 : index
    %360 = vector.load %arg25[%c0_170, %c0_171, %c0_172] : memref<1x1x128xf32, #tpu.memory_space<vmem>>, vector<1x1x128xf32>
    %361 = vector.shape_cast %360 : vector<1x1x128xf32> to vector<1x128xf32>
    %362 = vector.shape_cast %359 : vector<1x128xf32> to vector<1x1x128xf32>
    tpu.vector_store %arg25[%c0_170, %c0_171, %c0_172], %362 {strides = array<i32>} : memref<1x1x128xf32, #tpu.memory_space<vmem>>, vector<1x1x128xf32>,
    return
  }
  func.func @transform_0(%arg0: i32) -> (i32, i32, i32) {
    %c0_i32 = arith.constant 0 : i32
    %c0_i32_0 = arith.constant 0 : i32
    %c0_i32_1 = arith.constant 0 : i32
    return %arg0, %c0_i32, %c0_i32_0 : i32, i32, i32
  }
  func.func @transform_1(%arg0: i32) -> (i32, i32) {
    %c0_i32 = arith.constant 0 : i32
    %c0_i32_0 = arith.constant 0 : i32
    %c0_i32_1 = arith.constant 0 : i32
    return %c0_i32, %c0_i32_0 : i32, i32
  }
  func.func @transform_2(%arg0: i32) -> (i32, i32, i32) {
    %c0_i32 = arith.constant 0 : i32
    %c0_i32_0 = arith.constant 0 : i32
    %c0_i32_1 = arith.constant 0 : i32
    %c0_i32_2 = arith.constant 0 : i32
    return %c0_i32, %c0_i32_0, %c0_i32_1 : i32, i32, i32
  }
  func.func @transform_3(%arg0: i32) -> (i32, i32, i32) {
    %c0_i32 = arith.constant 0 : i32
    %c0_i32_0 = arith.constant 0 : i32
    %c0_i32_1 = arith.constant 0 : i32
    %c0_i32_2 = arith.constant 0 : i32
    return %c0_i32, %c0_i32_0, %c0_i32_1 : i32, i32, i32
  }
  func.func @transform_4(%arg0: i32) -> (i32, i32, i32) {
    %c0_i32 = arith.constant 0 : i32
    %c0_i32_0 = arith.constant 0 : i32
    %c0_i32_1 = arith.constant 0 : i32
    %c0_i32_2 = arith.constant 0 : i32
    return %c0_i32, %c0_i32_0, %c0_i32_1 : i32, i32, i32
  }
  func.func @transform_5(%arg0: i32) -> (i32, i32, i32) {
    %c0_i32 = arith.constant 0 : i32
    %c0_i32_0 = arith.constant 0 : i32
    %c0_i32_1 = arith.constant 0 : i32
    %c0_i32_2 = arith.constant 0 : i32
    return %c0_i32, %c0_i32_0, %c0_i32_1 : i32, i32, i32
  }
  func.func @transform_6(%arg0: i32) -> (i32, i32, i32) {
    %c0_i32 = arith.constant 0 : i32
    %c0_i32_0 = arith.constant 0 : i32
    %c0_i32_1 = arith.constant 0 : i32
    %c0_i32_2 = arith.constant 0 : i32
    return %c0_i32, %c0_i32_0, %c0_i32_1 : i32, i32, i32
  }
  func.func @transform_7(%arg0: i32) -> (i32, i32, i32) {
    %c0_i32 = arith.constant 0 : i32
    %c0_i32_0 = arith.constant 0 : i32
    %c0_i32_1 = arith.constant 0 : i32
    %c0_i32_2 = arith.constant 0 : i32
    return %c0_i32, %c0_i32_0, %c0_i32_1 : i32, i32, i32
  }
  func.func @transform_8(%arg0: i32) -> (i32, i32, i32) {
    %c0_i32 = arith.constant 0 : i32
    %c0_i32_0 = arith.constant 0 : i32
    %c0_i32_1 = arith.constant 0 : i32
    %c0_i32_2 = arith.constant 0 : i32
    return %c0_i32, %c0_i32_0, %c0_i32_1 : i32, i32, i32
  }
  func.func @transform_9(%arg0: i32) -> (i32, i32, i32) {
    %c0_i32 = arith.constant 0 : i32
    %c0_i32_0 = arith.constant 0 : i32
    %c0_i32_1 = arith.constant 0 : i32
    %c0_i32_2 = arith.constant 0 : i32
    return %c0_i32, %c0_i32_0, %c0_i32_1 : i32, i32, i32
  }
  func.func @transform_10(%arg0: i32) -> (i32, i32, i32) {
    %c0_i32 = arith.constant 0 : i32
    %c0_i32_0 = arith.constant 0 : i32
    %c0_i32_1 = arith.constant 0 : i32
    %c0_i32_2 = arith.constant 0 : i32
    return %c0_i32, %c0_i32_0, %c0_i32_1 : i32, i32, i32
  }
  func.func @transform_11(%arg0: i32) -> (i32, i32, i32) {
    %c0_i32 = arith.constant 0 : i32
    %c0_i32_0 = arith.constant 0 : i32
    %c0_i32_1 = arith.constant 0 : i32
    %c0_i32_2 = arith.constant 0 : i32
    return %c0_i32, %c0_i32_0, %c0_i32_1 : i32, i32, i32
  }
  func.func @transform_12(%arg0: i32) -> (i32, i32, i32) {
    %c0_i32 = arith.constant 0 : i32
    %c0_i32_0 = arith.constant 0 : i32
    %c0_i32_1 = arith.constant 0 : i32
    %c0_i32_2 = arith.constant 0 : i32
    return %c0_i32, %c0_i32_0, %c0_i32_1 : i32, i32, i32
  }
  func.func @transform_13(%arg0: i32) -> (i32, i32, i32) {
    %c0_i32 = arith.constant 0 : i32
    %c0_i32_0 = arith.constant 0 : i32
    %c0_i32_1 = arith.constant 0 : i32
    %c0_i32_2 = arith.constant 0 : i32
    return %c0_i32, %c0_i32_0, %c0_i32_1 : i32, i32, i32
  }
  func.func @transform_14(%arg0: i32) -> (i32, i32, i32) {
    %c0_i32 = arith.constant 0 : i32
    %c0_i32_0 = arith.constant 0 : i32
    %c0_i32_1 = arith.constant 0 : i32
    %c0_i32_2 = arith.constant 0 : i32
    return %c0_i32, %c0_i32_0, %c0_i32_1 : i32, i32, i32
  }
  func.func @transform_15(%arg0: i32) -> (i32, i32, i32) {
    %c0_i32 = arith.constant 0 : i32
    %c0_i32_0 = arith.constant 0 : i32
    %c0_i32_1 = arith.constant 0 : i32
    %c0_i32_2 = arith.constant 0 : i32
    return %c0_i32, %c0_i32_0, %c0_i32_1 : i32, i32, i32
  }
  func.func @transform_16(%arg0: i32) -> (i32, i32, i32) {
    %c0_i32 = arith.constant 0 : i32
    %c0_i32_0 = arith.constant 0 : i32
    %c0_i32_1 = arith.constant 0 : i32
    %c0_i32_2 = arith.constant 0 : i32
    return %c0_i32, %c0_i32_0, %c0_i32_1 : i32, i32, i32
  }
  func.func @transform_17(%arg0: i32) -> (i32, i32, i32) {
    %c0_i32 = arith.constant 0 : i32
    %c0_i32_0 = arith.constant 0 : i32
    %c0_i32_1 = arith.constant 0 : i32
    %c0_i32_2 = arith.constant 0 : i32
    return %c0_i32, %c0_i32_0, %c0_i32_1 : i32, i32, i32
  }
  func.func @transform_18(%arg0: i32) -> (i32, i32) {
    %c0_i32 = arith.constant 0 : i32
    %c0_i32_0 = arith.constant 0 : i32
    %c0_i32_1 = arith.constant 0 : i32
    return %c0_i32, %c0_i32_0 : i32, i32
  }
  func.func @transform_19(%arg0: i32) -> (i32, i32) {
    %c0_i32 = arith.constant 0 : i32
    %c0_i32_0 = arith.constant 0 : i32
    %c0_i32_1 = arith.constant 0 : i32
    return %c0_i32, %c0_i32_0 : i32, i32
  }
  func.func @transform_20(%arg0: i32) -> (i32, i32) {
    %c0_i32 = arith.constant 0 : i32
    %c0_i32_0 = arith.constant 0 : i32
    %c0_i32_1 = arith.constant 0 : i32
    return %c0_i32, %c0_i32_0 : i32, i32
  }
  func.func @transform_21(%arg0: i32) -> (i32, i32) {
    %c0_i32 = arith.constant 0 : i32
    %c0_i32_0 = arith.constant 0 : i32
    %c0_i32_1 = arith.constant 0 : i32
    return %c0_i32, %c0_i32_0 : i32, i32
  }
  func.func @transform_22(%arg0: i32) -> (i32, i32) {
    %c0_i32 = arith.constant 0 : i32
    %c0_i32_0 = arith.constant 0 : i32
    %c0_i32_1 = arith.constant 0 : i32
    return %c0_i32, %c0_i32_0 : i32, i32
  }
  func.func @transform_23(%arg0: i32) -> (i32, i32) {
    %c0_i32 = arith.constant 0 : i32
    %c0_i32_0 = arith.constant 0 : i32
    %c0_i32_1 = arith.constant 0 : i32
    return %c0_i32, %c0_i32_0 : i32, i32
  }
  func.func @transform_24(%arg0: i32) -> (i32, i32, i32) {
    %c0_i32 = arith.constant 0 : i32
    %c0_i32_0 = arith.constant 0 : i32
    %c0_i32_1 = arith.constant 0 : i32
    return %arg0, %c0_i32, %c0_i32_0 : i32, i32, i32
  }
}

</mosaic_0001>

<bundles_post_ra>
// kernel: transformer_classifier_forward.1
= control target key start
LH: loop header
LB: loop body
LE: loop exit
PB: predicated region body
PF: predicated region fallthrough
CT: control target
= control target key end

     0   :  { %s12262_s0 = inlined_call_operand.vmem [shape: f32[2,64,64], index: 0, kind: input, shape index: {}]   ;;  %s12263_s1 = inlined_call_operand.vmem [shape: f32[64,64], index: 1, kind: input, shape index: {}]   ;;  %s12264_s2 = inlined_call_operand.vmem [shape: f32[2,64,1], index: 2, kind: input, shape index: {}]   ;;  %s12265_s3 = inlined_call_operand.vmem [shape: f32[2,64,1], index: 3, kind: input, shape index: {}]   ;;  %s12266_s4 = inlined_call_operand.vmem [shape: bf16[2,64,64], index: 4, kind: input, shape index: {}]   ;;  %s12267_s5 = inlined_call_operand.vmem [shape: bf16[2,64,64], index: 5, kind: input, shape index: {}]   ;;  %s12268_s6 = inlined_call_operand.vmem [shape: bf16[2,64,64], index: 6, kind: input, shape index: {}]   ;;  %s12269_s7 = inlined_call_operand.vmem [shape: f32[2,64,1], index: 7, kind: input, shape index: {}]   ;;  %s12270_s8 = inlined_call_operand.vmem [shape: f32[2,64,1], index: 8, kind: input, shape index: {}]   ;;  %s12271_s9 = inlined_call_operand.vmem [shape: f32[2,64,1], index: 9, kind: input, shape index: {}]   ;;  %s12272_s10 = inlined_call_operand.vmem [shape: bf16[2,64,64], index: 10, kind: input, shape index: {}]   ;;  %s12273_s11 = inlined_call_operand.vmem [shape: f32[2,64,1], index: 11, kind: input, shape index: {}]   ;;  %s12274_s12 = inlined_call_operand.vmem [shape: f32[2,64,1], index: 12, kind: input, shape index: {}]   ;;  %s12275_s13 = inlined_call_operand.vmem [shape: f32[2,64,1], index: 13, kind: input, shape index: {}]   ;;  %s12276_s14 = inlined_call_operand.vmem [shape: bf16[2,256,64], index: 14, kind: input, shape index: {}]   ;;  %s12277_s15 = inlined_call_operand.vmem [shape: f32[2,256,1], index: 15, kind: input, shape index: {}]   ;;  %s12278_s16 = inlined_call_operand.vmem [shape: bf16[2,64,256], index: 16, kind: input, shape index: {}]   ;;  %s12279_s17 = inlined_call_operand.vmem [shape: f32[2,64,1], index: 17, kind: input, shape index: {}]   ;;  %s12280_s18 = inlined_call_operand.vmem [shape: f32[64,1], index: 18, kind: input, shape index: {}]   ;;  %s12281_s19 = inlined_call_operand.vmem [shape: f32[64,1], index: 19, kind: input, shape index: {}]   ;;  %s12282_s20 = inlined_call_operand.vmem [shape: f32[1,64], index: 20, kind: input, shape index: {}]   ;;  %s12283_s21 = inlined_call_operand.<no memory space> [shape: f32[1,1], index: 21, kind: input, shape index: {}]   ;;  %s12284_s22 = inlined_call_operand.vmem [shape: bf16[64,128], index: 22, kind: input, shape index: {}]   ;;  %s12285_s23 = inlined_call_operand.vmem [shape: f32[1,128], index: 23, kind: input, shape index: {}]   ;;  %s12286_s24 = inlined_call_operand.hbm [shape: f32[2,1,128], index: 24, kind: output, shape index: {}]  }
   0x1   :  { %12353 = sst [smem:[#allocation27_spill]] %s12262_s0  ;;  %v29_v0 = vstv %s12283_s21 }
   0x2   :  { %12354 = sst [smem:[#allocation28_spill]] %s12263_s1  ;;  %30 = vst [vmem:[#allocation2] sm:$0x1] %v29_v0 }
   0x3   :  { %12355 = sst [smem:[#allocation29_spill]] %s12264_s2 }
   0x4   :  { %12356 = sst [smem:[#allocation30_spill]] %s12265_s3 }
   0x5   :  { %12357 = sst [smem:[#allocation31_spill]] %s12266_s4 }
   0x6   :  { %12358 = sst [smem:[#allocation32_spill]] %s12267_s5 }
   0x7   :  { %12359 = sst [smem:[#allocation33_spill]] %s12268_s6 }
   0x8   :  { %12360 = sst [smem:[#allocation34_spill]] %s12269_s7 }
   0x9   :  { %12361 = sst [smem:[#allocation35_spill]] %s12270_s8 }
   0xa   :  { %12362 = sst [smem:[#allocation36_spill]] %s12285_s23 }
   0xb   :  { %12363 = sst [smem:[#allocation37_spill]] %s12286_s24 }
   0xc   :  { %31 = vsyncpa [#allocation4], 0 }
   0xd   :  { %33 = vsyncpa [#allocation4 + $0x1], 0  ;;  %s9136_s27 = smov 0   ;;  %s9138_s28 = smov 0  }
   0xe   :  { %s9140_s6 = smov 0   ;;  %s9142_s2 = smov 0  }
   0xf LB: > { %12364 = sst [smem:[#allocation6_spill]] %s8990_s27  ;;  %s9157_s21 = sadd.s32 4294967295, %s9002_s2   ;;  %s9002_s2 = sphi %s9142_s2, %s12478_s2   ;;  %s8998_s6 = sphi %s9140_s6, %s12480_s6   ;;  %s8994_s28 = sphi %s9138_s28, %s12482_s28   ;;  %s8990_s27 = sphi %s9136_s27, %s12481_s27  }
  0x10   : > { %12365 = sst [smem:[#allocation7_spill]] %s8998_s6  ;;  %s7288_s29 = sadd.s32 4294967294, %s9002_s2  }
  0x11   : > { %12366 = sst [smem:[#allocation8_spill]] %s9002_s2  ;;  %s9161_s0 = sadd.s32 1, %s9002_s2  }
  0x12   : > { %12367 = sst [smem:[#allocation9_spill]] %s9157_s21  ;;  %s555_s7 = sadd.s32 1, %s8998_s6 }
  0x13   : > { %12368 = sst [smem:[#allocation10_spill]] %s9161_s0  ;;  %s552_s30 = ssub.s32 %s9002_s2, %s9161_s0 }
  0x14   : > { %p565_p0 = scmp.ne.s32.totalorder %s8998_s6, %s8994_s28  ;;  %p553_p1 = scmp.eq.s32.totalorder %s552_s30, 0 }
  0x15   : > { %p566_p2 = scmp.eq.s32.totalorder %s9157_s21, 1  ;;  %p571_p3 = scmp.ne.s32.totalorder %s8994_s28, %s8990_s27 }
  0x16   : > { %p572_p4 = scmp.eq.s32.totalorder %s7288_s29, 1  ;;  %p7291_p7 = scmp.ge.s32.totalorder %s9002_s2, 1 }
  0x17   : > { %s9172_s3 = scalar_select %p553_p1, %s8998_s6, %s555_s7  }
  0x18   : > { %p9174_p5 = por %p566_p2, %p565_p0  ;;  %p9178_p6 = por %p572_p4, %p571_p3 }
  0x19   : > { %12369 = sst [smem:[#allocation11_spill]] %s9172_s3  ;;  %p667_p8 = scmp.lt.s32.totalorder %s9002_s2, 3 }
  0x1a   : > { %s12370_s25 = scalar_select %p9174_p5, 1, 0 }
  0x1b   : > { %s12372_s8 = scalar_select %p9178_p6, 1, 0 }
  0x1c   : > { %12371 = sst [smem:[#allocation12_spill]] %s12370_s25  ;;  %p668_p9 = pnand %p7291_p7, %p667_p8 }
  0x1d   : > { %12373 = sst [smem:[#allocation13_spill]] %s12372_s8 }
  0x1e   : > { %671 = sbr.rel (%p668_p9) target bundleno = 4631 (0x1217), region = 116 }
  0x23   : > { %s12374_s5 = sld [smem:[#allocation30_spill]]  ;;  %p732_p10 = scmp.lt.s32.totalorder %s9157_s21, 1  ;;  %v9004_v3 = vmov 0   ;;  %vm778_vm0 = vcmask 523264   ;;  %vm1561_vm1 = vcmask 130048   ;;  %vm9006_vm2 = vmmov 0  }
  0x24   : > { %s12375_s7 = sld [smem:[#allocation29_spill]]  ;;  %8373 = vset.pattern.permute.xlu1 %v9004_v3  ;;  %8372 = vset.pattern.permute.xlu0 %v9004_v3  ;;  %vm6997_vm3 = vcmask 7168  }
  0x25   : > { %s733_s30 = scalar_select %p732_p10, %s9157_s21, 1 }
  0x26   : > { %s12376_s23 = sld [smem:[#allocation27_spill]] }
  0x27   : > { %s7664_s1 = sshll.u32 %s733_s30, 6  ;;  %s12377_s26 = sld [smem:[#allocation28_spill]] }
  0x28   : > { %s12386_s4 = sld [smem:[#allocation35_spill]] }
  0x29   : > { %v776_v1 = vld [vmem:[%s12374_s5 + $0x30] sm:$0xff]  ;;  %v777_v4 = vld [vmem:[%s12374_s5 + $0x38] sm:$0xff]  ;;  %v775_v8 = vld [vmem:[%s12374_s5 + $0x28] sm:$0xff]  ;;  %s12387_s2 = sld [smem:[#allocation31_spill]] }
  0x2a   : > { %v768_v2 = vld [vmem:[%s12375_s7 + $0x30] sm:$0xff]  ;;  %930 = vperm.xlu1 %8373, %v776_v1   ;;  %v769_v5 = vld [vmem:[%s12375_s7 + $0x38] sm:$0xff]  ;;  %v767_v6 = vld [vmem:[%s12375_s7 + $0x28] sm:$0xff]  ;;  %s12389_s3 = sld [smem:[#allocation32_spill]] }
  0x2b   : > { %882 = vperm.xlu0 %8372, %v768_v2   ;;  %v766_v7 = vld [vmem:[%s12375_s7 + $0x20] sm:$0xff]  ;;  %v765_v17 = vld [vmem:[%s12375_s7 + $0x18] sm:$0xff]  ;;  %v764_v18 = vld [vmem:[%s12375_s7 + $0x10] sm:$0xff]  ;;  %s12390_s30 = sld [smem:[#allocation34_spill]] }
  0x2c   : > { %s736_s6 = scalar_lea.vmem %s12376_s23, %s7664_s1  ;;  %v774_v9 = vld [vmem:[%s12374_s5 + $0x20] sm:$0xff]  ;;  %v773_v37 = vld [vmem:[%s12374_s5 + $0x18] sm:$0xff]  ;;  %v772_v38 = vld [vmem:[%s12374_s5 + $0x10] sm:$0xff]  ;;  %s12391_s29 = sld [smem:[#allocation33_spill]] }
  0x2d   : > { %v738_v10 = vld [vmem:[%s736_s6] sm:$0xff]  ;;  %v739_v11 = vld [vmem:[%s736_s6 + $0x8] sm:$0xff]  ;;  %v740_v12 = vld [vmem:[%s736_s6 + $0x10] sm:$0xff]  ;;  %s12471_s23 = sld [smem:[#allocation9_spill]]  ;;  %s730_s1 = sand.u32 1, %s8994_s28  }
  0x2e   : > { %935 = vperm.xlu1 %8373, %v777_v4   ;;  %v741_v13 = vld [vmem:[%s736_s6 + $0x18] sm:$0xff]  ;;  %v742_v14 = vld [vmem:[%s736_s6 + $0x20] sm:$0xff]  ;;  %v743_v15 = vld [vmem:[%s736_s6 + $0x28] sm:$0xff]  ;;  %s12473_s24 = sld [smem:[#allocation36_spill]]  ;;  %s7221_s0 = scalar_lea.sflag [#allocation4], %s730_s1 }
  0x2f   : > { %887 = vperm.xlu0 %8372, %v769_v5   ;;  %v744_v16 = vld [vmem:[%s736_s6 + $0x30] sm:$0xff]  ;;  %v745_v19 = vld [vmem:[%s736_s6 + $0x38] sm:$0xff]  ;;  %v746_v20 = vld [vmem:[%s12377_s26] sm:$0xff]  ;;  %s12388_s8 = smov %s12387_s2 }
  0x30   : > { %v747_v21 = vld [vmem:[%s12377_s26 + $0x8] sm:$0xff]  ;;  %v748_v22 = vld [vmem:[%s12377_s26 + $0x10] sm:$0xff]  ;;  %v749_v23 = vld [vmem:[%s12377_s26 + $0x18] sm:$0xff]  ;;  %v9234_v25 = vadd.f32 %v746_v20, %v738_v10 }
  0x31   : > { %v750_v24 = vld [vmem:[%s12377_s26 + $0x20] sm:$0xff]  ;;  %v9236_v26 = vadd.f32 %v747_v21, %v739_v11  ;;  %v751_v27 = vld [vmem:[%s12377_s26 + $0x28] sm:$0xff]  ;;  %v752_v28 = vld [vmem:[%s12377_s26 + $0x30] sm:$0xff]  ;;  %v9247_v30 = vadd.f32 %v748_v22, %v740_v12  ;;  %v9249_v31 = vadd.f32 %v749_v23, %v741_v13 }
  0x32   : > { %877 = vperm.xlu1 %8373, %v767_v6   ;;  %12378 = vst [vmem:[#allocation14_spill] sm:$0xff] %v9234_v25  ;;  %v753_v29 = vld [vmem:[%s12377_s26 + $0x38] sm:$0xff]  ;;  %v9251_v32 = vadd.f32 %v750_v24, %v742_v14  ;;  %v9253_v33 = vadd.f32 %v751_v27, %v743_v15  ;;  %v9255_v34 = vadd.f32 %v752_v28, %v744_v16  ;;  %v779_v36 = vsel %vm778_vm0, %v9234_v25, 0.0  ;;  %v763_v48 = vld [vmem:[%s12375_s7 + $0x8] sm:$0xff]  ;;  %v762_v49 = vld [vmem:[%s12375_s7] sm:$0xff]  ;;  %s731_s26 = scalar_lea.vmem [#allocation3], %s730_s1 }
  0x33   : > { %872 = vperm.xlu0 %8372, %v766_v7   ;;  %12379 = vst [vmem:[#allocation15_spill] sm:$0xff] %v9236_v26  ;;  %12380 = vst [vmem:[#allocation16_spill] sm:$0xff] %v9247_v30  ;;  %v9257_v35 = vadd.f32 %v753_v29, %v745_v19  ;;  %v780_v39 = vsel %vm778_vm0, %v9236_v26, 0.0  ;;  %v782_v40 = vsel %vm778_vm0, %v9247_v30, 0.0  ;;  %v784_v41 = vsel %vm778_vm0, %v9249_v31, 0.0  ;;  %v771_v52 = vld [vmem:[%s12374_s5 + $0x8] sm:$0xff] }
  0x34   : > { %12381 = vst [vmem:[#allocation17_spill] sm:$0xff] %v9249_v31  ;;  %12382 = vst [vmem:[#allocation18_spill] sm:$0xff] %v9251_v32  ;;  %v786_v42 = vsel %vm778_vm0, %v9251_v32, 0.0  ;;  %v781_v43 = vadd.f32 %v780_v39, %v779_v36  ;;  %v788_v44 = vsel %vm778_vm0, %v9253_v33, 0.0  ;;  %v790_v45 = vsel %vm778_vm0, %v9255_v34, 0.0  ;;  %v770_v53 = vld [vmem:[%s12374_s5] sm:$0xff] }
  0x35   : > { %12383 = vst [vmem:[#allocation19_spill] sm:$0xff] %v9253_v33  ;;  %12384 = vst [vmem:[#allocation20_spill] sm:$0xff] %v9255_v34  ;;  %v792_v46 = vsel %vm778_vm0, %v9257_v35, 0.0  ;;  %v1114_v56 = vld [vmem:[%s12386_s4 + $0x18] sm:$0xff]  ;;  %v1113_v57 = vld [vmem:[%s12386_s4 + $0x10] sm:$0xff]  ;;  %s7661_s25 = sshll.u32 %s12471_s23, 4 }
  0x36   : > { %925 = vperm.xlu1 %8373, %v775_v8   ;;  %12385 = vst [vmem:[#allocation21_spill] sm:$0xff] %v9257_v35  ;;  %v783_v47 = vadd.f32 %v782_v40, %v781_v43  ;;  %v8550_v59 = vld [vmem:[%s12387_s2] sm:$0xff]   ;;  %v1112_v62 = vld [vmem:[%s12386_s4 + $0x8] sm:$0xff]  ;;  %v1118_v3 = vld [vmem:[%s12386_s4 + $0x38] sm:$0xff]  ;;  %s7233_s21 = sshll.u32 %s731_s26, 4  ;;  %s9007_s23 = smov [#allocation3]   ;;  %s12223_s21 = int_to_ptr.vmem [resolvable:$true] %s7233_s21 }
  0x37   : > { %920 = vperm.xlu0 %8372, %v774_v9   ;;  %v8551_v60 = vld [vmem:[%s12389_s3] sm:$0xff]   ;;  %7942 = vmatprep.mubr.msk.bf16.mxu0 %vm778_vm0, %v8550_v59  ;;  %v1117_v4 = vld [vmem:[%s12386_s4 + $0x30] sm:$0xff]  ;;  %v1116_v6 = vld [vmem:[%s12386_s4 + $0x28] sm:$0xff]  ;;  %s8942_s27 = scalar_lea.vmem %s12223_s21, 16 }
  0x38   : > { %v785_v50 = vadd.f32 %v784_v41, %v783_v47  ;;  %v1111_v63 = vld [vmem:[%s12386_s4] sm:$0xff]  ;;  %7958 = vmatprep.mubr.msk.bf16.mxu1 %vm778_vm0, %v8551_v60  ;;  %v961_v10 = vld [vmem:[%s12390_s30 + $0x18] sm:$0xff]  ;;  %v960_v11 = vld [vmem:[%s12390_s30 + $0x10] sm:$0xff]  ;;  %p8943_p11 = scmp.ne.s32.totalorder %s12223_s21, %s8942_s27 }
  0x39   : > { %v1115_v7 = vld [vmem:[%s12386_s4 + $0x20] sm:$0xff]  ;;  %v959_v19 = vld [vmem:[%s12390_s30 + $0x8] sm:$0xff] }
  0x3a   : > { %867 = vperm.xlu1 %8373, %v765_v17   ;;  %v787_v51 = vadd.f32 %v786_v42, %v785_v50  ;;  %v958_v28 = vld [vmem:[%s12390_s30] sm:$0xff]  ;;  %v963_v43 = vld [vmem:[%s12390_s30 + $0x28] sm:$0xff]  ;;  %p8944_p12 = pnand %p8943_p11, %p9174_p5 }
  0x3b   : > { %862 = vperm.xlu0 %8372, %v764_v18  }
  0x3c   : > { %v789_v54 = vadd.f32 %v788_v44, %v787_v51  ;;  %v962_v44 = vld [vmem:[%s12390_s30 + $0x20] sm:$0xff]  ;;  %p8945_p13 = pneg %p8944_p12 }
  0x3e   : > { %915 = vperm.xlu1 %8373, %v773_v37   ;;  %v791_v55 = vadd.f32 %v790_v45, %v789_v54  ;;  %v965_v37 = vld [vmem:[%s12390_s30 + $0x38] sm:$0xff] }
  0x3f   : > { %910 = vperm.xlu0 %8372, %v772_v38   ;;  %v964_v38 = vld [vmem:[%s12390_s30 + $0x30] sm:$0xff] }
  0x40   : > { %v793_v58 = vadd.f32 %v792_v46, %v791_v55 }
  0x42   : > { %857 = vperm.xlu1 %8373, %v763_v48   ;;  %v794_v61 = vrot.slane %v793_v58, 4 }
  0x43   : > { %852 = vperm.xlu0 %8372, %v762_v49  }
  0x44   : > { %v795_v0 = vadd.f32 %v794_v61, %v793_v58 }
  0x46   : > { %905 = vperm.xlu1 %8373, %v771_v52   ;;  %v796_v1 = vrot.slane %v795_v0, 2 }
  0x47   : > { %900 = vperm.xlu0 %8372, %v770_v53  }
  0x48   : > { %v797_v2 = vadd.f32 %v796_v1, %v795_v0 }
  0x4a   : > { %1136 = vperm.xlu1 %8373, %v1114_v56   ;;  %v798_v5 = vrot.slane %v797_v2, 1 }
  0x4b   : > { %1131 = vperm.xlu0 %8372, %v1113_v57  }
  0x4c   : > { %v799_v8 = vadd.f32 %v798_v5, %v797_v2 }
  0x4e   : > { %1126 = vperm.xlu1 %8373, %v1112_v62   ;;  %v801_v9 = vmul.f32 0.015625, %v799_v8 }
  0x4f   : > { %1121 = vperm.xlu0 %8372, %v1111_v63  }
  0x50   : > { %v9332_v12 = vsub.f32 %v9234_v25, %v801_v9  ;;  %v9335_v13 = vsub.f32 %v9236_v26, %v801_v9  ;;  %v9338_v14 = vsub.f32 %v9247_v30, %v801_v9  ;;  %v9341_v15 = vsub.f32 %v9249_v31, %v801_v9 }
  0x51   : > { %v806_v20 = vsub.f32 %v9251_v32, %v801_v9  ;;  %v807_v21 = vsub.f32 %v9253_v33, %v801_v9  ;;  %v808_v45 = vsub.f32 %v9255_v34, %v801_v9  ;;  %v809_v49 = vsub.f32 %v9257_v35, %v801_v9 }
  0x52   : > { %1156 = vperm.xlu1 %8373, %v1118_v3   ;;  %v810_v16 = vmul.f32 %v9332_v12, %v9332_v12  ;;  %v811_v17 = vmul.f32 %v9335_v13, %v9335_v13  ;;  %v812_v18 = vmul.f32 %v9338_v14, %v9338_v14  ;;  %v813_v22 = vmul.f32 %v9341_v15, %v9341_v15 }
  0x53   : > { %1151 = vperm.xlu0 %8372, %v1117_v4   ;;  %v814_v39 = vmul.f32 %v806_v20, %v806_v20  ;;  %v815_v40 = vmul.f32 %v807_v21, %v807_v21  ;;  %v816_v50 = vmul.f32 %v808_v45, %v808_v45  ;;  %v817_v52 = vmul.f32 %v809_v49, %v809_v49 }
  0x54   : > { %v818_v23 = vsel %vm778_vm0, %v810_v16, 0.0  ;;  %v819_v24 = vsel %vm778_vm0, %v811_v17, 0.0  ;;  %v821_v27 = vsel %vm778_vm0, %v812_v18, 0.0  ;;  %v823_v36 = vsel %vm778_vm0, %v813_v22, 0.0 }
  0x55   : > { %v820_v29 = vadd.f32 %v819_v24, %v818_v23  ;;  %v825_v46 = vsel %vm778_vm0, %v814_v39, 0.0  ;;  %v827_v47 = vsel %vm778_vm0, %v815_v40, 0.0  ;;  %v829_v53 = vsel %vm778_vm0, %v816_v50, 0.0 }
  0x56   : > { %1146 = vperm.xlu1 %8373, %v1116_v6   ;;  %v831_v55 = vsel %vm778_vm0, %v817_v52, 0.0 }
  0x57   : > { %1141 = vperm.xlu0 %8372, %v1115_v7   ;;  %v822_v41 = vadd.f32 %v821_v27, %v820_v29 }
  0x59   : > { %v824_v42 = vadd.f32 %v823_v36, %v822_v41 }
  0x5a   : > { %983 = vperm.xlu1 %8373, %v961_v10  }
  0x5b   : > { %978 = vperm.xlu0 %8372, %v960_v11   ;;  %v826_v48 = vadd.f32 %v825_v46, %v824_v42 }
  0x5d   : > { %v828_v51 = vadd.f32 %v827_v47, %v826_v48 }
  0x5e   : > { %973 = vperm.xlu1 %8373, %v959_v19  }
  0x5f   : > { %968 = vperm.xlu0 %8372, %v958_v28   ;;  %v830_v54 = vadd.f32 %v829_v53, %v828_v51 }
  0x61   : > { %v832_v56 = vadd.f32 %v831_v55, %v830_v54 }
  0x62   : > { %1003 = vperm.xlu1 %8373, %v965_v37  }
  0x63   : > { %998 = vperm.xlu0 %8372, %v964_v38   ;;  %v833_v57 = vrot.slane %v832_v56, 4 }
  0x65   : > { %v834_v58 = vadd.f32 %v833_v57, %v832_v56  ;;  %v8554_v56 = vld [vmem:[%s12388_s8 + $0x10] sm:$0xff]  }
  0x66   : > { %993 = vperm.xlu1 %8373, %v963_v43   ;;  %v8555_v57 = vld [vmem:[%s12389_s3 + $0x10] sm:$0xff]  }
  0x67   : > { %988 = vperm.xlu0 %8372, %v962_v44   ;;  %v835_v59 = vrot.slane %v834_v58, 2 }
  0x69   : > { %v836_v60 = vadd.f32 %v835_v59, %v834_v58  ;;  %v8556_v58 = vld [vmem:[%s12388_s8 + $0x18] sm:$0xff]  }
  0x6a   : > { %v8557_v59 = vld [vmem:[%s12389_s3 + $0x18] sm:$0xff]  }
  0x6b   : > { %v837_v61 = vrot.slane %v836_v60, 1 }
  0x6d   : > { %v838_v62 = vadd.f32 %v837_v61, %v836_v60  ;;  %v8558_v60 = vld [vmem:[%s12391_s29] sm:$0xff]   ;;  %v8559_v61 = vld [vmem:[%s12391_s29 + $0x8] sm:$0xff]  }
  0x6f   : > { %v839_v63 = vmul.f32 0.015625, %v838_v62  ;;  %v8560_v62 = vld [vmem:[%s12391_s29 + $0x10] sm:$0xff]  }
  0x71   : > { %v840_v0 = vadd.f32 1e-05, %v839_v63  ;;  %v8561_v63 = vld [vmem:[%s12391_s29 + $0x18] sm:$0xff]  }
  0x73   : > { %8642 = vrsqrt.f32 %v840_v0 }
  0x80   : > { %v8643_v1 = vpop.eup %8642 }
  0x81   : > { %v848_v2 = vmul.f32 %v8643_v1, %v808_v45  ;;  %v849_v5 = vmul.f32 %v8643_v1, %v809_v49  ;;  %v847_v16 = vmul.f32 %v8643_v1, %v807_v21  ;;  %v846_v17 = vmul.f32 %v8643_v1, %v806_v20 }
  0x82   : > { %v845_v38 = vmul.f32 %v8643_v1, %v9341_v15  ;;  %v844_v39 = vmul.f32 %v8643_v1, %v9338_v14  ;;  %v843_v47 = vmul.f32 %v8643_v1, %v9335_v13  ;;  %v842_v48 = vmul.f32 %v8643_v1, %v9332_v12  ;;  %v8552_v13 = vld [vmem:[%s12388_s8 + $0x8] sm:$0xff]  }
  0x83   : > { %v8553_v12 = vld [vmem:[%s12389_s3 + $0x8] sm:$0xff]  }
  0xa5   : > { %v931_v3 = vpop.permute.xlu1 %930 }
  0xa6   : > { %v883_v4 = vpop.permute.xlu0 %882 }
  0xa7   : > { %v896_v6 = vmul.f32 %v883_v4, %v848_v2 }
  0xa9   : > { %v936_v7 = vpop.permute.xlu1 %935  ;;  %v944_v10 = vadd.f32 %v931_v3, %v896_v6 }
  0xaa   : > { %v888_v8 = vpop.permute.xlu0 %887 }
  0xab   : > { %v897_v9 = vmul.f32 %v888_v8, %v849_v5 }
  0xad   : > { %v945_v11 = vadd.f32 %v936_v7, %v897_v9  ;;  %v878_v18 = vpop.permute.xlu1 %877 }
  0xae   : > { %v873_v19 = vpop.permute.xlu0 %872  ;;  %v895_v23 = vmul.f32 %v878_v18, %v847_v16 }
  0xaf   : > { %v949_v22 = vpack.c.bf16 %v945_v11, %v944_v10  ;;  %v894_v24 = vmul.f32 %v873_v19, %v846_v17 }
  0xb1   : > { %7934 = vmatprep.subr.bf16.mxu0 %v949_v22  ;;  %7950 = vmatprep.subr.bf16.mxu1 %v949_v22  ;;  %v926_v27 = vpop.permute.xlu1 %925 }
  0xb2   : > { %v921_v28 = vpop.permute.xlu0 %920  ;;  %7935 = vmatpush3.bf16.msra.mxu0 %v949_v22  ;;  %7951 = vmatpush3.bf16.msra.mxu1 %v949_v22  ;;  %v943_v29 = vadd.f32 %v926_v27, %v895_v23 }
  0xb3   : > { %v942_v36 = vadd.f32 %v921_v28, %v894_v24 }
  0xb5   : > { %v948_v37 = vpack.c.bf16 %v943_v29, %v942_v36  ;;  %v868_v21 = vpop.permute.xlu1 %867 }
  0xb6   : > { %v863_v20 = vpop.permute.xlu0 %862  ;;  %v893_v40 = vmul.f32 %v868_v21, %v845_v38 }
  0xb7   : > { %7936 = vmatprep.subr.bf16.mxu0 %v948_v37  ;;  %7952 = vmatprep.subr.bf16.mxu1 %v948_v37  ;;  %v892_v41 = vmul.f32 %v863_v20, %v844_v39 }
  0xb8   : > { %7937 = vmatpush3.bf16.msra.mxu0 %v948_v37  ;;  %7953 = vmatpush3.bf16.msra.mxu1 %v948_v37 }
  0xb9   : > { %v916_v42 = vpop.permute.xlu1 %915 }
  0xba   : > { %v911_v43 = vpop.permute.xlu0 %910  ;;  %v941_v44 = vadd.f32 %v916_v42, %v893_v40 }
  0xbb   : > { %v940_v45 = vadd.f32 %v911_v43, %v892_v41 }
  0xbd   : > { %v947_v46 = vpack.c.bf16 %v941_v44, %v940_v45  ;;  %v858_v15 = vpop.permute.xlu1 %857 }
  0xbe   : > { %v853_v49 = vpop.permute.xlu0 %852  ;;  %v891_v14 = vmul.f32 %v858_v15, %v843_v47 }
  0xbf   : > { %7938 = vmatprep.subr.bf16.mxu0 %v947_v46  ;;  %7954 = vmatprep.subr.bf16.mxu1 %v947_v46  ;;  %v890_v50 = vmul.f32 %v853_v49, %v842_v48 }
  0xc0   : > { %7939 = vmatpush3.bf16.msra.mxu0 %v947_v46  ;;  %7955 = vmatpush3.bf16.msra.mxu1 %v947_v46 }
  0xc1   : > { %v906_v51 = vpop.permute.xlu1 %905 }
  0xc2   : > { %v901_v52 = vpop.permute.xlu0 %900  ;;  %v939_v53 = vadd.f32 %v906_v51, %v891_v14 }
  0xc3   : > { %v938_v54 = vadd.f32 %v901_v52, %v890_v50 }
  0xc5   : > { %v946_v55 = vpack.c.bf16 %v939_v53, %v938_v54  ;;  %v1137_v0 = vpop.permute.xlu1 %1136 }
  0xc6   : > { %v1132_v1 = vpop.permute.xlu0 %1131 }
  0xc7   : > { %7940 = vmatprep.subr.bf16.mxu0 %v946_v55  ;;  %7956 = vmatprep.subr.bf16.mxu1 %v946_v55 }
  0xc8   : > { %7941 = vmatpush3.bf16.msra.mxu0 %v946_v55  ;;  %7957 = vmatpush3.bf16.msra.mxu1 %v946_v55 }
  0xc9   : > { %7966 = vmatprep.subr.bf16.mxu0 %v949_v22  ;;  %v1127_v2 = vpop.permute.xlu1 %1126 }
  0xca   : > { %v1122_v3 = vpop.permute.xlu0 %1121 }
  0xcb   : > { %7943 = vmatmul.mubr.msk.bf16.vlgmr.msra.gmra.mxu0 %vm778_vm0, %v8552_v13  ;;  %7959 = vmatmul.mubr.msk.bf16.vlgmr.msra.gmra.mxu1 %vm778_vm0, %v8553_v12 }
  0xcc   : > { %7967 = vmatpush3.bf16.msra.mxu0 %v949_v22  ;;  %7946 = vmatprep.mubr.msk.bf16.mxu0 %vm778_vm0, %v8554_v56 }
  0xcd   : > { %7968 = vmatprep.subr.bf16.mxu0 %v948_v37  ;;  %7962 = vmatprep.mubr.msk.bf16.mxu1 %vm778_vm0, %v8555_v57  ;;  %v1157_v4 = vpop.permute.xlu1 %1156 }
  0xce   : > { %v1152_v5 = vpop.permute.xlu0 %1151 }
  0xd0   : > { %7969 = vmatpush3.bf16.msra.mxu0 %v948_v37 }
  0xd1   : > { %7970 = vmatprep.subr.bf16.mxu0 %v947_v46  ;;  %v1147_v6 = vpop.permute.xlu1 %1146 }
  0xd2   : > { %v1142_v7 = vpop.permute.xlu0 %1141 }
  0xd3   : > { %7947 = vmatmul.mubr.msk.bf16.gmra.mxu0 %vm778_vm0, %v8556_v58  ;;  %7963 = vmatmul.mubr.msk.bf16.gmra.mxu1 %vm778_vm0, %v8557_v59 }
  0xd4   : > { %7971 = vmatpush3.bf16.msra.mxu0 %v947_v46  ;;  %7974 = vmatprep.mubr.msk.bf16.mxu0 %vm778_vm0, %v8558_v60 }
  0xd5   : > { %7972 = vmatprep.subr.bf16.mxu0 %v946_v55  ;;  %v984_v8 = vpop.permute.xlu1 %983 }
  0xd6   : > { %v979_v9 = vpop.permute.xlu0 %978 }
  0xd8   : > { %7973 = vmatpush3.bf16.msra.mxu0 %v946_v55 }
  0xd9   : > { %v974_v16 = vpop.permute.xlu1 %973 }
  0xda   : > { %v969_v17 = vpop.permute.xlu0 %968 }
  0xdb   : > { %7975 = vmatmul.mubr.msk.bf16.vlgmr.msra.gmra.mxu0 %vm778_vm0, %v8559_v61 }
  0xdc   : > { %7978 = vmatprep.mubr.msk.bf16.mxu0 %vm778_vm0, %v8560_v62 }
  0xdd   : > { %v1004_v21 = vpop.permute.xlu1 %1003 }
  0xde   : > { %v999_v20 = vpop.permute.xlu0 %998 }
  0xe1   : > { %v994_v52 = vpop.permute.xlu1 %993 }
  0xe2   : > { %v989_v53 = vpop.permute.xlu0 %988 }
  0xe3   : > { %7979 = vmatmul.mubr.msk.bf16.gmra.mxu0 %vm778_vm0, %v8561_v63 }
 0x18b   : > { %v7944_v10 = vpop.f32.mrf.mxu0  ;;  %v7960_v11 = vpop.f32.mrf.mxu1 }
 0x18c   : > { %v1234_v22 = vadd.f32 %v7960_v11, %v1132_v1  ;;  %v1081_v28 = vadd.f32 %v7944_v10, %v979_v9  ;;  %v1266_v1 = vld [vmem:[%s12271_s9 + $0x10] sm:$0xff]  ;;  %v2406_v9 = vld [vmem:[%s12273_s11] sm:$0xff]  ;;  %v2409_v10 = vld [vmem:[%s12273_s11 + $0x18] sm:$0xff] }
 0x18d   : > { %v1072_v18 = vpop.f32.mrf.mxu0  ;;  %v1225_v19 = vpop.f32.mrf.mxu1  ;;  %v2408_v11 = vld [vmem:[%s12273_s11 + $0x10] sm:$0xff] }
 0x18e   : > { %v1226_v23 = vadd.f32 %v1225_v19, %v1122_v3  ;;  %v1073_v37 = vadd.f32 %v1072_v18, %v969_v17  ;;  %v1264_v3 = vld [vmem:[%s12271_s9] sm:$0xff]  ;;  %v2413_v18 = vld [vmem:[%s12273_s11 + $0x38] sm:$0xff]  ;;  %v2412_v19 = vld [vmem:[%s12273_s11 + $0x30] sm:$0xff] }
 0x18f   : > { %v7945_v24 = vpop.f32.mrf.mxu0  ;;  %v7961_v27 = vpop.f32.mrf.mxu1  ;;  %v2410_v17 = vld [vmem:[%s12273_s11 + $0x20] sm:$0xff] }
 0x190   : > { %v8374_v29 = vpack.i.bf16 %v1226_v23, %v1234_v22  ;;  %v1084_v36 = vadd.f32 %v7945_v24, %v984_v8  ;;  %v1237_v41 = vadd.f32 %v7961_v27, %v1137_v0  ;;  %v1267_v0 = vld [vmem:[%s12271_s9 + $0x18] sm:$0xff]  ;;  %v2407_v8 = vld [vmem:[%s12273_s11 + $0x8] sm:$0xff]  ;;  %v2565_v23 = vld [vmem:[%s12274_s12 + $0x30] sm:$0xff] }
 0x191   : > { %v1075_v38 = vpop.f32.mrf.mxu0  ;;  %v1228_v39 = vpop.f32.mrf.mxu1  ;;  %v2566_v22 = vld [vmem:[%s12274_s12 + $0x38] sm:$0xff]  ;;  %v2573_v27 = vld [vmem:[%s12275_s13 + $0x30] sm:$0xff] }
 0x192   : > { %v1410_v40 = vpack.c.bf16 %v1084_v36, %v1081_v28  ;;  %v1076_v42 = vadd.f32 %v1075_v38, %v974_v16  ;;  %v1229_v43 = vadd.f32 %v1228_v39, %v1127_v2  ;;  %8375 = vxpose.xlu0.b32.start [1/2] (short) (narrow) %v8374_v29, 64  ;;  %v1265_v2 = vld [vmem:[%s12271_s9 + $0x8] sm:$0xff]  ;;  %v2574_v24 = vld [vmem:[%s12275_s13 + $0x38] sm:$0xff]  ;;  %v2563_v29 = vld [vmem:[%s12274_s12 + $0x20] sm:$0xff] }
 0x193   : > { %v7948_v44 = vpop.f32.mrf.mxu0  ;;  %v7964_v45 = vpop.f32.mrf.mxu1  ;;  %v2411_v16 = vld [vmem:[%s12273_s11 + $0x28] sm:$0xff]  ;;  %v2562_v38 = vld [vmem:[%s12274_s12 + $0x18] sm:$0xff]  ;;  %v2561_v39 = vld [vmem:[%s12274_s12 + $0x10] sm:$0xff] }
 0x194   : > { %v1409_v46 = vpack.c.bf16 %v1076_v42, %v1073_v37  ;;  %v8376_v47 = vpack.i.bf16 %v1229_v43, %v1237_v41  ;;  %7992 = vmatprep.subr.bf16.mxu0 %v1410_v40  ;;  %v1250_v49 = vadd.f32 %v7964_v45, %v1152_v5  ;;  %v1097_v54 = vadd.f32 %v7948_v44, %v999_v20  ;;  %v1270_v5 = vld [vmem:[%s12271_s9 + $0x30] sm:$0xff]  ;;  %v2564_v28 = vld [vmem:[%s12274_s12 + $0x28] sm:$0xff]  ;;  %v2571_v37 = vld [vmem:[%s12275_s13 + $0x20] sm:$0xff] }
 0x195   : > { %v1088_v48 = vpop.f32.mrf.mxu0  ;;  %v1241_v15 = vpop.f32.mrf.mxu1  ;;  %7993 = vmatpush3.bf16.msra.mxu0 %v1410_v40  ;;  %v2572_v36 = vld [vmem:[%s12275_s13 + $0x28] sm:$0xff]  ;;  %v2569_v20 = vld [vmem:[%s12275_s13 + $0x10] sm:$0xff]  ;;  %v2559_v41 = vld [vmem:[%s12274_s12] sm:$0xff] }
 0x196   : > { %v1242_v14 = vadd.f32 %v1241_v15, %v1142_v7  ;;  %8377 = vxpose.xlu0.b32.end [2/2] (short) (narrow) %v8376_v47, 64  ;;  %7982 = vmatprep.subr.bf16.mxu1 %v1409_v46  ;;  %v1089_v12 = vadd.f32 %v1088_v48, %v989_v53  ;;  %v1268_v7 = vld [vmem:[%s12271_s9 + $0x20] sm:$0xff]  ;;  %v2560_v40 = vld [vmem:[%s12274_s12 + $0x8] sm:$0xff]  ;;  %v2808_v45 = vld [vmem:[%s12277_s15 + $0xf8] sm:$0xff] }
 0x197   : > { %v7949_v50 = vpop.f32.mrf.mxu0  ;;  %v7965_v51 = vpop.f32.mrf.mxu1  ;;  %7983 = vmatpush3.bf16.msra.mxu1 %v1409_v46  ;;  %v2568_v42 = vld [vmem:[%s12275_s13 + $0x8] sm:$0xff]  ;;  %v2567_v44 = vld [vmem:[%s12275_s13] sm:$0xff] }
 0x198   : > { %v8418_v55 = vpack.i.bf16 %v1242_v14, %v1250_v49  ;;  %v1100_v13 = vadd.f32 %v7949_v50, %v1004_v21  ;;  %v1253_v59 = vadd.f32 %v7965_v51, %v1157_v4  ;;  %v1271_v4 = vld [vmem:[%s12271_s9 + $0x38] sm:$0xff]  ;;  %v2807_v14 = vld [vmem:[%s12277_s15 + $0xf0] sm:$0xff] }
 0x199   : > { %v1091_v56 = vpop.f32.mrf.mxu0  ;;  %v1244_v57 = vpop.f32.mrf.mxu1  ;;  %v2570_v21 = vld [vmem:[%s12275_s13 + $0x18] sm:$0xff] }
 0x19a   : > { %v9425_v58 = vpack.c.bf16 %v1100_v13, %v1097_v54  ;;  %v1092_v60 = vadd.f32 %v1091_v56, %v994_v52  ;;  %v1245_v61 = vadd.f32 %v1244_v57, %v1147_v6  ;;  %8419 = vxpose.xlu1.b32.start [1/2] (short) (narrow) %v8418_v55, 64  ;;  %v1269_v6 = vld [vmem:[%s12271_s9 + $0x28] sm:$0xff]  ;;  %v2792_v52 = vld [vmem:[%s12277_s15 + $0x78] sm:$0xff]  ;;  %v2791_v55 = vld [vmem:[%s12277_s15 + $0x70] sm:$0xff] }
 0x19b   : > { %v2806_v13 = vld [vmem:[%s12277_s15 + $0xe8] sm:$0xff] }
 0x19c   : > { %v9427_v62 = vpack.c.bf16 %v1092_v60, %v1089_v12  ;;  %v8420_v63 = vpack.i.bf16 %v1245_v61, %v1253_v59  ;;  %8012 = vmatprep.subr.bf16.mxu0 %v9425_v58 }
 0x19e   : > { %8421 = vxpose.xlu1.b32.end [2/2] (short) (narrow) %v8420_v63, 64  ;;  %8002 = vmatprep.subr.bf16.mxu1 %v9427_v62  ;;  %v2805_v63 = vld [vmem:[%s12277_s15 + $0xe0] sm:$0xff] }
 0x1d4   : > { %1289 = vperm.xlu1 %8373, %v1267_v0  }
 0x1d7   : > { %1284 = vperm.xlu0 %8372, %v1266_v1  }
 0x1d8   : > { %1279 = vperm.xlu1 %8373, %v1265_v2  }
 0x1db   : > { %1274 = vperm.xlu0 %8372, %v1264_v3   ;;  %v2790_v3 = vld [vmem:[%s12277_s15 + $0x68] sm:$0xff] }
 0x1dc   : > { %1309 = vperm.xlu1 %8373, %v1271_v4  }
 0x1df   : > { %1304 = vperm.xlu0 %8372, %v1270_v5   ;;  %v2789_v5 = vld [vmem:[%s12277_s15 + $0x60] sm:$0xff] }
 0x1e0   : > { %1299 = vperm.xlu1 %8373, %v1269_v6  }
 0x1e3   : > { %1294 = vperm.xlu0 %8372, %v1268_v7  }
 0x1e4   : > { %2421 = vperm.xlu1 %8373, %v2407_v8  }
 0x1e7   : > { %2416 = vperm.xlu0 %8372, %v2406_v9   ;;  %v2804_v9 = vld [vmem:[%s12277_s15 + $0xd8] sm:$0xff] }
 0x1e8   : > { %2431 = vperm.xlu1 %8373, %v2409_v10  }
 0x1eb   : > { %2426 = vperm.xlu0 %8372, %v2408_v11  }
 0x1ec   : > { %2441 = vperm.xlu1 %8373, %v2411_v16  }
 0x1ef   : > { %2436 = vperm.xlu0 %8372, %v2410_v17  }
 0x1f0   : > { %2451 = vperm.xlu1 %8373, %v2413_v18  }
 0x1f3   : > { %2446 = vperm.xlu0 %8372, %v2412_v19   ;;  %v2788_v19 = vld [vmem:[%s12277_s15 + $0x58] sm:$0xff] }
 0x1f4   : > { %2682 = vperm.xlu1 %8373, %v2566_v22  }
 0x1f7   : > { %2677 = vperm.xlu0 %8372, %v2565_v23   ;;  %v2787_v23 = vld [vmem:[%s12277_s15 + $0x50] sm:$0xff] }
 0x1f8   : > { %2730 = vperm.xlu1 %8373, %v2574_v24  }
 0x1fb   : > { %2725 = vperm.xlu0 %8372, %v2573_v27  }
 0x1fc   : > { %2672 = vperm.xlu1 %8373, %v2564_v28  }
 0x1ff   : > { %2667 = vperm.xlu0 %8372, %v2563_v29  }
 0x200   : > { %2720 = vperm.xlu1 %8373, %v2572_v36  }
 0x203   : > { %2715 = vperm.xlu0 %8372, %v2571_v37  }
 0x204   : > { %2662 = vperm.xlu1 %8373, %v2562_v38  }
 0x207   : > { %2657 = vperm.xlu0 %8372, %v2561_v39   ;;  %v2802_v39 = vld [vmem:[%s12277_s15 + $0xc8] sm:$0xff] }
 0x208   : > { %2710 = vperm.xlu1 %8373, %v2570_v21  }
 0x20b   : > { %2705 = vperm.xlu0 %8372, %v2569_v20  }
 0x20c   : > { %2652 = vperm.xlu1 %8373, %v2560_v40  }
 0x20e   : > { %v8378_v43 = vpop.trf.xlu0 }
 0x20f   : > { %2647 = vperm.xlu0 %8372, %v2559_v41   ;;  %v8382_v46 = vunpack.i.h.bf16 %v8378_v43  ;;  %v8379_v47 = vunpack.i.l.bf16 %v8378_v43  ;;  %v2801_v41 = vld [vmem:[%s12277_s15 + $0xc0] sm:$0xff] }
 0x210   : > { %2700 = vperm.xlu1 %8373, %v2568_v42  }
 0x212   : > { %v8383_v48 = vpop.trf.xlu0 }
 0x213   : > { %v8387_v15 = vunpack.i.h.bf16 %v8383_v48  ;;  %v8384_v49 = vunpack.i.l.bf16 %v8383_v48  ;;  %2695 = vperm.xlu0 %8372, %v2567_v44   ;;  %v2786_v44 = vld [vmem:[%s12277_s15 + $0x48] sm:$0xff]  ;;  %v2785_v48 = vld [vmem:[%s12277_s15 + $0x40] sm:$0xff] }
 0x214   : > { %2966 = vperm.xlu1 %8373, %v2808_v45  }
 0x215   : > { %v1545_v50 = vpack.c.bf16 %v8387_v15, %v8382_v46  ;;  %v1549_v51 = vpack.c.bf16 %v8384_v49, %v8379_v47 }
 0x216   : > { %v8388_v53 = vpop.trf.xlu0  ;;  %v9536_v54 = vpop.trf.xlu1 }
 0x217   : > { %2961 = vperm.xlu0 %8372, %v2807_v14   ;;  %7984 = vmatprep.mubr.msk.bf16.mxu1 %vm1561_vm1, %v1545_v50  ;;  %v8392_v12 = vunpack.i.h.bf16 %v8388_v53  ;;  %v8389_v56 = vunpack.i.l.bf16 %v8388_v53  ;;  %v8426_v24 = vunpack.i.h.bf16 %v9536_v54  ;;  %v8423_v27 = vunpack.i.l.bf16 %v9536_v54  ;;  %v2800_v53 = vld [vmem:[%s12277_s15 + $0xb8] sm:$0xff] }
 0x218   : > { %7994 = vmatprep.mubr.msk.bf16.mxu0 %vm1561_vm1, %v1549_v51  ;;  %2886 = vperm.xlu1 %8373, %v2792_v52  }
 0x21a   : > { %v8393_v57 = vpop.trf.xlu0  ;;  %v8427_v59 = vpop.trf.xlu1 }
 0x21b   : > { %v8397_v60 = vunpack.i.h.bf16 %v8393_v57  ;;  %v8394_v61 = vunpack.i.l.bf16 %v8393_v57  ;;  %2881 = vperm.xlu0 %8372, %v2791_v55   ;;  %v8431_v28 = vunpack.i.h.bf16 %v8427_v59  ;;  %v8428_v29 = vunpack.i.l.bf16 %v8427_v59  ;;  %v2784_v59 = vld [vmem:[%s12277_s15 + $0x38] sm:$0xff] }
 0x21c   : > { %2956 = vperm.xlu1 %8373, %v2806_v13  }
 0x21d   : > { %v1546_v0 = vpack.c.bf16 %v8397_v60, %v8392_v12  ;;  %v1550_v1 = vpack.c.bf16 %v8394_v61, %v8389_v56  ;;  %v1553_v45 = vpack.c.bf16 %v8431_v28, %v8426_v24  ;;  %v1557_v47 = vpack.c.bf16 %v8428_v29, %v8423_v27  ;;  %v2799_v12 = vld [vmem:[%s12277_s15 + $0xb0] sm:$0xff]  ;;  %v3686_v24 = vld [vmem:[%s12279_s17 + $0x18] sm:$0xff]  ;;  %v3688_v28 = vld [vmem:[%s12279_s17 + $0x28] sm:$0xff] }
 0x21e   : > { %v8398_v2 = vpop.trf.xlu0  ;;  %v9552_v4 = vpop.trf.xlu1  ;;  %v3685_v27 = vld [vmem:[%s12279_s17 + $0x10] sm:$0xff]  ;;  %v3687_v29 = vld [vmem:[%s12279_s17 + $0x20] sm:$0xff] }
 0x21f   : > { %2951 = vperm.xlu0 %8372, %v2805_v63   ;;  %7985 = vmatmul.mubr.msk.bf16.vlgmr.msra.gmra.mxu1 %vm1561_vm1, %v1546_v0  ;;  %v8402_v6 = vunpack.i.h.bf16 %v8398_v2  ;;  %v8399_v7 = vunpack.i.l.bf16 %v8398_v2  ;;  %v8436_v15 = vunpack.i.h.bf16 %v9552_v4  ;;  %v8433_v14 = vunpack.i.l.bf16 %v9552_v4  ;;  %v2783_v63 = vld [vmem:[%s12277_s15 + $0x30] sm:$0xff]  ;;  %v2798_v4 = vld [vmem:[%s12277_s15 + $0xa8] sm:$0xff] }
 0x220   : > { %7995 = vmatmul.mubr.msk.bf16.vlgmr.msra.gmra.mxu0 %vm1561_vm1, %v1550_v1  ;;  %8003 = vmatpush3.bf16.msra.mxu1 %v9427_v62  ;;  %v2803_v62 = vld [vmem:[%s12277_s15 + $0xd0] sm:$0xff] }
 0x221   : > { %8013 = vmatpush3.bf16.msra.mxu0 %v9425_v58  ;;  %2876 = vperm.xlu1 %8373, %v2790_v3  }
 0x222   : > { %v8403_v8 = vpop.trf.xlu0  ;;  %v8437_v10 = vpop.trf.xlu1 }
 0x223   : > { %v8407_v11 = vunpack.i.h.bf16 %v8403_v8  ;;  %v8404_v16 = vunpack.i.l.bf16 %v8403_v8  ;;  %2871 = vperm.xlu0 %8372, %v2789_v5   ;;  %v8441_v49 = vunpack.i.h.bf16 %v8437_v10  ;;  %v8438_v50 = vunpack.i.l.bf16 %v8437_v10  ;;  %v2797_v5 = vld [vmem:[%s12277_s15 + $0xa0] sm:$0xff]  ;;  %v2782_v8 = vld [vmem:[%s12277_s15 + $0x28] sm:$0xff]  ;;  %v2796_v10 = vld [vmem:[%s12277_s15 + $0x98] sm:$0xff] }
 0x225   : > { %2946 = vperm.xlu1 %8373, %v2804_v9   ;;  %v1547_v17 = vpack.c.bf16 %v8407_v11, %v8402_v6  ;;  %v1551_v18 = vpack.c.bf16 %v8404_v16, %v8399_v7  ;;  %v1554_v56 = vpack.c.bf16 %v8441_v49, %v8436_v15  ;;  %v1558_v57 = vpack.c.bf16 %v8438_v50, %v8433_v14  ;;  %v2781_v9 = vld [vmem:[%s12277_s15 + $0x20] sm:$0xff]  ;;  %v2795_v11 = vld [vmem:[%s12277_s15 + $0x90] sm:$0xff]  ;;  %v2780_v16 = vld [vmem:[%s12277_s15 + $0x18] sm:$0xff] }
 0x226   : > { %v8408_v58 = vpop.trf.xlu0  ;;  %v8442_v22 = vpop.trf.xlu1  ;;  %v7386_v15 = vld [vmem:[%s12375_s7 + $0x40] sm:$0xff]  ;;  %v7395_v49 = vld [vmem:[%s12374_s5 + $0x48] sm:$0xff]  ;;  %v7437_v50 = vld [vmem:[%s12386_s4 + $0x58] sm:$0xff] }
 0x227   : > { %2941 = vperm.xlu0 %8372, %v2803_v62   ;;  %7988 = vmatprep.mubr.msk.bf16.mxu1 %vm1561_vm1, %v1547_v17  ;;  %v8412_v36 = vunpack.i.h.bf16 %v8408_v58  ;;  %v8409_v37 = vunpack.i.l.bf16 %v8408_v58  ;;  %v8446_v51 = vunpack.i.h.bf16 %v8442_v22  ;;  %v8443_v55 = vunpack.i.l.bf16 %v8442_v22  ;;  %v2779_v62 = vld [vmem:[%s12277_s15 + $0x10] sm:$0xff]  ;;  %v2794_v17 = vld [vmem:[%s12277_s15 + $0x88] sm:$0xff]  ;;  %v7394_v14 = vld [vmem:[%s12374_s5 + $0x40] sm:$0xff] }
 0x228   : > { %7998 = vmatprep.mubr.msk.bf16.mxu0 %vm1561_vm1, %v1551_v18  ;;  %v2793_v18 = vld [vmem:[%s12277_s15 + $0x80] sm:$0xff]  ;;  %v2778_v58 = vld [vmem:[%s12277_s15 + $0x8] sm:$0xff] }
 0x229   : > { %2866 = vperm.xlu1 %8373, %v2788_v19   ;;  %v2777_v19 = vld [vmem:[%s12277_s15] sm:$0xff]  ;;  %v3684_v22 = vld [vmem:[%s12279_s17 + $0x8] sm:$0xff] }
 0x22a   : > { %v8413_v38 = vpop.trf.xlu0  ;;  %v8447_v21 = vpop.trf.xlu1 }
 0x22b   : > { %v8417_v20 = vunpack.i.h.bf16 %v8413_v38  ;;  %v8414_v40 = vunpack.i.l.bf16 %v8413_v38  ;;  %2861 = vperm.xlu0 %8372, %v2787_v23   ;;  %v8451_v52 = vunpack.i.h.bf16 %v8447_v21  ;;  %v8448_v13 = vunpack.i.l.bf16 %v8447_v21  ;;  %v3683_v23 = vld [vmem:[%s12279_s17] sm:$0xff]  ;;  %v7393_v38 = vld [vmem:[%s12375_s7 + $0x78] sm:$0xff] }
 0x22c   : > { %v7401_v21 = vld [vmem:[%s12374_s5 + $0x78] sm:$0xff] }
 0x22d   : > { %2936 = vperm.xlu1 %8373, %v2802_v39   ;;  %v1548_v42 = vpack.c.bf16 %v8417_v20, %v8412_v36  ;;  %v1552_v43 = vpack.c.bf16 %v8414_v40, %v8409_v37  ;;  %v1555_v60 = vpack.c.bf16 %v8451_v52, %v8446_v51  ;;  %v1559_v61 = vpack.c.bf16 %v8448_v13, %v8443_v55  ;;  %v3690_v36 = vld [vmem:[%s12279_s17 + $0x38] sm:$0xff]  ;;  %v3689_v37 = vld [vmem:[%s12279_s17 + $0x30] sm:$0xff]  ;;  %v7391_v40 = vld [vmem:[%s12375_s7 + $0x68] sm:$0xff] }
 0x22e   : > { %v8452_v46 = vpop.trf.xlu1  ;;  %v7392_v39 = vld [vmem:[%s12375_s7 + $0x70] sm:$0xff]  ;;  %v7435_v52 = vld [vmem:[%s12386_s4 + $0x48] sm:$0xff] }
 0x22f   : > { %2931 = vperm.xlu0 %8372, %v2801_v41   ;;  %7989 = vmatmul.mubr.msk.bf16.gmra.mxu1 %vm1561_vm1, %v1548_v42  ;;  %v8456_v0 = vunpack.i.h.bf16 %v8452_v46  ;;  %v8453_v2 = vunpack.i.l.bf16 %v8452_v46  ;;  %v7400_v20 = vld [vmem:[%s12374_s5 + $0x70] sm:$0xff]  ;;  %v7390_v41 = vld [vmem:[%s12375_s7 + $0x60] sm:$0xff]  ;;  %v7399_v42 = vld [vmem:[%s12374_s5 + $0x68] sm:$0xff] }
 0x230   : > { %7999 = vmatmul.mubr.msk.bf16.gmra.mxu0 %vm1561_vm1, %v1552_v43  ;;  %8004 = vmatprep.mubr.msk.bf16.mxu1 %vm1561_vm1, %v1553_v45  ;;  %v7398_v43 = vld [vmem:[%s12374_s5 + $0x60] sm:$0xff]  ;;  %v7388_v45 = vld [vmem:[%s12375_s7 + $0x50] sm:$0xff]  ;;  %v7397_v46 = vld [vmem:[%s12374_s5 + $0x58] sm:$0xff] }
 0x231   : > { %2856 = vperm.xlu1 %8373, %v2786_v44   ;;  %8014 = vmatprep.mubr.msk.bf16.mxu0 %vm1561_vm1, %v1557_v47  ;;  %v7389_v44 = vld [vmem:[%s12375_s7 + $0x58] sm:$0xff]  ;;  %v7396_v47 = vld [vmem:[%s12374_s5 + $0x50] sm:$0xff]  ;;  %v7439_v13 = vld [vmem:[%s12386_s4 + $0x68] sm:$0xff] }
 0x232   : > { %v8457_v54 = vpop.trf.xlu1  ;;  %v7436_v51 = vld [vmem:[%s12386_s4 + $0x50] sm:$0xff] }
 0x233   : > { %2851 = vperm.xlu0 %8372, %v2785_v48   ;;  %v8461_v1 = vunpack.i.h.bf16 %v8457_v54  ;;  %v8458_v3 = vunpack.i.l.bf16 %v8457_v54  ;;  %v7387_v48 = vld [vmem:[%s12375_s7 + $0x48] sm:$0xff]  ;;  %v7441_v54 = vld [vmem:[%s12386_s4 + $0x78] sm:$0xff]  ;;  %v7440_v55 = vld [vmem:[%s12386_s4 + $0x70] sm:$0xff] }
 0x235   : > { %2926 = vperm.xlu1 %8373, %v2800_v53   ;;  %v1556_v6 = vpack.c.bf16 %v8461_v1, %v8456_v0  ;;  %v1560_v7 = vpack.c.bf16 %v8458_v3, %v8453_v2  ;;  %v7434_v53 = vld [vmem:[%s12386_s4 + $0x40] sm:$0xff]  ;;  %v7417_v0 = vld [vmem:[%s12390_s30 + $0x78] sm:$0xff]  ;;  %v7416_v2 = vld [vmem:[%s12390_s30 + $0x70] sm:$0xff] }
 0x237   : > { %2921 = vperm.xlu0 %8372, %v2799_v12   ;;  %8005 = vmatmul.mubr.msk.bf16.vlgmr.msra.gmra.mxu1 %vm1561_vm1, %v1554_v56  ;;  %v7438_v12 = vld [vmem:[%s12386_s4 + $0x60] sm:$0xff]  ;;  %v7413_v56 = vld [vmem:[%s12390_s30 + $0x58] sm:$0xff]  ;;  %s12474_s4 = sld [smem:[#allocation37_spill]] }
 0x238   : > { %8015 = vmatmul.mubr.msk.bf16.vlgmr.msra.gmra.mxu0 %vm1561_vm1, %v1558_v57  ;;  %8008 = vmatprep.mubr.msk.bf16.mxu1 %vm1561_vm1, %v1555_v60  ;;  %v7412_v57 = vld [vmem:[%s12390_s30 + $0x50] sm:$0xff]  ;;  %v7411_v60 = vld [vmem:[%s12390_s30 + $0x48] sm:$0xff] }
 0x239   : > { %2846 = vperm.xlu1 %8373, %v2784_v59   ;;  %8018 = vmatprep.mubr.msk.bf16.mxu0 %vm1561_vm1, %v1559_v61 }
 0x23b   : > { %2841 = vperm.xlu0 %8372, %v2783_v63   ;;  %v7410_v63 = vld [vmem:[%s12390_s30 + $0x40] sm:$0xff] }
 0x23d   : > { %2916 = vperm.xlu1 %8373, %v2798_v4   ;;  %v7415_v4 = vld [vmem:[%s12390_s30 + $0x68] sm:$0xff]  ;;  %s12221_s5 = scalar_lea.hbm %s12474_s4, %s7661_s25 }
 0x23f   : > { %2911 = vperm.xlu0 %8372, %v2797_v5   ;;  %8009 = vmatmul.mubr.msk.bf16.gmra.mxu1 %vm1561_vm1, %v1556_v6  ;;  %v7414_v5 = vld [vmem:[%s12390_s30 + $0x60] sm:$0xff] }
 0x240   : > { %8019 = vmatmul.mubr.msk.bf16.gmra.mxu0 %vm1561_vm1, %v1560_v7 }
 0x241   : > { %2836 = vperm.xlu1 %8373, %v2782_v8   ;;  %v9781_v8 = vpop.f32.mrf.mxu0 }
 0x243   : > { %2831 = vperm.xlu0 %8372, %v2781_v9   ;;  %v9783_v9 = vpop.f32.mrf.mxu0 }
 0x245   : > { %2906 = vperm.xlu1 %8373, %v2796_v10   ;;  %v9785_v10 = vpop.f32.mrf.mxu0 }
 0x247   : > { %2901 = vperm.xlu0 %8372, %v2795_v11   ;;  %v9787_v11 = vpop.f32.mrf.mxu0 }
 0x249   : > { %2826 = vperm.xlu1 %8373, %v2780_v16   ;;  %v9789_v16 = vpop.f32.mrf.mxu0 }
 0x24b   : > { %2821 = vperm.xlu0 %8372, %v2779_v62   ;;  %v9791_v62 = vpop.f32.mrf.mxu0 }
 0x24d   : > { %2896 = vperm.xlu1 %8373, %v2794_v17   ;;  %v9793_v17 = vpop.f32.mrf.mxu0 }
 0x24e   : > { %12393 = vst [vmem:[#allocation23_spill] sm:$0xff] %v9793_v17 }
 0x24f   : > { %2891 = vperm.xlu0 %8372, %v2793_v18   ;;  %v9751_v59 = vpop.permute.xlu1 %1289  ;;  %v12306_v18 = vmov 0.0  }
 0x250   : > { %8022 = vmatprep.subr.bf16.mxu1 %v12306_v18  ;;  %8034 = vmatprep.subr.bf16.mxu0 %v12306_v18 }
 0x251   : > { %2816 = vperm.xlu1 %8373, %v2778_v58   ;;  %v9797_v58 = vpop.f32.mrf.mxu0  ;;  %8030 = vmatprep.mubr.msk.bf16.mxu1 %vm9006_vm2, %v12306_v18 }
 0x252   : > { %v9756_v61 = vpop.permute.xlu0 %1284  ;;  %8042 = vmatprep.mubr.msk.bf16.mxu0 %vm9006_vm2, %v12306_v18 }
 0x253   : > { %2811 = vperm.xlu0 %8372, %v2777_v19   ;;  %v9764_v1 = vpop.permute.xlu1 %1279 }
 0x255   : > { %3698 = vperm.xlu1 %8373, %v3684_v22  }
 0x256   : > { %v9769_v3 = vpop.permute.xlu0 %1274 }
 0x257   : > { %3693 = vperm.xlu0 %8372, %v3683_v23   ;;  %v9777_v6 = vpop.permute.xlu1 %1309 }
 0x258   : > { %12392 = vst [vmem:[#allocation22_spill] sm:$0xff] %v9777_v6 }
 0x259   : > { %3708 = vperm.xlu1 %8373, %v3686_v24  }
 0x25a   : > { %v9779_v7 = vpop.permute.xlu0 %1304 }
 0x25b   : > { %3703 = vperm.xlu0 %8372, %v3685_v27  }
 0x25d   : > { %3718 = vperm.xlu1 %8373, %v3688_v28  }
 0x25f   : > { %3713 = vperm.xlu0 %8372, %v3687_v29  }
 0x261   : > { %3728 = vperm.xlu1 %8373, %v3690_v36  }
 0x263   : > { %3723 = vperm.xlu0 %8372, %v3689_v37  }
 0x265   : > { %3864 = vperm.xlu1 %8373, %v7393_v38  }
 0x267   : > { %3859 = vperm.xlu0 %8372, %v7392_v39  }
 0x269   : > { %3912 = vperm.xlu1 %8373, %v7401_v21  }
 0x26b   : > { %3907 = vperm.xlu0 %8372, %v7400_v20  }
 0x26d   : > { %3854 = vperm.xlu1 %8373, %v7391_v40  }
 0x26f   : > { %3849 = vperm.xlu0 %8372, %v7390_v41  }
 0x271   : > { %3902 = vperm.xlu1 %8373, %v7399_v42  }
 0x273   : > { %3897 = vperm.xlu0 %8372, %v7398_v43  }
 0x275   : > { %3844 = vperm.xlu1 %8373, %v7389_v44  }
 0x277   : > { %3839 = vperm.xlu0 %8372, %v7388_v45  }
 0x279   : > { %3892 = vperm.xlu1 %8373, %v7397_v46  }
 0x27b   : > { %3887 = vperm.xlu0 %8372, %v7396_v47  }
 0x27d   : > { %3834 = vperm.xlu1 %8373, %v7387_v48  }
 0x27f   : > { %3829 = vperm.xlu0 %8372, %v7386_v15  }
 0x281   : > { %3882 = vperm.xlu1 %8373, %v7395_v49  }
 0x283   : > { %3877 = vperm.xlu0 %8372, %v7394_v14  }
 0x285   : > { %4117 = vperm.xlu1 %8373, %v7437_v50  }
 0x287   : > { %4112 = vperm.xlu0 %8372, %v7436_v51  }
 0x289   : > { %4107 = vperm.xlu1 %8373, %v7435_v52  }
 0x28b   : > { %4102 = vperm.xlu0 %8372, %v7434_v53  }
 0x28d   : > { %4137 = vperm.xlu1 %8373, %v7441_v54  }
 0x28f   : > { %4132 = vperm.xlu0 %8372, %v7440_v55  }
 0x291   : > { %4127 = vperm.xlu1 %8373, %v7439_v13  }
 0x293   : > { %4122 = vperm.xlu0 %8372, %v7438_v12  }
 0x295   : > { %3962 = vperm.xlu1 %8373, %v7413_v56  }
 0x297   : > { %3957 = vperm.xlu0 %8372, %v7412_v57  }
 0x299   : > { %3952 = vperm.xlu1 %8373, %v7411_v60  }
 0x29b   : > { %3947 = vperm.xlu0 %8372, %v7410_v63  }
 0x29d   : > { %3982 = vperm.xlu1 %8373, %v7417_v0  }
 0x29f   : > { %3977 = vperm.xlu0 %8372, %v7416_v2  }
 0x2a1   : > { %3972 = vperm.xlu1 %8373, %v7415_v4  }
 0x2a3   : > { %3967 = vperm.xlu0 %8372, %v7414_v5  }
 0x2df   : > { %v7986_v19 = vpop.f32.mrf.mxu1 }
 0x2e0   : > { %v7996_v22 = vpop.f32.mrf.mxu0  ;;  %v9815_v41 = vmul.f32 0.25, %v7986_v19 }
 0x2e1   : > { %v1608_v23 = vpop.f32.mrf.mxu1  ;;  %v9819_v43 = vmul.f32 0.25, %v7996_v22 }
 0x2e2   : > { %v1685_v24 = vpop.f32.mrf.mxu0  ;;  %v9807_v39 = vmul.f32 0.25, %v1608_v23  ;;  %v1905_v48 = vsel %vm778_vm0, %v9815_v41, -inf }
 0x2e3   : > { %v7987_v27 = vpop.f32.mrf.mxu1  ;;  %v9809_v21 = vmul.f32 0.25, %v1685_v24  ;;  %v1926_v14 = vsel %vm778_vm0, %v9819_v43, -inf }
 0x2e4   : > { %v7997_v28 = vpop.f32.mrf.mxu0  ;;  %v1902_v42 = vsel %vm778_vm0, %v9807_v39, -inf  ;;  %v9825_v15 = vmul.f32 0.25, %v7987_v27 }
 0x2e5   : > { %v1611_v29 = vpop.f32.mrf.mxu1  ;;  %v1923_v44 = vsel %vm778_vm0, %v9809_v21, -inf  ;;  %v9829_v50 = vmul.f32 0.25, %v7997_v28 }
 0x2e6   : > { %v9803_v36 = vmul.f32 0.25, %v1611_v29  ;;  %v1688_v37 = vpop.f32.mrf.mxu0  ;;  %v1907_v56 = vsel %vm778_vm0, %v9825_v15, -inf }
 0x2e7   : > { %v9805_v38 = vmul.f32 0.25, %v1688_v37  ;;  %v1928_v63 = vsel %vm778_vm0, %v9829_v50, -inf }
 0x2e8   : > { %v1903_v20 = vsel %vm778_vm0, %v9803_v36, -inf }
 0x2e9   : > { %v1924_v40 = vsel %vm778_vm0, %v9805_v38, -inf  ;;  %v1904_v45 = vmax.f32 %v1902_v42, %v1903_v20 }
 0x2ea   : > { %v1925_v46 = vmax.f32 %v1923_v44, %v1924_v40 }
 0x2eb   : > { %v1906_v51 = vmax.f32 %v1904_v45, %v1905_v48 }
 0x2ec   : > { %v1927_v53 = vmax.f32 %v1925_v46, %v1926_v14 }
 0x2ed   : > { %v1908_v0 = vmax.f32 %v1906_v51, %v1907_v56 }
 0x2ee   : > { %v1929_v19 = vmax.f32 %v1927_v53, %v1928_v63 }
 0x2ef   : > { %v7990_v47 = vpop.f32.mrf.mxu1 }
 0x2f0   : > { %v8000_v49 = vpop.f32.mrf.mxu0  ;;  %v9843_v5 = vmul.f32 0.25, %v7990_v47 }
 0x2f1   : > { %v1624_v52 = vpop.f32.mrf.mxu1  ;;  %v9847_v24 = vmul.f32 0.25, %v8000_v49 }
 0x2f2   : > { %v9831_v54 = vmul.f32 0.25, %v1624_v52  ;;  %v1701_v55 = vpop.f32.mrf.mxu0  ;;  %v1913_v48 = vsel %vm778_vm0, %v9843_v5, -inf }
 0x2f3   : > { %v9833_v13 = vmul.f32 0.25, %v1701_v55  ;;  %v7991_v12 = vpop.f32.mrf.mxu1  ;;  %v1934_v51 = vsel %vm778_vm0, %v9847_v24, -inf }
 0x2f4   : > { %v1909_v57 = vsel %vm778_vm0, %v9831_v54, -inf  ;;  %v8001_v60 = vpop.f32.mrf.mxu0  ;;  %v9851_v20 = vmul.f32 0.25, %v7991_v12 }
 0x2f5   : > { %v1930_v2 = vsel %vm778_vm0, %v9833_v13, -inf  ;;  %v1627_v4 = vpop.f32.mrf.mxu1  ;;  %v1910_v27 = vmax.f32 %v1908_v0, %v1909_v57  ;;  %v9855_v44 = vmul.f32 0.25, %v8001_v60 }
 0x2f6   : > { %v9845_v22 = vmul.f32 0.25, %v1627_v4  ;;  %v1704_v23 = vpop.f32.mrf.mxu0  ;;  %v1931_v37 = vmax.f32 %v1929_v19, %v1930_v2  ;;  %v1915_v12 = vsel %vm778_vm0, %v9851_v20, -inf }
 0x2f7   : > { %v9849_v28 = vmul.f32 0.25, %v1704_v23  ;;  %v8006_v29 = vpop.f32.mrf.mxu1  ;;  %v1936_v63 = vsel %vm778_vm0, %v9855_v44, -inf }
 0x2f8   : > { %v1911_v40 = vsel %vm778_vm0, %v9845_v22, -inf  ;;  %v8016_v42 = vpop.f32.mrf.mxu0  ;;  %v9871_v19 = vmul.f32 0.25, %v8006_v29 }
 0x2f9   : > { %v1912_v45 = vmax.f32 %v1910_v27, %v1911_v40  ;;  %v1932_v46 = vsel %vm778_vm0, %v9849_v28, -inf  ;;  %v1762_v47 = vpop.f32.mrf.mxu1  ;;  %v9875_v40 = vmul.f32 0.25, %v8016_v42 }
 0x2fa   : > { %v1933_v49 = vmax.f32 %v1931_v37, %v1932_v46  ;;  %v1839_v14 = vpop.f32.mrf.mxu0  ;;  %v9863_v53 = vmul.f32 0.25, %v1762_v47 }
 0x2fb   : > { %v1914_v52 = vmax.f32 %v1912_v45, %v1913_v48  ;;  %v8007_v55 = vpop.f32.mrf.mxu1  ;;  %v9867_v57 = vmul.f32 0.25, %v1839_v14  ;;  %v1968_v33 = vsel %vm778_vm0, %v9875_v40, -inf }
 0x2fc   : > { %v1935_v56 = vmax.f32 %v1933_v49, %v1934_v51  ;;  %v8017_v60 = vpop.f32.mrf.mxu0  ;;  %v1944_v45 = vsel %vm778_vm0, %v9863_v53, -inf  ;;  %v9883_v14 = vmul.f32 0.25, %v8007_v55 }
 0x2fd   : > { %v1916_v0 = vmax.f32 %v1914_v52, %v1915_v12  ;;  %v1765_v2 = vpop.f32.mrf.mxu1  ;;  %v1965_v49 = vsel %vm778_vm0, %v9867_v57, -inf  ;;  %v9887_v12 = vmul.f32 0.25, %v8017_v60 }
 0x2fe   : > { %v1937_v4 = vmax.f32 %v1935_v56, %v1936_v63  ;;  %v9873_v23 = vmul.f32 0.25, %v1765_v2  ;;  %v1842_v27 = vpop.f32.mrf.mxu0  ;;  %v1949_v60 = vsel %vm778_vm0, %v9883_v14, -inf }
 0x2ff   : > { %v1917_v37 = vrot.slane %v1916_v0, 4  ;;  %v9879_v46 = vmul.f32 0.25, %v1842_v27  ;;  %v8010_v47 = vpop.f32.mrf.mxu1  ;;  %v1947_v27 = vsel %vm778_vm0, %v9871_v19, -inf }
 0x300   : > { %v1938_v48 = vrot.slane %v1937_v4, 4  ;;  %v1945_v29 = vsel %vm778_vm0, %v9873_v23, -inf  ;;  %v8020_v51 = vpop.f32.mrf.mxu0 }
 0x301   : > { %v1918_v52 = vmax.f32 %v1916_v0, %v1917_v37  ;;  %v1946_v42 = vmax.f32 %v1944_v45, %v1945_v29  ;;  %v1966_v56 = vsel %vm778_vm0, %v9879_v46, -inf  ;;  %v1778_v63 = vpop.f32.mrf.mxu1 }
 0x302   : > { %v1939_v2 = vmax.f32 %v1937_v4, %v1938_v48  ;;  %v1967_v18 = vmax.f32 %v1965_v49, %v1966_v56  ;;  %v1855_v35 = vpop.f32.mrf.mxu0  ;;  %v1970_v4 = vsel %vm778_vm0, %v9887_v12, -inf  ;;  %v9899_v48 = vmul.f32 0.25, %v1778_v63 }
 0x303   : > { %v1919_v55 = vrot.slane %v1918_v52, 2  ;;  %v1948_v34 = vmax.f32 %v1946_v42, %v1947_v27  ;;  %v8011_v32 = vpop.f32.mrf.mxu1  ;;  %v9901_v49 = vmul.f32 0.25, %v1855_v35  ;;  %v9915_v63 = vmul.f32 0.25, %v8010_v47 }
 0x304   : > { %v1940_v0 = vrot.slane %v1939_v2, 2  ;;  %v1969_v37 = vmax.f32 %v1967_v18, %v1968_v33  ;;  %v8021_v45 = vpop.f32.mrf.mxu0  ;;  %v1951_v18 = vsel %vm778_vm0, %v9899_v48, -inf }
 0x305   : > { %v1920_v29 = vmax.f32 %v1918_v52, %v1919_v55  ;;  %v1781_v56 = vpop.f32.mrf.mxu1  ;;  %v1950_v26 = vmax.f32 %v1948_v34, %v1949_v60  ;;  %v1972_v35 = vsel %vm778_vm0, %v9901_v49, -inf }
 0x306   : > { %v1941_v31 = vmax.f32 %v1939_v2, %v1940_v0  ;;  %v1971_v30 = vmax.f32 %v1969_v37, %v1970_v4  ;;  %v1858_v42 = vpop.f32.mrf.mxu0  ;;  %v9903_v17 = vmul.f32 0.25, %v1781_v56  ;;  %v9937_v4 = vmul.f32 0.25, %v8011_v32 }
 0x307   : > { %v1921_v27 = vrot.slane %v1920_v29, 1  ;;  %v9905_v6 = vmul.f32 0.25, %v1858_v42  ;;  %v1952_v34 = vmax.f32 %v1950_v26, %v1951_v18  ;;  %v1955_v32 = vsel %vm778_vm0, %v9915_v63, -inf }
 0x308   : > { %v1942_v25 = vrot.slane %v1941_v31, 1  ;;  %v1973_v2 = vmax.f32 %v1971_v30, %v1972_v35  ;;  %v1953_v26 = vsel %vm778_vm0, %v9903_v17, -inf }
 0x309   : > { %v9907_v33 = vmax.f32 %v1920_v29, %v1921_v27  ;;  %v1974_v30 = vsel %vm778_vm0, %v9905_v6, -inf  ;;  %v1954_v56 = vmax.f32 %v1952_v34, %v1953_v26 }
 0x30a   : > { %v9913_v52 = vmax.f32 %v1941_v31, %v1942_v25  ;;  %v1975_v18 = vmax.f32 %v1973_v2, %v1974_v30 }
 0x30b   : > { %v1986_v55 = vsub.f32 %v9807_v39, %v9907_v33  ;;  %v1987_v0 = vsub.f32 %v9803_v36, %v9907_v33  ;;  %v1988_v60 = vsub.f32 %v9815_v41, %v9907_v33  ;;  %v1989_v37 = vsub.f32 %v9825_v15, %v9907_v33 }
 0x30c   : > { %v1990_v25 = vsub.f32 %v9831_v54, %v9907_v33  ;;  %v1991_v31 = vsub.f32 %v9845_v22, %v9907_v33  ;;  %v1994_v41 = vsub.f32 %v9809_v21, %v9913_v52  ;;  %v9935_v15 = vmul.f32 0.25, %v8020_v51 }
 0x30d   : > { %v2018_v39 = vmul.f32 1.442695, %v1986_v55  ;;  %v2020_v36 = vmul.f32 1.442695, %v1987_v0  ;;  %v2022_v47 = vmul.f32 1.442695, %v1988_v60  ;;  %v1995_v22 = vsub.f32 %v9805_v38, %v9913_v52 }
 0x30e   : > { %v2024_v29 = vmul.f32 1.442695, %v1989_v37  ;;  %v2026_v54 = vmul.f32 1.442695, %v1990_v25  ;;  %v2028_v42 = vmul.f32 1.442695, %v1991_v31  ;;  %v1996_v27 = vsub.f32 %v9819_v43, %v9913_v52 }
 0x30f   : > { %8644 = vpow2.f32 %v2018_v39  ;;  %v1997_v21 = vsub.f32 %v9829_v50, %v9913_v52  ;;  %v9947_v51 = vmul.f32 0.25, %v8021_v45  ;;  %v1992_v35 = vsub.f32 %v9843_v5, %v9907_v33 }
 0x310   : > { %8646 = vpow2.f32 %v2020_v36  ;;  %v2034_v38 = vmul.f32 1.442695, %v1994_v41  ;;  %v1976_v34 = vsel %vm778_vm0, %v9935_v15, -inf  ;;  %v1998_v43 = vsub.f32 %v9833_v13, %v9913_v52 }
 0x311   : > { %8648 = vpow2.f32 %v2022_v47  ;;  %v2036_v2 = vmul.f32 1.442695, %v1995_v22  ;;  %v1956_v55 = vmax.f32 %v1954_v56, %v1955_v32  ;;  %v2038_v50 = vmul.f32 1.442695, %v1996_v27 }
 0x312   : > { %8650 = vpow2.f32 %v2024_v29  ;;  %v1957_v45 = vsel %vm778_vm0, %v9937_v4, -inf  ;;  %v1977_v0 = vmax.f32 %v1975_v18, %v1976_v34  ;;  %v1999_v5 = vsub.f32 %v9849_v28, %v9913_v52 }
 0x313   : > { %8652 = vpow2.f32 %v2026_v54  ;;  %v2040_v60 = vmul.f32 1.442695, %v1997_v21  ;;  %v1978_v37 = vsel %vm778_vm0, %v9947_v51, -inf  ;;  %v1958_v25 = vmax.f32 %v1956_v55, %v1957_v45 }
 0x314   : > { %8654 = vpow2.f32 %v2028_v42  ;;  %v2030_v31 = vmul.f32 1.442695, %v1992_v35  ;;  %v2000_v13 = vsub.f32 %v9847_v24, %v9913_v52  ;;  %v1979_v26 = vmax.f32 %v1977_v0, %v1978_v37 }
 0x315   : > { %8656 = vpow2.f32 %v2034_v38  ;;  %v2042_v30 = vmul.f32 1.442695, %v1998_v43  ;;  %v1959_v39 = vrot.slane %v1958_v25, 4  ;;  %v2001_v47 = vsub.f32 %v9855_v44, %v9913_v52 }
 0x316   : > { %8658 = vpow2.f32 %v2036_v2  ;;  %v1980_v36 = vrot.slane %v1979_v26, 4  ;;  %v2044_v28 = vmul.f32 1.442695, %v1999_v5  ;;  %v2046_v41 = vmul.f32 1.442695, %v2000_v13 }
 0x317   : > { %8660 = vpow2.f32 %v2038_v50  ;;  %v1960_v29 = vmax.f32 %v1958_v25, %v1959_v39  ;;  %v1993_v22 = vsub.f32 %v9851_v20, %v9907_v33  ;;  %v2048_v44 = vmul.f32 1.442695, %v2001_v47 }
 0x318   : > { %8662 = vpow2.f32 %v2040_v60  ;;  %v1981_v54 = vmax.f32 %v1979_v26, %v1980_v36 }
 0x319   : > { %8664 = vpow2.f32 %v2030_v31  ;;  %v1961_v24 = vrot.slane %v1960_v29, 2  ;;  %v2032_v33 = vmul.f32 1.442695, %v1993_v22 }
 0x31a   : > { %8666 = vpow2.f32 %v2042_v30  ;;  %v1982_v42 = vrot.slane %v1981_v54, 2 }
 0x31b   : > { %8668 = vpow2.f32 %v2044_v28  ;;  %v1962_v52 = vmax.f32 %v1960_v29, %v1961_v24 }
 0x31c   : > { %v9967_v56 = vpop.eup %8644  ;;  %8670 = vpow2.f32 %v2046_v41  ;;  %v1983_v20 = vmax.f32 %v1981_v54, %v1982_v42 }
 0x31d   : > { %v9969_v27 = vpop.eup %8646  ;;  %v2082_v18 = vsel %vm778_vm0, %v9967_v56, 0.0  ;;  %v1963_v34 = vrot.slane %v1962_v52, 1  ;;  %8672 = vpow2.f32 %v2048_v44 }
 0x31e   : > { %v9973_v21 = vpop.eup %8648  ;;  %v2083_v32 = vsel %vm778_vm0, %v9969_v27, 0.0  ;;  %v1984_v0 = vrot.slane %v1983_v20, 1  ;;  %8674 = vpow2.f32 %v2032_v33 }
 0x31f   : > { %v9977_v35 = vpop.eup %8650  ;;  %v2084_v38 = vadd.f32 %v2083_v32, %v2082_v18  ;;  %v2085_v2 = vsel %vm778_vm0, %v9973_v21, 0.0  ;;  %v1964_v45 = vmax.f32 %v1962_v52, %v1963_v34 }
 0x320   : > { %v9979_v43 = vpop.eup %8652  ;;  %v2087_v5 = vsel %vm778_vm0, %v9977_v35, 0.0  ;;  %v10006_v41 = vmax.f32 %v1983_v20, %v1984_v0 }
 0x321   : > { %v9983_v55 = vpop.eup %8654  ;;  %v2086_v50 = vadd.f32 %v2085_v2, %v2084_v38  ;;  %v2089_v25 = vsel %vm778_vm0, %v9979_v43, 0.0  ;;  %v2002_v31 = vsub.f32 %v9863_v53, %v1964_v45  ;;  %v2003_v13 = vsub.f32 %v9873_v23, %v1964_v45 }
 0x322   : > { %v9987_v60 = vpop.eup %8656  ;;  %v2091_v30 = vsel %vm778_vm0, %v9983_v55, 0.0  ;;  %v2004_v36 = vsub.f32 %v9871_v19, %v1964_v45  ;;  %v2005_v47 = vsub.f32 %v9883_v14, %v1964_v45  ;;  %v2006_v23 = vsub.f32 %v9899_v48, %v1964_v45 }
 0x323   : > { %v2088_v37 = vadd.f32 %v2087_v5, %v2086_v50  ;;  %v9993_v26 = vpop.eup %8658  ;;  %v2103_v39 = vsel %vm778_vm0, %v9987_v60, 0.0  ;;  %v2007_v24 = vsub.f32 %v9903_v17, %v1964_v45  ;;  %v2008_v42 = vsub.f32 %v9915_v63, %v1964_v45 }
 0x324   : > { %v10001_v28 = vpop.eup %8660  ;;  %v2104_v53 = vsel %vm778_vm0, %v9993_v26, 0.0  ;;  %v2050_v19 = vmul.f32 1.442695, %v2002_v31  ;;  %v2052_v52 = vmul.f32 1.442695, %v2003_v13  ;;  %v2009_v20 = vsub.f32 %v9937_v4, %v1964_v45 }
 0x325   : > { %v2090_v29 = vadd.f32 %v2089_v25, %v2088_v37  ;;  %v10008_v54 = vpop.eup %8662  ;;  %v2105_v22 = vadd.f32 %v2104_v53, %v2103_v39  ;;  %v2106_v44 = vsel %vm778_vm0, %v10001_v28, 0.0  ;;  %v2054_v32 = vmul.f32 1.442695, %v2004_v36 }
 0x326   : > { %v10012_v18 = vpop.eup %8664  ;;  %8676 = vpow2.f32 %v2050_v19  ;;  %v2056_v38 = vmul.f32 1.442695, %v2005_v47  ;;  %v2108_v17 = vsel %vm778_vm0, %v10008_v54, 0.0  ;;  %v2058_v63 = vmul.f32 1.442695, %v2006_v23 }
 0x327   : > { %v2092_v14 = vadd.f32 %v2091_v30, %v2090_v29  ;;  %v10016_v33 = vpop.eup %8666  ;;  %v2107_v48 = vadd.f32 %v2106_v44, %v2105_v22  ;;  %8678 = vpow2.f32 %v2052_v52  ;;  %v2093_v2 = vsel %vm778_vm0, %v10012_v18, 0.0 }
 0x328   : > { %v10021_v34 = vpop.eup %8668  ;;  %8680 = vpow2.f32 %v2054_v32  ;;  %v2060_v0 = vmul.f32 1.442695, %v2007_v24  ;;  %v2110_v4 = vsel %vm778_vm0, %v10016_v33, 0.0  ;;  %v2062_v45 = vmul.f32 1.442695, %v2008_v42 }
 0x329   : > { %v2109_v50 = vadd.f32 %v2108_v17, %v2107_v48  ;;  %v10025_v5 = vpop.eup %8670  ;;  %v2094_v37 = vadd.f32 %v2093_v2, %v2092_v14  ;;  %8682 = vpow2.f32 %v2056_v38  ;;  %v2064_v31 = vmul.f32 1.442695, %v2009_v20 }
 0x32a   : > { %v2010_v13 = vsub.f32 %v9867_v57, %v10006_v41  ;;  %v2011_v30 = vsub.f32 %v9879_v46, %v10006_v41  ;;  %v2112_v39 = vsel %vm778_vm0, %v10021_v34, 0.0  ;;  %8684 = vpow2.f32 %v2058_v63  ;;  %v10039_v29 = vpop.eup %8672 }
 0x32b   : > { %v2111_v25 = vadd.f32 %v2110_v4, %v2109_v50  ;;  %v2012_v36 = vsub.f32 %v9875_v40, %v10006_v41  ;;  %v2013_v47 = vsub.f32 %v9887_v12, %v10006_v41  ;;  %v2114_v23 = vsel %vm778_vm0, %v10025_v5, 0.0  ;;  %v10045_v46 = vpop.eup %8674 }
 0x32c   : > { %8686 = vpow2.f32 %v2060_v0  ;;  %v2014_v57 = vsub.f32 %v9901_v49, %v10006_v41  ;;  %v2015_v22 = vsub.f32 %v9905_v6, %v10006_v41  ;;  %v2066_v40 = vmul.f32 1.442695, %v2010_v13 }
 0x32d   : > { %v2113_v53 = vadd.f32 %v2112_v39, %v2111_v25  ;;  %8688 = vpow2.f32 %v2062_v45  ;;  %v2068_v24 = vmul.f32 1.442695, %v2011_v30  ;;  %v2070_v12 = vmul.f32 1.442695, %v2012_v36 }
 0x32e   : > { %8690 = vpow2.f32 %v2064_v31  ;;  %v2072_v19 = vmul.f32 1.442695, %v2013_v47  ;;  %v2116_v14 = vsel %vm778_vm0, %v10039_v29, 0.0  ;;  %v2016_v44 = vsub.f32 %v9935_v15, %v10006_v41 }
 0x32f   : > { %v2115_v42 = vadd.f32 %v2114_v23, %v2113_v53  ;;  %8692 = vpow2.f32 %v2066_v40  ;;  %v2074_v52 = vmul.f32 1.442695, %v2014_v57  ;;  %v2095_v32 = vsel %vm778_vm0, %v10045_v46, 0.0 }
 0x330   : > { %8694 = vpow2.f32 %v2068_v24  ;;  %v2096_v6 = vadd.f32 %v2095_v32, %v2094_v37  ;;  %v2017_v20 = vsub.f32 %v9947_v51, %v10006_v41  ;;  %v2076_v38 = vmul.f32 1.442695, %v2015_v22 }
 0x331   : > { %v2117_v49 = vadd.f32 %v2116_v14, %v2115_v42  ;;  %8696 = vpow2.f32 %v2070_v12  ;;  %v2078_v0 = vmul.f32 1.442695, %v2016_v44 }
 0x332   : > { %8698 = vpow2.f32 %v2072_v19  ;;  %v2097_v63 = vrot.slane %v2096_v6, 4  ;;  %v2080_v31 = vmul.f32 1.442695, %v2017_v20 }
 0x333   : > { %v2118_v48 = vrot.slane %v2117_v49, 4  ;;  %v10057_v17 = vpop.eup %8676  ;;  %8700 = vpow2.f32 %v2074_v52 }
 0x334   : > { %v10059_v2 = vpop.eup %8678  ;;  %v2124_v50 = vsel %vm778_vm0, %v10057_v17, 0.0  ;;  %v2098_v45 = vadd.f32 %v2097_v63, %v2096_v6  ;;  %8702 = vpow2.f32 %v2076_v38 }
 0x335   : > { %v2119_v15 = vadd.f32 %v2118_v48, %v2117_v49  ;;  %v10063_v4 = vpop.eup %8680  ;;  %v2125_v37 = vsel %vm778_vm0, %v10059_v2, 0.0  ;;  %8704 = vpow2.f32 %v2078_v0 }
 0x336   : > { %v10067_v51 = vpop.eup %8682  ;;  %v2126_v25 = vadd.f32 %v2125_v37, %v2124_v50  ;;  %v2127_v13 = vsel %vm778_vm0, %v10063_v4, 0.0  ;;  %v2099_v30 = vrot.slane %v2098_v45, 2  ;;  %8706 = vpow2.f32 %v2080_v31 }
 0x337   : > { %v2120_v41 = vrot.slane %v2119_v15, 2  ;;  %v10071_v39 = vpop.eup %8684  ;;  %v2129_v23 = vsel %vm778_vm0, %v10067_v51, 0.0 }
 0x338   : > { %v2128_v47 = vadd.f32 %v2127_v13, %v2126_v25  ;;  %v2100_v57 = vadd.f32 %v2099_v30, %v2098_v45  ;;  %v2131_v12 = vsel %vm778_vm0, %v10071_v39, 0.0 }
 0x339   : > { %v2121_v36 = vadd.f32 %v2120_v41, %v2119_v15  ;;  %v10073_v53 = vpop.eup %8686 }
 0x33a   : > { %v10077_v22 = vpop.eup %8688  ;;  %v2130_v24 = vadd.f32 %v2129_v23, %v2128_v47  ;;  %v2101_v19 = vrot.slane %v2100_v57, 1  ;;  %v2133_v32 = vsel %vm778_vm0, %v10073_v53, 0.0 }
 0x33b   : > { %v2122_v40 = vrot.slane %v2121_v36, 1  ;;  %v10079_v42 = vpop.eup %8690  ;;  %v2135_v50 = vsel %vm778_vm0, %v10077_v22, 0.0 }
 0x33c   : > { %v10083_v14 = vpop.eup %8692  ;;  %v2132_v49 = vadd.f32 %v2131_v12, %v2130_v24  ;;  %v2102_v48 = vadd.f32 %v2101_v19, %v2100_v57  ;;  %v2137_v25 = vsel %vm778_vm0, %v10079_v42, 0.0 }
 0x33d   : > { %v2123_v44 = vadd.f32 %v2122_v40, %v2121_v36  ;;  %v10085_v52 = vpop.eup %8694  ;;  %v2145_v6 = vsel %vm778_vm0, %v10083_v14, 0.0 }
 0x33e   : > { %v10091_v20 = vpop.eup %8696  ;;  %v2134_v38 = vadd.f32 %v2133_v32, %v2132_v49  ;;  %v2146_v63 = vsel %vm778_vm0, %v10085_v52, 0.0 }
 0x33f   : > { %8708 = vrcp.f32 %v2123_v44  ;;  %v10095_v15 = vpop.eup %8698  ;;  %v2147_v0 = vadd.f32 %v2146_v63, %v2145_v6  ;;  %v2148_v45 = vsel %vm778_vm0, %v10091_v20, 0.0 }
 0x340   : > { %8710 = vrcp.f32 %v2102_v48  ;;  %v2136_v37 = vadd.f32 %v2135_v50, %v2134_v38  ;;  %v10101_v41 = vpop.eup %8700  ;;  %v2150_v30 = vsel %vm778_vm0, %v10095_v15, 0.0 }
 0x341   : > { %v2149_v31 = vadd.f32 %v2148_v45, %v2147_v0  ;;  %v10107_v36 = vpop.eup %8702  ;;  %v2152_v57 = vsel %vm778_vm0, %v10101_v41, 0.0 }
 0x342   : > { %v2138_v13 = vadd.f32 %v2137_v25, %v2136_v37  ;;  %v10111_v40 = vpop.eup %8704  ;;  %v2154_v19 = vsel %vm778_vm0, %v10107_v36, 0.0 }
 0x343   : > { %v2151_v47 = vadd.f32 %v2150_v30, %v2149_v31  ;;  %v10115_v44 = vpop.eup %8706  ;;  %v2156_v6 = vsel %vm778_vm0, %v10111_v40, 0.0 }
 0x344   : > { %v2139_v23 = vrot.slane %v2138_v13, 4  ;;  %v2158_v63 = vsel %vm778_vm0, %v10115_v44, 0.0 }
 0x345   : > { %v2153_v24 = vadd.f32 %v2152_v57, %v2151_v47 }
 0x346   : > { %v2140_v12 = vadd.f32 %v2139_v23, %v2138_v13 }
 0x347   : > { %v2155_v49 = vadd.f32 %v2154_v19, %v2153_v24 }
 0x348   : > { %v2141_v32 = vrot.slane %v2140_v12, 2 }
 0x349   : > { %v2157_v48 = vadd.f32 %v2156_v6, %v2155_v49 }
 0x34a   : > { %v2142_v38 = vadd.f32 %v2141_v32, %v2140_v12 }
 0x34b   : > { %v2159_v0 = vadd.f32 %v2158_v63, %v2157_v48 }
 0x34c   : > { %v8709_v50 = vpop.eup %8708  ;;  %v2143_v45 = vrot.slane %v2142_v38, 1 }
 0x34d   : > { %v8711_v37 = vpop.eup %8710  ;;  %v2184_v25 = vmul.f32 %v8709_v50, %v10025_v5  ;;  %v2185_v31 = vmul.f32 %v8709_v50, %v10039_v29  ;;  %v2160_v13 = vrot.slane %v2159_v0, 4  ;;  %v2182_v23 = vmul.f32 %v8709_v50, %v10016_v33 }
 0x34e   : > { %v2176_v30 = vmul.f32 %v8711_v37, %v10012_v18  ;;  %v2177_v47 = vmul.f32 %v8711_v37, %v10045_v46  ;;  %v2144_v57 = vadd.f32 %v2143_v45, %v2142_v38  ;;  %v2183_v12 = vmul.f32 %v8709_v50, %v10021_v34 }
 0x34f   : > { %v2209_v24 = vpack.c.bf16 %v2185_v31, %v2184_v25  ;;  %v2161_v19 = vadd.f32 %v2160_v13, %v2159_v0  ;;  %v2174_v32 = vmul.f32 %v8711_v37, %v9979_v43  ;;  %v2175_v6 = vmul.f32 %v8711_v37, %v9983_v55 }
 0x350   : > { %v2205_v49 = vpack.c.bf16 %v2177_v47, %v2176_v30  ;;  %8712 = vrcp.f32 %v2144_v57  ;;  %v12394_v29 = vmov 0.0   ;;  %v2208_v18 = vpack.c.bf16 %v2183_v12, %v2182_v23  ;;  %v1295_v30 = vpop.permute.xlu0 %1294 }
 0x351   : > { %8035 = vmatpush3.bf16.msra.mxu0 %v2209_v24  ;;  %v2162_v5 = vrot.slane %v2161_v19, 2  ;;  %v2180_v46 = vmul.f32 %v8709_v50, %v10001_v28  ;;  %v2170_v33 = vmul.f32 %v8711_v37, %v9967_v56  ;;  %v2181_v34 = vmul.f32 %v8709_v50, %v10008_v54 }
 0x352   : > { %8023 = vmatpush3.bf16.msra.mxu1 %v2205_v49  ;;  %8036 = vmatprep.subr.bf16.mxu0 %v12394_v29  ;;  %v2171_v48 = vmul.f32 %v8711_v37, %v9969_v27  ;;  %v2178_v43 = vmul.f32 %v8709_v50, %v9987_v60  ;;  %v2179_v55 = vmul.f32 %v8709_v50, %v9993_v26 }
 0x353   : > { %8024 = vmatprep.subr.bf16.mxu1 %v12394_v29  ;;  %v2163_v38 = vadd.f32 %v2162_v5, %v2161_v19  ;;  %v2204_v63 = vpack.c.bf16 %v2175_v6, %v2174_v32  ;;  %v2172_v0 = vmul.f32 %v8711_v37, %v9973_v21  ;;  %v2173_v45 = vmul.f32 %v8711_v37, %v9977_v35  ;;  %v12396_v32 = vld [vmem:[#allocation23_spill] sm:$0xff] }
 0x354   : > { %v2202_v28 = vpack.c.bf16 %v2171_v48, %v2170_v33  ;;  %v2206_v25 = vpack.c.bf16 %v2179_v55, %v2178_v43  ;;  %v2207_v27 = vpack.c.bf16 %v2181_v34, %v2180_v46  ;;  %v1387_v26 = vadd.f32 %v9781_v8, %v9756_v61 }
 0x355   : > { %8037 = vmatpush3.bf16.msra.mxu0 %v2208_v18  ;;  %v2164_v56 = vrot.slane %v2163_v38, 1  ;;  %v2203_v60 = vpack.c.bf16 %v2173_v45, %v2172_v0  ;;  %v1379_v21 = vadd.f32 %v9783_v9, %v9769_v3  ;;  %v1390_v35 = vadd.f32 %v9785_v10, %v9751_v59 }
 0x356   : > { %8025 = vmatpush3.bf16.msra.mxu1 %v2204_v63  ;;  %8038 = vmatprep.subr.bf16.mxu0 %v12394_v29  ;;  %v1382_v50 = vadd.f32 %v9787_v11, %v9764_v1 }
 0x357   : > { %8026 = vmatprep.subr.bf16.mxu1 %v12394_v29  ;;  %v2165_v54 = vadd.f32 %v2164_v56, %v2163_v38  ;;  %v1414_v31 = vpack.c.bf16 %v1390_v35, %v1387_v26  ;;  %v8563_v26 = vld [vmem:[%s12272_s10 + $0x8] sm:$0xff]   ;;  %v8565_v35 = vld [vmem:[%s12272_s10 + $0x18] sm:$0xff]  }
 0x358   : > { %v1413_v61 = vpack.c.bf16 %v1382_v50, %v1379_v21  ;;  %v8564_v21 = vld [vmem:[%s12272_s10 + $0x10] sm:$0xff]   ;;  %v8566_v50 = vld [vmem:[%s12276_s14] sm:$0xff]  }
 0x359   : > { %8039 = vmatpush3.bf16.msra.mxu0 %v2207_v27  ;;  %8714 = vrcp.f32 %v2165_v54 }
 0x35a   : > { %8027 = vmatpush3.bf16.msra.mxu1 %v2203_v60  ;;  %8040 = vmatprep.subr.bf16.mxu0 %v12394_v29 }
 0x35b   : > { %8028 = vmatprep.subr.bf16.mxu1 %v12394_v29 }
 0x35d   : > { %8041 = vmatpush3.bf16.msra.mxu0 %v2206_v25  ;;  %v8713_v37 = vpop.eup %8712 }
 0x35e   : > { %8029 = vmatpush3.bf16.msra.mxu1 %v2202_v28  ;;  %8058 = vmatprep.subr.bf16.mxu0 %v12394_v29  ;;  %v2192_v8 = vmul.f32 %v8713_v37, %v10077_v22  ;;  %v2193_v3 = vmul.f32 %v8713_v37, %v10079_v42  ;;  %v2186_v59 = vmul.f32 %v8713_v37, %v10057_v17 }
 0x35f   : > { %8046 = vmatprep.subr.bf16.mxu1 %v12394_v29  ;;  %v2187_v9 = vmul.f32 %v8713_v37, %v10059_v2  ;;  %v2190_v10 = vmul.f32 %v8713_v37, %v10071_v39  ;;  %v2191_v11 = vmul.f32 %v8713_v37, %v10073_v53  ;;  %v2188_v2 = vmul.f32 %v8713_v37, %v10063_v4 }
 0x360   : > { %8043 = vmatmul.mubr.msk.bf16.vlgmr.msra.gmra.mxu0 %vm778_vm0, %v1414_v31  ;;  %v2213_v1 = vpack.c.bf16 %v2193_v3, %v2192_v8  ;;  %v2189_v22 = vmul.f32 %v8713_v37, %v10067_v51  ;;  %v1300_v51 = vpop.permute.xlu1 %1299  ;;  %v2417_v37 = vpop.permute.xlu0 %2416 }
 0x361   : > { %8031 = vmatmul.mubr.msk.bf16.vlgmr.msra.gmra.mxu1 %vm778_vm0, %v1413_v61  ;;  %8066 = vmatprep.mubr.msk.bf16.mxu0 %vm9006_vm2, %v12394_v29  ;;  %v2210_v13 = vpack.c.bf16 %v2187_v9, %v2186_v59  ;;  %v2212_v17 = vpack.c.bf16 %v2191_v11, %v2190_v10 }
 0x362   : > { %8054 = vmatprep.mubr.msk.bf16.mxu1 %vm9006_vm2, %v12394_v29  ;;  %8047 = vmatpush3.bf16.msra.mxu1 %v2213_v1  ;;  %v2211_v47 = vpack.c.bf16 %v2189_v22, %v2188_v2 }
 0x363   : > { %8048 = vmatprep.subr.bf16.mxu1 %v12394_v29 }
 0x364   : > { %v2422_v31 = vpop.permute.xlu1 %2421  ;;  %v2427_v61 = vpop.permute.xlu0 %2426 }
 0x366   : > { %v8715_v42 = vpop.eup %8714  ;;  %8049 = vmatpush3.bf16.msra.mxu1 %v2212_v17  ;;  %v12397_v17 = vld [vmem:[#allocation14_spill] sm:$0xff] }
 0x367   : > { %v2200_v39 = vmul.f32 %v8715_v42, %v10111_v40  ;;  %v2201_v53 = vmul.f32 %v8715_v42, %v10115_v44  ;;  %8050 = vmatprep.subr.bf16.mxu1 %v12394_v29  ;;  %v2194_v23 = vmul.f32 %v8715_v42, %v10083_v14  ;;  %v2195_v57 = vmul.f32 %v8715_v42, %v10085_v52 }
 0x368   : > { %v2198_v12 = vmul.f32 %v8715_v42, %v10101_v41  ;;  %v2199_v4 = vmul.f32 %v8715_v42, %v10107_v36  ;;  %v1395_v40 = vadd.f32 %v9791_v62, %v1295_v30  ;;  %v1398_v44 = vadd.f32 %v9797_v58, %v1300_v51  ;;  %v12395_v58 = vld [vmem:[#allocation22_spill] sm:$0xff]  ;;  %v2432_v3 = vpop.permute.xlu1 %2431  ;;  %v2437_v11 = vpop.permute.xlu0 %2436  ;;  %v12398_v30 = vld [vmem:[#allocation16_spill] sm:$0xff] }
 0x369   : > { %v2217_v24 = vpack.c.bf16 %v2201_v53, %v2200_v39  ;;  %v2214_v19 = vpack.c.bf16 %v2195_v57, %v2194_v23  ;;  %v2196_v52 = vmul.f32 %v8715_v42, %v10091_v20  ;;  %v2197_v49 = vmul.f32 %v8715_v42, %v10095_v15  ;;  %v8562_v15 = vld [vmem:[%s12272_s10] sm:$0xff]   ;;  %v12399_v23 = vld [vmem:[#allocation15_spill] sm:$0xff] }
 0x36a   : > { %8051 = vmatpush3.bf16.msra.mxu1 %v2211_v47  ;;  %v2216_v14 = vpack.c.bf16 %v2199_v4, %v2198_v12  ;;  %v1415_v41 = vpack.c.bf16 %v1398_v44, %v1395_v40  ;;  %v1403_v62 = vadd.f32 %v9789_v16, %v9779_v7  ;;  %v1406_v6 = vadd.f32 %v12396_v32, %v12395_v58  ;;  %v12400_v4 = vld [vmem:[#allocation17_spill] sm:$0xff] }
 0x36b   : > { %8059 = vmatpush3.bf16.msra.mxu0 %v2217_v24  ;;  %8052 = vmatprep.subr.bf16.mxu1 %v12394_v29  ;;  %v2215_v36 = vpack.c.bf16 %v2197_v49, %v2196_v52 }
 0x36c   : > { %8060 = vmatprep.subr.bf16.mxu0 %v12394_v29  ;;  %v1416_v20 = vpack.c.bf16 %v1406_v6, %v1403_v62  ;;  %v2442_v39 = vpop.permute.xlu1 %2441  ;;  %v2447_v44 = vpop.permute.xlu0 %2446 }
 0x36e   : > { %8053 = vmatpush3.bf16.msra.mxu1 %v2210_v13 }
 0x36f   : > { %8061 = vmatpush3.bf16.msra.mxu0 %v2216_v14 }
 0x370   : > { %8062 = vmatprep.subr.bf16.mxu0 %v12394_v29  ;;  %v2452_v58 = vpop.permute.xlu1 %2451 }
 0x371   : > { %8055 = vmatmul.mubr.msk.bf16.vlgmr.msra.gmra.mxu1 %vm778_vm0, %v1415_v41 }
 0x372   : > { %8078 = vmatprep.mubr.msk.bf16.mxu1 %vm778_vm0, %v8562_v15 }
 0x373   : > { %8063 = vmatpush3.bf16.msra.mxu0 %v2215_v36  ;;  %v12401_v36 = vld [vmem:[#allocation18_spill] sm:$0xff] }
 0x374   : > { %8064 = vmatprep.subr.bf16.mxu0 %v12394_v29 }
 0x377   : > { %8065 = vmatpush3.bf16.msra.mxu0 %v2214_v19 }
 0x37a   : > { %8067 = vmatmul.mubr.msk.bf16.vlgmr.msra.gmra.mxu0 %vm778_vm0, %v1416_v20 }
 0x37b   : > { %8094 = vmatprep.mubr.msk.bf16.mxu0 %vm778_vm0, %v8566_v50 }
 0x420   : > { %v2299_v5 = vpop.f32.mrf.mxu0 }
 0x421   : > { %v2255_v18 = vpop.f32.mrf.mxu1 }
 0x422   : > { %v8044_v46 = vpop.f32.mrf.mxu0 }
 0x423   : > { %v8032_v33 = vpop.f32.mrf.mxu1  ;;  %v12402_v46 = vld [vmem:[#allocation20_spill] sm:$0xff] }
 0x424   : > { %v2302_v7 = vpop.f32.mrf.mxu0 }
 0x425   : > { %v2258_v16 = vpop.f32.mrf.mxu1  ;;  %v2395_v54 = vpack.c.bf16 %v2302_v7, %v2299_v5 }
 0x426   : > { %v8045_v34 = vpop.f32.mrf.mxu0  ;;  %v2394_v60 = vpack.c.bf16 %v2258_v16, %v2255_v18  ;;  %v12403_v16 = vld [vmem:[#allocation19_spill] sm:$0xff] }
 0x427   : > { %v8033_v48 = vpop.f32.mrf.mxu1 }
 0x431   : > { %v2343_v43 = vpop.f32.mrf.mxu1 }
 0x433   : > { %v8056_v55 = vpop.f32.mrf.mxu1 }
 0x435   : > { %v2346_v38 = vpop.f32.mrf.mxu1 }
 0x436   : > { %v2396_v27 = vpack.c.bf16 %v2346_v38, %v2343_v43  ;;  %v12404_v43 = vld [vmem:[#allocation21_spill] sm:$0xff] }
 0x437   : > { %v8057_v63 = vpop.f32.mrf.mxu1 }
 0x43a   : > { %v2387_v0 = vpop.f32.mrf.mxu0 }
 0x43c   : > { %v8068_v45 = vpop.f32.mrf.mxu0 }
 0x43e   : > { %v2390_v28 = vpop.f32.mrf.mxu0 }
 0x43f   : > { %v2397_v25 = vpack.c.bf16 %v2390_v28, %v2387_v0 }
 0x440   : > { %v8069_v56 = vpop.f32.mrf.mxu0 }
 0x441   : > { %8070 = vmatprep.subr.bf16.mxu1 %v2397_v25 }
 0x442   : > { %8071 = vmatpush3.bf16.msra.mxu1 %v2397_v25 }
 0x443   : > { %8072 = vmatprep.subr.bf16.mxu1 %v2396_v27 }
 0x446   : > { %8073 = vmatpush3.bf16.msra.mxu1 %v2396_v27 }
 0x447   : > { %8074 = vmatprep.subr.bf16.mxu1 %v2395_v54 }
 0x44a   : > { %8075 = vmatpush3.bf16.msra.mxu1 %v2395_v54 }
 0x44b   : > { %8076 = vmatprep.subr.bf16.mxu1 %v2394_v60 }
 0x44e   : > { %8077 = vmatpush3.bf16.msra.mxu1 %v2394_v60 }
 0x451   : > { %8079 = vmatmul.mubr.msk.bf16.vlgmr.msra.gmra.mxu1 %vm778_vm0, %v8563_v26 }
 0x452   : > { %8082 = vmatprep.mubr.msk.bf16.mxu1 %vm778_vm0, %v8564_v21 }
 0x459   : > { %8083 = vmatmul.mubr.msk.bf16.gmra.mxu1 %vm778_vm0, %v8565_v35 }
 0x511   : > { %v8080_v8 = vpop.f32.mrf.mxu1 }
 0x512   : > { %v2529_v10 = vadd.f32 %v8080_v8, %v2427_v61 }
 0x513   : > { %v2520_v59 = vpop.f32.mrf.mxu1 }
 0x514   : > { %v2521_v9 = vadd.f32 %v2520_v59, %v2417_v37  ;;  %v2553_v47 = vadd.f32 %v2529_v10, %v12398_v30 }
 0x515   : > { %v8081_v1 = vpop.f32.mrf.mxu1 }
 0x516   : > { %v2551_v2 = vadd.f32 %v2521_v9, %v12397_v17  ;;  %v2532_v22 = vadd.f32 %v8081_v1, %v2432_v3  ;;  %v2578_v49 = vsel %vm778_vm0, %v2553_v47, 0.0 }
 0x517   : > { %v2523_v13 = vpop.f32.mrf.mxu1 }
 0x518   : > { %v2524_v42 = vadd.f32 %v2523_v13, %v2422_v31  ;;  %v2575_v12 = vsel %vm778_vm0, %v2551_v2, 0.0  ;;  %v2554_v51 = vadd.f32 %v2532_v22, %v12400_v4 }
 0x519   : > { %v8084_v53 = vpop.f32.mrf.mxu1 }
 0x51a   : > { %v2552_v57 = vadd.f32 %v2524_v42, %v12399_v23  ;;  %v2545_v41 = vadd.f32 %v8084_v53, %v2447_v44  ;;  %v2580_v20 = vsel %vm778_vm0, %v2554_v51, 0.0 }
 0x51b   : > { %v2536_v24 = vpop.f32.mrf.mxu1 }
 0x51c   : > { %v2576_v19 = vsel %vm778_vm0, %v2552_v57, 0.0  ;;  %v2537_v40 = vadd.f32 %v2536_v24, %v2437_v11  ;;  %v2557_v33 = vadd.f32 %v2545_v41, %v12402_v46  ;;  %v2678_v41 = vpop.permute.xlu0 %2677 }
 0x51d   : > { %v2577_v14 = vadd.f32 %v2576_v19, %v2575_v12  ;;  %v8085_v52 = vpop.f32.mrf.mxu1 }
 0x51e   : > { %v2555_v62 = vadd.f32 %v2537_v40, %v12401_v36  ;;  %v2548_v15 = vadd.f32 %v8085_v52, %v2452_v58  ;;  %v2586_v0 = vsel %vm778_vm0, %v2557_v33, 0.0 }
 0x51f   : > { %v2579_v32 = vadd.f32 %v2578_v49, %v2577_v14  ;;  %v2539_v6 = vpop.f32.mrf.mxu1  ;;  %v2683_v49 = vpop.permute.xlu1 %2682 }
 0x520   : > { %v2540_v5 = vadd.f32 %v2539_v6, %v2442_v39  ;;  %v2582_v7 = vsel %vm778_vm0, %v2555_v62, 0.0  ;;  %v2558_v55 = vadd.f32 %v2548_v15, %v12404_v43  ;;  %v2726_v6 = vpop.permute.xlu0 %2725 }
 0x521   : > { %v2581_v18 = vadd.f32 %v2580_v20, %v2579_v32 }
 0x522   : > { %v2556_v34 = vadd.f32 %v2540_v5, %v12403_v16  ;;  %v2588_v28 = vsel %vm778_vm0, %v2558_v55, 0.0 }
 0x523   : > { %v2583_v48 = vadd.f32 %v2582_v7, %v2581_v18  ;;  %v2731_v32 = vpop.permute.xlu1 %2730 }
 0x524   : > { %v2584_v38 = vsel %vm778_vm0, %v2556_v34, 0.0  ;;  %v2668_v46 = vpop.permute.xlu0 %2667 }
 0x525   : > { %v2585_v63 = vadd.f32 %v2584_v38, %v2583_v48 }
 0x527   : > { %v2587_v45 = vadd.f32 %v2586_v0, %v2585_v63  ;;  %v2673_v18 = vpop.permute.xlu1 %2672 }
 0x529   : > { %v2589_v25 = vadd.f32 %v2588_v28, %v2587_v45 }
 0x52b   : > { %v2590_v56 = vrot.slane %v2589_v25, 4  ;;  %v2721_v16 = vpop.permute.xlu1 %2720 }
 0x52d   : > { %v2591_v27 = vadd.f32 %v2590_v56, %v2589_v25 }
 0x52f   : > { %v2592_v54 = vrot.slane %v2591_v27, 2  ;;  %v2663_v48 = vpop.permute.xlu1 %2662 }
 0x531   : > { %v2593_v60 = vadd.f32 %v2592_v54, %v2591_v27 }
 0x533   : > { %v2594_v26 = vrot.slane %v2593_v60, 1  ;;  %v2711_v38 = vpop.permute.xlu1 %2710 }
 0x535   : > { %v2595_v21 = vadd.f32 %v2594_v26, %v2593_v60 }
 0x537   : > { %v2596_v35 = vmul.f32 0.015625, %v2595_v21 }
 0x539   : > { %v10225_v50 = vsub.f32 %v2551_v2, %v2596_v35  ;;  %v10227_v37 = vsub.f32 %v2552_v57, %v2596_v35  ;;  %v2599_v31 = vsub.f32 %v2553_v47, %v2596_v35  ;;  %v2600_v61 = vsub.f32 %v2554_v51, %v2596_v35 }
 0x53a   : > { %v2601_v8 = vsub.f32 %v2555_v62, %v2596_v35  ;;  %v2602_v1 = vsub.f32 %v2556_v34, %v2596_v35  ;;  %v2603_v2 = vsub.f32 %v2557_v33, %v2596_v35  ;;  %v2604_v53 = vsub.f32 %v2558_v55, %v2596_v35  ;;  %v2716_v34 = vpop.permute.xlu0 %2715 }
 0x53b   : > { %v2605_v3 = vmul.f32 %v10225_v50, %v10225_v50  ;;  %v2606_v59 = vmul.f32 %v10227_v37, %v10227_v37  ;;  %v2607_v9 = vmul.f32 %v2599_v31, %v2599_v31  ;;  %v2608_v10 = vmul.f32 %v2600_v61, %v2600_v61 }
 0x53c   : > { %v2609_v22 = vmul.f32 %v2601_v8, %v2601_v8  ;;  %v2610_v30 = vmul.f32 %v2602_v1, %v2602_v1  ;;  %v2611_v57 = vmul.f32 %v2603_v2, %v2603_v2  ;;  %v2612_v4 = vmul.f32 %v2604_v53, %v2604_v53 }
 0x53d   : > { %v2613_v11 = vsel %vm778_vm0, %v2605_v3, 0.0  ;;  %v2614_v13 = vsel %vm778_vm0, %v2606_v59, 0.0  ;;  %v2616_v42 = vsel %vm778_vm0, %v2607_v9, 0.0  ;;  %v2618_v47 = vsel %vm778_vm0, %v2608_v10, 0.0 }
 0x53e   : > { %v2615_v17 = vadd.f32 %v2614_v13, %v2613_v11  ;;  %v2620_v24 = vsel %vm778_vm0, %v2609_v22, 0.0  ;;  %v2622_v51 = vsel %vm778_vm0, %v2610_v30, 0.0  ;;  %v2624_v40 = vsel %vm778_vm0, %v2611_v57, 0.0  ;;  %v2658_v43 = vpop.permute.xlu0 %2657  ;;  %v8567_v57 = vld [vmem:[%s12276_s14 + $0x8] sm:$0xff]  }
 0x53f   : > { %v2626_v14 = vsel %vm778_vm0, %v2612_v4, 0.0  ;;  %v8570_v4 = vld [vmem:[%s12276_s14 + $0x20] sm:$0xff]  }
 0x540   : > { %v2617_v39 = vadd.f32 %v2616_v42, %v2615_v17 }
 0x542   : > { %v2619_v23 = vadd.f32 %v2618_v47, %v2617_v39  ;;  %v2706_v63 = vpop.permute.xlu0 %2705 }
 0x544   : > { %v2621_v12 = vadd.f32 %v2620_v24, %v2619_v23  ;;  %v8568_v24 = vld [vmem:[%s12276_s14 + $0x10] sm:$0xff]  }
 0x546   : > { %v2623_v19 = vadd.f32 %v2622_v51, %v2621_v12  ;;  %v8569_v12 = vld [vmem:[%s12276_s14 + $0x18] sm:$0xff]   ;;  %v8571_v51 = vld [vmem:[%s12276_s14 + $0x28] sm:$0xff]  }
 0x548   : > { %v2625_v44 = vadd.f32 %v2624_v40, %v2623_v19  ;;  %v8572_v19 = vld [vmem:[%s12276_s14 + $0x30] sm:$0xff]   ;;  %v8573_v40 = vld [vmem:[%s12276_s14 + $0x38] sm:$0xff]  }
 0x54a   : > { %v2627_v52 = vadd.f32 %v2626_v14, %v2625_v44  ;;  %v8574_v44 = vld [vmem:[%s12276_s14 + $0x40] sm:$0xff]   ;;  %v8575_v14 = vld [vmem:[%s12276_s14 + $0x48] sm:$0xff]  }
 0x54c   : > { %v2628_v36 = vrot.slane %v2627_v52, 4 }
 0x54e   : > { %v2629_v62 = vadd.f32 %v2628_v36, %v2627_v52  ;;  %v8576_v52 = vld [vmem:[%s12276_s14 + $0x50] sm:$0xff]   ;;  %v8579_v36 = vld [vmem:[%s12276_s14 + $0x68] sm:$0xff]  }
 0x550   : > { %v2630_v58 = vrot.slane %v2629_v62, 2 }
 0x552   : > { %v2631_v20 = vadd.f32 %v2630_v58, %v2629_v62  ;;  %v8580_v62 = vld [vmem:[%s12276_s14 + $0x70] sm:$0xff]   ;;  %v8581_v58 = vld [vmem:[%s12276_s14 + $0x78] sm:$0xff]  }
 0x554   : > { %v2632_v15 = vrot.slane %v2631_v20, 1 }
 0x556   : > { %v2633_v5 = vadd.f32 %v2632_v15, %v2631_v20 }
 0x558   : > { %v2634_v33 = vmul.f32 0.015625, %v2633_v5 }
 0x55a   : > { %v2635_v7 = vadd.f32 1e-05, %v2634_v33 }
 0x55c   : > { %8716 = vrsqrt.f32 %v2635_v7 }
 0x569   : > { %v8717_v55 = vpop.eup %8716 }
 0x56a   : > { %v2642_v0 = vmul.f32 %v8717_v55, %v2602_v1  ;;  %v2643_v45 = vmul.f32 %v8717_v55, %v2603_v2  ;;  %v2644_v28 = vmul.f32 %v8717_v55, %v2604_v53  ;;  %v2641_v25 = vmul.f32 %v8717_v55, %v2601_v8 }
 0x56b   : > { %v2639_v56 = vmul.f32 %v8717_v55, %v2599_v31  ;;  %v2640_v27 = vmul.f32 %v8717_v55, %v2600_v61  ;;  %v2637_v59 = vmul.f32 %v8717_v55, %v10225_v50  ;;  %v2638_v9 = vmul.f32 %v8717_v55, %v10227_v37  ;;  %v2653_v31 = vpop.permute.xlu1 %2652  ;;  %v2648_v61 = vpop.permute.xlu0 %2647 }
 0x56c   : > { %v2691_v54 = vmul.f32 %v2678_v41, %v2643_v45  ;;  %v2692_v60 = vmul.f32 %v2683_v49, %v2644_v28  ;;  %v2689_v26 = vmul.f32 %v2668_v46, %v2641_v25  ;;  %v2690_v21 = vmul.f32 %v2673_v18, %v2642_v0  ;;  %v8577_v49 = vld [vmem:[%s12276_s14 + $0x58] sm:$0xff]   ;;  %v8578_v41 = vld [vmem:[%s12276_s14 + $0x60] sm:$0xff]  }
 0x56d   : > { %v2687_v35 = vmul.f32 %v2658_v43, %v2639_v56  ;;  %v2688_v3 = vmul.f32 %v2663_v48, %v2640_v27  ;;  %v2685_v17 = vmul.f32 %v2648_v61, %v2637_v59  ;;  %v2686_v22 = vmul.f32 %v2653_v31, %v2638_v9 }
 0x56e   : > { %v10243_v10 = vadd.f32 %v2726_v6, %v2691_v54  ;;  %v10245_v11 = vadd.f32 %v2731_v32, %v2692_v60  ;;  %v10247_v1 = vadd.f32 %v2716_v34, %v2689_v26  ;;  %v10249_v13 = vadd.f32 %v2721_v16, %v2690_v21  ;;  %v8584_v54 = vld [vmem:[%s12278_s16 + $0x4] ss:$8 sps:$4 sm:$0xff]  }
 0x56f   : > { %v10255_v2 = vadd.f32 %v2706_v63, %v2687_v35  ;;  %v10257_v37 = vadd.f32 %v2711_v38, %v2688_v3  ;;  %v2701_v42 = vpop.permute.xlu1 %2700  ;;  %v2696_v39 = vpop.permute.xlu0 %2695  ;;  %3642 = vmatprep.mubr.bf16.mxu1 %v8584_v54 }
 0x570   : > { %12405 = vst [vmem:[#allocation22_spill] sm:$0xff] %v10243_v10  ;;  %12406 = vst [vmem:[#allocation23_spill] sm:$0xff] %v10245_v11  ;;  %v2744_v8 = vpack.c.bf16 %v10245_v11, %v10243_v10  ;;  %v2743_v50 = vpack.c.bf16 %v10249_v13, %v10247_v1  ;;  %v10261_v30 = vadd.f32 %v2696_v39, %v2685_v17 }
 0x571   : > { %12407 = vst [vmem:[#allocation14_spill] sm:$0xff] %v10247_v1  ;;  %12408 = vst [vmem:[#allocation16_spill] sm:$0xff] %v10249_v13  ;;  %v2742_v53 = vpack.c.bf16 %v10257_v37, %v10255_v2  ;;  %v10263_v47 = vadd.f32 %v2701_v42, %v2686_v22 }
 0x572   : > { %8086 = vmatprep.subr.bf16.mxu0 %v2744_v8  ;;  %12409 = vst [vmem:[#allocation15_spill] sm:$0xff] %v10255_v2  ;;  %12410 = vst [vmem:[#allocation17_spill] sm:$0xff] %v10257_v37 }
 0x573   : > { %8087 = vmatpush3.bf16.msra.mxu0 %v2744_v8  ;;  %12411 = vst [vmem:[#allocation18_spill] sm:$0xff] %v10261_v30  ;;  %12412 = vst [vmem:[#allocation20_spill] sm:$0xff] %v10263_v47  ;;  %v2741_v23 = vpack.c.bf16 %v10263_v47, %v10261_v30  ;;  %v10327_v32 = vpop.permute.xlu0 %2961  ;;  %v10329_v6 = vpop.permute.xlu1 %2966 }
 0x574   : > { %8088 = vmatprep.subr.bf16.mxu0 %v2743_v50 }
 0x577   : > { %8089 = vmatpush3.bf16.msra.mxu0 %v2743_v50  ;;  %v10331_v20 = vpop.permute.xlu0 %2881  ;;  %v10333_v15 = vpop.permute.xlu1 %2886 }
 0x578   : > { %8090 = vmatprep.subr.bf16.mxu0 %v2742_v53 }
 0x57b   : > { %8091 = vmatpush3.bf16.msra.mxu0 %v2742_v53  ;;  %v10335_v5 = vpop.permute.xlu0 %2951  ;;  %v10337_v18 = vpop.permute.xlu1 %2956 }
 0x57c   : > { %8092 = vmatprep.subr.bf16.mxu0 %v2741_v23 }
 0x57f   : > { %8093 = vmatpush3.bf16.msra.mxu0 %v2741_v23  ;;  %v10339_v46 = vpop.permute.xlu0 %2871  ;;  %v10341_v33 = vpop.permute.xlu1 %2876 }
 0x582   : > { %8095 = vmatmul.mubr.msk.bf16.vlgmr.msra.gmra.mxu0 %vm778_vm0, %v8567_v57 }
 0x583   : > { %8098 = vmatprep.mubr.msk.bf16.mxu0 %vm778_vm0, %v8568_v24  ;;  %v10343_v7 = vpop.permute.xlu0 %2941  ;;  %v10345_v16 = vpop.permute.xlu1 %2946 }
 0x587   : > { %v10347_v34 = vpop.permute.xlu0 %2861  ;;  %v10349_v48 = vpop.permute.xlu1 %2866 }
 0x58a   : > { %8099 = vmatmul.mubr.msk.bf16.gmra.mxu0 %vm778_vm0, %v8569_v12 }
 0x58b   : > { %8102 = vmatprep.mubr.msk.bf16.mxu0 %vm778_vm0, %v8570_v4  ;;  %v10351_v43 = vpop.permute.xlu0 %2931  ;;  %v10353_v55 = vpop.permute.xlu1 %2936 }
 0x58f   : > { %v10355_v38 = vpop.permute.xlu0 %2851  ;;  %v10357_v63 = vpop.permute.xlu1 %2856 }
 0x592   : > { %8103 = vmatmul.mubr.msk.bf16.gmra.mxu0 %vm778_vm0, %v8571_v51 }
 0x593   : > { %8106 = vmatprep.mubr.msk.bf16.mxu0 %vm778_vm0, %v8572_v19  ;;  %v10359_v0 = vpop.permute.xlu0 %2921  ;;  %v10361_v45 = vpop.permute.xlu1 %2926 }
 0x597   : > { %v2842_v28 = vpop.permute.xlu0 %2841  ;;  %v2847_v25 = vpop.permute.xlu1 %2846 }
 0x59a   : > { %8107 = vmatmul.mubr.msk.bf16.gmra.mxu0 %vm778_vm0, %v8573_v40 }
 0x59b   : > { %8110 = vmatprep.mubr.msk.bf16.mxu0 %vm778_vm0, %v8574_v44  ;;  %v10363_v56 = vpop.permute.xlu0 %2911  ;;  %v10365_v27 = vpop.permute.xlu1 %2916 }
 0x59f   : > { %v2832_v60 = vpop.permute.xlu0 %2831  ;;  %v2837_v26 = vpop.permute.xlu1 %2836 }
 0x5a2   : > { %8111 = vmatmul.mubr.msk.bf16.gmra.mxu0 %vm778_vm0, %v8575_v14 }
 0x5a3   : > { %8114 = vmatprep.mubr.msk.bf16.mxu0 %vm778_vm0, %v8576_v52  ;;  %v10370_v35 = vpop.permute.xlu0 %2901  ;;  %v10372_v9 = vpop.permute.xlu1 %2906 }
 0x5a7   : > { %v2822_v61 = vpop.permute.xlu0 %2821  ;;  %v2827_v22 = vpop.permute.xlu1 %2826 }
 0x5aa   : > { %8115 = vmatmul.mubr.msk.bf16.gmra.mxu0 %vm778_vm0, %v8577_v49 }
 0x5ab   : > { %8118 = vmatprep.mubr.msk.bf16.mxu0 %vm778_vm0, %v8578_v41  ;;  %v10377_v53 = vpop.permute.xlu0 %2891  ;;  %v10384_v40 = vpop.permute.xlu1 %2896 }
 0x5af   : > { %v2812_v49 = vpop.permute.xlu0 %2811 }
 0x5b2   : > { %8119 = vmatmul.mubr.msk.bf16.gmra.mxu0 %vm778_vm0, %v8579_v36 }
 0x5b3   : > { %8122 = vmatprep.mubr.msk.bf16.mxu0 %vm778_vm0, %v8580_v62 }
 0x5ba   : > { %8123 = vmatmul.mubr.msk.bf16.gmra.mxu0 %vm778_vm0, %v8581_v58 }
 0x642   : > { %v8096_v21 = vpop.f32.mrf.mxu0 }
 0x643   : > { %v3140_v12 = vadd.f32 %v8096_v21, %v2822_v61 }
 0x644   : > { %v3131_v3 = vpop.f32.mrf.mxu0 }
 0x645   : > { %v3292_v41 = vmul.f32 0.044715, %v3140_v12  ;;  %v10390_v62 = vadd.f32 %v3131_v3, %v2812_v49 }
 0x646   : > { %v8097_v59 = vpop.f32.mrf.mxu0 }
 0x647   : > { %v10393_v54 = vadd.f32 %v8097_v59, %v2827_v22 }
 0x648   : > { %v3134_v31 = vpop.f32.mrf.mxu0 }
 0x64a   : > { %v8100_v8 = vpop.f32.mrf.mxu0 }
 0x64b   : > { %v10374_v17 = vadd.f32 %v8100_v8, %v2842_v28  ;;  %v3324_v8 = vmul.f32 %v3292_v41, %v3140_v12 }
 0x64c   : > { %v3147_v50 = vpop.f32.mrf.mxu0 }
 0x64d   : > { %v3296_v42 = vmul.f32 0.044715, %v10374_v17  ;;  %v10388_v36 = vadd.f32 %v3147_v50, %v2832_v60  ;;  %v3356_v22 = vmul.f32 %v3324_v8, %v3140_v12 }
 0x64e   : > { %v8101_v39 = vpop.f32.mrf.mxu0 }
 0x64f   : > { %v3328_v23 = vmul.f32 %v3296_v42, %v10374_v17  ;;  %v10380_v57 = vadd.f32 %v8101_v39, %v2847_v25  ;;  %v3294_v42 = vmul.f32 0.044715, %v10388_v36  ;;  %v2817_v39 = vpop.permute.xlu1 %2816  ;;  %v3388_v8 = vadd.f32 %v3356_v22, %v3140_v12 }
 0x650   : > { %v3150_v24 = vpop.f32.mrf.mxu0  ;;  %v10398_v3 = vadd.f32 %v3134_v31, %v2817_v39 }
 0x651   : > { %v3360_v4 = vmul.f32 %v3328_v23, %v10374_v17  ;;  %v3297_v51 = vmul.f32 0.044715, %v10380_v57  ;;  %v3290_v23 = vmul.f32 0.044715, %v10390_v62 }
 0x652   : > { %v8104_v19 = vpop.f32.mrf.mxu0  ;;  %v3291_v31 = vmul.f32 0.044715, %v10398_v3 }
 0x653   : > { %v3392_v44 = vadd.f32 %v3360_v4, %v10374_v17  ;;  %v3329_v14 = vmul.f32 %v3297_v51, %v10380_v57  ;;  %v3293_v4 = vmul.f32 0.044715, %v10393_v54  ;;  %v10401_v51 = vadd.f32 %v3150_v24, %v2837_v26 }
 0x654   : > { %v3163_v52 = vpop.f32.mrf.mxu0  ;;  %v3322_v49 = vmul.f32 %v3290_v23, %v10390_v62 }
 0x655   : > { %v3424_v58 = vmul.f32 0.7978846, %v3392_v44  ;;  %v3361_v28 = vmul.f32 %v3329_v14, %v10380_v57  ;;  %v3326_v44 = vmul.f32 %v3294_v42, %v10388_v36  ;;  %v10405_v14 = vadd.f32 %v8104_v19, %v10347_v34 }
 0x656   : > { %v8105_v25 = vpop.f32.mrf.mxu0  ;;  %v3295_v26 = vmul.f32 0.044715, %v10401_v51 }
 0x657   : > { %8718 = vtanh.f32 %v3424_v58  ;;  %v3393_v21 = vadd.f32 %v3361_v28, %v10380_v57  ;;  %12413 = vst [vmem:[#allocation19_spill] sm:$0xff] %v10405_v14  ;;  %v10409_v41 = vadd.f32 %v8105_v25, %v10349_v48  ;;  %v3325_v28 = vmul.f32 %v3293_v4, %v10393_v54 }
 0x658   : > { %v3166_v61 = vpop.f32.mrf.mxu0  ;;  %v3358_v34 = vmul.f32 %v3326_v44, %v10388_v36  ;;  %v3300_v19 = vmul.f32 0.044715, %v10405_v14  ;;  %v3354_v48 = vmul.f32 %v3322_v49, %v10390_v62  ;;  %v10424_v25 = vadd.f32 %v3163_v52, %v10355_v38 }
 0x659   : > { %v3425_v60 = vmul.f32 0.7978846, %v3393_v21  ;;  %v3301_v39 = vmul.f32 0.044715, %v10409_v41  ;;  %v3327_v4 = vmul.f32 %v3295_v26, %v10401_v51  ;;  %v10441_v52 = vmul.f32 0.5, %v3140_v12 }
 0x65a   : > { %v8108_v50 = vpop.f32.mrf.mxu0  ;;  %12414 = vst [vmem:[#allocation21_spill] sm:$0xff] %v10424_v25  ;;  %v3390_v44 = vadd.f32 %v3358_v34, %v10388_v36  ;;  %v3332_v49 = vmul.f32 %v3300_v19, %v10405_v14  ;;  %v3264_v19 = vmul.f32 0.5, %v10374_v17 }
 0x65b   : > { %8720 = vtanh.f32 %v3425_v60  ;;  %v10415_v24 = vadd.f32 %v8108_v50, %v10331_v20  ;;  %v3323_v60 = vmul.f32 %v3291_v31, %v10398_v3  ;;  %v10434_v50 = vadd.f32 %v3166_v61, %v10357_v63 }
 0x65c   : > { %v3179_v59 = vpop.f32.mrf.mxu0  ;;  %v3386_v63 = vadd.f32 %v3354_v48, %v10390_v62  ;;  %v3298_v61 = vmul.f32 0.044715, %v10424_v25  ;;  %v3333_v31 = vmul.f32 %v3301_v39, %v10409_v41  ;;  %v3359_v48 = vmul.f32 %v3327_v4, %v10401_v51 }
 0x65d   : > { %v10420_v42 = vadd.f32 %v3179_v59, %v10339_v46  ;;  %12415 = vst [vmem:[#allocation24_spill] sm:$0xff] %v10434_v50  ;;  %v3357_v46 = vmul.f32 %v3325_v28, %v10393_v54  ;;  %v3304_v59 = vmul.f32 0.044715, %v10415_v24  ;;  %v3355_v12 = vmul.f32 %v3323_v60, %v10398_v3 }
 0x65e   : > { %v8109_v58 = vpop.f32.mrf.mxu0  ;;  %v3422_v1 = vmul.f32 0.7978846, %v3390_v44  ;;  %v3364_v60 = vmul.f32 %v3332_v49, %v10405_v14  ;;  %v3365_v17 = vmul.f32 %v3333_v31, %v10409_v41  ;;  %v3391_v49 = vadd.f32 %v3359_v48, %v10401_v51 }
 0x65f   : > { %v10428_v23 = vadd.f32 %v8109_v58, %v10333_v15  ;;  %v3420_v15 = vmul.f32 0.7978846, %v3388_v8  ;;  %v3302_v58 = vmul.f32 0.044715, %v10420_v42  ;;  %v3299_v8 = vmul.f32 0.044715, %v10434_v50 }
 0x660   : > { %v3182_v21 = vpop.f32.mrf.mxu0  ;;  %v3389_v29 = vadd.f32 %v3357_v46, %v10393_v54  ;;  %v3336_v11 = vmul.f32 %v3304_v59, %v10415_v24  ;;  %v3418_v59 = vmul.f32 0.7978846, %v3386_v63  ;;  %v3387_v30 = vadd.f32 %v3355_v12, %v10398_v3 }
 0x661   : > { %v3305_v28 = vmul.f32 0.044715, %v10428_v23  ;;  %v10455_v34 = vadd.f32 %v3182_v21, %v10341_v33  ;;  %v3334_v37 = vmul.f32 %v3302_v58, %v10420_v42  ;;  %v3265_v33 = vmul.f32 0.5, %v10380_v57 }
 0x662   : > { %v10430_v20 = vpop.f32.mrf.mxu0  ;;  %v3330_v21 = vmul.f32 %v3298_v61, %v10424_v25  ;;  %v3368_v58 = vmul.f32 %v3336_v11, %v10415_v24  ;;  %8722 = vtanh.f32 %v3422_v1  ;;  %v3423_v1 = vmul.f32 0.7978846, %v3391_v49 }
 0x663   : > { %v3337_v46 = vmul.f32 %v3305_v28, %v10428_v23  ;;  %v3303_v44 = vmul.f32 0.044715, %v10455_v34  ;;  %v3421_v28 = vmul.f32 0.7978846, %v3389_v29  ;;  %v3366_v63 = vmul.f32 %v3334_v37, %v10420_v42 }
 0x664   : > { %v10439_v38 = vpop.f32.mrf.mxu0  ;;  %v8719_v22 = vpop.eup %8718  ;;  %v3362_v12 = vmul.f32 %v3330_v21, %v10424_v25  ;;  %8724 = vtanh.f32 %v3420_v15  ;;  %v3400_v37 = vadd.f32 %v3368_v58, %v10415_v24  ;;  %v10497_v15 = vmul.f32 0.5, %v10393_v54 }
 0x665   : > { %v3488_v10 = vadd.f32 1.0, %v8719_v22  ;;  %v3331_v22 = vmul.f32 %v3299_v8, %v10434_v50  ;;  %v3397_v8 = vadd.f32 %v3365_v17, %v10409_v41  ;;  %v3369_v48 = vmul.f32 %v3337_v46, %v10428_v23 }
 0x666   : > { %v10450_v26 = vpop.f32.mrf.mxu0  ;;  %v3335_v29 = vmul.f32 %v3303_v44, %v10455_v34  ;;  %8726 = vtanh.f32 %v3418_v59  ;;  %v3398_v21 = vadd.f32 %v3366_v63, %v10420_v42  ;;  %v10503_v59 = vadd.f32 %v10430_v20, %v10370_v35 }
 0x667   : > { %v10476_v61 = vmul.f32 %v3488_v10, %v3264_v19  ;;  %v3419_v10 = vmul.f32 0.7978846, %v3387_v30  ;;  %8728 = vtanh.f32 %v3421_v28  ;;  %v3394_v30 = vadd.f32 %v3362_v12, %v10424_v25 }
 0x668   : > { %v10461_v39 = vpop.f32.mrf.mxu0  ;;  %v8721_v13 = vpop.eup %8720  ;;  %v3429_v17 = vmul.f32 0.7978846, %v3397_v8  ;;  %v3401_v46 = vadd.f32 %v3369_v48, %v10428_v23  ;;  %v3367_v44 = vmul.f32 %v3335_v29, %v10455_v34  ;;  %v10508_v49 = vmul.f32 0.5, %v10398_v3 }
 0x669   : > { %v3489_v2 = vadd.f32 1.0, %v8721_v13  ;;  %12416 = vst [vmem:[#allocation25_spill] sm:$0xff] %v10476_v61  ;;  %v3396_v13 = vadd.f32 %v3364_v60, %v10405_v14  ;;  %v10493_v60 = vmul.f32 0.5, %v10390_v62  ;;  %8730 = vtanh.f32 %v3419_v10 }
 0x66a   : > { %v8116_v4 = vpop.f32.mrf.mxu0  ;;  %8732 = vtanh.f32 %v3423_v1  ;;  %v3432_v54 = vmul.f32 0.7978846, %v3400_v37  ;;  %v3430_v35 = vmul.f32 0.7978846, %v3398_v21  ;;  %v10518_v20 = vadd.f32 %v10450_v26, %v10372_v9 }
 0x66b   : > { %v10478_v31 = vmul.f32 %v3489_v2, %v3265_v33  ;;  %v3363_v2 = vmul.f32 %v3331_v22, %v10434_v50  ;;  %v3428_v33 = vmul.f32 0.7978846, %v3396_v13  ;;  %v10514_v13 = vmul.f32 0.5, %v10388_v36 }
 0x66c   : > { %v10474_v57 = vpop.f32.mrf.mxu0  ;;  %v10521_v63 = vmul.f32 0.5, %v10401_v51  ;;  %v10523_v3 = vmul.f32 0.7978846, %v3394_v30  ;;  %v3433_v12 = vmul.f32 0.7978846, %v3401_v46  ;;  %v3399_v36 = vadd.f32 %v3367_v44, %v10455_v34 }
 0x66d   : > { %12417 = vst [vmem:[#allocation26_spill] sm:$0xff] %v10478_v31  ;;  %v3395_v62 = vadd.f32 %v3363_v2, %v10434_v50  ;;  %8734 = vtanh.f32 %v3428_v33  ;;  %v10531_v10 = vadd.f32 %v10439_v38, %v10377_v53  ;;  %v10537_v51 = vadd.f32 %v8116_v4, %v10359_v0 }
 0x66e   : > { %v8117_v47 = vpop.f32.mrf.mxu0  ;;  %8736 = vtanh.f32 %v3429_v17  ;;  %v3309_v1 = vmul.f32 0.044715, %v10518_v20  ;;  %v10553_v0 = vadd.f32 %v10461_v39, %v10384_v40  ;;  %v3431_v33 = vmul.f32 0.7978846, %v3399_v36 }
 0x66f   : > { %v10526_v48 = vmul.f32 0.7978846, %v3395_v62  ;;  %8738 = vtanh.f32 %v3432_v54  ;;  %v3312_v46 = vmul.f32 0.044715, %v10537_v51  ;;  %v10568_v40 = vadd.f32 %v10474_v57, %v10363_v56 }
 0x670   : > { %v10490_v19 = vpop.f32.mrf.mxu0  ;;  %8740 = vtanh.f32 %v3430_v35  ;;  %v10575_v62 = vmul.f32 %v3309_v1, %v10518_v20 }
 0x671   : > { %8742 = vtanh.f32 %v3433_v12  ;;  %v10586_v57 = vadd.f32 %v10490_v19, %v10365_v27  ;;  %v3310_v27 = vmul.f32 0.044715, %v10568_v40 }
 0x672   : > { %v8120_v22 = vpop.f32.mrf.mxu0  ;;  %8744 = vtanh.f32 %v3431_v33 }
 0x673   : > { %v10511_v58 = vadd.f32 %v8120_v22, %v10343_v7  ;;  %v3308_v7 = vmul.f32 0.044715, %v10503_v59 }
 0x674   : > { %v3227_v28 = vpop.f32.mrf.mxu0 }
 0x675   : > { %v3316_v26 = vmul.f32 0.044715, %v10511_v58  ;;  %v10541_v2 = vadd.f32 %v3227_v28, %v10351_v43  ;;  %v10549_v38 = vmul.f32 %v3308_v7, %v10503_v59  ;;  %v10556_v43 = vadd.f32 %v8117_v47, %v10361_v45 }
 0x676   : > { %v8121_v8 = vpop.f32.mrf.mxu0 }
 0x677   : > { %v10534_v9 = vadd.f32 %v8121_v8, %v10345_v16  ;;  %v8723_v16 = vpop.eup %8722  ;;  %v3348_v47 = vmul.f32 %v3316_v26, %v10511_v58  ;;  %v3314_v45 = vmul.f32 0.044715, %v10541_v2  ;;  %v3313_v56 = vmul.f32 0.044715, %v10556_v43 }
 0x678   : > { %v3230_v29 = vpop.f32.mrf.mxu0  ;;  %v10563_v17 = vpop.eup %8724  ;;  %v3486_v54 = vadd.f32 1.0, %v8723_v16 }
 0x679   : > { %v3317_v37 = vmul.f32 0.044715, %v10534_v9  ;;  %v10546_v53 = vadd.f32 %v3230_v29, %v10353_v55  ;;  %v10572_v22 = vpop.eup %8726  ;;  %v3344_v29 = vmul.f32 %v3312_v46, %v10537_v51  ;;  %v3380_v19 = vmul.f32 %v3348_v47, %v10511_v58 }
 0x67a   : > { %v8124_v4 = vpop.f32.mrf.mxu0  ;;  %v10581_v28 = vpop.eup %8728  ;;  %v3346_v1 = vmul.f32 %v3314_v45, %v10541_v2  ;;  %v3345_v46 = vmul.f32 %v3313_v56, %v10556_v43 }
 0x67b   : > { %v3349_v21 = vmul.f32 %v3317_v37, %v10534_v9  ;;  %v3315_v30 = vmul.f32 0.044715, %v10546_v53  ;;  %v10561_v55 = vadd.f32 %v8124_v4, %v10327_v32  ;;  %v10595_v26 = vpop.eup %8730  ;;  %v3412_v11 = vadd.f32 %v3380_v19, %v10511_v58 }
 0x67c   : > { %v3243_v39 = vpop.f32.mrf.mxu0  ;;  %v8733_v16 = vpop.eup %8732  ;;  %v3378_v56 = vmul.f32 %v3346_v1, %v10541_v2  ;;  %v3377_v50 = vmul.f32 %v3345_v46, %v10556_v43 }
 0x67d   : > { %v3320_v32 = vmul.f32 0.044715, %v10561_v55  ;;  %v10579_v44 = vadd.f32 %v3243_v39, %v10335_v5  ;;  %v3381_v35 = vmul.f32 %v3349_v21, %v10534_v9  ;;  %v3347_v12 = vmul.f32 %v3315_v30, %v10546_v53  ;;  %v10607_v30 = vpop.eup %8734 }
 0x67e   : > { %v8125_v7 = vpop.f32.mrf.mxu0  ;;  %v3311_v39 = vmul.f32 0.044715, %v10586_v57  ;;  %v3487_v61 = vadd.f32 1.0, %v8733_v16 }
 0x67f   : > { %v3352_v8 = vmul.f32 %v3320_v32, %v10561_v55  ;;  %v3318_v5 = vmul.f32 0.044715, %v10579_v44  ;;  %v10593_v36 = vadd.f32 %v8125_v7, %v10329_v6  ;;  %v3379_v47 = vmul.f32 %v3347_v12, %v10546_v53  ;;  %v10613_v32 = vpop.eup %8736 }
 0x680   : > { %v3246_v37 = vpop.f32.mrf.mxu0  ;;  %v3413_v45 = vadd.f32 %v3381_v35, %v10534_v9  ;;  %v8739_v12 = vpop.eup %8738  ;;  %v10637_v46 = vmul.f32 %v3487_v61, %v10521_v63  ;;  %v3409_v61 = vadd.f32 %v3377_v50, %v10556_v43 }
 0x681   : > { %v3384_v4 = vmul.f32 %v3352_v8, %v10561_v55  ;;  %v3350_v33 = vmul.f32 %v3318_v5, %v10579_v44  ;;  %v3321_v21 = vmul.f32 0.044715, %v10593_v36  ;;  %v10605_v6 = vadd.f32 %v3246_v37, %v10337_v18 }
 0x682   : > { %v3376_v37 = vmul.f32 %v3344_v29, %v10537_v51  ;;  %v3445_v29 = vmul.f32 0.7978846, %v3413_v45  ;;  %v3411_v1 = vadd.f32 %v3379_v47, %v10546_v53  ;;  %v3410_v47 = vadd.f32 %v3378_v56, %v10541_v2 }
 0x683   : > { %v3382_v7 = vmul.f32 %v3350_v33, %v10579_v44  ;;  %v3353_v8 = vmul.f32 %v3321_v21, %v10593_v36  ;;  %v3319_v5 = vmul.f32 0.044715, %v10605_v6  ;;  %v3416_v18 = vadd.f32 %v3384_v4, %v10561_v55  ;;  %v10625_v21 = vpop.eup %8740 }
 0x684   : > { %v3343_v4 = vmul.f32 %v3311_v39, %v10586_v57  ;;  %v8743_v14 = vpop.eup %8742  ;;  %v3485_v56 = vadd.f32 1.0, %v10581_v28 }
 0x685   : > { %v3385_v35 = vmul.f32 %v3353_v8, %v10593_v36  ;;  %v3351_v31 = vmul.f32 %v3319_v5, %v10605_v6  ;;  %v3448_v25 = vmul.f32 0.7978846, %v3416_v18  ;;  %v3414_v33 = vadd.f32 %v3382_v7, %v10579_v44  ;;  %v8745_v63 = vpop.eup %8744 }
 0x686   : > { %v3342_v5 = vmul.f32 %v3310_v27, %v10568_v40  ;;  %v3444_v18 = vmul.f32 0.7978846, %v3412_v11  ;;  %v10634_v7 = vmul.f32 %v3486_v54, %v10514_v13  ;;  %v3443_v54 = vmul.f32 0.7978846, %v3411_v1 }
 0x687   : > { %v3383_v19 = vmul.f32 %v3351_v31, %v10605_v6  ;;  %v3417_v16 = vadd.f32 %v3385_v35, %v10593_v36  ;;  %8746 = vtanh.f32 %v3448_v25  ;;  %v3446_v8 = vmul.f32 0.7978846, %v3414_v33 }
 0x688   : > { %v3307_v31 = vmul.f32 0.044715, %v10553_v0  ;;  %v3375_v25 = vmul.f32 %v3343_v4, %v10586_v57  ;;  %v3548_v11 = vpack.c.bf16 %v10637_v46, %v10634_v7  ;;  %v3306_v27 = vmul.f32 0.044715, %v10531_v10  ;;  %v8587_v7 = vld [vmem:[%s12278_s16 + $0x10] ss:$8 sps:$4 sm:$0xff]  }
 0x689   : > { %v3449_v39 = vmul.f32 0.7978846, %v3417_v16  ;;  %v3415_v45 = vadd.f32 %v3383_v19, %v10605_v6  ;;  %8748 = vtanh.f32 %v3446_v8  ;;  %v3484_v35 = vadd.f32 1.0, %v10563_v17  ;;  %v8588_v46 = vld [vmem:[%s12278_s16 + $0x24] ss:$8 sps:$4 sm:$0xff]  }
 0x68a   : > { %8750 = vtanh.f32 %v3445_v29  ;;  %v3374_v33 = vmul.f32 %v3342_v5, %v10568_v40  ;;  %v3442_v4 = vmul.f32 0.7978846, %v3410_v47  ;;  %v3408_v29 = vadd.f32 %v3376_v37, %v10537_v51 }
 0x68b   : > { %8752 = vtanh.f32 %v3449_v39  ;;  %v3447_v13 = vmul.f32 0.7978846, %v3415_v45  ;;  %v3373_v19 = vmul.f32 %v10575_v62, %v10518_v20  ;;  %v3339_v1 = vmul.f32 %v3307_v31, %v10553_v0 }
 0x68c   : > { %8754 = vtanh.f32 %v3444_v18  ;;  %v10655_v50 = vmul.f32 %v3484_v35, %v10441_v52  ;;  %v10658_v16 = vmul.f32 %v3485_v56, %v10497_v15  ;;  %v3441_v17 = vmul.f32 0.7978846, %v3409_v61 }
 0x68d   : > { %8756 = vtanh.f32 %v3447_v13  ;;  %v3407_v28 = vadd.f32 %v3375_v25, %v10586_v57  ;;  %v3482_v8 = vadd.f32 1.0, %v10572_v22  ;;  %v3372_v37 = vmul.f32 %v10549_v38, %v10503_v59 }
 0x68e   : > { %8758 = vtanh.f32 %v3443_v54  ;;  %v3547_v62 = vpack.c.bf16 %v10658_v16, %v10655_v50  ;;  %v3483_v52 = vadd.f32 1.0, %v10595_v26  ;;  %v3338_v5 = vmul.f32 %v3306_v27, %v10531_v10  ;;  %v8591_v50 = vld [vmem:[%s12278_s16 + $0x34] ss:$8 sps:$4 sm:$0xff]   ;;  %v8593_v16 = vld [vmem:[%s12278_s16 + $0x30] ss:$8 sps:$4 sm:$0xff]  }
 0x68f   : > { %8760 = vtanh.f32 %v10526_v48  ;;  %v3440_v15 = vmul.f32 0.7978846, %v3408_v29  ;;  %v3406_v18 = vadd.f32 %v3374_v33, %v10568_v40  ;;  %v3371_v39 = vmul.f32 %v3339_v1, %v10553_v0 }
 0x690   : > { %8762 = vtanh.f32 %v3442_v4  ;;  %v3405_v22 = vadd.f32 %v3373_v19, %v10518_v20  ;;  %v10673_v48 = vmul.f32 %v3482_v8, %v10493_v60  ;;  %v10676_v38 = vmul.f32 %v3483_v52, %v10508_v49 }
 0x691   : > { %v3496_v45 = vadd.f32 1.0, %v8739_v12  ;;  %v3497_v47 = vadd.f32 1.0, %v8743_v14  ;;  %8764 = vtanh.f32 %v3441_v17  ;;  %v3439_v26 = vmul.f32 0.7978846, %v3407_v28 }
 0x692   : > { %8766 = vtanh.f32 %v10523_v3  ;;  %v3272_v25 = vmul.f32 0.5, %v10415_v24  ;;  %v3404_v13 = vadd.f32 %v3372_v37, %v10503_v59  ;;  %v3546_v54 = vpack.c.bf16 %v10676_v38, %v10673_v48  ;;  %v8595_v48 = vld [vmem:[%s12389_s3 + $0x20] sm:$0xff]  }
 0x693   : > { %v3370_v60 = vmul.f32 %v3338_v5, %v10531_v10  ;;  %v3273_v61 = vmul.f32 0.5, %v10428_v23  ;;  %8768 = vtanh.f32 %v3440_v15  ;;  %v3438_v49 = vmul.f32 0.7978846, %v3406_v18  ;;  %8150 = vmatprep.mubr.msk.bf16.mxu0 %vm778_vm0, %v8595_v48  ;;  %v12435_v48 = vld [vmem:[#allocation23_spill] sm:$0xff] }
 0x694   : > { %v8747_v31 = vpop.eup %8746  ;;  %v3270_v14 = vmul.f32 0.5, %v10420_v42  ;;  %v3271_v27 = vmul.f32 0.5, %v10455_v34  ;;  %v3437_v35 = vmul.f32 0.7978846, %v3405_v22  ;;  %v3403_v3 = vadd.f32 %v3371_v39, %v10553_v0 }
 0x695   : > { %v3512_v56 = vadd.f32 1.0, %v8747_v31  ;;  %v3528_v33 = vmul.f32 %v3496_v45, %v3272_v25  ;;  %v3529_v4 = vmul.f32 %v3497_v47, %v3273_v61  ;;  %8770 = vtanh.f32 %v3439_v26 }
 0x696   : > { %v8749_v12 = vpop.eup %8748  ;;  %v3288_v19 = vmul.f32 0.5, %v10561_v55  ;;  %v3289_v23 = vmul.f32 0.5, %v10593_v36  ;;  %v3495_v1 = vadd.f32 1.0, %v8745_v63  ;;  %v3436_v17 = vmul.f32 0.7978846, %v3404_v13 }
 0x697   : > { %v8751_v24 = vpop.eup %8750  ;;  %v3510_v42 = vadd.f32 1.0, %v8749_v12  ;;  %8772 = vtanh.f32 %v3438_v49  ;;  %v3402_v34 = vadd.f32 %v3370_v60, %v10531_v10  ;;  %v3286_v52 = vmul.f32 0.5, %v10579_v44 }
 0x698   : > { %v8753_v29 = vpop.eup %8752  ;;  %v3287_v5 = vmul.f32 0.5, %v10605_v6  ;;  %8774 = vtanh.f32 %v3437_v35  ;;  %v3435_v15 = vmul.f32 0.7978846, %v3403_v3  ;;  %v3544_v18 = vmul.f32 %v3512_v56, %v3288_v19 }
 0x699   : > { %v8755_v28 = vpop.eup %8754  ;;  %v3513_v8 = vadd.f32 1.0, %v8753_v29  ;;  %v3509_v22 = vadd.f32 1.0, %v8751_v24  ;;  %v3494_v63 = vadd.f32 1.0, %v10625_v21  ;;  %v3285_v45 = vmul.f32 0.5, %v10534_v9 }
 0x69a   : > { %v8757_v37 = vpop.eup %8756  ;;  %v3508_v47 = vadd.f32 1.0, %v8755_v28  ;;  %8776 = vtanh.f32 %v3436_v17  ;;  %v3542_v25 = vmul.f32 %v3510_v42, %v3286_v52  ;;  %v3434_v44 = vmul.f32 0.7978846, %v3402_v34 }
 0x69b   : > { %v3545_v39 = vmul.f32 %v3513_v8, %v3289_v23  ;;  %v3511_v55 = vadd.f32 1.0, %v8757_v37  ;;  %v8759_v36 = vpop.eup %8758  ;;  %v3553_v6 = vpack.c.bf16 %v3529_v4, %v3528_v33  ;;  %v3527_v61 = vmul.f32 %v3495_v1, %v3271_v27  ;;  %v12418_v23 = vld [vmem:[#allocation19_spill] sm:$0xff]  ;;  %v12419_v37 = vld [vmem:[#allocation24_spill] sm:$0xff] }
 0x69c   : > { %v8761_v26 = vpop.eup %8760  ;;  %v3284_v49 = vmul.f32 0.5, %v10511_v58  ;;  %v3493_v12 = vadd.f32 1.0, %v10613_v32  ;;  %v3541_v3 = vmul.f32 %v3509_v22, %v3285_v45  ;;  %v3507_v21 = vadd.f32 1.0, %v8759_v36  ;;  %v12420_v22 = vld [vmem:[#allocation21_spill] sm:$0xff] }
 0x69d   : > { %v3561_v31 = vpack.c.bf16 %v3545_v39, %v3544_v18  ;;  %v3543_v13 = vmul.f32 %v3511_v55, %v3287_v5  ;;  %v8763_v60 = vpop.eup %8762  ;;  %8778 = vtanh.f32 %v3435_v15  ;;  %v3526_v24 = vmul.f32 %v3494_v63, %v3270_v14 }
 0x69e   : > { %v8765_v9 = vpop.eup %8764  ;;  %v3269_v56 = vmul.f32 0.5, %v10409_v41  ;;  %v3492_v29 = vadd.f32 1.0, %v10607_v30  ;;  %v3540_v33 = vmul.f32 %v3508_v47, %v3284_v49  ;;  %v3283_v27 = vmul.f32 0.5, %v10546_v53 }
 0x69f   : > { %7757 = vmatprep.subr.bf16.mxu1 %v3561_v31  ;;  %v3560_v35 = vpack.c.bf16 %v3543_v13, %v3542_v25  ;;  %v8767_v19 = vpop.eup %8766  ;;  %v3506_v58 = vadd.f32 1.0, %v8763_v60  ;;  %8780 = vtanh.f32 %v3434_v44  ;;  %v3552_v4 = vpack.c.bf16 %v3527_v61, %v3526_v24 }
 0x6a0   : > { %7758 = vmatpush3.bf16.msra.mxu1 %v3553_v6  ;;  %v8769_v32 = vpop.eup %8768  ;;  %v3268_v1 = vmul.f32 0.5, %v12418_v23  ;;  %v3525_v17 = vmul.f32 %v3493_v12, %v3269_v56  ;;  %v3491_v28 = vadd.f32 1.0, %v8761_v26  ;;  %v3559_v8 = vpack.c.bf16 %v3541_v3, %v3540_v33  ;;  %v12421_v33 = vld [vmem:[#allocation26_spill] sm:$0xff] }
 0x6a1   : > { %7759 = vmatprep.subr.bf16.mxu1 %v3560_v35  ;;  %v3282_v14 = vmul.f32 0.5, %v10541_v2  ;;  %v3539_v42 = vmul.f32 %v3507_v21, %v3283_v27  ;;  %v3505_v41 = vadd.f32 1.0, %v8765_v9  ;;  %v3267_v52 = vmul.f32 0.5, %v12419_v37  ;;  %v12422_v27 = vld [vmem:[#allocation25_spill] sm:$0xff] }
 0x6a2   : > { %v8771_v34 = vpop.eup %8770  ;;  %v3524_v30 = vmul.f32 %v3492_v29, %v3268_v1  ;;  %v3490_v5 = vadd.f32 1.0, %v8767_v19  ;;  %v3281_v15 = vmul.f32 0.5, %v10556_v43  ;;  %v3504_v18 = vadd.f32 1.0, %v8769_v32 }
 0x6a3   : > { %v3538_v53 = vmul.f32 %v3506_v58, %v3282_v14  ;;  %v3266_v36 = vmul.f32 0.5, %v12420_v22  ;;  %v3523_v63 = vmul.f32 %v3491_v28, %v3267_v52  ;;  %v3280_v47 = vmul.f32 0.5, %v10537_v51  ;;  %v12425_v22 = vld [vmem:[#allocation18_spill] sm:$0xff] }
 0x6a4   : > { %7760 = vmatpush3.bf16.msra.mxu1 %v3552_v4  ;;  %v8773_v39 = vpop.eup %8772  ;;  %v3551_v55 = vpack.c.bf16 %v3525_v17, %v3524_v30  ;;  %v3537_v26 = vmul.f32 %v3505_v41, %v3281_v15  ;;  %v3503_v31 = vadd.f32 1.0, %v8771_v34  ;;  %v3279_v60 = vmul.f32 0.5, %v10586_v57  ;;  %v3694_v34 = vpop.permute.xlu0 %3693  ;;  %v12424_v15 = vld [vmem:[#allocation20_spill] sm:$0xff] }
 0x6a5   : > { %7761 = vmatprep.subr.bf16.mxu1 %v3559_v8  ;;  %v8775_v45 = vpop.eup %8774  ;;  %v3558_v2 = vpack.c.bf16 %v3539_v42, %v3538_v53  ;;  %v3522_v25 = vmul.f32 %v3490_v5, %v3266_v36  ;;  %v3536_v44 = vmul.f32 %v3504_v18, %v3280_v47  ;;  %v3502_v43 = vadd.f32 1.0, %v8773_v39  ;;  %v3699_v5 = vpop.permute.xlu1 %3698 }
 0x6a6   : > { %v3278_v49 = vmul.f32 0.5, %v10568_v40  ;;  %v3535_v12 = vmul.f32 %v3503_v31, %v3279_v60  ;;  %v3501_v35 = vadd.f32 1.0, %v8775_v45  ;;  %v3277_v21 = vmul.f32 0.5, %v10518_v20  ;;  %v12427_v31 = vld [vmem:[#allocation17_spill] sm:$0xff] }
 0x6a7   : > { %v8777_v13 = vpop.eup %8776  ;;  %v3550_v6 = vpack.c.bf16 %v3523_v63, %v3522_v25  ;;  %v3557_v61 = vpack.c.bf16 %v3537_v26, %v3536_v44  ;;  %v3276_v29 = vmul.f32 0.5, %v10503_v59  ;;  %v12423_v58 = vpack.c.bf16 %v12421_v33, %v12422_v27  ;;  %v12426_v63 = vld [vmem:[#allocation15_spill] sm:$0xff] }
 0x6a8   : > { %7762 = vmatpush3.bf16.msra.mxu1 %v3551_v55  ;;  %v3534_v51 = vmul.f32 %v3502_v43, %v3278_v49  ;;  %v3500_v9 = vadd.f32 1.0, %v8777_v13  ;;  %v3533_v19 = vmul.f32 %v3501_v35, %v3277_v21  ;;  %v3275_v32 = vmul.f32 0.5, %v10553_v0  ;;  %v8582_v0 = vld [vmem:[%s12278_s16] ss:$8 sps:$4 sm:$0xff]  }
 0x6a9   : > { %7763 = vmatprep.subr.bf16.mxu1 %v3558_v2  ;;  %v3274_v1 = vmul.f32 0.5, %v10531_v10  ;;  %v8585_v10 = vld [vmem:[%s12278_s16 + $0x14] ss:$8 sps:$4 sm:$0xff]   ;;  %v3704_v2 = vpop.permute.xlu0 %3703  ;;  %v3709_v44 = vpop.permute.xlu1 %3708 }
 0x6aa   : > { %v8779_v3 = vpop.eup %8778  ;;  %v3556_v56 = vpack.c.bf16 %v3535_v12, %v3534_v51  ;;  %v3532_v40 = vmul.f32 %v3500_v9, %v3276_v29 }
 0x6ab   : > { %v3499_v57 = vadd.f32 1.0, %v8779_v3 }
 0x6ac   : > { %7764 = vmatpush3.bf16.msra.mxu1 %v3550_v6  ;;  %v8781_v24 = vpop.eup %8780  ;;  %v3555_v23 = vpack.c.bf16 %v3533_v19, %v3532_v40  ;;  %v12431_v19 = vld [vmem:[#allocation16_spill] sm:$0xff] }
 0x6ad   : > { %7765 = vmatprep.subr.bf16.mxu1 %v3557_v61  ;;  %v3498_v4 = vadd.f32 1.0, %v8781_v24  ;;  %v3531_v20 = vmul.f32 %v3499_v57, %v3275_v32  ;;  %v12428_v61 = vld [vmem:[#allocation14_spill] sm:$0xff]  ;;  %v3714_v21 = vpop.permute.xlu0 %3713  ;;  %v3719_v33 = vpop.permute.xlu1 %3718 }
 0x6af   : > { %v3530_v59 = vmul.f32 %v3498_v4, %v3274_v1 }
 0x6b0   : > { %7766 = vmatpush3.bf16.msra.mxu1 %v12423_v58 }
 0x6b1   : > { %7767 = vmatprep.subr.bf16.mxu1 %v3556_v56  ;;  %v3554_v17 = vpack.c.bf16 %v3531_v20, %v3530_v59  ;;  %v12433_v59 = vld [vmem:[#allocation22_spill] sm:$0xff] }
 0x6b4   : > { %7768 = vmatpush3.bf16.msra.mxu1 %v3548_v11  ;;  %v8590_v11 = vld [vmem:[%s12278_s16 + $0x20] ss:$8 sps:$4 sm:$0xff]  }
 0x6b5   : > { %7769 = vmatprep.subr.bf16.mxu1 %v3555_v23 }
 0x6b8   : > { %7770 = vmatpush3.bf16.msra.mxu1 %v3547_v62  ;;  %v8594_v62 = vld [vmem:[%s12388_s8 + $0x20] sm:$0xff]  }
 0x6b9   : > { %7771 = vmatprep.subr.bf16.mxu1 %v3554_v17 }
 0x6bc   : > { %7772 = vmatpush3.bf16.msra.mxu1 %v3546_v54 }
 0x6bf   : > { %3643 = vmatmul.mubr.bf16.vlgmr.msra.gmra.mxu1 %v8582_v0  ;;  %v3724_v0 = vpop.permute.xlu0 %3723 }
 0x6c0   : > { %3650 = vmatprep.mubr.bf16.mxu1 %v8585_v10 }
 0x6c7   : > { %3651 = vmatmul.mubr.bf16.gmra.mxu1 %v8587_v7 }
 0x6c8   : > { %3658 = vmatprep.mubr.bf16.mxu1 %v8588_v46 }
 0x6cf   : > { %3659 = vmatmul.mubr.bf16.gmra.mxu1 %v8590_v11 }
 0x6d0   : > { %3666 = vmatprep.mubr.bf16.mxu1 %v8591_v50 }
 0x6d7   : > { %3667 = vmatmul.mubr.bf16.gmra.mxu1 %v8593_v16 }
 0x6d8   : > { %8134 = vmatprep.mubr.msk.bf16.mxu1 %vm778_vm0, %v8594_v62 }
 0x77f   : > { %v7773_v38 = vpop.f32.mrf.mxu1 }
 0x781   : > { %v7774_v54 = vpop.f32.mrf.mxu1 }
 0x782   : > { %v7775_v37 = vadd.f32 %v7774_v54, %v7773_v38  ;;  %v3729_v54 = vpop.permute.xlu1 %3728 }
 0x783   : > { %v7776_v28 = vpop.f32.mrf.mxu1 }
 0x784   : > { %v3675_v36 = vadd.f32 %v7775_v37, %v12425_v22 }
 0x785   : > { %v7777_v8 = vpop.f32.mrf.mxu1 }
 0x786   : > { %v7778_v41 = vadd.f32 %v7777_v8, %v7776_v28  ;;  %v10759_v43 = vadd.f32 %v3694_v34, %v3675_v36 }
 0x787   : > { %v7779_v14 = vpop.f32.mrf.mxu1 }
 0x788   : > { %v3676_v18 = vadd.f32 %v7778_v41, %v12424_v15  ;;  %v3757_v24 = vsel %vm778_vm0, %v10759_v43, 0.0 }
 0x789   : > { %v7780_v42 = vpop.f32.mrf.mxu1 }
 0x78a   : > { %v7781_v52 = vadd.f32 %v7780_v42, %v7779_v14  ;;  %v10756_v26 = vadd.f32 %v3699_v5, %v3676_v18 }
 0x78b   : > { %v7782_v30 = vpop.f32.mrf.mxu1 }
 0x78c   : > { %v3677_v45 = vadd.f32 %v7781_v52, %v12426_v63  ;;  %v3758_v35 = vsel %vm778_vm0, %v10756_v26, 0.0 }
 0x78d   : > { %v7783_v53 = vpop.f32.mrf.mxu1  ;;  %v3759_v27 = vadd.f32 %v3758_v35, %v3757_v24 }
 0x78e   : > { %v7784_v39 = vadd.f32 %v7783_v53, %v7782_v30  ;;  %v10761_v6 = vadd.f32 %v3704_v2, %v3677_v45 }
 0x78f   : > { %v7785_v55 = vpop.f32.mrf.mxu1 }
 0x790   : > { %v3678_v25 = vadd.f32 %v7784_v39, %v12427_v31  ;;  %v3760_v56 = vsel %vm778_vm0, %v10761_v6, 0.0 }
 0x791   : > { %v7786_v47 = vpop.f32.mrf.mxu1  ;;  %v3761_v23 = vadd.f32 %v3760_v56, %v3759_v27 }
 0x792   : > { %v7787_v13 = vadd.f32 %v7786_v47, %v7785_v55  ;;  %v10766_v3 = vadd.f32 %v3709_v44, %v3678_v25 }
 0x793   : > { %v7788_v60 = vpop.f32.mrf.mxu1 }
 0x794   : > { %v3679_v49 = vadd.f32 %v7787_v13, %v12428_v61  ;;  %12429 = vst [vmem:[#allocation19_spill] sm:$0xff] %v10766_v3  ;;  %v3762_v40 = vsel %vm778_vm0, %v10766_v3, 0.0 }
 0x795   : > { %v7789_v12 = vpop.f32.mrf.mxu1  ;;  %v3763_v10 = vadd.f32 %v3762_v40, %v3761_v23 }
 0x796   : > { %v7790_v51 = vadd.f32 %v7789_v12, %v7788_v60  ;;  %v10772_v29 = vadd.f32 %v3714_v21, %v3679_v49 }
 0x797   : > { %v7791_v9 = vpop.f32.mrf.mxu1 }
 0x798   : > { %12430 = vst [vmem:[#allocation24_spill] sm:$0xff] %v10772_v29  ;;  %v3680_v57 = vadd.f32 %v7790_v51, %v12431_v19  ;;  %v3764_v20 = vsel %vm778_vm0, %v10772_v29, 0.0 }
 0x799   : > { %v7792_v58 = vpop.f32.mrf.mxu1  ;;  %v3765_v16 = vadd.f32 %v3764_v20, %v3763_v10  ;;  %v3860_v20 = vpop.permute.xlu0 %3859 }
 0x79a   : > { %v10777_v32 = vadd.f32 %v3719_v33, %v3680_v57  ;;  %v7793_v4 = vadd.f32 %v7792_v58, %v7791_v9 }
 0x79b   : > { %v7794_v1 = vpop.f32.mrf.mxu1 }
 0x79c   : > { %12432 = vst [vmem:[#allocation21_spill] sm:$0xff] %v10777_v32  ;;  %v3681_v17 = vadd.f32 %v7793_v4, %v12433_v59  ;;  %v3766_v46 = vsel %vm778_vm0, %v10777_v32, 0.0 }
 0x79d   : > { %v7795_v7 = vpop.f32.mrf.mxu1  ;;  %v3767_v28 = vadd.f32 %v3766_v46, %v3765_v16 }
 0x79e   : > { %v10784_v11 = vadd.f32 %v3724_v0, %v3681_v17  ;;  %v7796_v50 = vadd.f32 %v7795_v7, %v7794_v1  ;;  %v3865_v1 = vpop.permute.xlu1 %3864  ;;  %v3908_v7 = vpop.permute.xlu0 %3907 }
 0x7a0   : > { %12434 = vst [vmem:[#allocation26_spill] sm:$0xff] %v10784_v11  ;;  %v3768_v62 = vsel %vm778_vm0, %v10784_v11, 0.0  ;;  %v3682_v38 = vadd.f32 %v7796_v50, %v12435_v48 }
 0x7a1   : > { %v3769_v14 = vadd.f32 %v3768_v62, %v3767_v28 }
 0x7a2   : > { %v10789_v8 = vadd.f32 %v3729_v54, %v3682_v38  ;;  %v3913_v10 = vpop.permute.xlu1 %3912  ;;  %v3850_v48 = vpop.permute.xlu0 %3849 }
 0x7a4   : > { %12436 = vst [vmem:[#allocation25_spill] sm:$0xff] %v10789_v8  ;;  %v3770_v42 = vsel %vm778_vm0, %v10789_v8, 0.0 }
 0x7a5   : > { %v3771_v41 = vadd.f32 %v3770_v42, %v3769_v14 }
 0x7a6   : > { %v3855_v62 = vpop.permute.xlu1 %3854  ;;  %v3898_v14 = vpop.permute.xlu0 %3897 }
 0x7a7   : > { %v3772_v34 = vrot.slane %v3771_v41, 4 }
 0x7a9   : > { %v3773_v30 = vadd.f32 %v3772_v34, %v3771_v41 }
 0x7aa   : > { %v3903_v28 = vpop.permute.xlu1 %3902  ;;  %v3840_v41 = vpop.permute.xlu0 %3839 }
 0x7ab   : > { %v3774_v37 = vrot.slane %v3773_v30, 2 }
 0x7ad   : > { %v3775_v52 = vadd.f32 %v3774_v37, %v3773_v30 }
 0x7ae   : > { %v3845_v42 = vpop.permute.xlu1 %3844  ;;  %v3888_v37 = vpop.permute.xlu0 %3887 }
 0x7af   : > { %v3776_v5 = vrot.slane %v3775_v52, 1 }
 0x7b1   : > { %v3777_v53 = vadd.f32 %v3776_v5, %v3775_v52 }
 0x7b2   : > { %v3893_v30 = vpop.permute.xlu1 %3892 }
 0x7b3   : > { %v3778_v15 = vmul.f32 0.015625, %v3777_v53 }
 0x7b5   : > { %v10794_v18 = vsub.f32 %v10759_v43, %v3778_v15  ;;  %v10797_v39 = vsub.f32 %v10756_v26, %v3778_v15  ;;  %v3781_v55 = vsub.f32 %v10761_v6, %v3778_v15  ;;  %v3782_v22 = vsub.f32 %v10766_v3, %v3778_v15 }
 0x7b6   : > { %v3783_v36 = vsub.f32 %v10772_v29, %v3778_v15  ;;  %v3784_v47 = vsub.f32 %v10777_v32, %v3778_v15  ;;  %v3785_v60 = vsub.f32 %v10784_v11, %v3778_v15  ;;  %v3786_v35 = vsub.f32 %v10789_v8, %v3778_v15 }
 0x7b7   : > { %v3787_v63 = vmul.f32 %v10794_v18, %v10794_v18  ;;  %v3788_v45 = vmul.f32 %v10797_v39, %v10797_v39  ;;  %v3789_v2 = vmul.f32 %v3781_v55, %v3781_v55  ;;  %v3790_v31 = vmul.f32 %v3782_v22, %v3782_v22 }
 0x7b8   : > { %v3791_v61 = vmul.f32 %v3783_v36, %v3783_v36  ;;  %v3792_v51 = vmul.f32 %v3784_v47, %v3784_v47  ;;  %v3793_v24 = vmul.f32 %v3785_v60, %v3785_v60  ;;  %v3794_v57 = vmul.f32 %v3786_v35, %v3786_v35 }
 0x7b9   : > { %v3795_v25 = vsel %vm778_vm0, %v3787_v63, 0.0  ;;  %v3796_v13 = vsel %vm778_vm0, %v3788_v45, 0.0  ;;  %v3798_v49 = vsel %vm778_vm0, %v3789_v2, 0.0  ;;  %v3800_v21 = vsel %vm778_vm0, %v3790_v31, 0.0 }
 0x7ba   : > { %v3797_v44 = vadd.f32 %v3796_v13, %v3795_v25  ;;  %v3802_v56 = vsel %vm778_vm0, %v3791_v61, 0.0  ;;  %v3804_v33 = vsel %vm778_vm0, %v3792_v51, 0.0  ;;  %v3806_v58 = vsel %vm778_vm0, %v3793_v24, 0.0 }
 0x7bb   : > { %v3808_v4 = vsel %vm778_vm0, %v3794_v57, 0.0 }
 0x7bc   : > { %v3799_v12 = vadd.f32 %v3798_v49, %v3797_v44 }
 0x7be   : > { %v3801_v9 = vadd.f32 %v3800_v21, %v3799_v12 }
 0x7c0   : > { %v3803_v19 = vadd.f32 %v3802_v56, %v3801_v9 }
 0x7c2   : > { %v3805_v27 = vadd.f32 %v3804_v33, %v3803_v19 }
 0x7c4   : > { %v3807_v40 = vadd.f32 %v3806_v58, %v3805_v27 }
 0x7c6   : > { %v3809_v23 = vadd.f32 %v3808_v4, %v3807_v40  ;;  %v8596_v40 = vld [vmem:[%s12388_s8 + $0x28] sm:$0xff]  }
 0x7c7   : > { %v8597_v4 = vld [vmem:[%s12389_s3 + $0x28] sm:$0xff]  }
 0x7c8   : > { %v3810_v59 = vrot.slane %v3809_v23, 4 }
 0x7ca   : > { %v3811_v17 = vadd.f32 %v3810_v59, %v3809_v23  ;;  %v8598_v23 = vld [vmem:[%s12388_s8 + $0x30] sm:$0xff]   ;;  %v8601_v59 = vld [vmem:[%s12389_s3 + $0x38] sm:$0xff]  }
 0x7cc   : > { %v3812_v0 = vrot.slane %v3811_v17, 2 }
 0x7ce   : > { %v3813_v46 = vadd.f32 %v3812_v0, %v3811_v17  ;;  %v8602_v17 = vld [vmem:[%s12391_s29 + $0x20] sm:$0xff]   ;;  %v8603_v0 = vld [vmem:[%s12391_s29 + $0x28] sm:$0xff]  }
 0x7d0   : > { %v3814_v50 = vrot.slane %v3813_v46, 1 }
 0x7d2   : > { %v3815_v16 = vadd.f32 %v3814_v50, %v3813_v46 }
 0x7d4   : > { %v3816_v38 = vmul.f32 0.015625, %v3815_v16 }
 0x7d6   : > { %v3817_v54 = vadd.f32 1e-05, %v3816_v38 }
 0x7d8   : > { %8782 = vrsqrt.f32 %v3817_v54 }
 0x7e5   : > { %v8783_v34 = vpop.eup %8782 }
 0x7e6   : > { %v3825_v52 = vmul.f32 %v8783_v34, %v3785_v60  ;;  %v3826_v5 = vmul.f32 %v8783_v34, %v3786_v35  ;;  %v3823_v53 = vmul.f32 %v8783_v34, %v3783_v36  ;;  %v3824_v15 = vmul.f32 %v8783_v34, %v3784_v47  ;;  %v3835_v60 = vpop.permute.xlu1 %3834  ;;  %v3830_v35 = vpop.permute.xlu0 %3829 }
 0x7e7   : > { %v3821_v63 = vmul.f32 %v8783_v34, %v3781_v55  ;;  %v3822_v45 = vmul.f32 %v8783_v34, %v3782_v22  ;;  %v3819_v49 = vmul.f32 %v8783_v34, %v10794_v18  ;;  %v3820_v12 = vmul.f32 %v8783_v34, %v10797_v39 }
 0x7e8   : > { %v3873_v2 = vmul.f32 %v3860_v20, %v3825_v52  ;;  %v3874_v31 = vmul.f32 %v3865_v1, %v3826_v5  ;;  %v3871_v25 = vmul.f32 %v3850_v48, %v3823_v53  ;;  %v3872_v13 = vmul.f32 %v3855_v62, %v3824_v15  ;;  %v8599_v1 = vld [vmem:[%s12389_s3 + $0x30] sm:$0xff]   ;;  %v8600_v20 = vld [vmem:[%s12388_s8 + $0x38] sm:$0xff]  }
 0x7e9   : > { %v3869_v44 = vmul.f32 %v3840_v41, %v3821_v63  ;;  %v3870_v61 = vmul.f32 %v3845_v42, %v3822_v45  ;;  %v3867_v47 = vmul.f32 %v3830_v35, %v3819_v49  ;;  %v3868_v55 = vmul.f32 %v3835_v60, %v3820_v12 }
 0x7ea   : > { %v3921_v51 = vadd.f32 %v3908_v7, %v3873_v2  ;;  %v3922_v21 = vadd.f32 %v3913_v10, %v3874_v31  ;;  %v3919_v9 = vadd.f32 %v3898_v14, %v3871_v25  ;;  %v3920_v24 = vadd.f32 %v3903_v28, %v3872_v13  ;;  %v3883_v18 = vpop.permute.xlu1 %3882  ;;  %v3878_v39 = vpop.permute.xlu0 %3877  ;;  %v8604_v10 = vld [vmem:[%s12391_s29 + $0x30] sm:$0xff]   ;;  %v8605_v7 = vld [vmem:[%s12391_s29 + $0x38] sm:$0xff]  }
 0x7eb   : > { %v3917_v56 = vadd.f32 %v3888_v37, %v3869_v44  ;;  %v3918_v19 = vadd.f32 %v3893_v30, %v3870_v61  ;;  %v3915_v33 = vadd.f32 %v3878_v39, %v3867_v47  ;;  %v3916_v27 = vadd.f32 %v3883_v18, %v3868_v55 }
 0x7ec   : > { %v3926_v36 = vpack.c.bf16 %v3922_v21, %v3921_v51  ;;  %v3925_v22 = vpack.c.bf16 %v3920_v24, %v3919_v9 }
 0x7ed   : > { %v3924_v57 = vpack.c.bf16 %v3918_v19, %v3917_v56  ;;  %v3923_v58 = vpack.c.bf16 %v3916_v27, %v3915_v33 }
 0x7ee   : > { %8126 = vmatprep.subr.bf16.mxu1 %v3926_v36  ;;  %8142 = vmatprep.subr.bf16.mxu0 %v3926_v36  ;;  %v4118_v46 = vpop.permute.xlu1 %4117  ;;  %v4113_v50 = vpop.permute.xlu0 %4112 }
 0x7ef   : > { %8127 = vmatpush3.bf16.msra.mxu1 %v3926_v36  ;;  %8143 = vmatpush3.bf16.msra.mxu0 %v3926_v36 }
 0x7f0   : > { %8128 = vmatprep.subr.bf16.mxu1 %v3925_v22  ;;  %8144 = vmatprep.subr.bf16.mxu0 %v3925_v22 }
 0x7f2   : > { %v4108_v16 = vpop.permute.xlu1 %4107  ;;  %v4103_v62 = vpop.permute.xlu0 %4102 }
 0x7f3   : > { %8129 = vmatpush3.bf16.msra.mxu1 %v3925_v22  ;;  %8145 = vmatpush3.bf16.msra.mxu0 %v3925_v22 }
 0x7f4   : > { %8130 = vmatprep.subr.bf16.mxu1 %v3924_v57  ;;  %8146 = vmatprep.subr.bf16.mxu0 %v3924_v57 }
 0x7f6   : > { %v4138_v48 = vpop.permute.xlu1 %4137  ;;  %v4133_v38 = vpop.permute.xlu0 %4132 }
 0x7f7   : > { %8131 = vmatpush3.bf16.msra.mxu1 %v3924_v57  ;;  %8147 = vmatpush3.bf16.msra.mxu0 %v3924_v57 }
 0x7f8   : > { %8132 = vmatprep.subr.bf16.mxu1 %v3923_v58  ;;  %8148 = vmatprep.subr.bf16.mxu0 %v3923_v58 }
 0x7fa   : > { %v4128_v54 = vpop.permute.xlu1 %4127  ;;  %v4123_v28 = vpop.permute.xlu0 %4122 }
 0x7fb   : > { %8133 = vmatpush3.bf16.msra.mxu1 %v3923_v58  ;;  %8149 = vmatpush3.bf16.msra.mxu0 %v3923_v58 }
 0x7fc   : > { %8158 = vmatprep.subr.bf16.mxu1 %v3926_v36 }
 0x7fe   : > { %8135 = vmatmul.mubr.msk.bf16.vlgmr.msra.gmra.mxu1 %vm778_vm0, %v8596_v40  ;;  %8151 = vmatmul.mubr.msk.bf16.vlgmr.msra.gmra.mxu0 %vm778_vm0, %v8597_v4  ;;  %v3963_v14 = vpop.permute.xlu1 %3962  ;;  %v3958_v42 = vpop.permute.xlu0 %3957 }
 0x7ff   : > { %8159 = vmatpush3.bf16.msra.mxu1 %v3926_v36  ;;  %8138 = vmatprep.mubr.msk.bf16.mxu1 %vm778_vm0, %v8598_v23 }
 0x800   : > { %8160 = vmatprep.subr.bf16.mxu1 %v3925_v22  ;;  %8154 = vmatprep.mubr.msk.bf16.mxu0 %vm778_vm0, %v8599_v1 }
 0x802   : > { %v3953_v30 = vpop.permute.xlu1 %3952  ;;  %v3948_v37 = vpop.permute.xlu0 %3947 }
 0x803   : > { %8161 = vmatpush3.bf16.msra.mxu1 %v3925_v22 }
 0x804   : > { %8162 = vmatprep.subr.bf16.mxu1 %v3924_v57 }
 0x806   : > { %8139 = vmatmul.mubr.msk.bf16.gmra.mxu1 %vm778_vm0, %v8600_v20  ;;  %8155 = vmatmul.mubr.msk.bf16.gmra.mxu0 %vm778_vm0, %v8601_v59  ;;  %v3983_v49 = vpop.permute.xlu1 %3982  ;;  %v3978_v12 = vpop.permute.xlu0 %3977 }
 0x807   : > { %8163 = vmatpush3.bf16.msra.mxu1 %v3924_v57  ;;  %8166 = vmatprep.mubr.msk.bf16.mxu1 %vm778_vm0, %v8602_v17 }
 0x808   : > { %8164 = vmatprep.subr.bf16.mxu1 %v3923_v58 }
 0x80a   : > { %v3973_v57 = vpop.permute.xlu1 %3972  ;;  %v3968_v33 = vpop.permute.xlu0 %3967 }
 0x80b   : > { %8165 = vmatpush3.bf16.msra.mxu1 %v3923_v58 }
 0x80e   : > { %8167 = vmatmul.mubr.msk.bf16.vlgmr.msra.gmra.mxu1 %vm778_vm0, %v8603_v0 }
 0x80f   : > { %8170 = vmatprep.mubr.msk.bf16.mxu1 %vm778_vm0, %v8604_v10 }
 0x816   : > { %8171 = vmatmul.mubr.msk.bf16.gmra.mxu1 %vm778_vm0, %v8605_v7 }
 0x8be   : > { %v8136_v41 = vpop.f32.mrf.mxu1  ;;  %v8152_v34 = vpop.f32.mrf.mxu0 }
 0x8bf   : > { %v4215_v53 = vadd.f32 %v8152_v34, %v4113_v50  ;;  %v4060_v2 = vadd.f32 %v8136_v41, %v3958_v42  ;;  %v7460_v50 = vld [vmem:[%s12271_s9 + $0x50] sm:$0xff]  ;;  %v7502_v42 = vld [vmem:[%s12273_s11 + $0x40] sm:$0xff]  ;;  %v7505_v41 = vld [vmem:[%s12273_s11 + $0x58] sm:$0xff] }
 0x8c0   : > { %v4051_v52 = vpop.f32.mrf.mxu1  ;;  %v4206_v5 = vpop.f32.mrf.mxu0  ;;  %v7504_v34 = vld [vmem:[%s12273_s11 + $0x50] sm:$0xff] }
 0x8c1   : > { %v4207_v15 = vadd.f32 %v4206_v5, %v4103_v62  ;;  %v4052_v13 = vadd.f32 %v4051_v52, %v3948_v37  ;;  %v7458_v62 = vld [vmem:[%s12271_s9 + $0x40] sm:$0xff]  ;;  %v7509_v52 = vld [vmem:[%s12273_s11 + $0x78] sm:$0xff]  ;;  %v7508_v5 = vld [vmem:[%s12273_s11 + $0x70] sm:$0xff] }
 0x8c2   : > { %v8137_v63 = vpop.f32.mrf.mxu1  ;;  %v8153_v45 = vpop.f32.mrf.mxu0  ;;  %v7506_v37 = vld [vmem:[%s12273_s11 + $0x60] sm:$0xff] }
 0x8c3   : > { %v8462_v31 = vpack.i.bf16 %v4207_v15, %v4215_v53  ;;  %v4063_v25 = vadd.f32 %v8137_v63, %v3963_v14  ;;  %v4218_v21 = vadd.f32 %v8153_v45, %v4118_v46  ;;  %v7461_v46 = vld [vmem:[%s12271_s9 + $0x58] sm:$0xff]  ;;  %v7503_v14 = vld [vmem:[%s12273_s11 + $0x48] sm:$0xff]  ;;  %v7524_v15 = vld [vmem:[%s12274_s12 + $0x70] sm:$0xff] }
 0x8c4   : > { %v4054_v44 = vpop.f32.mrf.mxu1  ;;  %v4209_v61 = vpop.f32.mrf.mxu0  ;;  %v7525_v53 = vld [vmem:[%s12274_s12 + $0x78] sm:$0xff]  ;;  %v7532_v45 = vld [vmem:[%s12275_s13 + $0x70] sm:$0xff] }
 0x8c5   : > { %v4393_v51 = vpack.c.bf16 %v4063_v25, %v4060_v2  ;;  %v4055_v9 = vadd.f32 %v4054_v44, %v3953_v30  ;;  %v4210_v24 = vadd.f32 %v4209_v61, %v4108_v16  ;;  %8463 = vxpose.xlu0.b32.start [1/2] (short) (narrow) %v8462_v31, 64  ;;  %v7459_v16 = vld [vmem:[%s12271_s9 + $0x48] sm:$0xff]  ;;  %v7533_v63 = vld [vmem:[%s12275_s13 + $0x78] sm:$0xff]  ;;  %v7522_v31 = vld [vmem:[%s12274_s12 + $0x60] sm:$0xff] }
 0x8c6   : > { %v8140_v60 = vpop.f32.mrf.mxu1  ;;  %v8156_v35 = vpop.f32.mrf.mxu0  ;;  %v7507_v30 = vld [vmem:[%s12273_s11 + $0x68] sm:$0xff]  ;;  %v7521_v44 = vld [vmem:[%s12274_s12 + $0x58] sm:$0xff]  ;;  %v7520_v61 = vld [vmem:[%s12274_s12 + $0x50] sm:$0xff] }
 0x8c7   : > { %v4392_v36 = vpack.c.bf16 %v4055_v9, %v4052_v13  ;;  %v8464_v47 = vpack.i.bf16 %v4210_v24, %v4218_v21  ;;  %8184 = vmatprep.subr.bf16.mxu1 %v4393_v51  ;;  %v4231_v56 = vadd.f32 %v8156_v35, %v4133_v38  ;;  %v4076_v27 = vadd.f32 %v8140_v60, %v3978_v12  ;;  %v7464_v38 = vld [vmem:[%s12271_s9 + $0x70] sm:$0xff]  ;;  %v7523_v2 = vld [vmem:[%s12274_s12 + $0x68] sm:$0xff]  ;;  %v7530_v13 = vld [vmem:[%s12275_s13 + $0x60] sm:$0xff] }
 0x8c8   : > { %v4067_v55 = vpop.f32.mrf.mxu1  ;;  %v4222_v22 = vpop.f32.mrf.mxu0  ;;  %8185 = vmatpush3.bf16.msra.mxu1 %v4393_v51  ;;  %v7531_v25 = vld [vmem:[%s12275_s13 + $0x68] sm:$0xff]  ;;  %v7528_v12 = vld [vmem:[%s12275_s13 + $0x50] sm:$0xff]  ;;  %v7518_v21 = vld [vmem:[%s12274_s12 + $0x40] sm:$0xff] }
 0x8c9   : > { %v4223_v19 = vadd.f32 %v4222_v22, %v4123_v28  ;;  %8465 = vxpose.xlu0.b32.end [2/2] (short) (narrow) %v8464_v47, 64  ;;  %8174 = vmatprep.subr.bf16.mxu0 %v4392_v36  ;;  %v4068_v4 = vadd.f32 %v4067_v55, %v3968_v33  ;;  %v7462_v28 = vld [vmem:[%s12271_s9 + $0x60] sm:$0xff]  ;;  %v7519_v51 = vld [vmem:[%s12274_s12 + $0x48] sm:$0xff]  ;;  %v7597_v35 = vld [vmem:[%s12277_s15 + $0x1f8] sm:$0xff] }
 0x8ca   : > { %v8141_v18 = vpop.f32.mrf.mxu1  ;;  %v8157_v39 = vpop.f32.mrf.mxu0  ;;  %8175 = vmatpush3.bf16.msra.mxu0 %v4392_v36  ;;  %v7527_v9 = vld [vmem:[%s12275_s13 + $0x48] sm:$0xff]  ;;  %v7526_v60 = vld [vmem:[%s12275_s13 + $0x40] sm:$0xff] }
 0x8cb   : > { %v8506_v58 = vpack.i.bf16 %v4223_v19, %v4231_v56  ;;  %v4079_v40 = vadd.f32 %v8141_v18, %v3983_v49  ;;  %v4234_v59 = vadd.f32 %v8157_v39, %v4138_v48  ;;  %v7465_v48 = vld [vmem:[%s12271_s9 + $0x78] sm:$0xff]  ;;  %v7596_v19 = vld [vmem:[%s12277_s15 + $0x1f0] sm:$0xff] }
 0x8cc   : > { %v4070_v23 = vpop.f32.mrf.mxu1  ;;  %v4225_v1 = vpop.f32.mrf.mxu0  ;;  %v7529_v49 = vld [vmem:[%s12275_s13 + $0x58] sm:$0xff] }
 0x8cd   : > { %v10859_v20 = vpack.c.bf16 %v4079_v40, %v4076_v27  ;;  %v4071_v17 = vadd.f32 %v4070_v23, %v3973_v57  ;;  %v4226_v0 = vadd.f32 %v4225_v1, %v4128_v54  ;;  %8507 = vxpose.xlu1.b32.start [1/2] (short) (narrow) %v8506_v58, 64  ;;  %v7463_v54 = vld [vmem:[%s12271_s9 + $0x68] sm:$0xff]  ;;  %v7581_v18 = vld [vmem:[%s12277_s15 + $0x178] sm:$0xff]  ;;  %v7580_v58 = vld [vmem:[%s12277_s15 + $0x170] sm:$0xff] }
 0x8ce   : > { %v7595_v40 = vld [vmem:[%s12277_s15 + $0x1e8] sm:$0xff] }
 0x8cf   : > { %v10861_v10 = vpack.c.bf16 %v4071_v17, %v4068_v4  ;;  %v8508_v7 = vpack.i.bf16 %v4226_v0, %v4234_v59  ;;  %8204 = vmatprep.subr.bf16.mxu1 %v10859_v20 }
 0x8d1   : > { %8509 = vxpose.xlu1.b32.end [2/2] (short) (narrow) %v8508_v7, 64  ;;  %8194 = vmatprep.subr.bf16.mxu0 %v10861_v10  ;;  %v7594_v7 = vld [vmem:[%s12277_s15 + $0x1e0] sm:$0xff] }
 0x907   : > { %4272 = vperm.xlu1 %8373, %v7461_v46  }
 0x90a   : > { %4267 = vperm.xlu0 %8372, %v7460_v50  }
 0x90b   : > { %4262 = vperm.xlu1 %8373, %v7459_v16  }
 0x90e   : > { %4257 = vperm.xlu0 %8372, %v7458_v62   ;;  %v7579_v62 = vld [vmem:[%s12277_s15 + $0x168] sm:$0xff] }
 0x90f   : > { %4292 = vperm.xlu1 %8373, %v7465_v48  }
 0x912   : > { %4287 = vperm.xlu0 %8372, %v7464_v38   ;;  %v7578_v38 = vld [vmem:[%s12277_s15 + $0x160] sm:$0xff] }
 0x913   : > { %4282 = vperm.xlu1 %8373, %v7463_v54  }
 0x916   : > { %4277 = vperm.xlu0 %8372, %v7462_v28  }
 0x917   : > { %5405 = vperm.xlu1 %8373, %v7503_v14  }
 0x91a   : > { %5400 = vperm.xlu0 %8372, %v7502_v42   ;;  %v7593_v42 = vld [vmem:[%s12277_s15 + $0x1d8] sm:$0xff] }
 0x91b   : > { %5415 = vperm.xlu1 %8373, %v7505_v41  }
 0x91e   : > { %5410 = vperm.xlu0 %8372, %v7504_v34   ;;  %v12437_v34 = vmov 0.0  }
 0x91f   : > { %5425 = vperm.xlu1 %8373, %v7507_v30  }
 0x922   : > { %5420 = vperm.xlu0 %8372, %v7506_v37  }
 0x923   : > { %5435 = vperm.xlu1 %8373, %v7509_v52  }
 0x926   : > { %5430 = vperm.xlu0 %8372, %v7508_v5  }
 0x927   : > { %5668 = vperm.xlu1 %8373, %v7525_v53   ;;  %v7577_v53 = vld [vmem:[%s12277_s15 + $0x158] sm:$0xff] }
 0x92a   : > { %5663 = vperm.xlu0 %8372, %v7524_v15  }
 0x92b   : > { %5716 = vperm.xlu1 %8373, %v7533_v63   ;;  %v7576_v63 = vld [vmem:[%s12277_s15 + $0x150] sm:$0xff] }
 0x92e   : > { %5711 = vperm.xlu0 %8372, %v7532_v45  }
 0x92f   : > { %5658 = vperm.xlu1 %8373, %v7523_v2  }
 0x932   : > { %5653 = vperm.xlu0 %8372, %v7522_v31  }
 0x933   : > { %5706 = vperm.xlu1 %8373, %v7531_v25  }
 0x936   : > { %5701 = vperm.xlu0 %8372, %v7530_v13  }
 0x937   : > { %5648 = vperm.xlu1 %8373, %v7521_v44  }
 0x93a   : > { %5643 = vperm.xlu0 %8372, %v7520_v61  }
 0x93b   : > { %5696 = vperm.xlu1 %8373, %v7529_v49   ;;  %v7591_v49 = vld [vmem:[%s12277_s15 + $0x1c8] sm:$0xff] }
 0x93e   : > { %5691 = vperm.xlu0 %8372, %v7528_v12  }
 0x93f   : > { %5638 = vperm.xlu1 %8373, %v7519_v51  }
 0x941   : > { %v8466_v24 = vpop.trf.xlu0 }
 0x942   : > { %5633 = vperm.xlu0 %8372, %v7518_v21   ;;  %v8470_v36 = vunpack.i.h.bf16 %v8466_v24  ;;  %v8467_v47 = vunpack.i.l.bf16 %v8466_v24 }
 0x943   : > { %5686 = vperm.xlu1 %8373, %v7527_v9   ;;  %v7590_v9 = vld [vmem:[%s12277_s15 + $0x1c0] sm:$0xff] }
 0x945   : > { %v8471_v55 = vpop.trf.xlu0 }
 0x946   : > { %v8475_v22 = vunpack.i.h.bf16 %v8471_v55  ;;  %v8472_v56 = vunpack.i.l.bf16 %v8471_v55  ;;  %5681 = vperm.xlu0 %8372, %v7526_v60  }
 0x947   : > { %5954 = vperm.xlu1 %8373, %v7597_v35   ;;  %v7575_v35 = vld [vmem:[%s12277_s15 + $0x148] sm:$0xff] }
 0x948   : > { %v4528_v39 = vpack.c.bf16 %v8475_v22, %v8470_v36  ;;  %v4532_v57 = vpack.c.bf16 %v8472_v56, %v8467_v47  ;;  %v7574_v22 = vld [vmem:[%s12277_s15 + $0x140] sm:$0xff] }
 0x949   : > { %v8476_v33 = vpop.trf.xlu0  ;;  %v10970_v27 = vpop.trf.xlu1 }
 0x94a   : > { %5949 = vperm.xlu0 %8372, %v7596_v19   ;;  %8176 = vmatprep.mubr.msk.bf16.mxu0 %vm1561_vm1, %v4528_v39  ;;  %v8480_v4 = vunpack.i.h.bf16 %v8476_v33  ;;  %v8477_v23 = vunpack.i.l.bf16 %v8476_v33  ;;  %v8514_v45 = vunpack.i.h.bf16 %v10970_v27  ;;  %v8511_v2 = vunpack.i.l.bf16 %v10970_v27  ;;  %v7589_v27 = vld [vmem:[%s12277_s15 + $0x1b8] sm:$0xff] }
 0x94b   : > { %5874 = vperm.xlu1 %8373, %v7581_v18   ;;  %8186 = vmatprep.mubr.msk.bf16.mxu1 %vm1561_vm1, %v4532_v57 }
 0x94d   : > { %v8481_v1 = vpop.trf.xlu0  ;;  %v8515_v59 = vpop.trf.xlu1 }
 0x94e   : > { %v8485_v17 = vunpack.i.h.bf16 %v8481_v1  ;;  %v8482_v0 = vunpack.i.l.bf16 %v8481_v1  ;;  %5869 = vperm.xlu0 %8372, %v7580_v58   ;;  %v8519_v31 = vunpack.i.h.bf16 %v8515_v59  ;;  %v8516_v25 = vunpack.i.l.bf16 %v8515_v59 }
 0x94f   : > { %5944 = vperm.xlu1 %8373, %v7595_v40  }
 0x950   : > { %v4529_v46 = vpack.c.bf16 %v8485_v17, %v8480_v4  ;;  %v4533_v50 = vpack.c.bf16 %v8482_v0, %v8477_v23  ;;  %v4536_v47 = vpack.c.bf16 %v8519_v31, %v8514_v45  ;;  %v4540_v55 = vpack.c.bf16 %v8516_v25, %v8511_v2  ;;  %v7588_v23 = vld [vmem:[%s12277_s15 + $0x1b0] sm:$0xff]  ;;  %v7573_v17 = vld [vmem:[%s12277_s15 + $0x138] sm:$0xff]  ;;  %v7646_v45 = vld [vmem:[%s12279_s17 + $0x40] sm:$0xff] }
 0x951   : > { %v8486_v16 = vpop.trf.xlu0  ;;  %v10986_v48 = vpop.trf.xlu1  ;;  %v7649_v2 = vld [vmem:[%s12279_s17 + $0x58] sm:$0xff]  ;;  %v7648_v31 = vld [vmem:[%s12279_s17 + $0x50] sm:$0xff]  ;;  %v7651_v25 = vld [vmem:[%s12279_s17 + $0x68] sm:$0xff] }
 0x952   : > { %5939 = vperm.xlu0 %8372, %v7594_v7   ;;  %8177 = vmatmul.mubr.msk.bf16.vlgmr.msra.gmra.mxu0 %vm1561_vm1, %v4529_v46  ;;  %v8490_v54 = vunpack.i.h.bf16 %v8486_v16  ;;  %v8487_v28 = vunpack.i.l.bf16 %v8486_v16  ;;  %v8524_v56 = vunpack.i.h.bf16 %v10986_v48  ;;  %v8521_v18 = vunpack.i.l.bf16 %v10986_v48  ;;  %v7572_v46 = vld [vmem:[%s12277_s15 + $0x130] sm:$0xff] }
 0x953   : > { %8187 = vmatmul.mubr.msk.bf16.vlgmr.msra.gmra.mxu1 %vm1561_vm1, %v4533_v50  ;;  %8195 = vmatpush3.bf16.msra.mxu0 %v10861_v10 }
 0x954   : > { %8205 = vmatpush3.bf16.msra.mxu1 %v10859_v20  ;;  %5864 = vperm.xlu1 %8373, %v7579_v62   ;;  %v7592_v20 = vld [vmem:[%s12277_s15 + $0x1d0] sm:$0xff] }
 0x955   : > { %v8491_v14 = vpop.trf.xlu0  ;;  %v8525_v41 = vpop.trf.xlu1  ;;  %8214 = vmatprep.subr.bf16.mxu0 %v12437_v34  ;;  %8226 = vmatprep.subr.bf16.mxu1 %v12437_v34 }
 0x956   : > { %v8495_v10 = vunpack.i.h.bf16 %v8491_v14  ;;  %v8492_v30 = vunpack.i.l.bf16 %v8491_v14  ;;  %5859 = vperm.xlu0 %8372, %v7578_v38   ;;  %v8529_v19 = vunpack.i.h.bf16 %v8525_v41  ;;  %v8526_v39 = vunpack.i.l.bf16 %v8525_v41  ;;  %v7587_v38 = vld [vmem:[%s12277_s15 + $0x1a8] sm:$0xff]  ;;  %v7570_v41 = vld [vmem:[%s12277_s15 + $0x120] sm:$0xff] }
 0x958   : > { %5934 = vperm.xlu1 %8373, %v7593_v42   ;;  %v4530_v37 = vpack.c.bf16 %v8495_v10, %v8490_v54  ;;  %v4534_v52 = vpack.c.bf16 %v8492_v30, %v8487_v28  ;;  %v4537_v1 = vpack.c.bf16 %v8529_v19, %v8524_v56  ;;  %v4541_v59 = vpack.c.bf16 %v8526_v39, %v8521_v18  ;;  %v7586_v54 = vld [vmem:[%s12277_s15 + $0x1a0] sm:$0xff]  ;;  %v7571_v42 = vld [vmem:[%s12277_s15 + $0x128] sm:$0xff]  ;;  %v7585_v10 = vld [vmem:[%s12277_s15 + $0x198] sm:$0xff] }
 0x959   : > { %v8496_v5 = vpop.trf.xlu0  ;;  %v8530_v15 = vpop.trf.xlu1  ;;  %v7584_v30 = vld [vmem:[%s12277_s15 + $0x190] sm:$0xff]  ;;  %v6736_v56 = vld [vmem:[%s12280_s18 + $0x38] sm:$0xff]  ;;  %v6742_v19 = vld [vmem:[%s12281_s19 + $0x28] sm:$0xff] }
 0x95a   : > { %5929 = vperm.xlu0 %8372, %v7592_v20   ;;  %8180 = vmatprep.mubr.msk.bf16.mxu0 %vm1561_vm1, %v4530_v37  ;;  %v8500_v13 = vunpack.i.h.bf16 %v8496_v5  ;;  %v8497_v44 = vunpack.i.l.bf16 %v8496_v5  ;;  %v8534_v57 = vunpack.i.h.bf16 %v8530_v15  ;;  %v8531_v40 = vunpack.i.l.bf16 %v8530_v15  ;;  %v7569_v20 = vld [vmem:[%s12277_s15 + $0x118] sm:$0xff]  ;;  %v7568_v37 = vld [vmem:[%s12277_s15 + $0x110] sm:$0xff]  ;;  %v7582_v5 = vld [vmem:[%s12277_s15 + $0x180] sm:$0xff] }
 0x95b   : > { %8190 = vmatprep.mubr.msk.bf16.mxu1 %vm1561_vm1, %v4534_v52  ;;  %v7583_v52 = vld [vmem:[%s12277_s15 + $0x188] sm:$0xff]  ;;  %v7566_v15 = vld [vmem:[%s12277_s15 + $0x100] sm:$0xff]  ;;  %v6744_v18 = vld [vmem:[%s12281_s19 + $0x38] sm:$0xff] }
 0x95c   : > { %5854 = vperm.xlu1 %8373, %v7577_v53   ;;  %v7567_v53 = vld [vmem:[%s12277_s15 + $0x108] sm:$0xff]  ;;  %v6743_v39 = vld [vmem:[%s12281_s19 + $0x30] sm:$0xff] }
 0x95d   : > { %v8501_v61 = vpop.trf.xlu0  ;;  %v8535_v12 = vpop.trf.xlu1 }
 0x95e   : > { %v8505_v51 = vunpack.i.h.bf16 %v8501_v61  ;;  %v8502_v21 = vunpack.i.l.bf16 %v8501_v61  ;;  %5849 = vperm.xlu0 %8372, %v7576_v63   ;;  %v8539_v33 = vunpack.i.h.bf16 %v8535_v12  ;;  %v8536_v4 = vunpack.i.l.bf16 %v8535_v12  ;;  %v7647_v63 = vld [vmem:[%s12279_s17 + $0x48] sm:$0xff]  ;;  %v7652_v61 = vld [vmem:[%s12279_s17 + $0x70] sm:$0xff]  ;;  %v6729_v12 = vld [vmem:[%s12280_s18] sm:$0xff] }
 0x960   : > { %5924 = vperm.xlu1 %8373, %v7591_v49   ;;  %v4531_v24 = vpack.c.bf16 %v8505_v51, %v8500_v13  ;;  %v4535_v60 = vpack.c.bf16 %v8502_v21, %v8497_v44  ;;  %v4538_v0 = vpack.c.bf16 %v8539_v33, %v8534_v57  ;;  %v4542_v7 = vpack.c.bf16 %v8536_v4, %v8531_v40  ;;  %v7650_v13 = vld [vmem:[%s12279_s17 + $0x60] sm:$0xff]  ;;  %v7653_v44 = vld [vmem:[%s12279_s17 + $0x78] sm:$0xff]  ;;  %v6730_v49 = vld [vmem:[%s12280_s18 + $0x8] sm:$0xff]  ;;  %v11161_v57 = vpop.f32.mrf.mxu1 }
 0x961   : > { %v8540_v36 = vpop.trf.xlu1  ;;  %v6731_v51 = vld [vmem:[%s12280_s18 + $0x10] sm:$0xff]  ;;  %v6737_v21 = vld [vmem:[%s12281_s19] sm:$0xff] }
 0x962   : > { %5919 = vperm.xlu0 %8372, %v7590_v9   ;;  %8181 = vmatmul.mubr.msk.bf16.gmra.mxu0 %vm1561_vm1, %v4531_v24  ;;  %v8544_v50 = vunpack.i.h.bf16 %v8540_v36  ;;  %v8541_v62 = vunpack.i.l.bf16 %v8540_v36  ;;  %v6732_v9 = vld [vmem:[%s12280_s18 + $0x18] sm:$0xff]  ;;  %v6738_v24 = vld [vmem:[%s12281_s19 + $0x8] sm:$0xff]  ;;  %v11163_v33 = vpop.f32.mrf.mxu1 }
 0x963   : > { %8191 = vmatmul.mubr.msk.bf16.gmra.mxu1 %vm1561_vm1, %v4535_v60  ;;  %8196 = vmatprep.mubr.msk.bf16.mxu0 %vm1561_vm1, %v4536_v47  ;;  %v6733_v60 = vld [vmem:[%s12280_s18 + $0x20] sm:$0xff]  ;;  %v6734_v36 = vld [vmem:[%s12280_s18 + $0x28] sm:$0xff]  ;;  %v6740_v47 = vld [vmem:[%s12281_s19 + $0x18] sm:$0xff] }
 0x964   : > { %5844 = vperm.xlu1 %8373, %v7575_v35   ;;  %8206 = vmatprep.mubr.msk.bf16.mxu1 %vm1561_vm1, %v4540_v55  ;;  %v6739_v35 = vld [vmem:[%s12281_s19 + $0x10] sm:$0xff] }
 0x965   : > { %v8545_v58 = vpop.trf.xlu1  ;;  %v6735_v55 = vld [vmem:[%s12280_s18 + $0x30] sm:$0xff] }
 0x966   : > { %5839 = vperm.xlu0 %8372, %v7574_v22   ;;  %v8549_v16 = vunpack.i.h.bf16 %v8545_v58  ;;  %v8546_v48 = vunpack.i.l.bf16 %v8545_v58  ;;  %v6741_v22 = vld [vmem:[%s12281_s19 + $0x20] sm:$0xff] }
 0x968   : > { %5914 = vperm.xlu1 %8373, %v7589_v27   ;;  %v4539_v28 = vpack.c.bf16 %v8549_v16, %v8544_v50  ;;  %v4543_v14 = vpack.c.bf16 %v8546_v48, %v8541_v62  ;;  %v11165_v27 = vpop.f32.mrf.mxu1 }
 0x96a   : > { %5909 = vperm.xlu0 %8372, %v7588_v23   ;;  %8197 = vmatmul.mubr.msk.bf16.vlgmr.msra.gmra.mxu0 %vm1561_vm1, %v4537_v1  ;;  %v11167_v58 = vpop.f32.mrf.mxu1 }
 0x96b   : > { %8207 = vmatmul.mubr.msk.bf16.vlgmr.msra.gmra.mxu1 %vm1561_vm1, %v4541_v59  ;;  %8200 = vmatprep.mubr.msk.bf16.mxu0 %vm1561_vm1, %v4538_v0 }
 0x96c   : > { %5834 = vperm.xlu1 %8373, %v7573_v17   ;;  %8210 = vmatprep.mubr.msk.bf16.mxu1 %vm1561_vm1, %v4542_v7  ;;  %v11169_v40 = vpop.f32.mrf.mxu1 }
 0x96e   : > { %5829 = vperm.xlu0 %8372, %v7572_v46   ;;  %v11171_v4 = vpop.f32.mrf.mxu1 }
 0x970   : > { %5904 = vperm.xlu1 %8373, %v7587_v38   ;;  %v11173_v23 = vpop.f32.mrf.mxu1 }
 0x972   : > { %5899 = vperm.xlu0 %8372, %v7586_v54   ;;  %8201 = vmatmul.mubr.msk.bf16.gmra.mxu0 %vm1561_vm1, %v4539_v28  ;;  %v11175_v1 = vpop.f32.mrf.mxu1 }
 0x973   : > { %8211 = vmatmul.mubr.msk.bf16.gmra.mxu1 %vm1561_vm1, %v4543_v14  ;;  %8222 = vmatprep.mubr.msk.bf16.mxu0 %vm9006_vm2, %v12437_v34 }
 0x974   : > { %5824 = vperm.xlu1 %8373, %v7571_v42   ;;  %8234 = vmatprep.mubr.msk.bf16.mxu1 %vm9006_vm2, %v12437_v34 }
 0x976   : > { %5819 = vperm.xlu0 %8372, %v7570_v41  }
 0x978   : > { %5894 = vperm.xlu1 %8373, %v7585_v10  }
 0x97a   : > { %5889 = vperm.xlu0 %8372, %v7584_v30  }
 0x97c   : > { %5814 = vperm.xlu1 %8373, %v7569_v20  }
 0x97e   : > { %5809 = vperm.xlu0 %8372, %v7568_v37  }
 0x980   : > { %5884 = vperm.xlu1 %8373, %v7583_v52  }
 0x982   : > { %5879 = vperm.xlu0 %8372, %v7582_v5  }
 0x984   : > { %5804 = vperm.xlu1 %8373, %v7567_v53  }
 0x986   : > { %5799 = vperm.xlu0 %8372, %v7566_v15  }
 0x988   : > { %6688 = vperm.xlu1 %8373, %v7647_v63  }
 0x98a   : > { %6683 = vperm.xlu0 %8372, %v7646_v45  }
 0x98c   : > { %6698 = vperm.xlu1 %8373, %v7649_v2  }
 0x98e   : > { %6693 = vperm.xlu0 %8372, %v7648_v31  }
 0x990   : > { %6708 = vperm.xlu1 %8373, %v7651_v25  }
 0x992   : > { %6703 = vperm.xlu0 %8372, %v7650_v13  }
 0x994   : > { %6718 = vperm.xlu1 %8373, %v7653_v44  }
 0x996   : > { %6713 = vperm.xlu0 %8372, %v7652_v61  }
 0x998   : > { %6822 = vperm.xlu1 %8373, %v6730_v49  }
 0x99a   : > { %6817 = vperm.xlu0 %8372, %v6729_v12  }
 0x99c   : > { %6827 = vperm.xlu1 %8373, %v6731_v51  }
 0x99e   : > { %6865 = vperm.xlu0 %8372, %v6737_v21  }
 0x9a0   : > { %6832 = vperm.xlu1 %8373, %v6732_v9  }
 0x9a2   : > { %6870 = vperm.xlu0 %8372, %v6738_v24  }
 0x9a4   : > { %6837 = vperm.xlu1 %8373, %v6733_v60  }
 0x9a6   : > { %6875 = vperm.xlu0 %8372, %v6739_v35  }
 0x9a8   : > { %6842 = vperm.xlu1 %8373, %v6734_v36  }
 0x9aa   : > { %6880 = vperm.xlu0 %8372, %v6740_v47  }
 0x9ac   : > { %6847 = vperm.xlu1 %8373, %v6735_v55  }
 0x9ae   : > { %6885 = vperm.xlu0 %8372, %v6741_v22  }
 0x9b0   : > { %6852 = vperm.xlu1 %8373, %v6736_v56  }
 0x9b2   : > { %6890 = vperm.xlu0 %8372, %v6742_v19  }
 0x9b4   : > { %6900 = vperm.xlu1 %8373, %v6744_v18  }
 0x9b6   : > { %6895 = vperm.xlu0 %8372, %v6743_v39  }
 0xa12   : > { %v8178_v59 = vpop.f32.mrf.mxu0 }
 0xa13   : > { %v8188_v17 = vpop.f32.mrf.mxu1  ;;  %v11189_v41 = vmul.f32 0.25, %v8178_v59 }
 0xa14   : > { %v4590_v0 = vpop.f32.mrf.mxu0  ;;  %v11193_v30 = vmul.f32 0.25, %v8188_v17 }
 0xa15   : > { %v4667_v7 = vpop.f32.mrf.mxu1  ;;  %v11181_v54 = vmul.f32 0.25, %v4590_v0  ;;  %v4887_v53 = vsel %vm778_vm0, %v11189_v41, -inf }
 0xa16   : > { %v8179_v46 = vpop.f32.mrf.mxu0  ;;  %v11183_v28 = vmul.f32 0.25, %v4667_v7  ;;  %v4908_v45 = vsel %vm778_vm0, %v11193_v30, -inf }
 0xa17   : > { %v8189_v50 = vpop.f32.mrf.mxu1  ;;  %v4884_v10 = vsel %vm778_vm0, %v11181_v54, -inf  ;;  %v11199_v15 = vmul.f32 0.25, %v8179_v46 }
 0xa18   : > { %v4593_v16 = vpop.f32.mrf.mxu0  ;;  %v4905_v20 = vsel %vm778_vm0, %v11183_v28, -inf  ;;  %v11203_v2 = vmul.f32 0.25, %v8189_v50 }
 0xa19   : > { %v11177_v62 = vmul.f32 0.25, %v4593_v16  ;;  %v4670_v48 = vpop.f32.mrf.mxu1  ;;  %v4889_v51 = vsel %vm778_vm0, %v11199_v15, -inf }
 0xa1a   : > { %v11179_v38 = vmul.f32 0.25, %v4670_v48  ;;  %v4910_v24 = vsel %vm778_vm0, %v11203_v2, -inf }
 0xa1b   : > { %v4885_v14 = vsel %vm778_vm0, %v11177_v62, -inf }
 0xa1c   : > { %v4906_v42 = vsel %vm778_vm0, %v11179_v38, -inf  ;;  %v4886_v37 = vmax.f32 %v4884_v10, %v4885_v14 }
 0xa1d   : > { %v4907_v52 = vmax.f32 %v4905_v20, %v4906_v42 }
 0xa1e   : > { %v4888_v31 = vmax.f32 %v4886_v37, %v4887_v53 }
 0xa1f   : > { %v4909_v13 = vmax.f32 %v4907_v52, %v4908_v45 }
 0xa20   : > { %v4890_v60 = vmax.f32 %v4888_v31, %v4889_v51 }
 0xa21   : > { %v4911_v55 = vmax.f32 %v4909_v13, %v4910_v24 }
 0xa22   : > { %v8182_v5 = vpop.f32.mrf.mxu0 }
 0xa23   : > { %v8192_v63 = vpop.f32.mrf.mxu1  ;;  %v11217_v47 = vmul.f32 0.25, %v8182_v5 }
 0xa24   : > { %v4606_v25 = vpop.f32.mrf.mxu0  ;;  %v11221_v19 = vmul.f32 0.25, %v8192_v63 }
 0xa25   : > { %v11205_v44 = vmul.f32 0.25, %v4606_v25  ;;  %v4683_v61 = vpop.f32.mrf.mxu1  ;;  %v4895_v42 = vsel %vm778_vm0, %v11217_v47, -inf }
 0xa26   : > { %v11207_v49 = vmul.f32 0.25, %v4683_v61  ;;  %v8183_v12 = vpop.f32.mrf.mxu0  ;;  %v4916_v37 = vsel %vm778_vm0, %v11221_v19, -inf }
 0xa27   : > { %v4891_v21 = vsel %vm778_vm0, %v11205_v44, -inf  ;;  %v8193_v9 = vpop.f32.mrf.mxu1  ;;  %v11225_v0 = vmul.f32 0.25, %v8183_v12 }
 0xa28   : > { %v4912_v35 = vsel %vm778_vm0, %v11207_v49, -inf  ;;  %v4609_v36 = vpop.f32.mrf.mxu0  ;;  %v4892_v18 = vmax.f32 %v4890_v60, %v4891_v21  ;;  %v11229_v50 = vmul.f32 0.25, %v8193_v9 }
 0xa29   : > { %v11219_v22 = vmul.f32 0.25, %v4609_v36  ;;  %v4686_v56 = vpop.f32.mrf.mxu1  ;;  %v4913_v17 = vmax.f32 %v4911_v55, %v4912_v35  ;;  %v4897_v63 = vsel %vm778_vm0, %v11225_v0, -inf }
 0xa2a   : > { %v11223_v39 = vmul.f32 0.25, %v4686_v56  ;;  %v8198_v59 = vpop.f32.mrf.mxu0  ;;  %v4918_v13 = vsel %vm778_vm0, %v11229_v50, -inf }
 0xa2b   : > { %v4893_v7 = vsel %vm778_vm0, %v11219_v22, -inf  ;;  %v8208_v46 = vpop.f32.mrf.mxu1  ;;  %v11245_v21 = vmul.f32 0.25, %v8198_v59 }
 0xa2c   : > { %v4894_v16 = vmax.f32 %v4892_v18, %v4893_v7  ;;  %v4914_v48 = vsel %vm778_vm0, %v11223_v39, -inf  ;;  %v4744_v14 = vpop.f32.mrf.mxu0  ;;  %v11249_v35 = vmul.f32 0.25, %v8208_v46 }
 0xa2d   : > { %v4915_v10 = vmax.f32 %v4913_v17, %v4914_v48  ;;  %v4821_v20 = vpop.f32.mrf.mxu1  ;;  %v11237_v5 = vmul.f32 0.25, %v4744_v14 }
 0xa2e   : > { %v4896_v52 = vmax.f32 %v4894_v16, %v4895_v42  ;;  %v8199_v53 = vpop.f32.mrf.mxu0  ;;  %v11241_v31 = vmul.f32 0.25, %v4821_v20 }
 0xa2f   : > { %v4917_v45 = vmax.f32 %v4915_v10, %v4916_v37  ;;  %v8209_v25 = vpop.f32.mrf.mxu1  ;;  %v4926_v36 = vsel %vm778_vm0, %v11237_v5, -inf  ;;  %v11257_v7 = vmul.f32 0.25, %v8199_v53  ;;  %v4929_v37 = vsel %vm778_vm0, %v11245_v21, -inf }
 0xa30   : > { %v4898_v61 = vmax.f32 %v4896_v52, %v4897_v63  ;;  %v4747_v12 = vpop.f32.mrf.mxu0  ;;  %v4947_v17 = vsel %vm778_vm0, %v11241_v31, -inf  ;;  %v11261_v14 = vmul.f32 0.25, %v8209_v25 }
 0xa31   : > { %v4919_v51 = vmax.f32 %v4917_v45, %v4918_v13  ;;  %v11247_v9 = vmul.f32 0.25, %v4747_v12  ;;  %v4824_v24 = vpop.f32.mrf.mxu1  ;;  %v4950_v45 = vsel %vm778_vm0, %v11249_v35, -inf  ;;  %v4931_v25 = vsel %vm778_vm0, %v11257_v7, -inf }
 0xa32   : > { %v4899_v60 = vrot.slane %v4898_v61, 4  ;;  %v11253_v55 = vmul.f32 0.25, %v4824_v24  ;;  %v8202_v56 = vpop.f32.mrf.mxu0 }
 0xa33   : > { %v4920_v18 = vrot.slane %v4919_v51, 4  ;;  %v4927_v59 = vsel %vm778_vm0, %v11247_v9, -inf  ;;  %v8212_v16 = vpop.f32.mrf.mxu1 }
 0xa34   : > { %v4900_v48 = vmax.f32 %v4898_v61, %v4899_v60  ;;  %v4928_v46 = vmax.f32 %v4926_v36, %v4927_v59  ;;  %v4948_v42 = vsel %vm778_vm0, %v11253_v55, -inf  ;;  %v4760_v10 = vpop.f32.mrf.mxu0 }
 0xa35   : > { %v4921_v20 = vmax.f32 %v4919_v51, %v4920_v18  ;;  %v4949_v52 = vmax.f32 %v4947_v17, %v4948_v42  ;;  %v4837_v63 = vpop.f32.mrf.mxu1  ;;  %v4952_v51 = vsel %vm778_vm0, %v11261_v14, -inf  ;;  %v11273_v18 = vmul.f32 0.25, %v4760_v10 }
 0xa36   : > { %v4901_v53 = vrot.slane %v4900_v48, 2  ;;  %v4930_v13 = vmax.f32 %v4928_v46, %v4929_v37  ;;  %v8203_v12 = vpop.f32.mrf.mxu0  ;;  %v11275_v17 = vmul.f32 0.25, %v4837_v63 }
 0xa37   : > { %v4922_v61 = vrot.slane %v4921_v20, 2  ;;  %v4951_v24 = vmax.f32 %v4949_v52, %v4950_v45  ;;  %v8213_v60 = vpop.f32.mrf.mxu1  ;;  %v4933_v10 = vsel %vm778_vm0, %v11273_v18, -inf }
 0xa38   : > { %v4902_v36 = vmax.f32 %v4900_v48, %v4901_v53  ;;  %v4763_v59 = vpop.f32.mrf.mxu0  ;;  %v4932_v8 = vmax.f32 %v4930_v13, %v4931_v25  ;;  %v11281_v48 = vmul.f32 0.25, %v8202_v56  ;;  %v4954_v63 = vsel %vm778_vm0, %v11275_v17, -inf }
 0xa39   : > { %v4923_v42 = vmax.f32 %v4921_v20, %v4922_v61  ;;  %v4953_v32 = vmax.f32 %v4951_v24, %v4952_v51  ;;  %v4840_v46 = vpop.f32.mrf.mxu1  ;;  %v11277_v29 = vmul.f32 0.25, %v4763_v59  ;;  %v11289_v20 = vmul.f32 0.25, %v8212_v16 }
 0xa3a   : > { %v4903_v37 = vrot.slane %v4902_v36, 1  ;;  %v11279_v3 = vmul.f32 0.25, %v4840_v46  ;;  %v4934_v45 = vmax.f32 %v4932_v8, %v4933_v10 }
 0xa3b   : > { %v4924_v11 = vrot.slane %v4923_v42, 1  ;;  %v4955_v13 = vmax.f32 %v4953_v32, %v4954_v63  ;;  %v11313_v63 = vmul.f32 0.25, %v8213_v60 }
 0xa3c   : > { %v4904_v52 = vmax.f32 %v4902_v36, %v4903_v37  ;;  %v4956_v16 = vsel %vm778_vm0, %v11279_v3, -inf }
 0xa3d   : > { %v11287_v53 = vmax.f32 %v4923_v42, %v4924_v11  ;;  %v4935_v11 = vsel %vm778_vm0, %v11277_v29, -inf  ;;  %v4957_v10 = vmax.f32 %v4955_v13, %v4956_v16 }
 0xa3e   : > { %v4968_v61 = vsub.f32 %v11181_v54, %v4904_v52  ;;  %v4969_v25 = vsub.f32 %v11177_v62, %v4904_v52  ;;  %v4970_v24 = vsub.f32 %v11189_v41, %v4904_v52  ;;  %v4971_v56 = vsub.f32 %v11199_v15, %v4904_v52 }
 0xa3f   : > { %v4972_v36 = vsub.f32 %v11205_v44, %v4904_v52  ;;  %v4973_v51 = vsub.f32 %v11219_v22, %v4904_v52  ;;  %v4974_v32 = vsub.f32 %v11217_v47, %v4904_v52  ;;  %v4975_v62 = vsub.f32 %v11225_v0, %v4904_v52 }
 0xa40   : > { %v5000_v8 = vmul.f32 1.442695, %v4968_v61  ;;  %v5002_v54 = vmul.f32 1.442695, %v4969_v25  ;;  %v5004_v59 = vmul.f32 1.442695, %v4970_v24  ;;  %v4976_v42 = vsub.f32 %v11183_v28, %v11287_v53 }
 0xa41   : > { %v5006_v41 = vmul.f32 1.442695, %v4971_v56  ;;  %v4937_v15 = vsel %vm778_vm0, %v11281_v48, -inf  ;;  %v11305_v44 = vmul.f32 0.25, %v8203_v12  ;;  %v5008_v22 = vmul.f32 1.442695, %v4972_v36 }
 0xa42   : > { %8784 = vpow2.f32 %v5000_v8  ;;  %v4936_v46 = vmax.f32 %v4934_v45, %v4935_v11  ;;  %v5010_v37 = vmul.f32 1.442695, %v4973_v51  ;;  %v4977_v47 = vsub.f32 %v11179_v38, %v11287_v53 }
 0xa43   : > { %8786 = vpow2.f32 %v5002_v54  ;;  %v5012_v0 = vmul.f32 1.442695, %v4974_v32  ;;  %v4978_v52 = vsub.f32 %v11193_v30, %v11287_v53  ;;  %v5014_v12 = vmul.f32 1.442695, %v4975_v62 }
 0xa44   : > { %8788 = vpow2.f32 %v5004_v59  ;;  %v4979_v61 = vsub.f32 %v11203_v2, %v11287_v53  ;;  %v4958_v28 = vsel %vm778_vm0, %v11289_v20, -inf  ;;  %v4980_v38 = vsub.f32 %v11207_v49, %v11287_v53 }
 0xa45   : > { %8790 = vpow2.f32 %v5006_v41  ;;  %v5016_v45 = vmul.f32 1.442695, %v4976_v42  ;;  %v4939_v13 = vsel %vm778_vm0, %v11305_v44, -inf  ;;  %v5018_v30 = vmul.f32 1.442695, %v4977_v47 }
 0xa46   : > { %8792 = vpow2.f32 %v5008_v22  ;;  %v4938_v60 = vmax.f32 %v4936_v46, %v4937_v15  ;;  %v4959_v25 = vmax.f32 %v4957_v10, %v4958_v28  ;;  %v4981_v24 = vsub.f32 %v11223_v39, %v11287_v53 }
 0xa47   : > { %8794 = vpow2.f32 %v5010_v37  ;;  %v5020_v2 = vmul.f32 1.442695, %v4978_v52  ;;  %v4960_v56 = vsel %vm778_vm0, %v11313_v63, -inf  ;;  %v5022_v36 = vmul.f32 1.442695, %v4979_v61 }
 0xa48   : > { %8796 = vpow2.f32 %v5012_v0  ;;  %v4940_v51 = vmax.f32 %v4938_v60, %v4939_v13  ;;  %v4961_v49 = vmax.f32 %v4959_v25, %v4960_v56  ;;  %v4982_v11 = vsub.f32 %v11221_v19, %v11287_v53 }
 0xa49   : > { %8798 = vpow2.f32 %v5014_v12  ;;  %v4983_v16 = vsub.f32 %v11229_v50, %v11287_v53  ;;  %v5024_v32 = vmul.f32 1.442695, %v4980_v38  ;;  %v5026_v39 = vmul.f32 1.442695, %v4981_v24 }
 0xa4a   : > { %8800 = vpow2.f32 %v5016_v45  ;;  %v4941_v8 = vrot.slane %v4940_v51, 4  ;;  %v4962_v54 = vrot.slane %v4961_v49, 4  ;;  %v5028_v41 = vmul.f32 1.442695, %v4982_v11 }
 0xa4b   : > { %8802 = vpow2.f32 %v5018_v30  ;;  %v5030_v22 = vmul.f32 1.442695, %v4983_v16 }
 0xa4c   : > { %8804 = vpow2.f32 %v5020_v2  ;;  %v4942_v59 = vmax.f32 %v4940_v51, %v4941_v8  ;;  %v4963_v62 = vmax.f32 %v4961_v49, %v4962_v54 }
 0xa4d   : > { %8806 = vpow2.f32 %v5022_v36 }
 0xa4e   : > { %8808 = vpow2.f32 %v5024_v32  ;;  %v4943_v42 = vrot.slane %v4942_v59, 2  ;;  %v4964_v19 = vrot.slane %v4963_v62, 2 }
 0xa4f   : > { %v11331_v15 = vpop.eup %8784  ;;  %8810 = vpow2.f32 %v5026_v39 }
 0xa50   : > { %v11333_v46 = vpop.eup %8786  ;;  %v5064_v50 = vsel %vm778_vm0, %v11331_v15, 0.0  ;;  %v4944_v47 = vmax.f32 %v4942_v59, %v4943_v42  ;;  %v4965_v10 = vmax.f32 %v4963_v62, %v4964_v19  ;;  %8812 = vpow2.f32 %v5028_v41 }
 0xa51   : > { %v11337_v53 = vpop.eup %8788  ;;  %v5065_v37 = vsel %vm778_vm0, %v11333_v46, 0.0  ;;  %8814 = vpow2.f32 %v5030_v22 }
 0xa52   : > { %v11341_v0 = vpop.eup %8790  ;;  %v5066_v52 = vadd.f32 %v5065_v37, %v5064_v50  ;;  %v5067_v61 = vsel %vm778_vm0, %v11337_v53, 0.0  ;;  %v4945_v28 = vrot.slane %v4944_v47, 1  ;;  %v4966_v13 = vrot.slane %v4965_v10, 1 }
 0xa53   : > { %v11343_v12 = vpop.eup %8792  ;;  %v5069_v60 = vsel %vm778_vm0, %v11341_v0, 0.0 }
 0xa54   : > { %v11347_v38 = vpop.eup %8794  ;;  %v5068_v45 = vadd.f32 %v5067_v61, %v5066_v52  ;;  %v4946_v25 = vmax.f32 %v4944_v47, %v4945_v28  ;;  %v5071_v56 = vsel %vm778_vm0, %v11343_v12, 0.0  ;;  %v11370_v59 = vmax.f32 %v4965_v10, %v4966_v13 }
 0xa55   : > { %v11349_v30 = vpop.eup %8796  ;;  %v5073_v51 = vsel %vm778_vm0, %v11347_v38, 0.0 }
 0xa56   : > { %v11353_v24 = vpop.eup %8798  ;;  %v5070_v2 = vadd.f32 %v5069_v60, %v5068_v45  ;;  %v4984_v49 = vsub.f32 %v11237_v5, %v4946_v25  ;;  %v4985_v11 = vsub.f32 %v11247_v9, %v4946_v25  ;;  %v4986_v16 = vsub.f32 %v11245_v21, %v4946_v25 }
 0xa57   : > { %v11357_v36 = vpop.eup %8800  ;;  %v5075_v54 = vsel %vm778_vm0, %v11349_v30, 0.0  ;;  %v5077_v5 = vsel %vm778_vm0, %v11353_v24, 0.0  ;;  %v4987_v21 = vsub.f32 %v11257_v7, %v4946_v25  ;;  %v4988_v41 = vsub.f32 %v11273_v18, %v4946_v25 }
 0xa58   : > { %v11364_v32 = vpop.eup %8802  ;;  %v5072_v8 = vadd.f32 %v5071_v56, %v5070_v2  ;;  %v5085_v39 = vsel %vm778_vm0, %v11357_v36, 0.0  ;;  %v4989_v50 = vsub.f32 %v11277_v29, %v4946_v25  ;;  %v5032_v37 = vmul.f32 1.442695, %v4984_v49 }
 0xa59   : > { %v11372_v62 = vpop.eup %8804  ;;  %v5086_v9 = vsel %vm778_vm0, %v11364_v32, 0.0  ;;  %v4990_v10 = vsub.f32 %v11281_v48, %v4946_v25  ;;  %v5034_v52 = vmul.f32 1.442695, %v4985_v11  ;;  %v5036_v61 = vmul.f32 1.442695, %v4986_v16 }
 0xa5a   : > { %v11380_v22 = vpop.eup %8806  ;;  %v5074_v42 = vadd.f32 %v5073_v51, %v5072_v8  ;;  %v5087_v19 = vadd.f32 %v5086_v9, %v5085_v39  ;;  %v5088_v47 = vsel %vm778_vm0, %v11372_v62, 0.0  ;;  %v4991_v18 = vsub.f32 %v11305_v44, %v4946_v25 }
 0xa5b   : > { %v11386_v28 = vpop.eup %8808  ;;  %8816 = vpow2.f32 %v5032_v37  ;;  %v5090_v29 = vsel %vm778_vm0, %v11380_v22, 0.0  ;;  %v5038_v60 = vmul.f32 1.442695, %v4987_v21  ;;  %v5040_v2 = vmul.f32 1.442695, %v4988_v41 }
 0xa5c   : > { %v5076_v45 = vadd.f32 %v5075_v54, %v5074_v42  ;;  %v5089_v7 = vadd.f32 %v5088_v47, %v5087_v19  ;;  %v11389_v13 = vpop.eup %8810  ;;  %8818 = vpow2.f32 %v5034_v52  ;;  %v4992_v48 = vsub.f32 %v11241_v31, %v11370_v59 }
 0xa5d   : > { %8820 = vpow2.f32 %v5036_v61  ;;  %v11395_v49 = vpop.eup %8812  ;;  %v5092_v44 = vsel %vm778_vm0, %v11386_v28, 0.0  ;;  %v5042_v25 = vmul.f32 1.442695, %v4989_v50  ;;  %v5044_v11 = vmul.f32 1.442695, %v4990_v10 }
 0xa5e   : > { %v5078_v56 = vadd.f32 %v5077_v5, %v5076_v45  ;;  %v5091_v51 = vadd.f32 %v5090_v29, %v5089_v7  ;;  %8822 = vpow2.f32 %v5038_v60  ;;  %v11399_v16 = vpop.eup %8814  ;;  %v5094_v39 = vsel %vm778_vm0, %v11389_v13, 0.0 }
 0xa5f   : > { %8824 = vpow2.f32 %v5040_v2  ;;  %v5046_v5 = vmul.f32 1.442695, %v4991_v18  ;;  %v4993_v31 = vsub.f32 %v11253_v55, %v11370_v59  ;;  %v4994_v9 = vsub.f32 %v11249_v35, %v11370_v59 }
 0xa60   : > { %v5079_v8 = vrot.slane %v5078_v56, 4  ;;  %v5093_v54 = vadd.f32 %v5092_v44, %v5091_v51  ;;  %v4995_v21 = vsub.f32 %v11261_v14, %v11370_v59  ;;  %8826 = vpow2.f32 %v5042_v25 }
 0xa61   : > { %v5096_v19 = vsel %vm778_vm0, %v11395_v49, 0.0  ;;  %v5098_v50 = vsel %vm778_vm0, %v11399_v16, 0.0  ;;  %8828 = vpow2.f32 %v5044_v11  ;;  %v4996_v37 = vsub.f32 %v11275_v17, %v11370_v59 }
 0xa62   : > { %v5080_v41 = vadd.f32 %v5079_v8, %v5078_v56  ;;  %v5095_v42 = vadd.f32 %v5094_v39, %v5093_v54  ;;  %v5048_v10 = vmul.f32 1.442695, %v4992_v48  ;;  %v5050_v35 = vmul.f32 1.442695, %v4993_v31 }
 0xa63   : > { %8830 = vpow2.f32 %v5046_v5  ;;  %v4997_v14 = vsub.f32 %v11279_v3, %v11370_v59  ;;  %v5052_v52 = vmul.f32 1.442695, %v4994_v9  ;;  %v5054_v61 = vmul.f32 1.442695, %v4995_v21 }
 0xa64   : > { %v5081_v55 = vrot.slane %v5080_v41, 2  ;;  %v5097_v47 = vadd.f32 %v5096_v19, %v5095_v42  ;;  %8832 = vpow2.f32 %v5048_v10  ;;  %v4998_v18 = vsub.f32 %v11289_v20, %v11370_v59 }
 0xa65   : > { %8834 = vpow2.f32 %v5050_v35  ;;  %v5056_v29 = vmul.f32 1.442695, %v4996_v37  ;;  %v4999_v56 = vsub.f32 %v11313_v63, %v11370_v59  ;;  %v5058_v3 = vmul.f32 1.442695, %v4997_v14 }
 0xa66   : > { %v5082_v45 = vadd.f32 %v5081_v55, %v5080_v41  ;;  %v5099_v7 = vadd.f32 %v5098_v50, %v5097_v47  ;;  %8836 = vpow2.f32 %v5052_v52  ;;  %v5060_v8 = vmul.f32 1.442695, %v4998_v18 }
 0xa67   : > { %8838 = vpow2.f32 %v5054_v61  ;;  %v5062_v31 = vmul.f32 1.442695, %v4999_v56 }
 0xa68   : > { %v5083_v60 = vrot.slane %v5082_v45, 1  ;;  %v5100_v17 = vrot.slane %v5099_v7, 4  ;;  %v11419_v2 = vpop.eup %8816  ;;  %8840 = vpow2.f32 %v5056_v29 }
 0xa69   : > { %v11423_v51 = vpop.eup %8818  ;;  %v5106_v25 = vsel %vm778_vm0, %v11419_v2, 0.0 }
 0xa6a   : > { %v5084_v48 = vadd.f32 %v5083_v60, %v5082_v45  ;;  %v5101_v44 = vadd.f32 %v5100_v17, %v5099_v7  ;;  %v11427_v20 = vpop.eup %8820  ;;  %v5107_v11 = vsel %vm778_vm0, %v11423_v51, 0.0 }
 0xa6b   : > { %v11431_v54 = vpop.eup %8822  ;;  %v5108_v59 = vadd.f32 %v5107_v11, %v5106_v25  ;;  %v5109_v5 = vsel %vm778_vm0, %v11427_v20, 0.0 }
 0xa6c   : > { %8842 = vrcp.f32 %v5084_v48  ;;  %v5102_v63 = vrot.slane %v5101_v44, 2  ;;  %v11433_v39 = vpop.eup %8824  ;;  %v5111_v42 = vsel %vm778_vm0, %v11431_v54, 0.0 }
 0xa6d   : > { %8844 = vpow2.f32 %v5058_v3  ;;  %v5110_v21 = vadd.f32 %v5109_v5, %v5108_v59  ;;  %v11437_v41 = vpop.eup %8826  ;;  %v5113_v55 = vsel %vm778_vm0, %v11433_v39, 0.0 }
 0xa6e   : > { %v5103_v9 = vadd.f32 %v5102_v63, %v5101_v44  ;;  %8846 = vpow2.f32 %v5060_v8  ;;  %v11441_v19 = vpop.eup %8828  ;;  %v5115_v52 = vsel %vm778_vm0, %v11437_v41, 0.0 }
 0xa6f   : > { %v5112_v37 = vadd.f32 %v5111_v42, %v5110_v21  ;;  %8848 = vpow2.f32 %v5062_v31  ;;  %v5117_v29 = vsel %vm778_vm0, %v11441_v19, 0.0 }
 0xa70   : > { %v5104_v50 = vrot.slane %v5103_v9, 1  ;;  %v11445_v47 = vpop.eup %8830 }
 0xa71   : > { %v5114_v35 = vadd.f32 %v5113_v55, %v5112_v37  ;;  %v11447_v14 = vpop.eup %8832  ;;  %v5119_v48 = vsel %vm778_vm0, %v11445_v47, 0.0 }
 0xa72   : > { %v5105_v10 = vadd.f32 %v5104_v50, %v5103_v9  ;;  %v11451_v61 = vpop.eup %8834  ;;  %v5127_v7 = vsel %vm778_vm0, %v11447_v14, 0.0 }
 0xa73   : > { %v5116_v45 = vadd.f32 %v5115_v52, %v5114_v35  ;;  %v11455_v18 = vpop.eup %8836  ;;  %v5128_v60 = vsel %vm778_vm0, %v11451_v61, 0.0 }
 0xa74   : > { %8850 = vrcp.f32 %v5105_v10  ;;  %v11461_v17 = vpop.eup %8838  ;;  %v5129_v3 = vadd.f32 %v5128_v60, %v5127_v7  ;;  %v5130_v44 = vsel %vm778_vm0, %v11455_v18, 0.0  ;;  %v4268_v60 = vpop.permute.xlu0 %4267 }
 0xa75   : > { %v5118_v56 = vadd.f32 %v5117_v29, %v5116_v45  ;;  %v11467_v25 = vpop.eup %8840  ;;  %v5132_v59 = vsel %vm778_vm0, %v11461_v17, 0.0 }
 0xa76   : > { %v5131_v8 = vadd.f32 %v5130_v44, %v5129_v3  ;;  %v5134_v50 = vsel %vm778_vm0, %v11467_v25, 0.0 }
 0xa77   : > { %v5120_v11 = vadd.f32 %v5119_v48, %v5118_v56 }
 0xa78   : > { %v5133_v9 = vadd.f32 %v5132_v59, %v5131_v8 }
 0xa79   : > { %v8843_v63 = vpop.eup %8842  ;;  %v5121_v31 = vrot.slane %v5120_v11, 4 }
 0xa7a   : > { %v11471_v5 = vpop.eup %8844  ;;  %v5158_v21 = vmul.f32 %v8843_v63, %v11349_v30  ;;  %v5159_v42 = vmul.f32 %v8843_v63, %v11353_v24  ;;  %v5156_v37 = vmul.f32 %v8843_v63, %v11343_v12  ;;  %v5135_v35 = vadd.f32 %v5134_v50, %v5133_v9 }
 0xa7b   : > { %v11478_v55 = vpop.eup %8846  ;;  %v5122_v10 = vadd.f32 %v5121_v31, %v5120_v11  ;;  %v5157_v45 = vmul.f32 %v8843_v63, %v11347_v38  ;;  %v5136_v7 = vsel %vm778_vm0, %v11471_v5, 0.0  ;;  %v5152_v29 = vmul.f32 %v8843_v63, %v11331_v15  ;;  %v4273_v11 = vpop.permute.xlu1 %4272 }
 0xa7c   : > { %v5187_v52 = vpack.c.bf16 %v5159_v42, %v5158_v21  ;;  %v5153_v30 = vmul.f32 %v8843_v63, %v11333_v46  ;;  %v11485_v24 = vpop.eup %8848  ;;  %v5137_v3 = vadd.f32 %v5136_v7, %v5135_v35  ;;  %v5138_v12 = vsel %vm778_vm0, %v11478_v55, 0.0 }
 0xa7d   : > { %v5123_v56 = vrot.slane %v5122_v10, 2  ;;  %v5154_v38 = vmul.f32 %v8843_v63, %v11337_v53  ;;  %v5155_v48 = vmul.f32 %v8843_v63, %v11341_v0  ;;  %v5186_v46 = vpack.c.bf16 %v5157_v45, %v5156_v37 }
 0xa7e   : > { %8215 = vmatpush3.bf16.msra.mxu0 %v5187_v52  ;;  %v5184_v44 = vpack.c.bf16 %v5153_v30, %v5152_v29  ;;  %v5139_v8 = vadd.f32 %v5138_v12, %v5137_v3  ;;  %v5140_v31 = vsel %vm778_vm0, %v11485_v24, 0.0 }
 0xa7f   : > { %8216 = vmatprep.subr.bf16.mxu0 %v12437_v34  ;;  %v5124_v15 = vadd.f32 %v5123_v56, %v5122_v10  ;;  %v5185_v63 = vpack.c.bf16 %v5155_v48, %v5154_v38  ;;  %v4258_v10 = vpop.permute.xlu0 %4257  ;;  %v4263_v29 = vpop.permute.xlu1 %4262 }
 0xa80   : > { %v5141_v21 = vadd.f32 %v5140_v31, %v5139_v8 }
 0xa81   : > { %v8851_v59 = vpop.eup %8850  ;;  %v5125_v9 = vrot.slane %v5124_v15, 1 }
 0xa82   : > { %v5166_v42 = vmul.f32 %v8851_v59, %v11395_v49  ;;  %v5167_v50 = vmul.f32 %v8851_v59, %v11399_v16  ;;  %8217 = vmatpush3.bf16.msra.mxu0 %v5186_v46  ;;  %v5164_v53 = vmul.f32 %v8851_v59, %v11386_v28  ;;  %v5165_v0 = vmul.f32 %v8851_v59, %v11389_v13 }
 0xa83   : > { %8218 = vmatprep.subr.bf16.mxu0 %v12437_v34  ;;  %v5126_v37 = vadd.f32 %v5125_v9, %v5124_v15  ;;  %v5142_v35 = vrot.slane %v5141_v21, 4  ;;  %v5160_v45 = vmul.f32 %v8851_v59, %v11357_v36  ;;  %v5161_v7 = vmul.f32 %v8851_v59, %v11364_v32  ;;  %v4288_v31 = vpop.permute.xlu0 %4287 }
 0xa84   : > { %v5191_v52 = vpack.c.bf16 %v5167_v50, %v5166_v42  ;;  %v4362_v28 = vadd.f32 %v11163_v33, %v4258_v10  ;;  %v5190_v30 = vpack.c.bf16 %v5165_v0, %v5164_v53  ;;  %v5162_v56 = vmul.f32 %v8851_v59, %v11372_v62 }
 0xa85   : > { %8852 = vrcp.f32 %v5126_v37  ;;  %v5143_v49 = vadd.f32 %v5142_v35, %v5141_v21  ;;  %v5188_v13 = vpack.c.bf16 %v5161_v7, %v5160_v45  ;;  %v5163_v36 = vmul.f32 %v8851_v59, %v11380_v22 }
 0xa86   : > { %8227 = vmatpush3.bf16.msra.mxu1 %v5191_v52  ;;  %8219 = vmatpush3.bf16.msra.mxu0 %v5185_v63  ;;  %v4365_v32 = vadd.f32 %v11167_v58, %v4263_v29  ;;  %v4370_v62 = vadd.f32 %v11161_v57, %v4268_v60  ;;  %v4373_v58 = vadd.f32 %v11165_v27, %v4273_v11 }
 0xa87   : > { %8228 = vmatprep.subr.bf16.mxu1 %v12437_v34  ;;  %8220 = vmatprep.subr.bf16.mxu0 %v12437_v34  ;;  %v5144_v16 = vrot.slane %v5143_v49, 2  ;;  %v5189_v38 = vpack.c.bf16 %v5163_v36, %v5162_v56 }
 0xa88   : > { %v4396_v12 = vpack.c.bf16 %v4365_v32, %v4362_v28 }
 0xa89   : > { %v5145_v3 = vadd.f32 %v5144_v16, %v5143_v49 }
 0xa8a   : > { %8229 = vmatpush3.bf16.msra.mxu1 %v5190_v30  ;;  %8221 = vmatpush3.bf16.msra.mxu0 %v5184_v44  ;;  %v4397_v44 = vpack.c.bf16 %v4373_v58, %v4370_v62  ;;  %v8607_v62 = vld [vmem:[%s12272_s10 + $0x28] sm:$0xff]   ;;  %v8608_v58 = vld [vmem:[%s12272_s10 + $0x30] sm:$0xff]  }
 0xa8b   : > { %8230 = vmatprep.subr.bf16.mxu1 %v12437_v34  ;;  %8238 = vmatprep.subr.bf16.mxu0 %v12437_v34  ;;  %v5146_v33 = vrot.slane %v5145_v3, 1 }
 0xa8d   : > { %8223 = vmatmul.mubr.msk.bf16.vlgmr.msra.gmra.mxu0 %vm778_vm0, %v4396_v12  ;;  %v5147_v48 = vadd.f32 %v5146_v33, %v5145_v3 }
 0xa8e   : > { %8231 = vmatpush3.bf16.msra.mxu1 %v5189_v38  ;;  %8246 = vmatprep.mubr.msk.bf16.mxu0 %vm9006_vm2, %v12437_v34 }
 0xa8f   : > { %8232 = vmatprep.subr.bf16.mxu1 %v12437_v34  ;;  %8854 = vrcp.f32 %v5147_v48 }
 0xa92   : > { %8233 = vmatpush3.bf16.msra.mxu1 %v5188_v13  ;;  %v8853_v22 = vpop.eup %8852 }
 0xa93   : > { %8250 = vmatprep.subr.bf16.mxu1 %v12437_v34  ;;  %v5174_v15 = vmul.f32 %v8853_v22, %v11441_v19  ;;  %v5175_v8 = vmul.f32 %v8853_v22, %v11445_v47  ;;  %v5168_v46 = vmul.f32 %v8853_v22, %v11419_v2  ;;  %v5169_v57 = vmul.f32 %v8853_v22, %v11423_v51  ;;  %v4293_v19 = vpop.permute.xlu1 %4292 }
 0xa94   : > { %v5172_v59 = vmul.f32 %v8853_v22, %v11433_v39  ;;  %v5173_v27 = vmul.f32 %v8853_v22, %v11437_v41  ;;  %v5170_v9 = vmul.f32 %v8853_v22, %v11427_v20  ;;  %v5171_v2 = vmul.f32 %v8853_v22, %v11431_v54  ;;  %v4278_v39 = vpop.permute.xlu0 %4277  ;;  %v8609_v22 = vld [vmem:[%s12272_s10 + $0x38] sm:$0xff]  }
 0xa95   : > { %8235 = vmatmul.mubr.msk.bf16.vlgmr.msra.gmra.mxu1 %vm778_vm0, %v4397_v44  ;;  %v5195_v60 = vpack.c.bf16 %v5175_v8, %v5174_v15  ;;  %v5192_v11 = vpack.c.bf16 %v5169_v57, %v5168_v46  ;;  %v4378_v10 = vadd.f32 %v11171_v4, %v4278_v39  ;;  %v8610_v44 = vld [vmem:[%s12276_s14 + $0x80] sm:$0xff]  }
 0xa96   : > { %8258 = vmatprep.mubr.msk.bf16.mxu1 %vm9006_vm2, %v12437_v34  ;;  %v5194_v47 = vpack.c.bf16 %v5173_v27, %v5172_v59  ;;  %v5193_v42 = vpack.c.bf16 %v5171_v2, %v5170_v9 }
 0xa97   : > { %8239 = vmatpush3.bf16.msra.mxu0 %v5195_v60  ;;  %v4283_v0 = vpop.permute.xlu1 %4282 }
 0xa98   : > { %8240 = vmatprep.subr.bf16.mxu0 %v12437_v34  ;;  %v5401_v15 = vpop.permute.xlu0 %5400 }
 0xa9b   : > { %8241 = vmatpush3.bf16.msra.mxu0 %v5194_v47  ;;  %v5406_v8 = vpop.permute.xlu1 %5405 }
 0xa9c   : > { %v8855_v51 = vpop.eup %8854  ;;  %8242 = vmatprep.subr.bf16.mxu0 %v12437_v34  ;;  %v5411_v46 = vpop.permute.xlu0 %5410 }
 0xa9d   : > { %v5182_v41 = vmul.f32 %v8855_v51, %v11478_v55  ;;  %v5183_v21 = vmul.f32 %v8855_v51, %v11485_v24  ;;  %v5176_v50 = vmul.f32 %v8855_v51, %v11447_v14  ;;  %v5177_v53 = vmul.f32 %v8855_v51, %v11451_v61 }
 0xa9e   : > { %v5180_v20 = vmul.f32 %v8855_v51, %v11467_v25  ;;  %v5181_v54 = vmul.f32 %v8855_v51, %v11471_v5  ;;  %v4381_v55 = vadd.f32 %v11175_v1, %v4283_v0  ;;  %v5178_v61 = vmul.f32 %v8855_v51, %v11455_v18  ;;  %v8606_v18 = vld [vmem:[%s12272_s10 + $0x20] sm:$0xff]   ;;  %v12438_v0 = vld [vmem:[#allocation19_spill] sm:$0xff] }
 0xa9f   : > { %v5199_v63 = vpack.c.bf16 %v5183_v21, %v5182_v41  ;;  %8243 = vmatpush3.bf16.msra.mxu0 %v5193_v42  ;;  %v5196_v37 = vpack.c.bf16 %v5177_v53, %v5176_v50  ;;  %v5179_v24 = vmul.f32 %v8855_v51, %v11461_v17  ;;  %v4386_v5 = vadd.f32 %v11169_v40, %v4288_v31  ;;  %v5416_v60 = vpop.permute.xlu1 %5415 }
 0xaa0   : > { %8244 = vmatprep.subr.bf16.mxu0 %v12437_v34  ;;  %v5198_v14 = vpack.c.bf16 %v5181_v54, %v5180_v20  ;;  %v4398_v25 = vpack.c.bf16 %v4381_v55, %v4378_v10  ;;  %v4389_v1 = vadd.f32 %v11173_v23, %v4293_v19  ;;  %v5421_v19 = vpop.permute.xlu0 %5420 }
 0xaa1   : > { %8251 = vmatpush3.bf16.msra.mxu1 %v5199_v63  ;;  %v5197_v4 = vpack.c.bf16 %v5179_v24, %v5178_v61  ;;  %v12439_v61 = vld [vmem:[#allocation24_spill] sm:$0xff] }
 0xaa2   : > { %8252 = vmatprep.subr.bf16.mxu1 %v12437_v34  ;;  %v4399_v35 = vpack.c.bf16 %v4389_v1, %v4386_v5 }
 0xaa3   : > { %8245 = vmatpush3.bf16.msra.mxu0 %v5192_v11  ;;  %v5426_v39 = vpop.permute.xlu1 %5425 }
 0xaa4   : > { %v5431_v10 = vpop.permute.xlu0 %5430 }
 0xaa5   : > { %8253 = vmatpush3.bf16.msra.mxu1 %v5198_v14 }
 0xaa6   : > { %8254 = vmatprep.subr.bf16.mxu1 %v12437_v34  ;;  %8247 = vmatmul.mubr.msk.bf16.vlgmr.msra.gmra.mxu0 %vm778_vm0, %v4398_v25 }
 0xaa7   : > { %8270 = vmatprep.mubr.msk.bf16.mxu0 %vm778_vm0, %v8606_v18  ;;  %v5436_v25 = vpop.permute.xlu1 %5435  ;;  %v12440_v18 = vld [vmem:[#allocation26_spill] sm:$0xff] }
 0xaa9   : > { %8255 = vmatpush3.bf16.msra.mxu1 %v5197_v4 }
 0xaaa   : > { %8256 = vmatprep.subr.bf16.mxu1 %v12437_v34 }
 0xaad   : > { %8257 = vmatpush3.bf16.msra.mxu1 %v5196_v37 }
 0xab0   : > { %8259 = vmatmul.mubr.msk.bf16.vlgmr.msra.gmra.mxu1 %vm778_vm0, %v4399_v35 }
 0xab1   : > { %8286 = vmatprep.mubr.msk.bf16.mxu1 %vm778_vm0, %v8610_v44 }
 0xb4d   : > { %v5237_v17 = vpop.f32.mrf.mxu0 }
 0xb4f   : > { %v8224_v52 = vpop.f32.mrf.mxu0 }
 0xb51   : > { %v5240_v45 = vpop.f32.mrf.mxu0 }
 0xb52   : > { %v5376_v48 = vpack.c.bf16 %v5240_v45, %v5237_v17  ;;  %v12441_v45 = vld [vmem:[#allocation21_spill] sm:$0xff] }
 0xb53   : > { %v8225_v7 = vpop.f32.mrf.mxu0 }
 0xb55   : > { %v5281_v29 = vpop.f32.mrf.mxu1 }
 0xb57   : > { %v8236_v40 = vpop.f32.mrf.mxu1 }
 0xb58   : > { %v12442_v40 = vld [vmem:[#allocation25_spill] sm:$0xff] }
 0xb59   : > { %v5284_v49 = vpop.f32.mrf.mxu1 }
 0xb5a   : > { %v5377_v38 = vpack.c.bf16 %v5284_v49, %v5281_v29 }
 0xb5b   : > { %v8237_v28 = vpop.f32.mrf.mxu1 }
 0xb66   : > { %v5325_v13 = vpop.f32.mrf.mxu0 }
 0xb68   : > { %v8248_v23 = vpop.f32.mrf.mxu0 }
 0xb6a   : > { %v5328_v16 = vpop.f32.mrf.mxu0 }
 0xb6b   : > { %v5378_v33 = vpack.c.bf16 %v5328_v16, %v5325_v13 }
 0xb6c   : > { %v8249_v30 = vpop.f32.mrf.mxu0 }
 0xb70   : > { %v5369_v56 = vpop.f32.mrf.mxu1 }
 0xb72   : > { %v8260_v36 = vpop.f32.mrf.mxu1 }
 0xb74   : > { %v5372_v32 = vpop.f32.mrf.mxu1 }
 0xb75   : > { %v5379_v3 = vpack.c.bf16 %v5372_v32, %v5369_v56 }
 0xb76   : > { %v8261_v12 = vpop.f32.mrf.mxu1 }
 0xb77   : > { %8262 = vmatprep.subr.bf16.mxu0 %v5379_v3 }
 0xb78   : > { %8263 = vmatpush3.bf16.msra.mxu0 %v5379_v3 }
 0xb79   : > { %8264 = vmatprep.subr.bf16.mxu0 %v5378_v33 }
 0xb7c   : > { %8265 = vmatpush3.bf16.msra.mxu0 %v5378_v33 }
 0xb7d   : > { %8266 = vmatprep.subr.bf16.mxu0 %v5377_v38 }
 0xb80   : > { %8267 = vmatpush3.bf16.msra.mxu0 %v5377_v38 }
 0xb81   : > { %8268 = vmatprep.subr.bf16.mxu0 %v5376_v48 }
 0xb84   : > { %8269 = vmatpush3.bf16.msra.mxu0 %v5376_v48 }
 0xb87   : > { %8271 = vmatmul.mubr.msk.bf16.vlgmr.msra.gmra.mxu0 %vm778_vm0, %v8607_v62 }
 0xb88   : > { %8274 = vmatprep.mubr.msk.bf16.mxu0 %vm778_vm0, %v8608_v58 }
 0xb8f   : > { %8275 = vmatmul.mubr.msk.bf16.gmra.mxu0 %vm778_vm0, %v8609_v22 }
 0xc47   : > { %v8272_v57 = vpop.f32.mrf.mxu0 }
 0xc48   : > { %v5513_v31 = vadd.f32 %v8272_v57, %v5411_v46 }
 0xc49   : > { %v5504_v59 = vpop.f32.mrf.mxu0 }
 0xc4a   : > { %v5505_v27 = vadd.f32 %v5504_v59, %v5401_v15  ;;  %v5537_v21 = vadd.f32 %v5513_v31, %v10761_v6 }
 0xc4b   : > { %v8273_v11 = vpop.f32.mrf.mxu0 }
 0xc4c   : > { %v5535_v9 = vadd.f32 %v5505_v27, %v10759_v43  ;;  %v5516_v2 = vadd.f32 %v8273_v11, %v5416_v60  ;;  %v5564_v43 = vsel %vm778_vm0, %v5537_v21, 0.0 }
 0xc4d   : > { %v5507_v47 = vpop.f32.mrf.mxu0 }
 0xc4e   : > { %v5508_v51 = vadd.f32 %v5507_v47, %v5406_v8  ;;  %v5561_v53 = vsel %vm778_vm0, %v5535_v9, 0.0  ;;  %v5538_v63 = vadd.f32 %v5516_v2, %v12438_v0 }
 0xc4f   : > { %v8276_v41 = vpop.f32.mrf.mxu0 }
 0xc50   : > { %v5536_v42 = vadd.f32 %v5508_v51, %v10756_v26  ;;  %v5529_v14 = vadd.f32 %v8276_v41, %v5431_v10  ;;  %v5566_v26 = vsel %vm778_vm0, %v5538_v63, 0.0 }
 0xc51   : > { %v5520_v50 = vpop.f32.mrf.mxu0 }
 0xc52   : > { %v5562_v20 = vsel %vm778_vm0, %v5536_v42, 0.0  ;;  %v5521_v54 = vadd.f32 %v5520_v50, %v5421_v19  ;;  %v5541_v17 = vadd.f32 %v5529_v14, %v12440_v18  ;;  %v5664_v14 = vpop.permute.xlu0 %5663 }
 0xc53   : > { %v5563_v37 = vadd.f32 %v5562_v20, %v5561_v53  ;;  %v8277_v55 = vpop.f32.mrf.mxu0 }
 0xc54   : > { %v5539_v24 = vadd.f32 %v5521_v54, %v12439_v61  ;;  %v5532_v5 = vadd.f32 %v8277_v55, %v5436_v25  ;;  %v5572_v23 = vsel %vm778_vm0, %v5541_v17, 0.0 }
 0xc55   : > { %v5565_v6 = vadd.f32 %v5564_v43, %v5563_v37  ;;  %v5523_v4 = vpop.f32.mrf.mxu0  ;;  %v5669_v43 = vpop.permute.xlu1 %5668 }
 0xc56   : > { %v5524_v1 = vadd.f32 %v5523_v4, %v5426_v39  ;;  %v5568_v52 = vsel %vm778_vm0, %v5539_v24, 0.0  ;;  %v5542_v49 = vadd.f32 %v5532_v5, %v12442_v40  ;;  %v5712_v4 = vpop.permute.xlu0 %5711 }
 0xc57   : > { %v5567_v35 = vadd.f32 %v5566_v26, %v5565_v6 }
 0xc58   : > { %v5540_v7 = vadd.f32 %v5524_v1, %v12441_v45  ;;  %v5574_v30 = vsel %vm778_vm0, %v5542_v49, 0.0 }
 0xc59   : > { %v5569_v29 = vadd.f32 %v5568_v52, %v5567_v35  ;;  %v5717_v6 = vpop.permute.xlu1 %5716 }
 0xc5a   : > { %v5570_v28 = vsel %vm778_vm0, %v5540_v7, 0.0  ;;  %v5654_v18 = vpop.permute.xlu0 %5653 }
 0xc5b   : > { %v5571_v13 = vadd.f32 %v5570_v28, %v5569_v29 }
 0xc5d   : > { %v5573_v16 = vadd.f32 %v5572_v23, %v5571_v13  ;;  %v5659_v35 = vpop.permute.xlu1 %5658 }
 0xc5f   : > { %v5575_v56 = vadd.f32 %v5574_v30, %v5573_v16 }
 0xc61   : > { %v5576_v36 = vrot.slane %v5575_v56, 4  ;;  %v5707_v45 = vpop.permute.xlu1 %5706 }
 0xc63   : > { %v5577_v32 = vadd.f32 %v5576_v36, %v5575_v56 }
 0xc65   : > { %v5578_v3 = vrot.slane %v5577_v32, 2  ;;  %v5649_v29 = vpop.permute.xlu1 %5648 }
 0xc67   : > { %v5579_v12 = vadd.f32 %v5578_v3, %v5577_v32 }
 0xc69   : > { %v5580_v33 = vrot.slane %v5579_v12, 1  ;;  %v5697_v28 = vpop.permute.xlu1 %5696 }
 0xc6b   : > { %v5581_v38 = vadd.f32 %v5580_v33, %v5579_v12 }
 0xc6d   : > { %v5582_v48 = vmul.f32 0.015625, %v5581_v38 }
 0xc6f   : > { %v11583_v62 = vsub.f32 %v5535_v9, %v5582_v48  ;;  %v11585_v58 = vsub.f32 %v5536_v42, %v5582_v48  ;;  %v5585_v22 = vsub.f32 %v5537_v21, %v5582_v48  ;;  %v5586_v44 = vsub.f32 %v5538_v63, %v5582_v48 }
 0xc70   : > { %v5587_v15 = vsub.f32 %v5539_v24, %v5582_v48  ;;  %v5588_v60 = vsub.f32 %v5540_v7, %v5582_v48  ;;  %v5589_v19 = vsub.f32 %v5541_v17, %v5582_v48  ;;  %v5590_v51 = vsub.f32 %v5542_v49, %v5582_v48  ;;  %v5702_v7 = vpop.permute.xlu0 %5701 }
 0xc71   : > { %v5591_v8 = vmul.f32 %v11583_v62, %v11583_v62  ;;  %v5592_v46 = vmul.f32 %v11585_v58, %v11585_v58  ;;  %v5593_v57 = vmul.f32 %v5585_v22, %v5585_v22  ;;  %v5594_v59 = vmul.f32 %v5586_v44, %v5586_v44 }
 0xc72   : > { %v5595_v47 = vmul.f32 %v5587_v15, %v5587_v15  ;;  %v5596_v39 = vmul.f32 %v5588_v60, %v5588_v60  ;;  %v5597_v42 = vmul.f32 %v5589_v19, %v5589_v19  ;;  %v5598_v0 = vmul.f32 %v5590_v51, %v5590_v51 }
 0xc73   : > { %v5599_v27 = vsel %vm778_vm0, %v5591_v8, 0.0  ;;  %v5600_v11 = vsel %vm778_vm0, %v5592_v46, 0.0  ;;  %v5602_v9 = vsel %vm778_vm0, %v5593_v57, 0.0  ;;  %v5604_v41 = vsel %vm778_vm0, %v5594_v59, 0.0 }
 0xc74   : > { %v5601_v31 = vadd.f32 %v5600_v11, %v5599_v27  ;;  %v5606_v50 = vsel %vm778_vm0, %v5595_v47, 0.0  ;;  %v5608_v63 = vsel %vm778_vm0, %v5596_v39, 0.0  ;;  %v5610_v54 = vsel %vm778_vm0, %v5597_v42, 0.0  ;;  %v5644_v40 = vpop.permute.xlu0 %5643  ;;  %v8611_v42 = vld [vmem:[%s12276_s14 + $0x88] sm:$0xff]  }
 0xc75   : > { %v5612_v37 = vsel %vm778_vm0, %v5598_v0, 0.0  ;;  %v8614_v0 = vld [vmem:[%s12276_s14 + $0xa0] sm:$0xff]  }
 0xc76   : > { %v5603_v2 = vadd.f32 %v5602_v9, %v5601_v31 }
 0xc78   : > { %v5605_v21 = vadd.f32 %v5604_v41, %v5603_v2  ;;  %v5692_v13 = vpop.permute.xlu0 %5691 }
 0xc7a   : > { %v5607_v53 = vadd.f32 %v5606_v50, %v5605_v21  ;;  %v8612_v50 = vld [vmem:[%s12276_s14 + $0x90] sm:$0xff]  }
 0xc7c   : > { %v5609_v20 = vadd.f32 %v5608_v63, %v5607_v53  ;;  %v8613_v53 = vld [vmem:[%s12276_s14 + $0x98] sm:$0xff]   ;;  %v8615_v63 = vld [vmem:[%s12276_s14 + $0xa8] sm:$0xff]  }
 0xc7e   : > { %v5611_v10 = vadd.f32 %v5610_v54, %v5609_v20  ;;  %v8616_v20 = vld [vmem:[%s12276_s14 + $0xb0] sm:$0xff]   ;;  %v8617_v54 = vld [vmem:[%s12276_s14 + $0xb8] sm:$0xff]  }
 0xc80   : > { %v5613_v55 = vadd.f32 %v5612_v37, %v5611_v10  ;;  %v8618_v10 = vld [vmem:[%s12276_s14 + $0xc0] sm:$0xff]   ;;  %v8619_v37 = vld [vmem:[%s12276_s14 + $0xc8] sm:$0xff]  }
 0xc82   : > { %v5614_v61 = vrot.slane %v5613_v55, 4 }
 0xc84   : > { %v5615_v24 = vadd.f32 %v5614_v61, %v5613_v55  ;;  %v8620_v55 = vld [vmem:[%s12276_s14 + $0xd0] sm:$0xff]   ;;  %v8623_v61 = vld [vmem:[%s12276_s14 + $0xe8] sm:$0xff]  }
 0xc86   : > { %v5616_v25 = vrot.slane %v5615_v24, 2 }
 0xc88   : > { %v5617_v26 = vadd.f32 %v5616_v25, %v5615_v24  ;;  %v8624_v24 = vld [vmem:[%s12276_s14 + $0xf0] sm:$0xff]   ;;  %v8625_v25 = vld [vmem:[%s12276_s14 + $0xf8] sm:$0xff]  }
 0xc8a   : > { %v5618_v5 = vrot.slane %v5617_v26, 1 }
 0xc8c   : > { %v5619_v1 = vadd.f32 %v5618_v5, %v5617_v26 }
 0xc8e   : > { %v5620_v17 = vmul.f32 0.015625, %v5619_v1 }
 0xc90   : > { %v5621_v52 = vadd.f32 1e-05, %v5620_v17 }
 0xc92   : > { %8856 = vrsqrt.f32 %v5621_v52 }
 0xc9f   : > { %v8857_v49 = vpop.eup %8856 }
 0xca0   : > { %v5628_v23 = vmul.f32 %v8857_v49, %v5588_v60  ;;  %v5629_v16 = vmul.f32 %v8857_v49, %v5589_v19  ;;  %v5630_v30 = vmul.f32 %v8857_v49, %v5590_v51  ;;  %v5627_v56 = vmul.f32 %v8857_v49, %v5587_v15 }
 0xca1   : > { %v5625_v36 = vmul.f32 %v8857_v49, %v5585_v22  ;;  %v5626_v32 = vmul.f32 %v8857_v49, %v5586_v44  ;;  %v5623_v46 = vmul.f32 %v8857_v49, %v11583_v62  ;;  %v5624_v57 = vmul.f32 %v8857_v49, %v11585_v58  ;;  %v5639_v22 = vpop.permute.xlu1 %5638  ;;  %v5634_v44 = vpop.permute.xlu0 %5633 }
 0xca2   : > { %v5677_v3 = vmul.f32 %v5664_v14, %v5629_v16  ;;  %v5678_v12 = vmul.f32 %v5669_v43, %v5630_v30  ;;  %v5675_v33 = vmul.f32 %v5654_v18, %v5627_v56  ;;  %v5676_v38 = vmul.f32 %v5659_v35, %v5628_v23  ;;  %v8621_v43 = vld [vmem:[%s12276_s14 + $0xd8] sm:$0xff]   ;;  %v8622_v14 = vld [vmem:[%s12276_s14 + $0xe0] sm:$0xff]  }
 0xca3   : > { %v5673_v48 = vmul.f32 %v5644_v40, %v5625_v36  ;;  %v5674_v8 = vmul.f32 %v5649_v29, %v5626_v32  ;;  %v5671_v31 = vmul.f32 %v5634_v44, %v5623_v46  ;;  %v5672_v47 = vmul.f32 %v5639_v22, %v5624_v57 }
 0xca4   : > { %v11601_v59 = vadd.f32 %v5712_v4, %v5677_v3  ;;  %v11603_v27 = vadd.f32 %v5717_v6, %v5678_v12  ;;  %v11605_v60 = vadd.f32 %v5702_v7, %v5675_v33  ;;  %v11607_v11 = vadd.f32 %v5707_v45, %v5676_v38  ;;  %v8628_v3 = vld [vmem:[%s12278_s16 + $0x44] ss:$8 sps:$4 sm:$0xff]  }
 0xca5   : > { %v11613_v19 = vadd.f32 %v5692_v13, %v5673_v48  ;;  %v11615_v58 = vadd.f32 %v5697_v28, %v5674_v8  ;;  %v5687_v9 = vpop.permute.xlu1 %5686  ;;  %v5682_v2 = vpop.permute.xlu0 %5681  ;;  %6631 = vmatprep.mubr.bf16.mxu0 %v8628_v3 }
 0xca6   : > { %12443 = vst [vmem:[#allocation20_spill] sm:$0xff] %v11601_v59  ;;  %12444 = vst [vmem:[#allocation18_spill] sm:$0xff] %v11603_v27  ;;  %v5730_v15 = vpack.c.bf16 %v11603_v27, %v11601_v59  ;;  %v5729_v62 = vpack.c.bf16 %v11607_v11, %v11605_v60  ;;  %v11619_v39 = vadd.f32 %v5682_v2, %v5671_v31 }
 0xca7   : > { %12445 = vst [vmem:[#allocation15_spill] sm:$0xff] %v11605_v60  ;;  %12446 = vst [vmem:[#allocation17_spill] sm:$0xff] %v11607_v11  ;;  %v5728_v51 = vpack.c.bf16 %v11615_v58, %v11613_v19  ;;  %v11621_v41 = vadd.f32 %v5687_v9, %v5672_v47 }
 0xca8   : > { %8278 = vmatprep.subr.bf16.mxu1 %v5730_v15  ;;  %12447 = vst [vmem:[#allocation14_spill] sm:$0xff] %v11613_v19  ;;  %12448 = vst [vmem:[#allocation16_spill] sm:$0xff] %v11615_v58 }
 0xca9   : > { %8279 = vmatpush3.bf16.msra.mxu1 %v5730_v15  ;;  %12449 = vst [vmem:[#allocation22_spill] sm:$0xff] %v11619_v39  ;;  %12450 = vst [vmem:[#allocation23_spill] sm:$0xff] %v11621_v41  ;;  %v5727_v21 = vpack.c.bf16 %v11621_v41, %v11619_v39  ;;  %v11685_v6 = vpop.permute.xlu0 %5949  ;;  %v11687_v4 = vpop.permute.xlu1 %5954 }
 0xcaa   : > { %8280 = vmatprep.subr.bf16.mxu1 %v5729_v62 }
 0xcad   : > { %8281 = vmatpush3.bf16.msra.mxu1 %v5729_v62  ;;  %v11689_v26 = vpop.permute.xlu0 %5869  ;;  %v11691_v5 = vpop.permute.xlu1 %5874 }
 0xcae   : > { %8282 = vmatprep.subr.bf16.mxu1 %v5728_v51 }
 0xcb1   : > { %8283 = vmatpush3.bf16.msra.mxu1 %v5728_v51  ;;  %v11693_v1 = vpop.permute.xlu0 %5939  ;;  %v11695_v35 = vpop.permute.xlu1 %5944 }
 0xcb2   : > { %8284 = vmatprep.subr.bf16.mxu1 %v5727_v21 }
 0xcb5   : > { %8285 = vmatpush3.bf16.msra.mxu1 %v5727_v21  ;;  %v11697_v18 = vpop.permute.xlu0 %5859  ;;  %v11699_v17 = vpop.permute.xlu1 %5864 }
 0xcb8   : > { %8287 = vmatmul.mubr.msk.bf16.vlgmr.msra.gmra.mxu1 %vm778_vm0, %v8611_v42 }
 0xcb9   : > { %8290 = vmatprep.mubr.msk.bf16.mxu1 %vm778_vm0, %v8612_v50  ;;  %v11701_v52 = vpop.permute.xlu0 %5929  ;;  %v11703_v45 = vpop.permute.xlu1 %5934 }
 0xcbd   : > { %v11705_v7 = vpop.permute.xlu0 %5849  ;;  %v11707_v29 = vpop.permute.xlu1 %5854 }
 0xcc0   : > { %8291 = vmatmul.mubr.msk.bf16.gmra.mxu1 %vm778_vm0, %v8613_v53 }
 0xcc1   : > { %8294 = vmatprep.mubr.msk.bf16.mxu1 %vm778_vm0, %v8614_v0  ;;  %v11709_v40 = vpop.permute.xlu0 %5919  ;;  %v11711_v49 = vpop.permute.xlu1 %5924 }
 0xcc5   : > { %v11713_v28 = vpop.permute.xlu0 %5839  ;;  %v11715_v13 = vpop.permute.xlu1 %5844 }
 0xcc8   : > { %8295 = vmatmul.mubr.msk.bf16.gmra.mxu1 %vm778_vm0, %v8615_v63 }
 0xcc9   : > { %8298 = vmatprep.mubr.msk.bf16.mxu1 %vm778_vm0, %v8616_v20  ;;  %v11717_v23 = vpop.permute.xlu0 %5909  ;;  %v11719_v16 = vpop.permute.xlu1 %5914 }
 0xccd   : > { %v5830_v30 = vpop.permute.xlu0 %5829  ;;  %v5835_v56 = vpop.permute.xlu1 %5834 }
 0xcd0   : > { %8299 = vmatmul.mubr.msk.bf16.gmra.mxu1 %vm778_vm0, %v8617_v54 }
 0xcd1   : > { %8302 = vmatprep.mubr.msk.bf16.mxu1 %vm778_vm0, %v8618_v10  ;;  %v11721_v36 = vpop.permute.xlu0 %5899  ;;  %v11723_v32 = vpop.permute.xlu1 %5904 }
 0xcd5   : > { %v5820_v12 = vpop.permute.xlu0 %5819  ;;  %v5825_v33 = vpop.permute.xlu1 %5824 }
 0xcd8   : > { %8303 = vmatmul.mubr.msk.bf16.gmra.mxu1 %vm778_vm0, %v8619_v37 }
 0xcd9   : > { %8306 = vmatprep.mubr.msk.bf16.mxu1 %vm778_vm0, %v8620_v55  ;;  %v11728_v48 = vpop.permute.xlu0 %5889  ;;  %v11730_v57 = vpop.permute.xlu1 %5894 }
 0xcdd   : > { %v5810_v44 = vpop.permute.xlu0 %5809  ;;  %v5815_v47 = vpop.permute.xlu1 %5814 }
 0xce0   : > { %8307 = vmatmul.mubr.msk.bf16.gmra.mxu1 %vm778_vm0, %v8621_v43 }
 0xce1   : > { %8310 = vmatprep.mubr.msk.bf16.mxu1 %vm778_vm0, %v8622_v14  ;;  %v11735_v51 = vpop.permute.xlu0 %5879  ;;  %v11742_v54 = vpop.permute.xlu1 %5884 }
 0xce5   : > { %v5800_v43 = vpop.permute.xlu0 %5799 }
 0xce8   : > { %8311 = vmatmul.mubr.msk.bf16.gmra.mxu1 %vm778_vm0, %v8623_v61 }
 0xce9   : > { %8314 = vmatprep.mubr.msk.bf16.mxu1 %vm778_vm0, %v8624_v24 }
 0xcf0   : > { %8315 = vmatmul.mubr.msk.bf16.gmra.mxu1 %vm778_vm0, %v8625_v25 }
 0xd78   : > { %v8288_v38 = vpop.f32.mrf.mxu1 }
 0xd79   : > { %v6128_v53 = vadd.f32 %v8288_v38, %v5810_v44 }
 0xd7a   : > { %v6119_v8 = vpop.f32.mrf.mxu1 }
 0xd7b   : > { %v6280_v14 = vmul.f32 0.044715, %v6128_v53  ;;  %v11748_v24 = vadd.f32 %v6119_v8, %v5800_v43 }
 0xd7c   : > { %v8289_v46 = vpop.f32.mrf.mxu1 }
 0xd7d   : > { %v11751_v3 = vadd.f32 %v8289_v46, %v5815_v47 }
 0xd7e   : > { %v6122_v22 = vpop.f32.mrf.mxu1 }
 0xd80   : > { %v8292_v15 = vpop.f32.mrf.mxu1 }
 0xd81   : > { %v11732_v31 = vadd.f32 %v8292_v15, %v5830_v30  ;;  %v6312_v15 = vmul.f32 %v6280_v14, %v6128_v53 }
 0xd82   : > { %v6135_v62 = vpop.f32.mrf.mxu1 }
 0xd83   : > { %v6284_v9 = vmul.f32 0.044715, %v11732_v31  ;;  %v11746_v61 = vadd.f32 %v6135_v62, %v5820_v12  ;;  %v6344_v47 = vmul.f32 %v6312_v15, %v6128_v53 }
 0xd84   : > { %v8293_v2 = vpop.f32.mrf.mxu1 }
 0xd85   : > { %v6316_v21 = vmul.f32 %v6284_v9, %v11732_v31  ;;  %v11738_v42 = vadd.f32 %v8293_v2, %v5835_v56  ;;  %v6282_v9 = vmul.f32 0.044715, %v11746_v61  ;;  %v5805_v2 = vpop.permute.xlu1 %5804  ;;  %v6376_v15 = vadd.f32 %v6344_v47, %v6128_v53 }
 0xd86   : > { %v6138_v50 = vpop.f32.mrf.mxu1  ;;  %v11756_v8 = vadd.f32 %v6122_v22, %v5805_v2 }
 0xd87   : > { %v6348_v0 = vmul.f32 %v6316_v21, %v11732_v31  ;;  %v6285_v63 = vmul.f32 0.044715, %v11738_v42  ;;  %v6278_v21 = vmul.f32 0.044715, %v11748_v24 }
 0xd88   : > { %v8296_v20 = vpop.f32.mrf.mxu1  ;;  %v6279_v22 = vmul.f32 0.044715, %v11756_v8 }
 0xd89   : > { %v6380_v10 = vadd.f32 %v6348_v0, %v11732_v31  ;;  %v6317_v37 = vmul.f32 %v6285_v63, %v11738_v42  ;;  %v6281_v0 = vmul.f32 0.044715, %v11751_v3  ;;  %v11759_v63 = vadd.f32 %v6138_v50, %v5825_v33 }
 0xd8a   : > { %v6151_v55 = vpop.f32.mrf.mxu1  ;;  %v6310_v43 = vmul.f32 %v6278_v21, %v11748_v24 }
 0xd8b   : > { %v6412_v25 = vmul.f32 0.7978846, %v6380_v10  ;;  %v6349_v30 = vmul.f32 %v6317_v37, %v11738_v42  ;;  %v6314_v10 = vmul.f32 %v6282_v9, %v11746_v61  ;;  %v11763_v37 = vadd.f32 %v8296_v20, %v11705_v7 }
 0xd8c   : > { %v8297_v56 = vpop.f32.mrf.mxu1  ;;  %v6283_v33 = vmul.f32 0.044715, %v11759_v63 }
 0xd8d   : > { %8858 = vtanh.f32 %v6412_v25  ;;  %v6381_v38 = vadd.f32 %v6349_v30, %v11738_v42  ;;  %12451 = vst [vmem:[#allocation19_spill] sm:$0xff] %v11763_v37  ;;  %v11767_v14 = vadd.f32 %v8297_v56, %v11707_v29  ;;  %v6313_v30 = vmul.f32 %v6281_v0, %v11751_v3 }
 0xd8e   : > { %v6154_v44 = vpop.f32.mrf.mxu1  ;;  %v6346_v7 = vmul.f32 %v6314_v10, %v11746_v61  ;;  %v6288_v20 = vmul.f32 0.044715, %v11763_v37  ;;  %v6342_v29 = vmul.f32 %v6310_v43, %v11748_v24  ;;  %v11782_v56 = vadd.f32 %v6151_v55, %v11713_v28 }
 0xd8f   : > { %v6413_v12 = vmul.f32 0.7978846, %v6381_v38  ;;  %v6289_v2 = vmul.f32 0.044715, %v11767_v14  ;;  %v6315_v0 = vmul.f32 %v6283_v33, %v11759_v63  ;;  %v11799_v55 = vmul.f32 0.5, %v6128_v53 }
 0xd90   : > { %v8300_v62 = vpop.f32.mrf.mxu1  ;;  %12452 = vst [vmem:[#allocation24_spill] sm:$0xff] %v11782_v56  ;;  %v6378_v10 = vadd.f32 %v6346_v7, %v11746_v61  ;;  %v6320_v43 = vmul.f32 %v6288_v20, %v11763_v37  ;;  %v6252_v20 = vmul.f32 0.5, %v11732_v31 }
 0xd91   : > { %8860 = vtanh.f32 %v6413_v12  ;;  %v11773_v50 = vadd.f32 %v8300_v62, %v11689_v26  ;;  %v6311_v12 = vmul.f32 %v6279_v22, %v11756_v8  ;;  %v11792_v62 = vadd.f32 %v6154_v44, %v11715_v13 }
 0xd92   : > { %v6167_v46 = vpop.f32.mrf.mxu1  ;;  %v6374_v13 = vadd.f32 %v6342_v29, %v11748_v24  ;;  %v6286_v44 = vmul.f32 0.044715, %v11782_v56  ;;  %v6321_v22 = vmul.f32 %v6289_v2, %v11767_v14  ;;  %v6347_v29 = vmul.f32 %v6315_v0, %v11759_v63 }
 0xd93   : > { %v11778_v9 = vadd.f32 %v6167_v46, %v11697_v18  ;;  %12453 = vst [vmem:[#allocation26_spill] sm:$0xff] %v11792_v62  ;;  %v6345_v18 = vmul.f32 %v6313_v30, %v11751_v3  ;;  %v6292_v46 = vmul.f32 0.044715, %v11773_v50  ;;  %v6343_v53 = vmul.f32 %v6311_v12, %v11756_v8 }
 0xd94   : > { %v8301_v25 = vpop.f32.mrf.mxu1  ;;  %v6410_v58 = vmul.f32 0.7978846, %v6378_v10  ;;  %v6352_v12 = vmul.f32 %v6320_v43, %v11763_v37  ;;  %v6353_v31 = vmul.f32 %v6321_v22, %v11767_v14  ;;  %v6379_v43 = vadd.f32 %v6347_v29, %v11759_v63 }
 0xd95   : > { %v11786_v21 = vadd.f32 %v8301_v25, %v11691_v5  ;;  %v6408_v5 = vmul.f32 0.7978846, %v6376_v15  ;;  %v6290_v25 = vmul.f32 0.044715, %v11778_v9  ;;  %v6287_v15 = vmul.f32 0.044715, %v11792_v62 }
 0xd96   : > { %v6170_v38 = vpop.f32.mrf.mxu1  ;;  %v6377_v27 = vadd.f32 %v6345_v18, %v11751_v3  ;;  %v6324_v59 = vmul.f32 %v6292_v46, %v11773_v50  ;;  %v6406_v46 = vmul.f32 0.7978846, %v6374_v13  ;;  %v6375_v41 = vadd.f32 %v6343_v53, %v11756_v8 }
 0xd97   : > { %v6293_v30 = vmul.f32 0.044715, %v11786_v21  ;;  %v11813_v7 = vadd.f32 %v6170_v38, %v11699_v17  ;;  %v6322_v19 = vmul.f32 %v6290_v25, %v11778_v9  ;;  %v6253_v17 = vmul.f32 0.5, %v11738_v42 }
 0xd98   : > { %v11788_v26 = vpop.f32.mrf.mxu1  ;;  %v6318_v38 = vmul.f32 %v6286_v44, %v11782_v56  ;;  %v6356_v25 = vmul.f32 %v6324_v59, %v11773_v50  ;;  %8862 = vtanh.f32 %v6410_v58  ;;  %v6411_v58 = vmul.f32 0.7978846, %v6379_v43 }
 0xd99   : > { %v6325_v18 = vmul.f32 %v6293_v30, %v11786_v21  ;;  %v6291_v10 = vmul.f32 0.044715, %v11813_v7  ;;  %v6409_v30 = vmul.f32 0.7978846, %v6377_v27  ;;  %v6354_v13 = vmul.f32 %v6322_v19, %v11778_v9 }
 0xd9a   : > { %v11797_v28 = vpop.f32.mrf.mxu1  ;;  %v8859_v47 = vpop.eup %8858  ;;  %v6350_v53 = vmul.f32 %v6318_v38, %v11782_v56  ;;  %8864 = vtanh.f32 %v6408_v5  ;;  %v6388_v19 = vadd.f32 %v6356_v25, %v11773_v50  ;;  %v11855_v5 = vmul.f32 0.5, %v11751_v3 }
 0xd9b   : > { %v6476_v11 = vadd.f32 1.0, %v8859_v47  ;;  %v6319_v47 = vmul.f32 %v6287_v15, %v11792_v62  ;;  %v6385_v15 = vadd.f32 %v6353_v31, %v11767_v14  ;;  %v6357_v29 = vmul.f32 %v6325_v18, %v11786_v21 }
 0xd9c   : > { %v11808_v33 = vpop.f32.mrf.mxu1  ;;  %v6323_v27 = vmul.f32 %v6291_v10, %v11813_v7  ;;  %8866 = vtanh.f32 %v6406_v46  ;;  %v6386_v38 = vadd.f32 %v6354_v13, %v11778_v9  ;;  %v11861_v46 = vadd.f32 %v11788_v26, %v11728_v48 }
 0xd9d   : > { %v11834_v44 = vmul.f32 %v6476_v11, %v6252_v20  ;;  %v6407_v11 = vmul.f32 0.7978846, %v6375_v41  ;;  %8868 = vtanh.f32 %v6409_v30  ;;  %v6382_v41 = vadd.f32 %v6350_v53, %v11782_v56 }
 0xd9e   : > { %v11819_v2 = vpop.f32.mrf.mxu1  ;;  %v8861_v60 = vpop.eup %8860  ;;  %v6417_v31 = vmul.f32 0.7978846, %v6385_v15  ;;  %v6389_v18 = vadd.f32 %v6357_v29, %v11786_v21  ;;  %v6355_v10 = vmul.f32 %v6323_v27, %v11813_v7  ;;  %v11866_v43 = vmul.f32 0.5, %v11756_v8 }
 0xd9f   : > { %v6477_v39 = vadd.f32 1.0, %v8861_v60  ;;  %12454 = vst [vmem:[#allocation21_spill] sm:$0xff] %v11834_v44  ;;  %v6384_v60 = vadd.f32 %v6352_v12, %v11763_v37  ;;  %v11851_v12 = vmul.f32 0.5, %v11748_v24  ;;  %8870 = vtanh.f32 %v6407_v11 }
 0xda0   : > { %v8308_v0 = vpop.f32.mrf.mxu1  ;;  %8872 = vtanh.f32 %v6411_v58  ;;  %v6420_v3 = vmul.f32 0.7978846, %v6388_v19  ;;  %v6418_v48 = vmul.f32 0.7978846, %v6386_v38  ;;  %v11876_v26 = vadd.f32 %v11808_v33, %v11730_v57 }
 0xda1   : > { %v11836_v22 = vmul.f32 %v6477_v39, %v6253_v17  ;;  %v6351_v39 = vmul.f32 %v6319_v47, %v11792_v62  ;;  %v6416_v17 = vmul.f32 0.7978846, %v6384_v60  ;;  %v11872_v60 = vmul.f32 0.5, %v11746_v61 }
 0xda2   : > { %v11832_v42 = vpop.f32.mrf.mxu1  ;;  %v11879_v13 = vmul.f32 0.5, %v11759_v63  ;;  %v11881_v8 = vmul.f32 0.7978846, %v6382_v41  ;;  %v6421_v53 = vmul.f32 0.7978846, %v6389_v18  ;;  %v6387_v61 = vadd.f32 %v6355_v10, %v11813_v7 }
 0xda3   : > { %12455 = vst [vmem:[#allocation25_spill] sm:$0xff] %v11836_v22  ;;  %v6383_v24 = vadd.f32 %v6351_v39, %v11792_v62  ;;  %8874 = vtanh.f32 %v6416_v17  ;;  %v11889_v11 = vadd.f32 %v11797_v28, %v11735_v51  ;;  %v11895_v63 = vadd.f32 %v8308_v0, %v11717_v23 }
 0xda4   : > { %v8309_v34 = vpop.f32.mrf.mxu1  ;;  %8876 = vtanh.f32 %v6417_v31  ;;  %v6297_v58 = vmul.f32 0.044715, %v11876_v26  ;;  %v11911_v23 = vadd.f32 %v11819_v2, %v11742_v54  ;;  %v6419_v17 = vmul.f32 0.7978846, %v6387_v61 }
 0xda5   : > { %v11884_v29 = vmul.f32 0.7978846, %v6383_v24  ;;  %8878 = vtanh.f32 %v6420_v3  ;;  %v6300_v18 = vmul.f32 0.044715, %v11895_v63  ;;  %v11926_v54 = vadd.f32 %v11832_v42, %v11721_v36 }
 0xda6   : > { %v11848_v20 = vpop.f32.mrf.mxu1  ;;  %8880 = vtanh.f32 %v6418_v48  ;;  %v11933_v24 = vmul.f32 %v6297_v58, %v11876_v26 }
 0xda7   : > { %8882 = vtanh.f32 %v6421_v53  ;;  %v11944_v42 = vadd.f32 %v11848_v20, %v11723_v32  ;;  %v6298_v32 = vmul.f32 0.044715, %v11926_v54 }
 0xda8   : > { %v8312_v47 = vpop.f32.mrf.mxu1  ;;  %8884 = vtanh.f32 %v6419_v17 }
 0xda9   : > { %v11869_v25 = vadd.f32 %v8312_v47, %v11701_v52  ;;  %v6296_v52 = vmul.f32 0.044715, %v11861_v46 }
 0xdaa   : > { %v6215_v30 = vpop.f32.mrf.mxu1 }
 0xdab   : > { %v6304_v33 = vmul.f32 0.044715, %v11869_v25  ;;  %v11899_v39 = vadd.f32 %v6215_v30, %v11709_v40  ;;  %v11907_v28 = vmul.f32 %v6296_v52, %v11861_v46  ;;  %v11914_v40 = vadd.f32 %v8309_v34, %v11719_v16 }
 0xdac   : > { %v8313_v15 = vpop.f32.mrf.mxu1 }
 0xdad   : > { %v11892_v57 = vadd.f32 %v8313_v15, %v11703_v45  ;;  %v8863_v45 = vpop.eup %8862  ;;  %v6336_v34 = vmul.f32 %v6304_v33, %v11869_v25  ;;  %v6302_v16 = vmul.f32 0.044715, %v11899_v39  ;;  %v6301_v36 = vmul.f32 0.044715, %v11914_v40 }
 0xdae   : > { %v6218_v27 = vpop.f32.mrf.mxu1  ;;  %v11921_v31 = vpop.eup %8864  ;;  %v6474_v3 = vadd.f32 1.0, %v8863_v45 }
 0xdaf   : > { %v6305_v19 = vmul.f32 0.044715, %v11892_v57  ;;  %v11904_v51 = vadd.f32 %v6218_v27, %v11711_v49  ;;  %v11930_v47 = vpop.eup %8866  ;;  %v6332_v27 = vmul.f32 %v6300_v18, %v11895_v63  ;;  %v6368_v20 = vmul.f32 %v6336_v34, %v11869_v25 }
 0xdb0   : > { %v8316_v0 = vpop.f32.mrf.mxu1  ;;  %v11939_v30 = vpop.eup %8868  ;;  %v6334_v58 = vmul.f32 %v6302_v16, %v11899_v39  ;;  %v6333_v18 = vmul.f32 %v6301_v36, %v11914_v40 }
 0xdb1   : > { %v6337_v38 = vmul.f32 %v6305_v19, %v11892_v57  ;;  %v6303_v41 = vmul.f32 0.044715, %v11904_v51  ;;  %v11919_v49 = vadd.f32 %v8316_v0, %v11685_v6  ;;  %v11953_v33 = vpop.eup %8870  ;;  %v6400_v59 = vadd.f32 %v6368_v20, %v11869_v25 }
 0xdb2   : > { %v6231_v2 = vpop.f32.mrf.mxu1  ;;  %v8873_v45 = vpop.eup %8872  ;;  %v6366_v36 = vmul.f32 %v6334_v58, %v11899_v39  ;;  %v6365_v62 = vmul.f32 %v6333_v18, %v11914_v40 }
 0xdb3   : > { %v6308_v6 = vmul.f32 0.044715, %v11919_v49  ;;  %v11937_v10 = vadd.f32 %v6231_v2, %v11693_v1  ;;  %v6369_v48 = vmul.f32 %v6337_v38, %v11892_v57  ;;  %v6335_v53 = vmul.f32 %v6303_v41, %v11904_v51  ;;  %v11965_v41 = vpop.eup %8874 }
 0xdb4   : > { %v8317_v52 = vpop.f32.mrf.mxu1  ;;  %v6299_v2 = vmul.f32 0.044715, %v11944_v42  ;;  %v6475_v44 = vadd.f32 1.0, %v8873_v45 }
 0xdb5   : > { %v6340_v15 = vmul.f32 %v6308_v6, %v11919_v49  ;;  %v6306_v1 = vmul.f32 0.044715, %v11937_v10  ;;  %v11951_v61 = vadd.f32 %v8317_v52, %v11687_v4  ;;  %v6367_v34 = vmul.f32 %v6335_v53, %v11904_v51  ;;  %v11971_v6 = vpop.eup %8876 }
 0xdb6   : > { %v6234_v19 = vpop.f32.mrf.mxu1  ;;  %v6401_v16 = vadd.f32 %v6369_v48, %v11892_v57  ;;  %v8879_v53 = vpop.eup %8878  ;;  %v11995_v18 = vmul.f32 %v6475_v44, %v11879_v13  ;;  %v6397_v44 = vadd.f32 %v6365_v62, %v11914_v40 }
 0xdb7   : > { %v6372_v0 = vmul.f32 %v6340_v15, %v11919_v49  ;;  %v6338_v17 = vmul.f32 %v6306_v1, %v11937_v10  ;;  %v6309_v38 = vmul.f32 0.044715, %v11951_v61  ;;  %v11963_v4 = vadd.f32 %v6234_v19, %v11695_v35 }
 0xdb8   : > { %v6364_v19 = vmul.f32 %v6332_v27, %v11895_v63  ;;  %v6433_v27 = vmul.f32 0.7978846, %v6401_v16  ;;  %v6399_v58 = vadd.f32 %v6367_v34, %v11904_v51  ;;  %v6398_v34 = vadd.f32 %v6366_v36, %v11899_v39 }
 0xdb9   : > { %v6370_v52 = vmul.f32 %v6338_v17, %v11937_v10  ;;  %v6341_v15 = vmul.f32 %v6309_v38, %v11951_v61  ;;  %v6307_v1 = vmul.f32 0.044715, %v11963_v4  ;;  %v6404_v35 = vadd.f32 %v6372_v0, %v11919_v49  ;;  %v11983_v38 = vpop.eup %8880 }
 0xdba   : > { %v6331_v0 = vmul.f32 %v6299_v2, %v11944_v42  ;;  %v8883_v37 = vpop.eup %8882  ;;  %v6473_v36 = vadd.f32 1.0, %v11939_v30 }
 0xdbb   : > { %v6373_v48 = vmul.f32 %v6341_v15, %v11951_v61  ;;  %v6339_v22 = vmul.f32 %v6307_v1, %v11963_v4  ;;  %v6436_v56 = vmul.f32 0.7978846, %v6404_v35  ;;  %v6402_v17 = vadd.f32 %v6370_v52, %v11937_v10  ;;  %v8885_v13 = vpop.eup %8884 }
 0xdbc   : > { %v6330_v1 = vmul.f32 %v6298_v32, %v11926_v54  ;;  %v6432_v35 = vmul.f32 0.7978846, %v6400_v59  ;;  %v11992_v52 = vmul.f32 %v6474_v3, %v11872_v60  ;;  %v6431_v3 = vmul.f32 0.7978846, %v6399_v58 }
 0xdbd   : > { %v6371_v20 = vmul.f32 %v6339_v22, %v11963_v4  ;;  %v6405_v45 = vadd.f32 %v6373_v48, %v11951_v61  ;;  %8886 = vtanh.f32 %v6436_v56  ;;  %v6434_v15 = vmul.f32 0.7978846, %v6402_v17 }
 0xdbe   : > { %v6295_v22 = vmul.f32 0.044715, %v11911_v23  ;;  %v6363_v56 = vmul.f32 %v6331_v0, %v11944_v42  ;;  %v6536_v59 = vpack.c.bf16 %v11995_v18, %v11992_v52  ;;  %v6294_v32 = vmul.f32 0.044715, %v11889_v11  ;;  %v8629_v18 = vld [vmem:[%s12278_s16 + $0x50] ss:$8 sps:$4 sm:$0xff]  }
 0xdbf   : > { %v6437_v2 = vmul.f32 0.7978846, %v6405_v45  ;;  %v6403_v16 = vadd.f32 %v6371_v20, %v11963_v4  ;;  %8888 = vtanh.f32 %v6434_v15  ;;  %v6472_v48 = vadd.f32 1.0, %v11921_v31 }
 0xdc0   : > { %8890 = vtanh.f32 %v6433_v27  ;;  %v6362_v17 = vmul.f32 %v6330_v1, %v11926_v54  ;;  %v6430_v0 = vmul.f32 0.7978846, %v6398_v34  ;;  %v6396_v27 = vadd.f32 %v6364_v19, %v11895_v63 }
 0xdc1   : > { %8892 = vtanh.f32 %v6437_v2  ;;  %v6435_v60 = vmul.f32 0.7978846, %v6403_v16  ;;  %v6361_v20 = vmul.f32 %v11933_v24, %v11876_v26  ;;  %v6327_v58 = vmul.f32 %v6295_v22, %v11911_v23 }
 0xdc2   : > { %8894 = vtanh.f32 %v6432_v35  ;;  %v12013_v62 = vmul.f32 %v6472_v48, %v11799_v55  ;;  %v12016_v45 = vmul.f32 %v6473_v36, %v11855_v5  ;;  %v6429_v31 = vmul.f32 0.7978846, %v6397_v44 }
 0xdc3   : > { %8896 = vtanh.f32 %v6435_v60  ;;  %v6395_v30 = vadd.f32 %v6363_v56, %v11944_v42  ;;  %v6470_v15 = vadd.f32 1.0, %v11930_v47  ;;  %v6360_v19 = vmul.f32 %v11907_v28, %v11861_v46 }
 0xdc4   : > { %8898 = vtanh.f32 %v6431_v3  ;;  %v6535_v24 = vpack.c.bf16 %v12016_v45, %v12013_v62  ;;  %v6471_v55 = vadd.f32 1.0, %v11953_v33  ;;  %v6326_v1 = vmul.f32 %v6294_v32, %v11889_v11  ;;  %v8632_v62 = vld [vmem:[%s12278_s16 + $0x60] ss:$8 sps:$4 sm:$0xff]   ;;  %v8637_v45 = vld [vmem:[%s12278_s16 + $0x74] ss:$8 sps:$4 sm:$0xff]  }
 0xdc5   : > { %8900 = vtanh.f32 %v11884_v29  ;;  %v6428_v5 = vmul.f32 0.7978846, %v6396_v27  ;;  %v6394_v35 = vadd.f32 %v6362_v17, %v11926_v54  ;;  %v6359_v2 = vmul.f32 %v6327_v58, %v11911_v23 }
 0xdc6   : > { %8902 = vtanh.f32 %v6430_v0  ;;  %v6393_v47 = vadd.f32 %v6361_v20, %v11876_v26  ;;  %v12031_v29 = vmul.f32 %v6470_v15, %v11851_v12  ;;  %v12034_v28 = vmul.f32 %v6471_v55, %v11866_v43 }
 0xdc7   : > { %v6484_v16 = vadd.f32 1.0, %v8879_v53  ;;  %v6485_v34 = vadd.f32 1.0, %v8883_v37  ;;  %8904 = vtanh.f32 %v6429_v31  ;;  %v6427_v33 = vmul.f32 0.7978846, %v6395_v30 }
 0xdc8   : > { %8906 = vtanh.f32 %v11881_v8  ;;  %v6260_v56 = vmul.f32 0.5, %v11773_v50  ;;  %v6392_v60 = vadd.f32 %v6360_v19, %v11861_v46  ;;  %v6534_v3 = vpack.c.bf16 %v12034_v28, %v12031_v29 }
 0xdc9   : > { %v6358_v12 = vmul.f32 %v6326_v1, %v11889_v11  ;;  %v6261_v44 = vmul.f32 0.5, %v11786_v21  ;;  %8908 = vtanh.f32 %v6428_v5  ;;  %v6426_v43 = vmul.f32 0.7978846, %v6394_v35 }
 0xdca   : > { %v8887_v22 = vpop.eup %8886  ;;  %v6258_v37 = vmul.f32 0.5, %v11778_v9  ;;  %v6259_v32 = vmul.f32 0.5, %v11813_v7  ;;  %v6425_v48 = vmul.f32 0.7978846, %v6393_v47  ;;  %v6391_v8 = vadd.f32 %v6359_v2, %v11911_v23 }
 0xdcb   : > { %v6500_v36 = vadd.f32 1.0, %v8887_v22  ;;  %v6516_v17 = vmul.f32 %v6484_v16, %v6260_v56  ;;  %v6517_v0 = vmul.f32 %v6485_v34, %v6261_v44  ;;  %8910 = vtanh.f32 %v6427_v33 }
 0xdcc   : > { %v8889_v53 = vpop.eup %8888  ;;  %v6276_v20 = vmul.f32 0.5, %v11919_v49  ;;  %v6277_v21 = vmul.f32 0.5, %v11951_v61  ;;  %v6483_v58 = vadd.f32 1.0, %v8885_v13  ;;  %v6424_v31 = vmul.f32 0.7978846, %v6392_v60 }
 0xdcd   : > { %v8891_v50 = vpop.eup %8890  ;;  %v6498_v9 = vadd.f32 1.0, %v8889_v53  ;;  %8912 = vtanh.f32 %v6426_v43  ;;  %v6390_v7 = vadd.f32 %v6358_v12, %v11889_v11  ;;  %v6274_v55 = vmul.f32 0.5, %v11937_v10 }
 0xdce   : > { %v8893_v27 = vpop.eup %8892  ;;  %v6275_v1 = vmul.f32 0.5, %v11963_v4  ;;  %8914 = vtanh.f32 %v6425_v48  ;;  %v6423_v5 = vmul.f32 0.7978846, %v6391_v8  ;;  %v6532_v35 = vmul.f32 %v6500_v36, %v6276_v20 }
 0xdcf   : > { %v8895_v30 = vpop.eup %8894  ;;  %v6501_v15 = vadd.f32 1.0, %v8893_v27  ;;  %v6497_v47 = vadd.f32 1.0, %v8891_v50  ;;  %v6482_v13 = vadd.f32 1.0, %v11983_v38  ;;  %v6273_v16 = vmul.f32 0.5, %v11892_v57 }
 0xdd0   : > { %v8897_v19 = vpop.eup %8896  ;;  %v6496_v34 = vadd.f32 1.0, %v8895_v30  ;;  %8916 = vtanh.f32 %v6424_v31  ;;  %v6530_v56 = vmul.f32 %v6498_v9, %v6274_v55  ;;  %v6422_v10 = vmul.f32 0.7978846, %v6390_v7 }
 0xdd1   : > { %v6533_v2 = vmul.f32 %v6501_v15, %v6277_v21  ;;  %v6499_v49 = vadd.f32 1.0, %v8897_v19  ;;  %v8899_v61 = vpop.eup %8898  ;;  %v6541_v4 = vpack.c.bf16 %v6517_v0, %v6516_v17  ;;  %v6515_v44 = vmul.f32 %v6483_v58, %v6259_v32  ;;  %v12456_v21 = vld [vmem:[#allocation19_spill] sm:$0xff]  ;;  %v12457_v19 = vld [vmem:[#allocation26_spill] sm:$0xff] }
 0xdd2   : > { %v8901_v33 = vpop.eup %8900  ;;  %v6272_v43 = vmul.f32 0.5, %v11869_v25  ;;  %v6481_v53 = vadd.f32 1.0, %v11971_v6  ;;  %v6529_v8 = vmul.f32 %v6497_v47, %v6273_v16  ;;  %v6495_v38 = vadd.f32 1.0, %v8899_v61  ;;  %v12458_v47 = vld [vmem:[#allocation24_spill] sm:$0xff] }
 0xdd3   : > { %v6549_v22 = vpack.c.bf16 %v6533_v2, %v6532_v35  ;;  %v6531_v60 = vmul.f32 %v6499_v49, %v6275_v1  ;;  %v8903_v12 = vpop.eup %8902  ;;  %8918 = vtanh.f32 %v6423_v5  ;;  %v6514_v50 = vmul.f32 %v6482_v13, %v6258_v37 }
 0xdd4   : > { %v8905_v57 = vpop.eup %8904  ;;  %v6257_v36 = vmul.f32 0.5, %v11767_v14  ;;  %v6480_v27 = vadd.f32 1.0, %v11965_v41  ;;  %v6528_v17 = vmul.f32 %v6496_v34, %v6272_v43  ;;  %v6271_v32 = vmul.f32 0.5, %v11904_v51 }
 0xdd5   : > { %7889 = vmatprep.subr.bf16.mxu0 %v6549_v22  ;;  %v6548_v48 = vpack.c.bf16 %v6531_v60, %v6530_v56  ;;  %v8907_v20 = vpop.eup %8906  ;;  %v6494_v25 = vadd.f32 1.0, %v8903_v12  ;;  %8920 = vtanh.f32 %v6422_v10  ;;  %v6540_v0 = vpack.c.bf16 %v6515_v44, %v6514_v50 }
 0xdd6   : > { %7890 = vmatpush3.bf16.msra.mxu0 %v6541_v4  ;;  %v8909_v6 = vpop.eup %8908  ;;  %v6256_v58 = vmul.f32 0.5, %v12456_v21  ;;  %v6513_v31 = vmul.f32 %v6481_v53, %v6257_v36  ;;  %v6479_v30 = vadd.f32 1.0, %v8901_v33  ;;  %v6547_v15 = vpack.c.bf16 %v6529_v8, %v6528_v17  ;;  %v12459_v17 = vld [vmem:[#allocation25_spill] sm:$0xff] }
 0xdd7   : > { %7891 = vmatprep.subr.bf16.mxu0 %v6548_v48  ;;  %v6270_v37 = vmul.f32 0.5, %v11899_v39  ;;  %v6527_v9 = vmul.f32 %v6495_v38, %v6271_v32  ;;  %v6493_v14 = vadd.f32 1.0, %v8905_v57  ;;  %v6255_v55 = vmul.f32 0.5, %v12457_v19  ;;  %v12460_v32 = vld [vmem:[#allocation21_spill] sm:$0xff] }
 0xdd8   : > { %v8911_v7 = vpop.eup %8910  ;;  %v6512_v41 = vmul.f32 %v6480_v27, %v6256_v58  ;;  %v6478_v1 = vadd.f32 1.0, %v8907_v20  ;;  %v6269_v5 = vmul.f32 0.5, %v11914_v40  ;;  %v6492_v35 = vadd.f32 1.0, %v8909_v6 }
 0xdd9   : > { %v6526_v51 = vmul.f32 %v6494_v25, %v6270_v37  ;;  %v6254_v61 = vmul.f32 0.5, %v12458_v47  ;;  %v6511_v13 = vmul.f32 %v6479_v30, %v6255_v55  ;;  %v6268_v34 = vmul.f32 0.5, %v11895_v63  ;;  %v6689_v55 = vpop.permute.xlu1 %6688 }
 0xdda   : > { %7892 = vmatpush3.bf16.msra.mxu0 %v6540_v0  ;;  %v8913_v2 = vpop.eup %8912  ;;  %v6539_v49 = vpack.c.bf16 %v6513_v31, %v6512_v41  ;;  %v6525_v33 = vmul.f32 %v6493_v14, %v6269_v5  ;;  %v6491_v22 = vadd.f32 1.0, %v8911_v7  ;;  %v6267_v12 = vmul.f32 0.5, %v11944_v42  ;;  %v6684_v14 = vpop.permute.xlu0 %6683 }
 0xddb   : > { %7893 = vmatprep.subr.bf16.mxu0 %v6547_v15  ;;  %v8915_v16 = vpop.eup %8914  ;;  %v6546_v39 = vpack.c.bf16 %v6527_v9, %v6526_v51  ;;  %v6510_v56 = vmul.f32 %v6478_v1, %v6254_v61  ;;  %v6524_v10 = vmul.f32 %v6492_v35, %v6268_v34  ;;  %v6490_v40 = vadd.f32 1.0, %v8913_v2  ;;  %v12463_v51 = vld [vmem:[#allocation23_spill] sm:$0xff]  ;;  %v12465_v61 = vld [vmem:[#allocation14_spill] sm:$0xff] }
 0xddc   : > { %v6266_v43 = vmul.f32 0.5, %v11926_v54  ;;  %v6523_v53 = vmul.f32 %v6491_v22, %v6267_v12  ;;  %v6489_v48 = vadd.f32 1.0, %v8915_v16  ;;  %v6265_v38 = vmul.f32 0.5, %v11876_v26 }
 0xddd   : > { %v8917_v60 = vpop.eup %8916  ;;  %v6538_v4 = vpack.c.bf16 %v6511_v13, %v6510_v56  ;;  %v6545_v44 = vpack.c.bf16 %v6525_v33, %v6524_v10  ;;  %v6264_v27 = vmul.f32 0.5, %v11861_v46  ;;  %v12461_v25 = vpack.c.bf16 %v12459_v17, %v12460_v32  ;;  %v12466_v33 = vld [vmem:[#allocation16_spill] sm:$0xff] }
 0xdde   : > { %7894 = vmatpush3.bf16.msra.mxu0 %v6539_v49  ;;  %v6522_v63 = vmul.f32 %v6490_v40, %v6266_v43  ;;  %v6488_v57 = vadd.f32 1.0, %v8917_v60  ;;  %v6521_v20 = vmul.f32 %v6489_v48, %v6265_v38  ;;  %v6263_v6 = vmul.f32 0.5, %v11911_v23  ;;  %v8626_v23 = vld [vmem:[%s12278_s16 + $0x40] ss:$8 sps:$4 sm:$0xff]   ;;  %v6694_v16 = vpop.permute.xlu0 %6693  ;;  %v6699_v60 = vpop.permute.xlu1 %6698 }
 0xddf   : > { %7895 = vmatprep.subr.bf16.mxu0 %v6546_v39  ;;  %v6262_v58 = vmul.f32 0.5, %v11889_v11  ;;  %v8631_v11 = vld [vmem:[%s12278_s16 + $0x54] ss:$8 sps:$4 sm:$0xff]   ;;  %v12462_v52 = vmov 0.0   ;;  %v12464_v49 = vld [vmem:[#allocation22_spill] sm:$0xff] }
 0xde0   : > { %v8919_v8 = vpop.eup %8918  ;;  %v6544_v36 = vpack.c.bf16 %v6523_v53, %v6522_v63  ;;  %v6520_v54 = vmul.f32 %v6488_v57, %v6264_v27  ;;  %v12468_v27 = vld [vmem:[#allocation17_spill] sm:$0xff] }
 0xde1   : > { %v6487_v42 = vadd.f32 1.0, %v8919_v8 }
 0xde2   : > { %7896 = vmatpush3.bf16.msra.mxu0 %v6538_v4  ;;  %v8921_v50 = vpop.eup %8920  ;;  %v6543_v21 = vpack.c.bf16 %v6521_v20, %v6520_v54  ;;  %v12467_v4 = vld [vmem:[#allocation15_spill] sm:$0xff]  ;;  %v6704_v63 = vpop.permute.xlu0 %6703 }
 0xde3   : > { %7897 = vmatprep.subr.bf16.mxu0 %v6545_v44  ;;  %v6486_v0 = vadd.f32 1.0, %v8921_v50  ;;  %v6519_v26 = vmul.f32 %v6487_v42, %v6263_v6  ;;  %v6709_v42 = vpop.permute.xlu1 %6708 }
 0xde5   : > { %v6518_v46 = vmul.f32 %v6486_v0, %v6262_v58 }
 0xde6   : > { %7898 = vmatpush3.bf16.msra.mxu0 %v12461_v25 }
 0xde7   : > { %7899 = vmatprep.subr.bf16.mxu0 %v6544_v36  ;;  %v6542_v31 = vpack.c.bf16 %v6519_v26, %v6518_v46  ;;  %v12469_v26 = vld [vmem:[#allocation20_spill] sm:$0xff] }
 0xdea   : > { %7900 = vmatpush3.bf16.msra.mxu0 %v6536_v59  ;;  %v8634_v59 = vld [vmem:[%s12278_s16 + $0x64] ss:$8 sps:$4 sm:$0xff]  }
 0xdeb   : > { %7901 = vmatprep.subr.bf16.mxu0 %v6543_v21 }
 0xdee   : > { %7902 = vmatpush3.bf16.msra.mxu0 %v6535_v24  ;;  %v8635_v24 = vld [vmem:[%s12278_s16 + $0x70] ss:$8 sps:$4 sm:$0xff]  }
 0xdef   : > { %7903 = vmatprep.subr.bf16.mxu0 %v6542_v31  ;;  %v6714_v31 = vpop.permute.xlu0 %6713 }
 0xdf2   : > { %7904 = vmatpush3.bf16.msra.mxu0 %v6534_v3 }
 0xdf3   : > { %8318 = vmatprep.subr.bf16.mxu0 %v12462_v52 }
 0xdf5   : > { %6632 = vmatmul.mubr.bf16.vlgmr.msra.gmra.mxu0 %v8626_v23 }
 0xdf6   : > { %6639 = vmatprep.mubr.bf16.mxu0 %v8631_v11 }
 0xdfd   : > { %6640 = vmatmul.mubr.bf16.gmra.mxu0 %v8629_v18 }
 0xdfe   : > { %6647 = vmatprep.mubr.bf16.mxu0 %v8634_v59 }
 0xe05   : > { %6648 = vmatmul.mubr.bf16.gmra.mxu0 %v8632_v62 }
 0xe06   : > { %6655 = vmatprep.mubr.bf16.mxu0 %v8637_v45 }
 0xe0d   : > { %6656 = vmatmul.mubr.bf16.gmra.mxu0 %v8635_v24 }
 0xe0e   : > { %8326 = vmatprep.mubr.msk.bf16.mxu0 %vm9006_vm2, %v12462_v52 }
 0xeb5   : > { %v7905_v29 = vpop.f32.mrf.mxu0 }
 0xeb7   : > { %v7906_v28 = vpop.f32.mrf.mxu0 }
 0xeb8   : > { %v7907_v41 = vadd.f32 %v7906_v28, %v7905_v29  ;;  %v12470_v29 = vld [vmem:[#allocation18_spill] sm:$0xff] }
 0xeb9   : > { %v7908_v3 = vpop.f32.mrf.mxu0 }
 0xeba   : > { %v6664_v47 = vadd.f32 %v7907_v41, %v12464_v49 }
 0xebb   : > { %v7909_v30 = vpop.f32.mrf.mxu0 }
 0xebc   : > { %v7910_v9 = vadd.f32 %v7909_v30, %v7908_v3  ;;  %v6721_v12 = vadd.f32 %v6684_v14, %v6664_v47  ;;  %v6719_v3 = vpop.permute.xlu1 %6718 }
 0xebd   : > { %v7911_v15 = vpop.f32.mrf.mxu0 }
 0xebe   : > { %v6665_v5 = vadd.f32 %v7910_v9, %v12463_v51  ;;  %v6745_v57 = vsel %vm778_vm0, %v6721_v12, 0.0 }
 0xebf   : > { %v7912_v37 = vpop.f32.mrf.mxu0 }
 0xec0   : > { %v7913_v19 = vadd.f32 %v7912_v37, %v7911_v15  ;;  %v6722_v34 = vadd.f32 %v6689_v55, %v6665_v5 }
 0xec1   : > { %v7914_v7 = vpop.f32.mrf.mxu0 }
 0xec2   : > { %v6666_v13 = vadd.f32 %v7913_v19, %v12465_v61  ;;  %v6746_v53 = vsel %vm778_vm0, %v6722_v34, 0.0 }
 0xec3   : > { %v7915_v1 = vpop.f32.mrf.mxu0  ;;  %v6747_v17 = vadd.f32 %v6746_v53, %v6745_v57 }
 0xec4   : > { %v7916_v35 = vadd.f32 %v7915_v1, %v7914_v7  ;;  %v6723_v40 = vadd.f32 %v6694_v16, %v6666_v13 }
 0xec5   : > { %v7917_v2 = vpop.f32.mrf.mxu0 }
 0xec6   : > { %v6667_v22 = vadd.f32 %v7916_v35, %v12466_v33  ;;  %v6748_v50 = vsel %vm778_vm0, %v6723_v40, 0.0 }
 0xec7   : > { %v7918_v39 = vpop.f32.mrf.mxu0  ;;  %v6749_v0 = vadd.f32 %v6748_v50, %v6747_v17 }
 0xec8   : > { %v7919_v56 = vadd.f32 %v7918_v39, %v7917_v2  ;;  %v6724_v48 = vadd.f32 %v6699_v60, %v6667_v22 }
 0xec9   : > { %v7920_v10 = vpop.f32.mrf.mxu0 }
 0xeca   : > { %v6668_v44 = vadd.f32 %v7919_v56, %v12467_v4  ;;  %v6750_v25 = vsel %vm778_vm0, %v6724_v48, 0.0 }
 0xecb   : > { %v7921_v43 = vpop.f32.mrf.mxu0  ;;  %v6751_v23 = vadd.f32 %v6750_v25, %v6749_v0 }
 0xecc   : > { %v7922_v8 = vadd.f32 %v7921_v43, %v7920_v10  ;;  %v6725_v36 = vadd.f32 %v6704_v63, %v6668_v44 }
 0xecd   : > { %v7923_v38 = vpop.f32.mrf.mxu0 }
 0xece   : > { %v6669_v20 = vadd.f32 %v7922_v8, %v12468_v27  ;;  %v6752_v58 = vsel %vm778_vm0, %v6725_v36, 0.0 }
 0xecf   : > { %v7924_v32 = vpop.f32.mrf.mxu0  ;;  %v6753_v45 = vadd.f32 %v6752_v58, %v6751_v23 }
 0xed0   : > { %v6726_v54 = vadd.f32 %v6709_v42, %v6669_v20  ;;  %v7925_v6 = vadd.f32 %v7924_v32, %v7923_v38 }
 0xed1   : > { %v7926_v21 = vpop.f32.mrf.mxu0 }
 0xed2   : > { %v6670_v46 = vadd.f32 %v7925_v6, %v12469_v26  ;;  %v6754_v18 = vsel %vm778_vm0, %v6726_v54, 0.0 }
 0xed3   : > { %v7927_v11 = vpop.f32.mrf.mxu0  ;;  %v6755_v30 = vadd.f32 %v6754_v18, %v6753_v45 }
 0xed4   : > { %v6727_v59 = vadd.f32 %v6714_v31, %v6670_v46  ;;  %v7928_v62 = vadd.f32 %v7927_v11, %v7926_v21  ;;  %v6818_v46 = vpop.permute.xlu0 %6817  ;;  %v6823_v31 = vpop.permute.xlu1 %6822 }
 0xed6   : > { %v6756_v24 = vsel %vm778_vm0, %v6727_v59, 0.0  ;;  %v6671_v28 = vadd.f32 %v7928_v62, %v12470_v29 }
 0xed7   : > { %v6757_v37 = vadd.f32 %v6756_v24, %v6755_v30 }
 0xed8   : > { %v6728_v15 = vadd.f32 %v6719_v3, %v6671_v28  ;;  %v6866_v23 = vpop.permute.xlu0 %6865  ;;  %v6828_v11 = vpop.permute.xlu1 %6827 }
 0xeda   : > { %v6758_v9 = vsel %vm778_vm0, %v6728_v15, 0.0 }
 0xedb   : > { %v6759_v14 = vadd.f32 %v6758_v9, %v6757_v37 }
 0xedc   : > { %v6871_v18 = vpop.permute.xlu0 %6870  ;;  %v6833_v24 = vpop.permute.xlu1 %6832 }
 0xedd   : > { %v6760_v7 = vrot.slane %v6759_v14, 4 }
 0xedf   : > { %v6761_v41 = vadd.f32 %v6760_v7, %v6759_v14 }
 0xee0   : > { %v6876_v28 = vpop.permute.xlu0 %6875  ;;  %v6838_v37 = vpop.permute.xlu1 %6837 }
 0xee1   : > { %v6762_v19 = vrot.slane %v6761_v41, 2 }
 0xee3   : > { %v6763_v55 = vadd.f32 %v6762_v19, %v6761_v41 }
 0xee4   : > { %v6881_v41 = vpop.permute.xlu0 %6880 }
 0xee5   : > { %v6764_v1 = vrot.slane %v6763_v55, 1 }
 0xee7   : > { %v6765_v51 = vadd.f32 %v6764_v1, %v6763_v55 }
 0xee9   : > { %v6766_v5 = vmul.f32 0.015625, %v6765_v51  ;;  %v6843_v51 = vpop.permute.xlu1 %6842 }
 0xeeb   : > { %v6767_v35 = vsub.f32 %v6721_v12, %v6766_v5  ;;  %v6768_v2 = vsub.f32 %v6722_v34, %v6766_v5  ;;  %v6769_v49 = vsub.f32 %v6723_v40, %v6766_v5  ;;  %v6770_v47 = vsub.f32 %v6724_v48, %v6766_v5 }
 0xeec   : > { %v6771_v61 = vsub.f32 %v6725_v36, %v6766_v5  ;;  %v6772_v33 = vsub.f32 %v6726_v54, %v6766_v5  ;;  %v6773_v4 = vsub.f32 %v6727_v59, %v6766_v5  ;;  %v6774_v12 = vsub.f32 %v6728_v15, %v6766_v5  ;;  %v6886_v5 = vpop.permute.xlu0 %6885 }
 0xeed   : > { %v6775_v13 = vmul.f32 %v6767_v35, %v6767_v35  ;;  %v6776_v16 = vmul.f32 %v6768_v2, %v6768_v2  ;;  %v6777_v39 = vmul.f32 %v6769_v49, %v6769_v49  ;;  %v6778_v22 = vmul.f32 %v6770_v47, %v6770_v47 }
 0xeee   : > { %v6779_v44 = vmul.f32 %v6771_v61, %v6771_v61  ;;  %v6780_v34 = vmul.f32 %v6772_v33, %v6772_v33  ;;  %v6781_v8 = vmul.f32 %v6773_v4, %v6773_v4  ;;  %v6782_v57 = vmul.f32 %v6774_v12, %v6774_v12 }
 0xeef   : > { %v6783_v56 = vsel %vm778_vm0, %v6775_v13, 0.0  ;;  %v6784_v60 = vsel %vm778_vm0, %v6776_v16, 0.0  ;;  %v6786_v43 = vsel %vm778_vm0, %v6777_v39, 0.0  ;;  %v6788_v40 = vsel %vm778_vm0, %v6778_v22, 0.0  ;;  %v6848_v16 = vpop.permute.xlu1 %6847 }
 0xef0   : > { %v6785_v10 = vadd.f32 %v6784_v60, %v6783_v56  ;;  %v6790_v63 = vsel %vm778_vm0, %v6779_v44, 0.0  ;;  %v6792_v50 = vsel %vm778_vm0, %v6780_v34, 0.0  ;;  %v6794_v27 = vsel %vm778_vm0, %v6781_v8, 0.0  ;;  %v6891_v56 = vpop.permute.xlu0 %6890 }
 0xef1   : > { %v6796_v42 = vsel %vm778_vm0, %v6782_v57, 0.0 }
 0xef2   : > { %v6787_v53 = vadd.f32 %v6786_v43, %v6785_v10 }
 0xef3   : > { %v6853_v44 = vpop.permute.xlu1 %6852 }
 0xef4   : > { %v6789_v48 = vadd.f32 %v6788_v40, %v6787_v53  ;;  %v6896_v43 = vpop.permute.xlu0 %6895 }
 0xef6   : > { %v6791_v38 = vadd.f32 %v6790_v63, %v6789_v48 }
 0xef7   : > { %v6901_v34 = vpop.permute.xlu1 %6900 }
 0xef8   : > { %v6793_v36 = vadd.f32 %v6792_v50, %v6791_v38 }
 0xefa   : > { %v6795_v20 = vadd.f32 %v6794_v27, %v6793_v36 }
 0xefc   : > { %v6797_v17 = vadd.f32 %v6796_v42, %v6795_v20 }
 0xefe   : > { %v6798_v32 = vrot.slane %v6797_v17, 4 }
 0xf00   : > { %v6799_v25 = vadd.f32 %v6798_v32, %v6797_v17 }
 0xf02   : > { %v6800_v54 = vrot.slane %v6799_v25, 2 }
 0xf04   : > { %v6801_v6 = vadd.f32 %v6800_v54, %v6799_v25 }
 0xf06   : > { %v6802_v0 = vrot.slane %v6801_v6, 1 }
 0xf08   : > { %v6803_v21 = vadd.f32 %v6802_v0, %v6801_v6 }
 0xf0a   : > { %v6804_v58 = vmul.f32 0.015625, %v6803_v21 }
 0xf0c   : > { %v6805_v26 = vadd.f32 1e-05, %v6804_v58 }
 0xf0e   : > { %8922 = vrsqrt.f32 %v6805_v26 }
 0xf1b   : > { %v8923_v59 = vpop.eup %8922 }
 0xf1c   : > { %v6807_v62 = vmul.f32 %v8923_v59, %v6767_v35  ;;  %v6808_v45 = vmul.f32 %v8923_v59, %v6768_v2  ;;  %v6809_v15 = vmul.f32 %v8923_v59, %v6769_v49  ;;  %v6810_v7 = vmul.f32 %v8923_v59, %v6770_v47 }
 0xf1d   : > { %v6811_v1 = vmul.f32 %v8923_v59, %v6771_v61  ;;  %v6812_v13 = vmul.f32 %v8923_v59, %v6772_v33  ;;  %v6813_v22 = vmul.f32 %v8923_v59, %v6773_v4  ;;  %v6814_v60 = vmul.f32 %v8923_v59, %v6774_v12  ;;  %v7654_v33 = vld [vmem:[%s12282_s20] ss:$0 sm:$0xff] }
 0xf1e   : > { %v6855_v29 = vmul.f32 %v6818_v46, %v6807_v62  ;;  %v6856_v30 = vmul.f32 %v6823_v31, %v6808_v45  ;;  %v6857_v14 = vmul.f32 %v6828_v11, %v6809_v15  ;;  %v6858_v55 = vmul.f32 %v6833_v24, %v6810_v7 }
 0xf1f   : > { %v6859_v2 = vmul.f32 %v6838_v37, %v6811_v1  ;;  %v6860_v49 = vmul.f32 %v6843_v51, %v6812_v13  ;;  %v6861_v10 = vmul.f32 %v6848_v16, %v6813_v22  ;;  %v6862_v61 = vmul.f32 %v6853_v44, %v6814_v60 }
 0xf20   : > { %v6903_v3 = vadd.f32 %v6866_v23, %v6855_v29  ;;  %v6904_v9 = vadd.f32 %v6871_v18, %v6856_v30  ;;  %v6905_v19 = vadd.f32 %v6876_v28, %v6857_v14  ;;  %v6906_v35 = vadd.f32 %v6881_v41, %v6858_v55  ;;  %v7655_v29 = vld [vmem:[#allocation2] ss:$0 sm:$0xff] }
 0xf21   : > { %v6907_v39 = vadd.f32 %v6886_v5, %v6859_v2  ;;  %v6908_v47 = vadd.f32 %v6891_v56, %v6860_v49  ;;  %v6909_v53 = vadd.f32 %v6896_v43, %v6861_v10  ;;  %v6910_v40 = vadd.f32 %v6901_v34, %v6862_v61 }
 0xf22   : > { %6911 = vxpose.xlu0.b32.start [1/8] (short) (narrow) %v6903_v3, 64 }
 0xf26   : > { %6912 = vxpose.xlu0.b32.cont [2/8] (short) (narrow) %v6904_v9, 64 }
 0xf2a   : > { %6913 = vxpose.xlu0.b32.cont [3/8] (short) (narrow) %v6905_v19, 64 }
 0xf2e   : > { %6914 = vxpose.xlu0.b32.cont [4/8] (short) (narrow) %v6906_v35, 64 }
 0xf32   : > { %6915 = vxpose.xlu0.b32.cont [5/8] (short) (narrow) %v6907_v39, 64 }
 0xf36   : > { %6916 = vxpose.xlu0.b32.cont [6/8] (short) (narrow) %v6908_v47, 64 }
 0xf3a   : > { %6917 = vxpose.xlu0.b32.cont [7/8] (short) (narrow) %v6909_v53, 64 }
 0xf3e   : > { %6918 = vxpose.xlu0.b32.end [8/8] (short) (narrow) %v6910_v40, 64 }
 0xf9e   : > { %v12133_v48 = vpop.trf.xlu0 }
 0xf9f   : > { %v6950_v4 = vmul.f32 %v7654_v33, %v12133_v48 }
 0xfa1   : > { %v6958_v12 = vsel %vm778_vm0, %v6950_v4, 0.0 }
 0xfa2   : > { %v12137_v8 = vpop.trf.xlu0  ;;  %6959 = vadd.xlane.f32.xlu1 %v6958_v12 }
 0xfa3   : > { %v6951_v63 = vmul.f32 %v7654_v33, %v12137_v8 }
 0xfa5   : > { %v6961_v38 = vsel %vm778_vm0, %v6951_v63, 0.0 }
 0xfa6   : > { %v12141_v57 = vpop.trf.xlu0  ;;  %6962 = vadd.xlane.f32.xlu1 %v6961_v38 }
 0xfa7   : > { %v6952_v50 = vmul.f32 %v7654_v33, %v12141_v57 }
 0xfa9   : > { %v6964_v36 = vsel %vm778_vm0, %v6952_v50, 0.0 }
 0xfaa   : > { %v12145_v27 = vpop.trf.xlu0  ;;  %6965 = vadd.xlane.f32.xlu1 %v6964_v36 }
 0xfab   : > { %v6953_v20 = vmul.f32 %v7654_v33, %v12145_v27 }
 0xfad   : > { %v6967_v42 = vsel %vm778_vm0, %v6953_v20, 0.0 }
 0xfae   : > { %v12149_v17 = vpop.trf.xlu0  ;;  %6968 = vadd.xlane.f32.xlu1 %v6967_v42 }
 0xfaf   : > { %v6954_v32 = vmul.f32 %v7654_v33, %v12149_v17 }
 0xfb1   : > { %v6970_v25 = vsel %vm778_vm0, %v6954_v32, 0.0 }
 0xfb2   : > { %v12153_v54 = vpop.trf.xlu0  ;;  %6971 = vadd.xlane.f32.xlu1 %v6970_v25 }
 0xfb3   : > { %v6955_v6 = vmul.f32 %v7654_v33, %v12153_v54 }
 0xfb5   : > { %v6973_v0 = vsel %vm778_vm0, %v6955_v6, 0.0 }
 0xfb6   : > { %v12157_v21 = vpop.trf.xlu0  ;;  %6974 = vadd.xlane.f32.xlu1 %v6973_v0 }
 0xfb7   : > { %v6956_v58 = vmul.f32 %v7654_v33, %v12157_v21 }
 0xfb9   : > { %v6976_v26 = vsel %vm778_vm0, %v6956_v58, 0.0 }
 0xfba   : > { %v12161_v46 = vpop.trf.xlu0  ;;  %6977 = vadd.xlane.f32.xlu1 %v6976_v26 }
 0xfbb   : > { %v6957_v31 = vmul.f32 %v7654_v33, %v12161_v46 }
 0xfbd   : > { %v6979_v23 = vsel %vm778_vm0, %v6957_v31, 0.0 }
 0xfbe   : > { %6980 = vadd.xlane.f32.xlu0 %v6979_v23 }
0x102b   : > { %v6960_v11 = vpop.xlane.xlu1 %6959 }
0x102c   : > { %v6989_v9 = vadd.f32 %v7655_v29, %v6960_v11 }
0x102e   : > { %v6998_v2 = vsel %vm6997_vm3, %v6989_v9, -inf }
0x102f   : > { %v6963_v18 = vpop.xlane.xlu1 %6962 }
0x1030   : > { %v6990_v30 = vadd.f32 %v7655_v29, %v6963_v18 }
0x1032   : > { %v6999_v55 = vsel %vm6997_vm3, %v6990_v30, -inf }
0x1033   : > { %v6966_v59 = vpop.xlane.xlu1 %6965 }
0x1034   : > { %v6991_v14 = vadd.f32 %v7655_v29, %v6966_v59 }
0x1036   : > { %v7000_v13 = vsel %vm6997_vm3, %v6991_v14, -inf }
0x1037   : > { %v6969_v62 = vpop.xlane.xlu1 %6968 }
0x1038   : > { %v6992_v7 = vadd.f32 %v7655_v29, %v6969_v62 }
0x103a   : > { %v7001_v16 = vsel %vm6997_vm3, %v6992_v7, -inf }
0x103b   : > { %v6972_v45 = vpop.xlane.xlu1 %6971 }
0x103c   : > { %v6993_v15 = vadd.f32 %v7655_v29, %v6972_v45 }
0x103e   : > { %v7002_v1 = vsel %vm6997_vm3, %v6993_v15, -inf }
0x103f   : > { %v6975_v24 = vpop.xlane.xlu1 %6974  ;;  %v7003_v49 = vmax.f32 %v6998_v2, %v7002_v1 }
0x1040   : > { %v6994_v28 = vadd.f32 %v7655_v29, %v6975_v24 }
0x1042   : > { %v7004_v41 = vsel %vm6997_vm3, %v6994_v28, -inf }
0x1043   : > { %v6978_v3 = vpop.xlane.xlu1 %6977  ;;  %v7005_v35 = vmax.f32 %v6999_v55, %v7004_v41 }
0x1044   : > { %v6995_v37 = vadd.f32 %v7655_v29, %v6978_v3 }
0x1045   : > { %v7010_v60 = vmax.f32 %v7003_v49, %v7005_v35 }
0x1046   : > { %v7006_v51 = vsel %vm6997_vm3, %v6995_v37, -inf }
0x1047   : > { %v6981_v19 = vpop.xlane.xlu0 %6980  ;;  %v7007_v22 = vmax.f32 %v7000_v13, %v7006_v51 }
0x1048   : > { %v6996_v5 = vadd.f32 %v7655_v29, %v6981_v19 }
0x104a   : > { %v7008_v39 = vsel %vm6997_vm3, %v6996_v5, -inf }
0x104b   : > { %v7009_v56 = vmax.f32 %v7001_v16, %v7008_v39 }
0x104d   : > { %v7011_v47 = vmax.f32 %v7007_v22, %v7009_v56 }
0x104f   : > { %v7012_v10 = vmax.f32 %v7010_v60, %v7011_v47 }
0x1051   : > { %v7013_v44 = vrot.slane %v7012_v10, 4 }
0x1053   : > { %v7014_v43 = vmax.f32 %v7012_v10, %v7013_v44 }
0x1055   : > { %v7015_v61 = vrot.slane %v7014_v43, 2 }
0x1057   : > { %v7016_v53 = vmax.f32 %v7014_v43, %v7015_v61 }
0x1059   : > { %v7017_v34 = vrot.slane %v7016_v53, 1 }
0x105b   : > { %v7018_v40 = vmax.f32 %v7016_v53, %v7017_v34 }
0x105d   : > { %v7019_v33 = vsub.f32 %v6989_v9, %v7018_v40  ;;  %v7020_v4 = vsub.f32 %v6990_v30, %v7018_v40  ;;  %v7021_v12 = vsub.f32 %v6991_v14, %v7018_v40  ;;  %v7022_v63 = vsub.f32 %v6992_v7, %v7018_v40 }
0x105e   : > { %v7023_v38 = vsub.f32 %v6993_v15, %v7018_v40  ;;  %v7024_v42 = vsub.f32 %v6994_v28, %v7018_v40  ;;  %v7025_v25 = vsub.f32 %v6995_v37, %v7018_v40  ;;  %v7026_v0 = vsub.f32 %v6996_v5, %v7018_v40  ;;  %v8638_v40 = vld [vmem:[%s12284_s22 + $0x18] sm:$0xff]  }
0x105f   : > { %v7027_v50 = vmul.f32 1.442695, %v7019_v33  ;;  %v7029_v36 = vmul.f32 1.442695, %v7020_v4  ;;  %v7031_v20 = vmul.f32 1.442695, %v7021_v12  ;;  %8319 = vmatpush3.bf16.msra.mxu0 %v8638_v40 }
0x1060   : > { %v7033_v32 = vmul.f32 1.442695, %v7022_v63  ;;  %v7035_v6 = vmul.f32 1.442695, %v7023_v38  ;;  %v7037_v58 = vmul.f32 1.442695, %v7024_v42  ;;  %8320 = vmatprep.subr.bf16.mxu0 %v12462_v52 }
0x1061   : > { %8924 = vpow2.f32 %v7027_v50  ;;  %v7039_v26 = vmul.f32 1.442695, %v7025_v25  ;;  %v7041_v31 = vmul.f32 1.442695, %v7026_v0  ;;  %v8639_v33 = vld [vmem:[%s12284_s22 + $0x10] sm:$0xff]   ;;  %v8640_v4 = vld [vmem:[%s12284_s22 + $0x8] sm:$0xff]  }
0x1062   : > { %8926 = vpow2.f32 %v7029_v36  ;;  %v8641_v12 = vld [vmem:[%s12284_s22] sm:$0xff]  }
0x1063   : > { %8928 = vpow2.f32 %v7031_v20  ;;  %8321 = vmatpush3.bf16.msra.mxu0 %v8639_v33 }
0x1064   : > { %8930 = vpow2.f32 %v7033_v32  ;;  %8322 = vmatprep.subr.bf16.mxu0 %v12462_v52 }
0x1065   : > { %8932 = vpow2.f32 %v7035_v6 }
0x1066   : > { %8934 = vpow2.f32 %v7037_v58 }
0x1067   : > { %8936 = vpow2.f32 %v7039_v26  ;;  %8323 = vmatpush3.bf16.msra.mxu0 %v8640_v4 }
0x1068   : > { %8938 = vpow2.f32 %v7041_v31  ;;  %8324 = vmatprep.subr.bf16.mxu0 %v12462_v52 }
0x106b   : > { %8325 = vmatpush3.bf16.msra.mxu0 %v8641_v12 }
0x106e   : > { %v8925_v23 = vpop.eup %8924 }
0x106f   : > { %v8927_v11 = vpop.eup %8926  ;;  %v7043_v18 = vsel %vm6997_vm3, %v8925_v23, 0.0 }
0x1070   : > { %v8929_v59 = vpop.eup %8928  ;;  %v7044_v62 = vsel %vm6997_vm3, %v8927_v11, 0.0 }
0x1071   : > { %v8931_v45 = vpop.eup %8930  ;;  %v7045_v24 = vadd.f32 %v7044_v62, %v7043_v18  ;;  %v7046_v29 = vsel %vm6997_vm3, %v8929_v59, 0.0 }
0x1072   : > { %v8933_v28 = vpop.eup %8932  ;;  %v7048_v30 = vsel %vm6997_vm3, %v8931_v45, 0.0 }
0x1073   : > { %v7047_v3 = vadd.f32 %v7046_v29, %v7045_v24  ;;  %v8935_v15 = vpop.eup %8934  ;;  %v7050_v9 = vsel %vm6997_vm3, %v8933_v28, 0.0 }
0x1074   : > { %v8937_v14 = vpop.eup %8936  ;;  %v7052_v41 = vsel %vm6997_vm3, %v8935_v15, 0.0 }
0x1075   : > { %v7049_v37 = vadd.f32 %v7048_v30, %v7047_v3  ;;  %v8939_v19 = vpop.eup %8938  ;;  %v7054_v1 = vsel %vm6997_vm3, %v8937_v14, 0.0 }
0x1076   : > { %v7056_v5 = vsel %vm6997_vm3, %v8939_v19, 0.0 }
0x1077   : > { %v7051_v7 = vadd.f32 %v7050_v9, %v7049_v37 }
0x1079   : > { %v7053_v55 = vadd.f32 %v7052_v41, %v7051_v7 }
0x107b   : > { %v7055_v51 = vadd.f32 %v7054_v1, %v7053_v55 }
0x107d   : > { %v7057_v35 = vadd.f32 %v7056_v5, %v7055_v51 }
0x107f   : > { %v7058_v2 = vrot.slane %v7057_v35, 4 }
0x1081   : > { %v7059_v13 = vadd.f32 %v7058_v2, %v7057_v35 }
0x1083   : > { %v7060_v16 = vrot.slane %v7059_v13, 2 }
0x1085   : > { %v7061_v39 = vadd.f32 %v7060_v16, %v7059_v13 }
0x1087   : > { %v7062_v49 = vrot.slane %v7061_v39, 1 }
0x1089   : > { %v7063_v22 = vadd.f32 %v7062_v49, %v7061_v39 }
0x108b   : > { %8940 = vrcp.f32 %v7063_v22 }
0x1098   : > { %v8941_v56 = vpop.eup %8940 }
0x1099   : > { %v7065_v60 = vmul.f32 %v8941_v56, %v8925_v23  ;;  %v7066_v47 = vmul.f32 %v8941_v56, %v8927_v11  ;;  %v7067_v10 = vmul.f32 %v8941_v56, %v8929_v59  ;;  %v7068_v44 = vmul.f32 %v8941_v56, %v8931_v45 }
0x109a   : > { %v7069_v43 = vmul.f32 %v8941_v56, %v8933_v28  ;;  %v7070_v61 = vmul.f32 %v8941_v56, %v8935_v15  ;;  %v7071_v53 = vmul.f32 %v8941_v56, %v8937_v14  ;;  %v7072_v34 = vmul.f32 %v8941_v56, %v8939_v19  ;;  %v7151_v19 = vld [vmem:[%s12473_s24] sm:$0x1]  ;;  %s8946_s24 = sshll.u32 %s9007_s23, 4  ;;  %s8947_s24 = int_to_ptr.vmem [resolvable:$false] %s8946_s24 }
0x109b   : > { %7075 = vperm.xlu1 %8373, %v7065_v60   ;;  %s8948_s3 = scalar_lea.vmem %s8947_s24, 32  ;;  %p8949_p0 = scmp.lt.s32.totalorder %s12223_s21, %s8947_s24 }
0x109c   : > { %p8950_p1 = scmp.lt.s32.totalorder %s8948_s3, %s8942_s27 }
0x109e   : > { %p8951_p2 = por %p8950_p1, %p8949_p0 }
0x109f   : > { %7080 = vperm.xlu1 %8373, %v7066_v47  }
0x10a0   : > { %p8952_p3 = pnand %p8951_p2, %p8945_p13 }
0x10a3   : > { %7085 = vperm.xlu1 %8373, %v7067_v10  }
0x10a7   : > { %7090 = vperm.xlu1 %8373, %v7068_v44  }
0x10ab   : > { %7095 = vperm.xlu1 %8373, %v7069_v43  }
0x10af   : > { %7100 = vperm.xlu1 %8373, %v7070_v61  }
0x10b3   : > { %7105 = vperm.xlu1 %8373, %v7071_v53  }
0x10b7   : > { %7110 = vperm.xlu1 %8373, %v7072_v34  }
0x1116   : > { %v7076_v63 = vpop.permute.xlu1 %7075 }
0x1117   : > { %v7113_v42 = vmul.f32 %v7076_v63, %v12133_v48 }
0x1119   : > { %v7121_v58 = vsel %vm778_vm0, %v7113_v42, 0.0 }
0x111a   : > { %v7081_v38 = vpop.permute.xlu1 %7080 }
0x111b   : > { %v7114_v20 = vmul.f32 %v7081_v38, %v12137_v8 }
0x111d   : > { %v7122_v6 = vsel %vm778_vm0, %v7114_v20, 0.0 }
0x111e   : > { %v7086_v50 = vpop.permute.xlu1 %7085  ;;  %v7123_v31 = vadd.f32 %v7122_v6, %v7121_v58 }
0x111f   : > { %v7115_v32 = vmul.f32 %v7086_v50, %v12141_v57 }
0x1121   : > { %v7124_v52 = vsel %vm778_vm0, %v7115_v32, 0.0 }
0x1122   : > { %v7091_v36 = vpop.permute.xlu1 %7090  ;;  %v7125_v48 = vadd.f32 %v7124_v52, %v7123_v31 }
0x1123   : > { %v7116_v0 = vmul.f32 %v7091_v36, %v12145_v27 }
0x1125   : > { %v7126_v11 = vsel %vm778_vm0, %v7116_v0, 0.0 }
0x1126   : > { %v7096_v25 = vpop.permute.xlu1 %7095  ;;  %v7127_v18 = vadd.f32 %v7126_v11, %v7125_v48 }
0x1127   : > { %v7117_v26 = vmul.f32 %v7096_v25, %v12149_v17 }
0x1129   : > { %v7128_v57 = vsel %vm778_vm0, %v7117_v26, 0.0 }
0x112a   : > { %v7101_v23 = vpop.permute.xlu1 %7100  ;;  %v7129_v45 = vadd.f32 %v7128_v57, %v7127_v18 }
0x112b   : > { %v7118_v8 = vmul.f32 %v7101_v23, %v12153_v54 }
0x112d   : > { %v7130_v62 = vsel %vm778_vm0, %v7118_v8, 0.0 }
0x112e   : > { %v7106_v59 = vpop.permute.xlu1 %7105  ;;  %v7131_v17 = vadd.f32 %v7130_v62, %v7129_v45 }
0x112f   : > { %v7119_v27 = vmul.f32 %v7106_v59, %v12157_v21 }
0x1131   : > { %v7132_v24 = vsel %vm778_vm0, %v7119_v27, 0.0 }
0x1132   : > { %v7111_v29 = vpop.permute.xlu1 %7110  ;;  %v7133_v3 = vadd.f32 %v7132_v24, %v7131_v17 }
0x1133   : > { %v7120_v28 = vmul.f32 %v7111_v29, %v12161_v46 }
0x1135   : > { %v7134_v54 = vsel %vm778_vm0, %v7120_v28, 0.0 }
0x1136   : > { %v7135_v30 = vadd.f32 %v7134_v54, %v7133_v3 }
0x1138   : > { %v7136_v15 = vrot.slane %v7135_v30, 4 }
0x113a   : > { %v7137_v37 = vadd.f32 %v7136_v15, %v7135_v30 }
0x113c   : > { %v7138_v9 = vrot.slane %v7137_v37, 2 }
0x113e   : > { %v7139_v14 = vadd.f32 %v7138_v9, %v7137_v37 }
0x1140   : > { %v7140_v7 = vrot.slane %v7139_v14, 1 }
0x1142   : > { %v7141_v41 = vadd.f32 %v7140_v7, %v7139_v14 }
0x1144   : > { %v7142_v21 = vpack.c.bf16 %v7141_v41, %v7141_v41 }
0x1146   : > { %8327 = vmatmul.mubr.msk.bf16.vlgmr.msra.gmra.mxu0 %vm778_vm0, %v7142_v21 }
0x1206   : > { %v7213_v46 = vpop.f32.mrf.mxu0 }
0x1207   : > { %v7214_v55 = vadd.f32 %v7213_v46, %v7151_v19 }
0x1208   : > { %v8328_v1 = vpop.f32.mrf.mxu0 }
0x1209   : > { %7219 = vst [vmem:[%s731_s26] sm:$0x1] %v7214_v55 }
0x120a   : > { %v7216_v51 = vpop.f32.mrf.mxu0 }
0x120b   : > { %8955 = shalt.err (!%p8952_p3)
}
0x120c   : > { %s8956_s25 = scalar_lea.hbm %s12221_s5, 16  ;;  %s8960_s6 = scalar_lea.hbm %s12474_s4, 32 }
0x120d   : > { %p8957_p4 = scmp.ne.s32.totalorder %s12221_s5, %s8956_s25  ;;  %p8961_p9 = scmp.lt.s32.totalorder %s12221_s5, %s12474_s4 }
0x120e   : > { %p8962_p10 = scmp.lt.s32.totalorder %s8960_s6, %s8956_s25 }
0x120f   : > { %p8958_p7 = pnand %p8957_p4, %p9174_p5 }
0x1210   : > { %p8963_p11 = por %p8962_p10, %p8961_p9 }
0x1211   : > { %p8959_p8 = pneg %p8958_p7 }
0x1213   : > { %p8964_p12 = pnand %p8963_p11, %p8959_p8 }
0x1215   : > { %8967 = shalt.err (!%p8964_p12)
}
0x1216   : > { %8330 = dma.vmem_to_hbm [thread:$0]  (%p9174_p5), %s12223_s21, 16, %s12221_s5, %s7221_s0   ;;  %v8329_v5 = vpop.f32.mrf.mxu0 }
0x1217 PF: > { %s12475_s27 = sld [smem:[#allocation8_spill]] }
0x1218   : > { %s12476_s24 = sld [smem:[#allocation6_spill]] }
0x121d   : > { %p8336_p13 = scmp.ge.s32.totalorder %s12475_s27, 2 }
0x121e   : > { %s7245_s1 = sand.u32 1, %s12476_s24  }
0x121f   : > { %p8333_p0 = pnand %p8336_p13, %p9178_p6  ;;  %s7246_s7 = scalar_lea.sflag [#allocation4], %s7245_s1 }
0x1221   : > { %p8334_p1 = pneg %p8333_p0 }
0x1223   : > { %8985 = dma.done.wait (%p8334_p1), %s7246_s7, 16  }
0x1224   : > { %8987 = vsyncadd (%p8334_p1), %s7246_s7, 4294967280  ;;  %s12478_s2 = sld [smem:[#allocation10_spill]]  ;;  %s12481_s27 = smov %s8994_s28 }
0x1225   : > { %s12479_s25 = sld [smem:[#allocation7_spill]] }
0x1226   : > { %s12480_s6 = sld [smem:[#allocation11_spill]] }
0x122a   : > { %p36_p2 = scmp.ge.s32.totalorder %s12478_s2, 4  }
0x122b   : > { %s12482_s28 = smov %s12479_s25 }
0x122c   :  { %38 = sbr.rel (!%p36_p2) target bundleno = 15 (0xf), region = 167 }
0x1231   :  { %7250 = vsyncpa [#allocation4], 1 }
0x1232   :  { %7252 = vsyncpa [#allocation4 + $0x1], 1 }

</bundles_post_ra>
